<compile_context>
chip_gen: v6e
topology: v6e:2x2x1
jax: 0.10.0
libtpu: 0.0.40
codegen_flags: <defaults>
</compile_context>

<pallas_src>
import functools

import jax
import jax.numpy as jnp
from jax import lax
from jax.experimental import pallas as pl
from jax.experimental.pallas import tpu as pltpu

BN_EPS = 1e-5
ROW_TILE = 256      # M tile for the gridded (no-BN, no-resid) layers
LANE = 128


def _round_up(x, m):
    return ((x + m - 1) // m) * m


# --------------------------- shared layer math --------------------------------
def _layer_math(p, w, gamma, beta, resid, *, use_bn, activation, true_m):
    # bf16 operands -> MXU with f32 accumulation; everything after is f32.
    y = jnp.dot(p, w, preferred_element_type=jnp.float32)
    if use_bn:
        # Training-mode BatchNorm2d (biased batch variance) over the *true*
        # N*H*W rows.  Padded rows of `p` are all-zero, so they contribute
        # nothing to the sums and the statistics are exact.
        inv_m = 1.0 / float(true_m)
        mean = jnp.sum(y, axis=0, keepdims=True) * inv_m
        var = jnp.sum(y * y, axis=0, keepdims=True) * inv_m - mean * mean
        y = (y - mean) * lax.rsqrt(var + BN_EPS) * gamma + beta
    if activation == "relu":
        y = jnp.maximum(y, 0.0)
    elif activation == "tanh":
        y = jnp.tanh(y)
    if resid is not None:
        y = y + resid
    return y


# ------------------------------ Pallas kernels ---------------------------------
def _tile_kernel(p_ref, w_ref, out_ref, *, activation):
    # BN-free, residual-free layer: each M tile is independent ("parallel").
    out_ref[...] = _layer_math(p_ref[...], w_ref[...], None, None, None,
                               use_bn=False, activation=activation, true_m=1)


def _fused_kernel(*refs, use_bn, has_resid, activation, true_m):
    # Single-block layer: matmul + BN (batch stats over all rows) + act + skip.
    out_ref = refs[-1]
    p_ref, w_ref = refs[0], refs[1]
    idx = 2
    gamma = beta = resid = None
    if use_bn:
        gamma, beta = refs[idx][...], refs[idx + 1][...]
        idx += 2
    if has_resid:
        resid = refs[idx][...]
    out_ref[...] = _layer_math(p_ref[...], w_ref[...], gamma, beta, resid,
                               use_bn=use_bn, activation=activation,
                               true_m=true_m)


# ---------------------------- layer dispatcher ---------------------------------
def _layer(patches, w2d, gamma, beta, resid, *, use_bn, activation, use_pallas):
    """patches: (M, K) f32, w2d: (K, Co) f32, resid: (N,OH,OW,Co) or None."""
    M, K = patches.shape
    Co = w2d.shape[1]

    # Lane-dense output for tiny channel counts (deconv_4: Co=3 -> 128).
    co_pad = Co if Co >= 8 else LANE
    if co_pad != Co:
        w2d = jnp.pad(w2d, ((0, 0), (0, co_pad - Co)))

    gridded = (not use_bn) and (resid is None)
    mp = _round_up(M, ROW_TILE) if gridded else _round_up(M, 16)

    p_bf = jnp.pad(patches.astype(jnp.bfloat16), ((0, mp - M), (0, 0)))
    w_bf = w2d.astype(jnp.bfloat16)

    gamma2 = beta2 = None
    if use_bn:
        gamma2 = gamma.reshape(1, Co).astype(jnp.float32)
        beta2 = beta.reshape(1, Co).astype(jnp.float32)
        if co_pad != Co:
            gamma2 = jnp.pad(gamma2, ((0, 0), (0, co_pad - Co)))
            beta2 = jnp.pad(beta2, ((0, 0), (0, co_pad - Co)))

    resid_p = None
    if resid is not None:
        resid_p = jnp.pad(resid.reshape(M, Co).astype(jnp.float32),
                          ((0, mp - M), (0, co_pad - Co)))

    if not use_pallas:
        # Pure-jnp reference of exactly the same (bf16-operand) math.
        y = _layer_math(p_bf, w_bf, gamma2, beta2, resid_p,
                        use_bn=use_bn, activation=activation, true_m=M)
        return y[:M, :Co]

    in_bytes = p_bf.size * 2 + w_bf.size * 2
    if use_bn:
        in_bytes += (gamma2.size + beta2.size) * 4
    if resid_p is not None:
        in_bytes += resid_p.size * 4
    out_bytes = mp * co_pad * 4
    cost = pl.CostEstimate(flops=int(2 * mp * K * co_pad),
                           transcendentals=int(mp * co_pad
                                               if activation == "tanh" else 0),
                           bytes_accessed=int(in_bytes + out_bytes))
    vmem_limit = int(min(48 * 2**20, max(8 * 2**20, 4 * (in_bytes + out_bytes))))
    out_shape = jax.ShapeDtypeStruct((mp, co_pad), jnp.float32)

    if gridded:
        grid = (mp // ROW_TILE,)
        out = pl.pallas_call(
            functools.partial(_tile_kernel, activation=activation),
            out_shape=out_shape,
            grid=grid,
            in_specs=[pl.BlockSpec((ROW_TILE, K), lambda i: (i, 0)),
                      pl.BlockSpec((K, co_pad), lambda i: (0, 0))],
            out_specs=pl.BlockSpec((ROW_TILE, co_pad), lambda i: (i, 0)),
            compiler_params=pltpu.CompilerParams(
                dimension_semantics=("parallel",),
                vmem_limit_bytes=vmem_limit),
            cost_estimate=cost,
        )(p_bf, w_bf)
    else:
        vmem = pl.BlockSpec(memory_space=pltpu.MemorySpace.VMEM)
        args = [p_bf, w_bf]
        if use_bn:
            args += [gamma2, beta2]
        if resid_p is not None:
            args.append(resid_p)
        out = pl.pallas_call(
            functools.partial(_fused_kernel, use_bn=use_bn,
                              has_resid=resid_p is not None,
                              activation=activation, true_m=M),
            out_shape=out_shape,
            in_specs=[vmem] * len(args),
            out_specs=vmem,
            compiler_params=pltpu.CompilerParams(vmem_limit_bytes=vmem_limit),
            cost_estimate=cost,
        )(*args)
    return out[:M, :Co]


# --------------------------------- JAX glue ------------------------------------
def _im2col(x, kh, kw, stride):
    # x: (N, H, W, C) -> (N*OH*OW, kh*kw*C); column order ((kh*kw), C), matching
    # the reordered PyTorch weights below.
    N, H, W, C = x.shape
    oh = (H - kh) // stride + 1
    ow = (W - kw) // stride + 1
    cols = []
    for i in range(kh):
        for j in range(kw):
            cols.append(x[:, i:i + stride * oh:stride, j:j + stride * ow:stride, :])
    patches = jnp.stack(cols, axis=3)                 # (N, OH, OW, kh*kw, C)
    return patches.reshape(N * oh * ow, kh * kw * C), oh, ow


def _conv_block(x, w_oihw, gamma, beta, *, stride, use_bn, activation,
                resid=None, use_pallas=True):
    # w_oihw: PyTorch Conv2d weight (Cout, Cin, KH, KW), bias=False.
    Co, Ci, KH, KW = w_oihw.shape
    w2d = jnp.transpose(w_oihw, (2, 3, 1, 0)).reshape(KH * KW * Ci, Co)
    patches, oh, ow = _im2col(x, KH, KW, stride)
    out = _layer(patches, w2d, gamma, beta, resid, use_bn=use_bn,
                 activation=activation, use_pallas=use_pallas)
    return out.reshape(x.shape[0], oh, ow, Co)


def _deconv_block(x, w_iohw, gamma, beta, *, stride, use_bn, activation,
                  resid=None, use_pallas=True):
    # w_iohw: PyTorch ConvTranspose2d weight (Cin, Cout, KH, KW), bias=False.
    # Exact rewrite: stride-1 conv of the dilated, (K-1)-padded input with the
    # spatially flipped kernel.
    Ci, Co, KH, KW = w_iohw.shape
    N, H, W, C = x.shape
    dh, dw = (H - 1) * stride + 1, (W - 1) * stride + 1
    xd = jnp.zeros((N, dh, dw, C), x.dtype).at[:, ::stride, ::stride, :].set(x)
    xp = jnp.pad(xd, ((0, 0), (KH - 1, KH - 1), (KW - 1, KW - 1), (0, 0)))
    w_flip = w_iohw[:, :, ::-1, ::-1]
    w2d = jnp.transpose(w_flip, (2, 3, 0, 1)).reshape(KH * KW * Ci, Co)
    patches, oh, ow = _im2col(xp, KH, KW, 1)
    out = _layer(patches, w2d, gamma, beta, resid, use_bn=use_bn,
                 activation=activation, use_pallas=use_pallas)
    return out.reshape(N, oh, ow, Co)


# ------------------------------- parameters ------------------------------------
def init_params(key):
    ks = jax.random.split(key, 8)
    w = lambda k, s: 0.02 * jax.random.normal(k, s, jnp.float32)
    p = {
        "conv_1":   w(ks[0], (32, 1, 4, 4)),
        "conv_2":   w(ks[1], (64, 32, 3, 3)),
        "conv_3":   w(ks[2], (128, 64, 3, 3)),
        "conv_4":   w(ks[3], (128, 128, 3, 3)),
        "deconv_1": w(ks[4], (128, 128, 3, 3)),
        "deconv_2": w(ks[5], (128, 64, 3, 3)),
        "deconv_3": w(ks[6], (64, 32, 3, 3)),
        "deconv_4": w(ks[7], (32, 3, 4, 4)),
    }
    # BatchNorm affine params, PyTorch default init (weight=1, bias=0).
    # (conv_1_bn exists in __init__ but is unused in forward, so it is omitted.)
    for name, c in [("conv_2_bn", 64), ("conv_3_bn", 128), ("conv_4_bn", 128),
                    ("deconv_1_bn", 128), ("deconv_2_bn", 64), ("deconv_3_bn", 32)]:
        p[name + "_g"] = jnp.ones((c,), jnp.float32)
        p[name + "_b"] = jnp.zeros((c,), jnp.float32)
    return p


# --------------------------------- forward -------------------------------------
def generator_forward(params, x_nchw, *, use_pallas=True):
    x = jnp.transpose(x_nchw, (0, 2, 3, 1)).astype(jnp.float32)   # NCHW -> NHWC
    kw = dict(use_pallas=use_pallas)
    x1 = _conv_block(x,  params["conv_1"], None, None,
                     stride=2, use_bn=False, activation="relu", **kw)
    x2 = _conv_block(x1, params["conv_2"], params["conv_2_bn_g"], params["conv_2_bn_b"],
                     stride=2, use_bn=True, activation="relu", **kw)
    x3 = _conv_block(x2, params["conv_3"], params["conv_3_bn_g"], params["conv_3_bn_b"],
                     stride=2, use_bn=True, activation="relu", **kw)
    x4 = _conv_block(x3, params["conv_4"], params["conv_4_bn_g"], params["conv_4_bn_b"],
                     stride=2, use_bn=True, activation="relu", **kw)
    x5 = _deconv_block(x4, params["deconv_1"], params["deconv_1_bn_g"], params["deconv_1_bn_b"],
                       stride=2, use_bn=True, activation="relu", resid=x3, **kw)
    x6 = _deconv_block(x5, params["deconv_2"], params["deconv_2_bn_g"], params["deconv_2_bn_b"],
                       stride=2, use_bn=True, activation="relu", resid=x2, **kw)
    x7 = _deconv_block(x6, params["deconv_3"], params["deconv_3_bn_g"], params["deconv_3_bn_b"],
                       stride=2, use_bn=True, activation="relu", resid=x1, **kw)
    x8 = _deconv_block(x7, params["deconv_4"], None, None,
                       stride=2, use_bn=False, activation="tanh", **kw)
    return jnp.transpose(x8, (0, 3, 1, 2))                        # NHWC -> NCHW


if __name__ == "__main__":
    key = jax.random.PRNGKey(0)
    pkey, xkey = jax.random.split(key)
    params = init_params(pkey)

    # Smallest spatial size where every skip connection lines up exactly:
    # 32 -> 15 -> 7 -> 3 -> 1 -> 3 -> 7 -> 15 -> 32.
    x = jax.random.normal(xkey, (2, 1, 32, 32), jnp.float32)

    fwd = jax.jit(functools.partial(generator_forward, use_pallas=True))
    out = jax.block_until_ready(fwd(params, x))

    ref = jax.block_until_ready(
        jax.jit(functools.partial(generator_forward, use_pallas=False))(params, x))

    assert out.shape == (2, 3, 32, 32), out.shape
    assert bool(jnp.all(jnp.isfinite(out)))
    max_diff = float(jnp.max(jnp.abs(out - ref)))
    assert bool(jnp.allclose(out, ref, atol=2e-2, rtol=2e-2)), max_diff
    print("KERNEL_OK")
</pallas_src>

<mosaic_0001>
module attributes {stable_mosaic.version = 11 : i64} {
  func.func @_tile_kernel(%arg0: i32, %arg1: memref<256x16xbf16, #tpu.memory_space<vmem>>, %arg2: memref<16x32xbf16, #tpu.memory_space<vmem>>, %arg3: memref<256x32xf32, #tpu.memory_space<vmem>>) attributes {dimension_semantics = [#tpu.dimension_semantics<parallel>], iteration_bounds = array<i64: 2>, scalar_prefetch = 0 : i64, scratch_operands = 0 : i64, tpu.core_type = #tpu.core_type<tc>, window_params = [{transform_indices = @transform_0, window_bounds = array<i64: 256, 16>}, {pipeline_mode = #tpu.pipeline_mode<synchronous>, transform_indices = @transform_1, window_bounds = array<i64: 16, 32>}, {transform_indices = @transform_2, window_bounds = array<i64: 256, 32>}]} {
    %c0 = arith.constant 0 : index
    %c0_0 = arith.constant 0 : index
    %0 = vector.load %arg1[%c0, %c0_0] : memref<256x16xbf16, #tpu.memory_space<vmem>>, vector<256x16xbf16>
    %c0_1 = arith.constant 0 : index
    %c0_2 = arith.constant 0 : index
    %1 = vector.load %arg2[%c0_1, %c0_2] : memref<16x32xbf16, #tpu.memory_space<vmem>>, vector<16x32xbf16>
    %cst = arith.constant dense<0.000000e+00> : vector<256x32xf32>
    %2 = tpu.matmul %0, %1, %cst {dimension_numbers = #tpu.dot_dimension_numbers<[1], [0], [0], [1], [0, 0, 1, 1], [], []>} : vector<256x16xbf16>, vector<16x32xbf16>, vector<256x32xf32> -> vector<256x32xf32>
    %cst_3 = arith.constant 0.000000e+00 : f32
    %3 = vector.broadcast %cst_3 : f32 to vector<256x32xf32>
    %4 = arith.maximumf %2, %3 : vector<256x32xf32>
    %c0_4 = arith.constant 0 : index
    %c0_5 = arith.constant 0 : index
    %5 = vector.load %arg3[%c0_4, %c0_5] : memref<256x32xf32, #tpu.memory_space<vmem>>, vector<256x32xf32>
    tpu.vector_store %arg3[%c0_4, %c0_5], %4 {strides = array<i32>} : memref<256x32xf32, #tpu.memory_space<vmem>>, vector<256x32xf32>,
    return
  }
  func.func @transform_0(%arg0: i32) -> (i32, i32) {
    %c0_i32 = arith.constant 0 : i32
    %c0_i32_0 = arith.constant 0 : i32
    return %arg0, %c0_i32 : i32, i32
  }
  func.func @transform_1(%arg0: i32) -> (i32, i32) {
    %c0_i32 = arith.constant 0 : i32
    %c0_i32_0 = arith.constant 0 : i32
    %c0_i32_1 = arith.constant 0 : i32
    return %c0_i32, %c0_i32_0 : i32, i32
  }
  func.func @transform_2(%arg0: i32) -> (i32, i32) {
    %c0_i32 = arith.constant 0 : i32
    %c0_i32_0 = arith.constant 0 : i32
    return %arg0, %c0_i32 : i32, i32
  }
}

module attributes {stable_mosaic.version = 11 : i64} {
  func.func @_fused_kernel(%arg0: memref<112x288xbf16, #tpu.memory_space<vmem>>, %arg1: memref<288x64xbf16, #tpu.memory_space<vmem>>, %arg2: memref<1x64xf32, #tpu.memory_space<vmem>>, %arg3: memref<1x64xf32, #tpu.memory_space<vmem>>, %arg4: memref<112x64xf32, #tpu.memory_space<vmem>>) attributes {dimension_semantics = [], scalar_prefetch = 0 : i64, scratch_operands = 0 : i64, tpu.core_type = #tpu.core_type<tc>} {
    %c0 = arith.constant 0 : index
    %c0_0 = arith.constant 0 : index
    %0 = vector.load %arg2[%c0, %c0_0] : memref<1x64xf32, #tpu.memory_space<vmem>>, vector<1x64xf32>
    %c0_1 = arith.constant 0 : index
    %c0_2 = arith.constant 0 : index
    %1 = vector.load %arg3[%c0_1, %c0_2] : memref<1x64xf32, #tpu.memory_space<vmem>>, vector<1x64xf32>
    %c0_3 = arith.constant 0 : index
    %c0_4 = arith.constant 0 : index
    %2 = vector.load %arg0[%c0_3, %c0_4] : memref<112x288xbf16, #tpu.memory_space<vmem>>, vector<112x288xbf16>
    %c0_5 = arith.constant 0 : index
    %c0_6 = arith.constant 0 : index
    %3 = vector.load %arg1[%c0_5, %c0_6] : memref<288x64xbf16, #tpu.memory_space<vmem>>, vector<288x64xbf16>
    %cst = arith.constant dense<0.000000e+00> : vector<112x64xf32>
    %4 = tpu.matmul %2, %3, %cst {dimension_numbers = #tpu.dot_dimension_numbers<[1], [0], [0], [1], [0, 0, 1, 1], [], []>} : vector<112x288xbf16>, vector<288x64xbf16>, vector<112x64xf32> -> vector<112x64xf32>
    %cst_7 = arith.constant dense<0.000000e+00> : vector<64xf32>
    %5 = vector.multi_reduction <add>, %4, %cst_7 [0] : vector<112x64xf32> to vector<64xf32>
    %6 = vector.shape_cast %5 : vector<64xf32> to vector<1x64xf32>
    %cst_8 = arith.constant 0.0102040814 : f32
    %7 = vector.broadcast %cst_8 : f32 to vector<1x64xf32>
    %8 = arith.mulf %6, %7 : vector<1x64xf32>
    %9 = arith.mulf %4, %4 : vector<112x64xf32>
    %cst_9 = arith.constant dense<0.000000e+00> : vector<64xf32>
    %10 = vector.multi_reduction <add>, %9, %cst_9 [0] : vector<112x64xf32> to vector<64xf32>
    %11 = vector.shape_cast %10 : vector<64xf32> to vector<1x64xf32>
    %cst_10 = arith.constant 0.0102040814 : f32
    %12 = vector.broadcast %cst_10 : f32 to vector<1x64xf32>
    %13 = arith.mulf %11, %12 : vector<1x64xf32>
    %14 = arith.mulf %8, %8 : vector<1x64xf32>
    %15 = arith.subf %13, %14 : vector<1x64xf32>
    %16 = vector.broadcast %8 : vector<1x64xf32> to vector<112x64xf32>
    %17 = arith.subf %4, %16 : vector<112x64xf32>
    %cst_11 = arith.constant 9.99999974E-6 : f32
    %18 = vector.broadcast %cst_11 : f32 to vector<1x64xf32>
    %19 = arith.addf %15, %18 : vector<1x64xf32>
    %20 = math.rsqrt %19 : vector<1x64xf32>
    %21 = vector.broadcast %20 : vector<1x64xf32> to vector<112x64xf32>
    %22 = arith.mulf %17, %21 : vector<112x64xf32>
    %23 = vector.broadcast %0 : vector<1x64xf32> to vector<112x64xf32>
    %24 = arith.mulf %22, %23 : vector<112x64xf32>
    %25 = vector.broadcast %1 : vector<1x64xf32> to vector<112x64xf32>
    %26 = arith.addf %24, %25 : vector<112x64xf32>
    %cst_12 = arith.constant 0.000000e+00 : f32
    %27 = vector.broadcast %cst_12 : f32 to vector<112x64xf32>
    %28 = arith.maximumf %26, %27 : vector<112x64xf32>
    %c0_13 = arith.constant 0 : index
    %c0_14 = arith.constant 0 : index
    %29 = vector.load %arg4[%c0_13, %c0_14] : memref<112x64xf32, #tpu.memory_space<vmem>>, vector<112x64xf32>
    tpu.vector_store %arg4[%c0_13, %c0_14], %28 {strides = array<i32>} : memref<112x64xf32, #tpu.memory_space<vmem>>, vector<112x64xf32>,
    return
  }
}

module attributes {stable_mosaic.version = 11 : i64} {
  func.func @_fused_kernel(%arg0: memref<32x576xbf16, #tpu.memory_space<vmem>>, %arg1: memref<576x128xbf16, #tpu.memory_space<vmem>>, %arg2: memref<1x128xf32, #tpu.memory_space<vmem>>, %arg3: memref<1x128xf32, #tpu.memory_space<vmem>>, %arg4: memref<32x128xf32, #tpu.memory_space<vmem>>) attributes {dimension_semantics = [], scalar_prefetch = 0 : i64, scratch_operands = 0 : i64, tpu.core_type = #tpu.core_type<tc>} {
    %c0 = arith.constant 0 : index
    %c0_0 = arith.constant 0 : index
    %0 = vector.load %arg2[%c0, %c0_0] : memref<1x128xf32, #tpu.memory_space<vmem>>, vector<1x128xf32>
    %c0_1 = arith.constant 0 : index
    %c0_2 = arith.constant 0 : index
    %1 = vector.load %arg3[%c0_1, %c0_2] : memref<1x128xf32, #tpu.memory_space<vmem>>, vector<1x128xf32>
    %c0_3 = arith.constant 0 : index
    %c0_4 = arith.constant 0 : index
    %2 = vector.load %arg0[%c0_3, %c0_4] : memref<32x576xbf16, #tpu.memory_space<vmem>>, vector<32x576xbf16>
    %c0_5 = arith.constant 0 : index
    %c0_6 = arith.constant 0 : index
    %3 = vector.load %arg1[%c0_5, %c0_6] : memref<576x128xbf16, #tpu.memory_space<vmem>>, vector<576x128xbf16>
    %cst = arith.constant dense<0.000000e+00> : vector<32x128xf32>
    %4 = tpu.matmul %2, %3, %cst {dimension_numbers = #tpu.dot_dimension_numbers<[1], [0], [0], [1], [0, 0, 1, 1], [], []>} : vector<32x576xbf16>, vector<576x128xbf16>, vector<32x128xf32> -> vector<32x128xf32>
    %cst_7 = arith.constant dense<0.000000e+00> : vector<128xf32>
    %5 = vector.multi_reduction <add>, %4, %cst_7 [0] : vector<32x128xf32> to vector<128xf32>
    %6 = vector.shape_cast %5 : vector<128xf32> to vector<1x128xf32>
    %cst_8 = arith.constant 0.055555556 : f32
    %7 = vector.broadcast %cst_8 : f32 to vector<1x128xf32>
    %8 = arith.mulf %6, %7 : vector<1x128xf32>
    %9 = arith.mulf %4, %4 : vector<32x128xf32>
    %cst_9 = arith.constant dense<0.000000e+00> : vector<128xf32>
    %10 = vector.multi_reduction <add>, %9, %cst_9 [0] : vector<32x128xf32> to vector<128xf32>
    %11 = vector.shape_cast %10 : vector<128xf32> to vector<1x128xf32>
    %cst_10 = arith.constant 0.055555556 : f32
    %12 = vector.broadcast %cst_10 : f32 to vector<1x128xf32>
    %13 = arith.mulf %11, %12 : vector<1x128xf32>
    %14 = arith.mulf %8, %8 : vector<1x128xf32>
    %15 = arith.subf %13, %14 : vector<1x128xf32>
    %16 = vector.broadcast %8 : vector<1x128xf32> to vector<32x128xf32>
    %17 = arith.subf %4, %16 : vector<32x128xf32>
    %cst_11 = arith.constant 9.99999974E-6 : f32
    %18 = vector.broadcast %cst_11 : f32 to vector<1x128xf32>
    %19 = arith.addf %15, %18 : vector<1x128xf32>
    %20 = math.rsqrt %19 : vector<1x128xf32>
    %21 = vector.broadcast %20 : vector<1x128xf32> to vector<32x128xf32>
    %22 = arith.mulf %17, %21 : vector<32x128xf32>
    %23 = vector.broadcast %0 : vector<1x128xf32> to vector<32x128xf32>
    %24 = arith.mulf %22, %23 : vector<32x128xf32>
    %25 = vector.broadcast %1 : vector<1x128xf32> to vector<32x128xf32>
    %26 = arith.addf %24, %25 : vector<32x128xf32>
    %cst_12 = arith.constant 0.000000e+00 : f32
    %27 = vector.broadcast %cst_12 : f32 to vector<32x128xf32>
    %28 = arith.maximumf %26, %27 : vector<32x128xf32>
    %c0_13 = arith.constant 0 : index
    %c0_14 = arith.constant 0 : index
    %29 = vector.load %arg4[%c0_13, %c0_14] : memref<32x128xf32, #tpu.memory_space<vmem>>, vector<32x128xf32>
    tpu.vector_store %arg4[%c0_13, %c0_14], %28 {strides = array<i32>} : memref<32x128xf32, #tpu.memory_space<vmem>>, vector<32x128xf32>,
    return
  }
}

module attributes {stable_mosaic.version = 11 : i64} {
  func.func @_fused_kernel(%arg0: memref<16x1152xbf16, #tpu.memory_space<vmem>>, %arg1: memref<1152x128xbf16, #tpu.memory_space<vmem>>, %arg2: memref<1x128xf32, #tpu.memory_space<vmem>>, %arg3: memref<1x128xf32, #tpu.memory_space<vmem>>, %arg4: memref<16x128xf32, #tpu.memory_space<vmem>>) attributes {dimension_semantics = [], scalar_prefetch = 0 : i64, scratch_operands = 0 : i64, tpu.core_type = #tpu.core_type<tc>} {
    %c0 = arith.constant 0 : index
    %c0_0 = arith.constant 0 : index
    %0 = vector.load %arg2[%c0, %c0_0] : memref<1x128xf32, #tpu.memory_space<vmem>>, vector<1x128xf32>
    %c0_1 = arith.constant 0 : index
    %c0_2 = arith.constant 0 : index
    %1 = vector.load %arg3[%c0_1, %c0_2] : memref<1x128xf32, #tpu.memory_space<vmem>>, vector<1x128xf32>
    %c0_3 = arith.constant 0 : index
    %c0_4 = arith.constant 0 : index
    %2 = vector.load %arg0[%c0_3, %c0_4] : memref<16x1152xbf16, #tpu.memory_space<vmem>>, vector<16x1152xbf16>
    %c0_5 = arith.constant 0 : index
    %c0_6 = arith.constant 0 : index
    %3 = vector.load %arg1[%c0_5, %c0_6] : memref<1152x128xbf16, #tpu.memory_space<vmem>>, vector<1152x128xbf16>
    %cst = arith.constant dense<0.000000e+00> : vector<16x128xf32>
    %4 = tpu.matmul %2, %3, %cst {dimension_numbers = #tpu.dot_dimension_numbers<[1], [0], [0], [1], [0, 0, 1, 1], [], []>} : vector<16x1152xbf16>, vector<1152x128xbf16>, vector<16x128xf32> -> vector<16x128xf32>
    %cst_7 = arith.constant dense<0.000000e+00> : vector<128xf32>
    %5 = vector.multi_reduction <add>, %4, %cst_7 [0] : vector<16x128xf32> to vector<128xf32>
    %6 = vector.shape_cast %5 : vector<128xf32> to vector<1x128xf32>
    %cst_8 = arith.constant 5.000000e-01 : f32
    %7 = vector.broadcast %cst_8 : f32 to vector<1x128xf32>
    %8 = arith.mulf %6, %7 : vector<1x128xf32>
    %9 = arith.mulf %4, %4 : vector<16x128xf32>
    %cst_9 = arith.constant dense<0.000000e+00> : vector<128xf32>
    %10 = vector.multi_reduction <add>, %9, %cst_9 [0] : vector<16x128xf32> to vector<128xf32>
    %11 = vector.shape_cast %10 : vector<128xf32> to vector<1x128xf32>
    %cst_10 = arith.constant 5.000000e-01 : f32
    %12 = vector.broadcast %cst_10 : f32 to vector<1x128xf32>
    %13 = arith.mulf %11, %12 : vector<1x128xf32>
    %14 = arith.mulf %8, %8 : vector<1x128xf32>
    %15 = arith.subf %13, %14 : vector<1x128xf32>
    %16 = vector.broadcast %8 : vector<1x128xf32> to vector<16x128xf32>
    %17 = arith.subf %4, %16 : vector<16x128xf32>
    %cst_11 = arith.constant 9.99999974E-6 : f32
    %18 = vector.broadcast %cst_11 : f32 to vector<1x128xf32>
    %19 = arith.addf %15, %18 : vector<1x128xf32>
    %20 = math.rsqrt %19 : vector<1x128xf32>
    %21 = vector.broadcast %20 : vector<1x128xf32> to vector<16x128xf32>
    %22 = arith.mulf %17, %21 : vector<16x128xf32>
    %23 = vector.broadcast %0 : vector<1x128xf32> to vector<16x128xf32>
    %24 = arith.mulf %22, %23 : vector<16x128xf32>
    %25 = vector.broadcast %1 : vector<1x128xf32> to vector<16x128xf32>
    %26 = arith.addf %24, %25 : vector<16x128xf32>
    %cst_12 = arith.constant 0.000000e+00 : f32
    %27 = vector.broadcast %cst_12 : f32 to vector<16x128xf32>
    %28 = arith.maximumf %26, %27 : vector<16x128xf32>
    %c0_13 = arith.constant 0 : index
    %c0_14 = arith.constant 0 : index
    %29 = vector.load %arg4[%c0_13, %c0_14] : memref<16x128xf32, #tpu.memory_space<vmem>>, vector<16x128xf32>
    tpu.vector_store %arg4[%c0_13, %c0_14], %28 {strides = array<i32>} : memref<16x128xf32, #tpu.memory_space<vmem>>, vector<16x128xf32>,
    return
  }
}

module attributes {stable_mosaic.version = 11 : i64} {
  func.func @_fused_kernel(%arg0: memref<32x1152xbf16, #tpu.memory_space<vmem>>, %arg1: memref<1152x128xbf16, #tpu.memory_space<vmem>>, %arg2: memref<1x128xf32, #tpu.memory_space<vmem>>, %arg3: memref<1x128xf32, #tpu.memory_space<vmem>>, %arg4: memref<32x128xf32, #tpu.memory_space<vmem>>, %arg5: memref<32x128xf32, #tpu.memory_space<vmem>>) attributes {dimension_semantics = [], scalar_prefetch = 0 : i64, scratch_operands = 0 : i64, tpu.core_type = #tpu.core_type<tc>} {
    %c0 = arith.constant 0 : index
    %c0_0 = arith.constant 0 : index
    %0 = vector.load %arg2[%c0, %c0_0] : memref<1x128xf32, #tpu.memory_space<vmem>>, vector<1x128xf32>
    %c0_1 = arith.constant 0 : index
    %c0_2 = arith.constant 0 : index
    %1 = vector.load %arg3[%c0_1, %c0_2] : memref<1x128xf32, #tpu.memory_space<vmem>>, vector<1x128xf32>
    %c0_3 = arith.constant 0 : index
    %c0_4 = arith.constant 0 : index
    %2 = vector.load %arg4[%c0_3, %c0_4] : memref<32x128xf32, #tpu.memory_space<vmem>>, vector<32x128xf32>
    %c0_5 = arith.constant 0 : index
    %c0_6 = arith.constant 0 : index
    %3 = vector.load %arg0[%c0_5, %c0_6] : memref<32x1152xbf16, #tpu.memory_space<vmem>>, vector<32x1152xbf16>
    %c0_7 = arith.constant 0 : index
    %c0_8 = arith.constant 0 : index
    %4 = vector.load %arg1[%c0_7, %c0_8] : memref<1152x128xbf16, #tpu.memory_space<vmem>>, vector<1152x128xbf16>
    %cst = arith.constant dense<0.000000e+00> : vector<32x128xf32>
    %5 = tpu.matmul %3, %4, %cst {dimension_numbers = #tpu.dot_dimension_numbers<[1], [0], [0], [1], [0, 0, 1, 1], [], []>} : vector<32x1152xbf16>, vector<1152x128xbf16>, vector<32x128xf32> -> vector<32x128xf32>
    %cst_9 = arith.constant dense<0.000000e+00> : vector<128xf32>
    %6 = vector.multi_reduction <add>, %5, %cst_9 [0] : vector<32x128xf32> to vector<128xf32>
    %7 = vector.shape_cast %6 : vector<128xf32> to vector<1x128xf32>
    %cst_10 = arith.constant 0.055555556 : f32
    %8 = vector.broadcast %cst_10 : f32 to vector<1x128xf32>
    %9 = arith.mulf %7, %8 : vector<1x128xf32>
    %10 = arith.mulf %5, %5 : vector<32x128xf32>
    %cst_11 = arith.constant dense<0.000000e+00> : vector<128xf32>
    %11 = vector.multi_reduction <add>, %10, %cst_11 [0] : vector<32x128xf32> to vector<128xf32>
    %12 = vector.shape_cast %11 : vector<128xf32> to vector<1x128xf32>
    %cst_12 = arith.constant 0.055555556 : f32
    %13 = vector.broadcast %cst_12 : f32 to vector<1x128xf32>
    %14 = arith.mulf %12, %13 : vector<1x128xf32>
    %15 = arith.mulf %9, %9 : vector<1x128xf32>
    %16 = arith.subf %14, %15 : vector<1x128xf32>
    %17 = vector.broadcast %9 : vector<1x128xf32> to vector<32x128xf32>
    %18 = arith.subf %5, %17 : vector<32x128xf32>
    %cst_13 = arith.constant 9.99999974E-6 : f32
    %19 = vector.broadcast %cst_13 : f32 to vector<1x128xf32>
    %20 = arith.addf %16, %19 : vector<1x128xf32>
    %21 = math.rsqrt %20 : vector<1x128xf32>
    %22 = vector.broadcast %21 : vector<1x128xf32> to vector<32x128xf32>
    %23 = arith.mulf %18, %22 : vector<32x128xf32>
    %24 = vector.broadcast %0 : vector<1x128xf32> to vector<32x128xf32>
    %25 = arith.mulf %23, %24 : vector<32x128xf32>
    %26 = vector.broadcast %1 : vector<1x128xf32> to vector<32x128xf32>
    %27 = arith.addf %25, %26 : vector<32x128xf32>
    %cst_14 = arith.constant 0.000000e+00 : f32
    %28 = vector.broadcast %cst_14 : f32 to vector<32x128xf32>
    %29 = arith.maximumf %27, %28 : vector<32x128xf32>
    %30 = arith.addf %29, %2 : vector<32x128xf32>
    %c0_15 = arith.constant 0 : index
    %c0_16 = arith.constant 0 : index
    %31 = vector.load %arg5[%c0_15, %c0_16] : memref<32x128xf32, #tpu.memory_space<vmem>>, vector<32x128xf32>
    tpu.vector_store %arg5[%c0_15, %c0_16], %30 {strides = array<i32>} : memref<32x128xf32, #tpu.memory_space<vmem>>, vector<32x128xf32>,
    return
  }
}

module attributes {stable_mosaic.version = 11 : i64} {
  func.func @_fused_kernel(%arg0: memref<112x1152xbf16, #tpu.memory_space<vmem>>, %arg1: memref<1152x64xbf16, #tpu.memory_space<vmem>>, %arg2: memref<1x64xf32, #tpu.memory_space<vmem>>, %arg3: memref<1x64xf32, #tpu.memory_space<vmem>>, %arg4: memref<112x64xf32, #tpu.memory_space<vmem>>, %arg5: memref<112x64xf32, #tpu.memory_space<vmem>>) attributes {dimension_semantics = [], scalar_prefetch = 0 : i64, scratch_operands = 0 : i64, tpu.core_type = #tpu.core_type<tc>} {
    %c0 = arith.constant 0 : index
    %c0_0 = arith.constant 0 : index
    %0 = vector.load %arg2[%c0, %c0_0] : memref<1x64xf32, #tpu.memory_space<vmem>>, vector<1x64xf32>
    %c0_1 = arith.constant 0 : index
    %c0_2 = arith.constant 0 : index
    %1 = vector.load %arg3[%c0_1, %c0_2] : memref<1x64xf32, #tpu.memory_space<vmem>>, vector<1x64xf32>
    %c0_3 = arith.constant 0 : index
    %c0_4 = arith.constant 0 : index
    %2 = vector.load %arg4[%c0_3, %c0_4] : memref<112x64xf32, #tpu.memory_space<vmem>>, vector<112x64xf32>
    %c0_5 = arith.constant 0 : index
    %c0_6 = arith.constant 0 : index
    %3 = vector.load %arg0[%c0_5, %c0_6] : memref<112x1152xbf16, #tpu.memory_space<vmem>>, vector<112x1152xbf16>
    %c0_7 = arith.constant 0 : index
    %c0_8 = arith.constant 0 : index
    %4 = vector.load %arg1[%c0_7, %c0_8] : memref<1152x64xbf16, #tpu.memory_space<vmem>>, vector<1152x64xbf16>
    %cst = arith.constant dense<0.000000e+00> : vector<112x64xf32>
    %5 = tpu.matmul %3, %4, %cst {dimension_numbers = #tpu.dot_dimension_numbers<[1], [0], [0], [1], [0, 0, 1, 1], [], []>} : vector<112x1152xbf16>, vector<1152x64xbf16>, vector<112x64xf32> -> vector<112x64xf32>
    %cst_9 = arith.constant dense<0.000000e+00> : vector<64xf32>
    %6 = vector.multi_reduction <add>, %5, %cst_9 [0] : vector<112x64xf32> to vector<64xf32>
    %7 = vector.shape_cast %6 : vector<64xf32> to vector<1x64xf32>
    %cst_10 = arith.constant 0.0102040814 : f32
    %8 = vector.broadcast %cst_10 : f32 to vector<1x64xf32>
    %9 = arith.mulf %7, %8 : vector<1x64xf32>
    %10 = arith.mulf %5, %5 : vector<112x64xf32>
    %cst_11 = arith.constant dense<0.000000e+00> : vector<64xf32>
    %11 = vector.multi_reduction <add>, %10, %cst_11 [0] : vector<112x64xf32> to vector<64xf32>
    %12 = vector.shape_cast %11 : vector<64xf32> to vector<1x64xf32>
    %cst_12 = arith.constant 0.0102040814 : f32
    %13 = vector.broadcast %cst_12 : f32 to vector<1x64xf32>
    %14 = arith.mulf %12, %13 : vector<1x64xf32>
    %15 = arith.mulf %9, %9 : vector<1x64xf32>
    %16 = arith.subf %14, %15 : vector<1x64xf32>
    %17 = vector.broadcast %9 : vector<1x64xf32> to vector<112x64xf32>
    %18 = arith.subf %5, %17 : vector<112x64xf32>
    %cst_13 = arith.constant 9.99999974E-6 : f32
    %19 = vector.broadcast %cst_13 : f32 to vector<1x64xf32>
    %20 = arith.addf %16, %19 : vector<1x64xf32>
    %21 = math.rsqrt %20 : vector<1x64xf32>
    %22 = vector.broadcast %21 : vector<1x64xf32> to vector<112x64xf32>
    %23 = arith.mulf %18, %22 : vector<112x64xf32>
    %24 = vector.broadcast %0 : vector<1x64xf32> to vector<112x64xf32>
    %25 = arith.mulf %23, %24 : vector<112x64xf32>
    %26 = vector.broadcast %1 : vector<1x64xf32> to vector<112x64xf32>
    %27 = arith.addf %25, %26 : vector<112x64xf32>
    %cst_14 = arith.constant 0.000000e+00 : f32
    %28 = vector.broadcast %cst_14 : f32 to vector<112x64xf32>
    %29 = arith.maximumf %27, %28 : vector<112x64xf32>
    %30 = arith.addf %29, %2 : vector<112x64xf32>
    %c0_15 = arith.constant 0 : index
    %c0_16 = arith.constant 0 : index
    %31 = vector.load %arg5[%c0_15, %c0_16] : memref<112x64xf32, #tpu.memory_space<vmem>>, vector<112x64xf32>
    tpu.vector_store %arg5[%c0_15, %c0_16], %30 {strides = array<i32>} : memref<112x64xf32, #tpu.memory_space<vmem>>, vector<112x64xf32>,
    return
  }
}

module attributes {stable_mosaic.version = 11 : i64} {
  func.func @_fused_kernel(%arg0: memref<464x576xbf16, #tpu.memory_space<vmem>>, %arg1: memref<576x32xbf16, #tpu.memory_space<vmem>>, %arg2: memref<1x32xf32, #tpu.memory_space<vmem>>, %arg3: memref<1x32xf32, #tpu.memory_space<vmem>>, %arg4: memref<464x32xf32, #tpu.memory_space<vmem>>, %arg5: memref<464x32xf32, #tpu.memory_space<vmem>>) attributes {dimension_semantics = [], scalar_prefetch = 0 : i64, scratch_operands = 0 : i64, tpu.core_type = #tpu.core_type<tc>} {
    %c0 = arith.constant 0 : index
    %c0_0 = arith.constant 0 : index
    %0 = vector.load %arg2[%c0, %c0_0] : memref<1x32xf32, #tpu.memory_space<vmem>>, vector<1x32xf32>
    %c0_1 = arith.constant 0 : index
    %c0_2 = arith.constant 0 : index
    %1 = vector.load %arg3[%c0_1, %c0_2] : memref<1x32xf32, #tpu.memory_space<vmem>>, vector<1x32xf32>
    %c0_3 = arith.constant 0 : index
    %c0_4 = arith.constant 0 : index
    %2 = vector.load %arg4[%c0_3, %c0_4] : memref<464x32xf32, #tpu.memory_space<vmem>>, vector<464x32xf32>
    %c0_5 = arith.constant 0 : index
    %c0_6 = arith.constant 0 : index
    %3 = vector.load %arg0[%c0_5, %c0_6] : memref<464x576xbf16, #tpu.memory_space<vmem>>, vector<464x576xbf16>
    %c0_7 = arith.constant 0 : index
    %c0_8 = arith.constant 0 : index
    %4 = vector.load %arg1[%c0_7, %c0_8] : memref<576x32xbf16, #tpu.memory_space<vmem>>, vector<576x32xbf16>
    %cst = arith.constant dense<0.000000e+00> : vector<464x32xf32>
    %5 = tpu.matmul %3, %4, %cst {dimension_numbers = #tpu.dot_dimension_numbers<[1], [0], [0], [1], [0, 0, 1, 1], [], []>} : vector<464x576xbf16>, vector<576x32xbf16>, vector<464x32xf32> -> vector<464x32xf32>
    %cst_9 = arith.constant dense<0.000000e+00> : vector<32xf32>
    %6 = vector.multi_reduction <add>, %5, %cst_9 [0] : vector<464x32xf32> to vector<32xf32>
    %7 = vector.shape_cast %6 : vector<32xf32> to vector<1x32xf32>
    %cst_10 = arith.constant 0.00222222228 : f32
    %8 = vector.broadcast %cst_10 : f32 to vector<1x32xf32>
    %9 = arith.mulf %7, %8 : vector<1x32xf32>
    %10 = arith.mulf %5, %5 : vector<464x32xf32>
    %cst_11 = arith.constant dense<0.000000e+00> : vector<32xf32>
    %11 = vector.multi_reduction <add>, %10, %cst_11 [0] : vector<464x32xf32> to vector<32xf32>
    %12 = vector.shape_cast %11 : vector<32xf32> to vector<1x32xf32>
    %cst_12 = arith.constant 0.00222222228 : f32
    %13 = vector.broadcast %cst_12 : f32 to vector<1x32xf32>
    %14 = arith.mulf %12, %13 : vector<1x32xf32>
    %15 = arith.mulf %9, %9 : vector<1x32xf32>
    %16 = arith.subf %14, %15 : vector<1x32xf32>
    %17 = vector.broadcast %9 : vector<1x32xf32> to vector<464x32xf32>
    %18 = arith.subf %5, %17 : vector<464x32xf32>
    %cst_13 = arith.constant 9.99999974E-6 : f32
    %19 = vector.broadcast %cst_13 : f32 to vector<1x32xf32>
    %20 = arith.addf %16, %19 : vector<1x32xf32>
    %21 = math.rsqrt %20 : vector<1x32xf32>
    %22 = vector.broadcast %21 : vector<1x32xf32> to vector<464x32xf32>
    %23 = arith.mulf %18, %22 : vector<464x32xf32>
    %24 = vector.broadcast %0 : vector<1x32xf32> to vector<464x32xf32>
    %25 = arith.mulf %23, %24 : vector<464x32xf32>
    %26 = vector.broadcast %1 : vector<1x32xf32> to vector<464x32xf32>
    %27 = arith.addf %25, %26 : vector<464x32xf32>
    %cst_14 = arith.constant 0.000000e+00 : f32
    %28 = vector.broadcast %cst_14 : f32 to vector<464x32xf32>
    %29 = arith.maximumf %27, %28 : vector<464x32xf32>
    %30 = arith.addf %29, %2 : vector<464x32xf32>
    %c0_15 = arith.constant 0 : index
    %c0_16 = arith.constant 0 : index
    %31 = vector.load %arg5[%c0_15, %c0_16] : memref<464x32xf32, #tpu.memory_space<vmem>>, vector<464x32xf32>
    tpu.vector_store %arg5[%c0_15, %c0_16], %30 {strides = array<i32>} : memref<464x32xf32, #tpu.memory_space<vmem>>, vector<464x32xf32>,
    return
  }
}

module attributes {stable_mosaic.version = 11 : i64} {
  func.func @_tile_kernel(%arg0: i32, %arg1: memref<256x512xbf16, #tpu.memory_space<vmem>>, %arg2: memref<512x128xbf16, #tpu.memory_space<vmem>>, %arg3: memref<256x128xf32, #tpu.memory_space<vmem>>) attributes {dimension_semantics = [#tpu.dimension_semantics<parallel>], iteration_bounds = array<i64: 8>, scalar_prefetch = 0 : i64, scratch_operands = 0 : i64, tpu.core_type = #tpu.core_type<tc>, window_params = [{transform_indices = @transform_0, window_bounds = array<i64: 256, 512>}, {pipeline_mode = #tpu.pipeline_mode<synchronous>, transform_indices = @transform_1, window_bounds = array<i64: 512, 128>}, {transform_indices = @transform_2, window_bounds = array<i64: 256, 128>}]} {
    %c0 = arith.constant 0 : index
    %c0_0 = arith.constant 0 : index
    %0 = vector.load %arg1[%c0, %c0_0] : memref<256x512xbf16, #tpu.memory_space<vmem>>, vector<256x512xbf16>
    %c0_1 = arith.constant 0 : index
    %c0_2 = arith.constant 0 : index
    %1 = vector.load %arg2[%c0_1, %c0_2] : memref<512x128xbf16, #tpu.memory_space<vmem>>, vector<512x128xbf16>
    %cst = arith.constant dense<0.000000e+00> : vector<256x128xf32>
    %2 = tpu.matmul %0, %1, %cst {dimension_numbers = #tpu.dot_dimension_numbers<[1], [0], [0], [1], [0, 0, 1, 1], [], []>} : vector<256x512xbf16>, vector<512x128xbf16>, vector<256x128xf32> -> vector<256x128xf32>
    %3 = math.tanh %2 : vector<256x128xf32>
    %c0_3 = arith.constant 0 : index
    %c0_4 = arith.constant 0 : index
    %4 = vector.load %arg3[%c0_3, %c0_4] : memref<256x128xf32, #tpu.memory_space<vmem>>, vector<256x128xf32>
    tpu.vector_store %arg3[%c0_3, %c0_4], %3 {strides = array<i32>} : memref<256x128xf32, #tpu.memory_space<vmem>>, vector<256x128xf32>,
    return
  }
  func.func @transform_0(%arg0: i32) -> (i32, i32) {
    %c0_i32 = arith.constant 0 : i32
    %c0_i32_0 = arith.constant 0 : i32
    return %arg0, %c0_i32 : i32, i32
  }
  func.func @transform_1(%arg0: i32) -> (i32, i32) {
    %c0_i32 = arith.constant 0 : i32
    %c0_i32_0 = arith.constant 0 : i32
    %c0_i32_1 = arith.constant 0 : i32
    return %c0_i32, %c0_i32_0 : i32, i32
  }
  func.func @transform_2(%arg0: i32) -> (i32, i32) {
    %c0_i32 = arith.constant 0 : i32
    %c0_i32_0 = arith.constant 0 : i32
    return %arg0, %c0_i32 : i32, i32
  }
}

</mosaic_0001>

<bundles_post_ra>
// kernel: generator_forward.8
= control target key start
LH: loop header
LB: loop body
LE: loop exit
PB: predicated region body
PF: predicated region fallthrough
CT: control target
= control target key end

     0   :  { %s744_s9 = smov 0   ;;  %s868_s0 = inlined_call_operand.vmem [shape: bf16[512,16], index: 0, kind: input, shape index: {}]   ;;  %s869_s1 = inlined_call_operand.vmem [shape: bf16[16,32], index: 1, kind: input, shape index: {}]   ;;  %s870_s2 = inlined_call_operand.vmem [shape: f32[512,32], index: 2, kind: output, shape index: {}]  }
   0x1 LB: > { %s599_s10 = sadd.s32 4294967295, %s727_s9   ;;  %p603_p0 = scmp.ge.s32.totalorder %s727_s9, 1  ;;  %s727_s9 = sphi %s744_s9, %s12_s9  }
   0x2   : > { %p113_p1 = scmp.lt.s32.totalorder %s727_s9, 3 }
   0x4   : > { %p114_p2 = pnand %p603_p0, %p113_p1 }
   0x5   : > { %s604_s13 = sshll.u32 (!%p114_p2), %s599_s10, 5 }
   0x6   : > { %117 = sbr.rel (%p114_p2) target bundleno = 243 (0xf3), region = 28  ;;  %p136_p3 = scmp.lt.s32.totalorder (!%p114_p2), %s604_s13, 63 }
   0xb   : > { %v704_v0 = vld [vmem:[%s869_s1] sm:$0xff]   ;;  %s872_s13 = smov (!%p136_p3, %s604_s13), 63  ;;  %vm268_vm0 = vcmask 130048   ;;  %vm510_vm1 = vcmask 261120  }
   0xc   : > { %660 = vmatprep.subr.bf16.mxu0 %v704_v0  ;;  %694 = vmatprep.subr.bf16.mxu1 %v704_v0  ;;  %s605_s14 = sshll.u32 %s872_s13, 2  ;;  %s607_s18 = sshll.u32 %s872_s13, 3 }
   0xd   : > { %661 = vmatpush3.bf16.msra.mxu0 %v704_v0  ;;  %695 = vmatpush3.bf16.msra.mxu1 %v704_v0  ;;  %s761_s17 = scalar_lea.vmem %s868_s0, %s605_s14  ;;  %s799_s21 = scalar_lea.vmem %s870_s2, %s607_s18 }
   0xe   : > { %v705_v1 = vld [vmem:[%s761_s17] sm:$0xff]   ;;  %v707_v3 = vld [vmem:[%s761_s17 + $0x8] sm:$0xff]   ;;  %v709_v5 = vld [vmem:[%s761_s17 + $0x10] sm:$0xff]  }
   0xf   : > { %v706_v2 = vld [vmem:[%s761_s17 + $0x40] sm:$0xff]   ;;  %662 = vmatprep.mubr.msk.bf16.mxu0 %vm268_vm0, %v705_v1  ;;  %v708_v4 = vld [vmem:[%s761_s17 + $0x48] sm:$0xff]   ;;  %v710_v6 = vld [vmem:[%s761_s17 + $0x50] sm:$0xff]  }
  0x10   : > { %678 = vmatprep.mubr.msk.bf16.mxu1 %vm268_vm0, %v706_v2  ;;  %663 = vmatmul.mubr.msk.bf16.vlgmr.msra.gmra.mxu0 %vm268_vm0, %v707_v3  ;;  %v711_v7 = vld [vmem:[%s761_s17 + $0x18] sm:$0xff]   ;;  %v713_v9 = vld [vmem:[%s761_s17 + $0x20] sm:$0xff]   ;;  %v715_v11 = vld [vmem:[%s761_s17 + $0x28] sm:$0xff]  }
  0x11   : > { %679 = vmatmul.mubr.msk.bf16.vlgmr.msra.gmra.mxu1 %vm268_vm0, %v708_v4  ;;  %666 = vmatprep.mubr.msk.bf16.mxu0 %vm268_vm0, %v709_v5  ;;  %v712_v8 = vld [vmem:[%s761_s17 + $0x58] sm:$0xff]   ;;  %v714_v10 = vld [vmem:[%s761_s17 + $0x60] sm:$0xff]   ;;  %v716_v12 = vld [vmem:[%s761_s17 + $0x68] sm:$0xff]  }
  0x12   : > { %682 = vmatprep.mubr.msk.bf16.mxu1 %vm268_vm0, %v710_v6  ;;  %v717_v13 = vld [vmem:[%s761_s17 + $0x30] sm:$0xff]   ;;  %v719_v15 = vld [vmem:[%s761_s17 + $0x38] sm:$0xff]  }
  0x13   : > { %v718_v14 = vld [vmem:[%s761_s17 + $0x70] sm:$0xff]   ;;  %v720_v16 = vld [vmem:[%s761_s17 + $0x78] sm:$0xff]  }
  0x18   : > { %667 = vmatmul.mubr.msk.bf16.gmra.mxu0 %vm268_vm0, %v711_v7 }
  0x19   : > { %683 = vmatmul.mubr.msk.bf16.gmra.mxu1 %vm268_vm0, %v712_v8  ;;  %670 = vmatprep.mubr.msk.bf16.mxu0 %vm268_vm0, %v713_v9 }
  0x1a   : > { %686 = vmatprep.mubr.msk.bf16.mxu1 %vm268_vm0, %v714_v10 }
  0x20   : > { %671 = vmatmul.mubr.msk.bf16.gmra.mxu0 %vm268_vm0, %v715_v11 }
  0x21   : > { %687 = vmatmul.mubr.msk.bf16.gmra.mxu1 %vm268_vm0, %v716_v12  ;;  %674 = vmatprep.mubr.msk.bf16.mxu0 %vm268_vm0, %v717_v13 }
  0x22   : > { %690 = vmatprep.mubr.msk.bf16.mxu1 %vm268_vm0, %v718_v14 }
  0x28   : > { %675 = vmatmul.mubr.msk.bf16.gmra.mxu0 %vm268_vm0, %v719_v15 }
  0x29   : > { %691 = vmatmul.mubr.msk.bf16.gmra.mxu1 %vm268_vm0, %v720_v16 }
  0xd0   : > { %v664_v17 = vpop.f32.mrf.mxu0 }
  0xd1   : > { %v480_v18 = vmax.f32 %v664_v17, 0.0  ;;  %v680_v19 = vpop.f32.mrf.mxu1 }
  0xd2   : > { %v496_v20 = vmax.f32 %v680_v19, 0.0  ;;  %v351_v21 = vpop.f32.mrf.mxu0 }
  0xd3   : > { %513 = vst.msk [vmem:[%s799_s21 + $0x10] sm:$0xff] %vm510_vm1, %v480_v18  ;;  %v478_v22 = vmax.f32 %v351_v21, 0.0  ;;  %v415_v23 = vpop.f32.mrf.mxu1 }
  0xd4   : > { %529 = vst.msk [vmem:[%s799_s21 + $0x90] sm:$0xff] %vm510_vm1, %v496_v20  ;;  %v494_v24 = vmax.f32 %v415_v23, 0.0  ;;  %v665_v25 = vpop.f32.mrf.mxu0 }
  0xd5   : > { %511 = vst.msk [vmem:[%s799_s21] sm:$0xff] %vm510_vm1, %v478_v22  ;;  %v481_v26 = vmax.f32 %v665_v25, 0.0  ;;  %v681_v27 = vpop.f32.mrf.mxu1 }
  0xd6   : > { %527 = vst.msk [vmem:[%s799_s21 + $0x80] sm:$0xff] %vm510_vm1, %v494_v24  ;;  %v497_v28 = vmax.f32 %v681_v27, 0.0  ;;  %v354_v29 = vpop.f32.mrf.mxu0 }
  0xd7   : > { %514 = vst.msk [vmem:[%s799_s21 + $0x18] sm:$0xff] %vm510_vm1, %v481_v26  ;;  %v479_v30 = vmax.f32 %v354_v29, 0.0  ;;  %v418_v31 = vpop.f32.mrf.mxu1 }
  0xd8   : > { %530 = vst.msk [vmem:[%s799_s21 + $0x98] sm:$0xff] %vm510_vm1, %v497_v28  ;;  %v495_v32 = vmax.f32 %v418_v31, 0.0  ;;  %v668_v33 = vpop.f32.mrf.mxu0 }
  0xd9   : > { %512 = vst.msk [vmem:[%s799_s21 + $0x8] sm:$0xff] %vm510_vm1, %v479_v30  ;;  %v484_v34 = vmax.f32 %v668_v33, 0.0  ;;  %v684_v35 = vpop.f32.mrf.mxu1 }
  0xda   : > { %528 = vst.msk [vmem:[%s799_s21 + $0x88] sm:$0xff] %vm510_vm1, %v495_v32  ;;  %v500_v36 = vmax.f32 %v684_v35, 0.0  ;;  %v367_v37 = vpop.f32.mrf.mxu0 }
  0xdb   : > { %517 = vst.msk [vmem:[%s799_s21 + $0x30] sm:$0xff] %vm510_vm1, %v484_v34  ;;  %v482_v38 = vmax.f32 %v367_v37, 0.0  ;;  %v431_v39 = vpop.f32.mrf.mxu1 }
  0xdc   : > { %533 = vst.msk [vmem:[%s799_s21 + $0xb0] sm:$0xff] %vm510_vm1, %v500_v36  ;;  %v498_v40 = vmax.f32 %v431_v39, 0.0  ;;  %v669_v41 = vpop.f32.mrf.mxu0 }
  0xdd   : > { %515 = vst.msk [vmem:[%s799_s21 + $0x20] sm:$0xff] %vm510_vm1, %v482_v38  ;;  %v485_v42 = vmax.f32 %v669_v41, 0.0  ;;  %v685_v43 = vpop.f32.mrf.mxu1 }
  0xde   : > { %531 = vst.msk [vmem:[%s799_s21 + $0xa0] sm:$0xff] %vm510_vm1, %v498_v40  ;;  %v501_v44 = vmax.f32 %v685_v43, 0.0  ;;  %v370_v45 = vpop.f32.mrf.mxu0 }
  0xdf   : > { %518 = vst.msk [vmem:[%s799_s21 + $0x38] sm:$0xff] %vm510_vm1, %v485_v42  ;;  %v483_v46 = vmax.f32 %v370_v45, 0.0  ;;  %v434_v47 = vpop.f32.mrf.mxu1 }
  0xe0   : > { %534 = vst.msk [vmem:[%s799_s21 + $0xb8] sm:$0xff] %vm510_vm1, %v501_v44  ;;  %v499_v48 = vmax.f32 %v434_v47, 0.0  ;;  %v672_v49 = vpop.f32.mrf.mxu0 }
  0xe1   : > { %516 = vst.msk [vmem:[%s799_s21 + $0x28] sm:$0xff] %vm510_vm1, %v483_v46  ;;  %v488_v50 = vmax.f32 %v672_v49, 0.0  ;;  %v688_v51 = vpop.f32.mrf.mxu1 }
  0xe2   : > { %532 = vst.msk [vmem:[%s799_s21 + $0xa8] sm:$0xff] %vm510_vm1, %v499_v48  ;;  %v504_v52 = vmax.f32 %v688_v51, 0.0  ;;  %v383_v53 = vpop.f32.mrf.mxu0 }
  0xe3   : > { %521 = vst.msk [vmem:[%s799_s21 + $0x50] sm:$0xff] %vm510_vm1, %v488_v50  ;;  %v486_v54 = vmax.f32 %v383_v53, 0.0  ;;  %v447_v55 = vpop.f32.mrf.mxu1 }
  0xe4   : > { %537 = vst.msk [vmem:[%s799_s21 + $0xd0] sm:$0xff] %vm510_vm1, %v504_v52  ;;  %v502_v56 = vmax.f32 %v447_v55, 0.0  ;;  %v673_v57 = vpop.f32.mrf.mxu0 }
  0xe5   : > { %519 = vst.msk [vmem:[%s799_s21 + $0x40] sm:$0xff] %vm510_vm1, %v486_v54  ;;  %v489_v58 = vmax.f32 %v673_v57, 0.0  ;;  %v689_v59 = vpop.f32.mrf.mxu1 }
  0xe6   : > { %535 = vst.msk [vmem:[%s799_s21 + $0xc0] sm:$0xff] %vm510_vm1, %v502_v56  ;;  %v505_v60 = vmax.f32 %v689_v59, 0.0  ;;  %v386_v61 = vpop.f32.mrf.mxu0 }
  0xe7   : > { %522 = vst.msk [vmem:[%s799_s21 + $0x58] sm:$0xff] %vm510_vm1, %v489_v58  ;;  %v487_v62 = vmax.f32 %v386_v61, 0.0  ;;  %v450_v63 = vpop.f32.mrf.mxu1 }
  0xe8   : > { %538 = vst.msk [vmem:[%s799_s21 + $0xd8] sm:$0xff] %vm510_vm1, %v505_v60  ;;  %v503_v0 = vmax.f32 %v450_v63, 0.0  ;;  %v676_v1 = vpop.f32.mrf.mxu0 }
  0xe9   : > { %520 = vst.msk [vmem:[%s799_s21 + $0x48] sm:$0xff] %vm510_vm1, %v487_v62  ;;  %v492_v2 = vmax.f32 %v676_v1, 0.0  ;;  %v692_v3 = vpop.f32.mrf.mxu1 }
  0xea   : > { %536 = vst.msk [vmem:[%s799_s21 + $0xc8] sm:$0xff] %vm510_vm1, %v503_v0  ;;  %v508_v4 = vmax.f32 %v692_v3, 0.0  ;;  %v399_v5 = vpop.f32.mrf.mxu0 }
  0xeb   : > { %525 = vst.msk [vmem:[%s799_s21 + $0x70] sm:$0xff] %vm510_vm1, %v492_v2  ;;  %v490_v6 = vmax.f32 %v399_v5, 0.0  ;;  %v463_v7 = vpop.f32.mrf.mxu1 }
  0xec   : > { %541 = vst.msk [vmem:[%s799_s21 + $0xf0] sm:$0xff] %vm510_vm1, %v508_v4  ;;  %v506_v8 = vmax.f32 %v463_v7, 0.0  ;;  %v677_v9 = vpop.f32.mrf.mxu0 }
  0xed   : > { %523 = vst.msk [vmem:[%s799_s21 + $0x60] sm:$0xff] %vm510_vm1, %v490_v6  ;;  %v493_v10 = vmax.f32 %v677_v9, 0.0  ;;  %v693_v11 = vpop.f32.mrf.mxu1 }
  0xee   : > { %539 = vst.msk [vmem:[%s799_s21 + $0xe0] sm:$0xff] %vm510_vm1, %v506_v8  ;;  %v509_v12 = vmax.f32 %v693_v11, 0.0  ;;  %v402_v13 = vpop.f32.mrf.mxu0 }
  0xef   : > { %526 = vst.msk [vmem:[%s799_s21 + $0x78] sm:$0xff] %vm510_vm1, %v493_v10  ;;  %v491_v14 = vmax.f32 %v402_v13, 0.0  ;;  %v466_v15 = vpop.f32.mrf.mxu1 }
  0xf0   : > { %542 = vst.msk [vmem:[%s799_s21 + $0xf8] sm:$0xff] %vm510_vm1, %v509_v12  ;;  %v507_v16 = vmax.f32 %v466_v15, 0.0 }
  0xf1   : > { %524 = vst.msk [vmem:[%s799_s21 + $0x68] sm:$0xff] %vm510_vm1, %v491_v14 }
  0xf2   : > { %540 = vst.msk [vmem:[%s799_s21 + $0xe8] sm:$0xff] %vm510_vm1, %v507_v16 }
  0xf3 PF: > { %s12_s9 = sadd.s32 1, %s727_s9  }
  0xf4   : > { %p9_p4 = scmp.ge.s32.totalorder %s12_s9, 4  }
  0xf6   :  { %11 = sbr.rel (!%p9_p4) target bundleno = 1 (0x1), region = 58 }

// kernel: generator_forward.9
= control target key start
LH: loop header
LB: loop body
LE: loop exit
PB: predicated region body
PF: predicated region fallthrough
CT: control target
= control target key end

     0   :  { %9 = vsyncpa [#allocation3], 0  ;;  %s1305_s0 = inlined_call_operand.vmem [shape: bf16[112,288], index: 0, kind: input, shape index: {}]   ;;  %s1306_s1 = inlined_call_operand.vmem [shape: bf16[288,64], index: 1, kind: input, shape index: {}]   ;;  %s1307_s2 = inlined_call_operand.hbm [shape: f32[1,64], index: 2, kind: input, shape index: {}]   ;;  %s1308_s3 = inlined_call_operand.hbm [shape: f32[1,64], index: 3, kind: input, shape index: {}]   ;;  %s1309_s4 = inlined_call_operand.vmem [shape: f32[112,64], index: 4, kind: output, shape index: {}]  }
   0x1   :  { %10 = vsyncpa [#allocation5], 0  ;;  %s953_s15 = smov [#allocation2]   ;;  %s954_s17 = smov [#allocation4]  }
   0x2   :  { %s21_s16 = sshll.u32 %s953_s15, 4  ;;  %s31_s18 = sshll.u32 %s954_s17, 4  ;;  %s22_s16 = int_to_ptr.vmem [resolvable:$true] %s21_s16  ;;  %s32_s18 = int_to_ptr.vmem [resolvable:$true] %s31_s18 }
   0x3   :  { %s917_s19 = scalar_lea.vmem %s22_s16, 16  ;;  %s921_s20 = scalar_lea.vmem %s22_s16, 32 }
   0x4   :  { %p918_p0 = scmp.ne.s32.totalorder %s22_s16, %s917_s19  ;;  %p922_p1 = scmp.lt.s32.totalorder %s22_s16, %s22_s16 }
   0x5   :  { %p923_p2 = scmp.lt.s32.totalorder %s921_s20, %s917_s19 }
   0x7   :  { %p924_p3 = por %p923_p2, %p922_p1 }
   0x9   :  { %p925_p4 = pnand %p924_p3, %p918_p0 }
   0xb   :  { %928 = shalt.err (!%p925_p4)
}
   0xc   :  { %24 = dma.hbm_to_vmem [thread:$0]  %s1307_s2, 16, %s22_s16, [#allocation3]  }
   0xd   :  { %s937_s23 = scalar_lea.vmem %s32_s18, 16  ;;  %s941_s24 = scalar_lea.vmem %s32_s18, 32 }
   0xe   :  { %p938_p5 = scmp.ne.s32.totalorder %s32_s18, %s937_s23  ;;  %p942_p6 = scmp.lt.s32.totalorder %s32_s18, %s32_s18 }
   0xf   :  { %p943_p7 = scmp.lt.s32.totalorder %s941_s24, %s937_s23 }
  0x11   :  { %p944_p8 = por %p943_p7, %p942_p6 }
  0x13   :  { %p945_p9 = pnand %p944_p8, %p938_p5 }
  0x15   :  { %948 = shalt.err (!%p945_p9)
}
  0x16   :  { %34 = dma.hbm_to_vmem [thread:$0]  %s1308_s3, 16, %s32_s18, [#allocation5]  }
  0x17   :  { %949 = dma.done.wait [#allocation3], 16  }
  0x18   :  { %950 = vsyncadd [#allocation3], 4294967280 }
  0x19   :  { %951 = dma.done.wait [#allocation5], 16  }
  0x1a   :  { %952 = vsyncadd [#allocation5], 4294967280  ;;  %v955_v0 = vmov 0.0   ;;  %vm956_vm0 = vmmov 0   ;;  %v861_v1 = vld [vmem:[%s1306_s1 + $0x78] sm:$0xff]   ;;  %v863_v3 = vld [vmem:[%s1306_s1 + $0x70] sm:$0xff]  }
  0x1b   :  { %825 = vmatprep.subr.bf16.mxu1 %v955_v0  ;;  %829 = vmatprep.mubr.msk.bf16.mxu1 %vm956_vm0, %v955_v0  ;;  %v862_v2 = vld [vmem:[%s1306_s1 + $0x38] sm:$0xff]   ;;  %v864_v4 = vld [vmem:[%s1306_s1 + $0x30] sm:$0xff]   ;;  %v865_v5 = vld [vmem:[%s1306_s1 + $0x68] sm:$0xff]   ;;  %vm321_vm1 = vcmask 261120   ;;  %vm521_vm2 = vcmask 523264  }
  0x1c   :  { %758 = vmatprep.subr.bf16.mxu0 %v861_v1  ;;  %v866_v6 = vld [vmem:[%s1306_s1 + $0x28] sm:$0xff]   ;;  %v867_v7 = vld [vmem:[%s1306_s1 + $0x60] sm:$0xff]   ;;  %v869_v9 = vld [vmem:[%s1306_s1 + $0x58] sm:$0xff]  }
  0x1d   :  { %759 = vmatpush3.bf16.msra.mxu0 %v862_v2  ;;  %v868_v8 = vld [vmem:[%s1306_s1 + $0x20] sm:$0xff]   ;;  %v873_v10 = vld [vmem:[%s1306_s1 + $0x88] sm:$0xff]   ;;  %v870_v11 = vld [vmem:[%s1306_s1 + $0x18] sm:$0xff]  }
  0x1e   :  { %760 = vmatprep.subr.bf16.mxu0 %v863_v3  ;;  %826 = vmatpush3.bf16.msra.mxu1 %v873_v10  ;;  %v876_v12 = vld [vmem:[%s1306_s1 + $0x80] sm:$0xff]   ;;  %v871_v13 = vld [vmem:[%s1306_s1 + $0x50] sm:$0xff]   ;;  %v874_v16 = vld [vmem:[%s1306_s1 + $0x48] sm:$0xff]  }
  0x1f   :  { %827 = vmatprep.subr.bf16.mxu1 %v955_v0  ;;  %v872_v14 = vld [vmem:[%s1306_s1 + $0x10] sm:$0xff]   ;;  %v875_v18 = vld [vmem:[%s1306_s1 + $0x8] sm:$0xff]   ;;  %v877_v19 = vld [vmem:[%s1306_s1 + $0x40] sm:$0xff]  }
  0x20   :  { %v879_v15 = vld [vmem:[%s1305_s0 + $0x8] ss:$12 sps:$4 sm:$0xff]   ;;  %v882_v17 = vld [vmem:[%s1305_s0 + $0x4] ss:$12 sps:$4 sm:$0xff]   ;;  %v883_v20 = vld [vmem:[%s1305_s0 + $0x20] ss:$12 sps:$4 sm:$0xff]  }
  0x21   :  { %761 = vmatpush3.bf16.msra.mxu0 %v864_v4  ;;  %375 = vmatprep.mubr.bf16.mxu0 %v882_v17  ;;  %v878_v21 = vld [vmem:[%s1306_s1] sm:$0xff]   ;;  %v884_v23 = vld [vmem:[%s1305_s0 + $0x1c] ss:$12 sps:$4 sm:$0xff]   ;;  %v892_v29 = vld [vmem:[%s1305_s0 + $0x4c] ss:$12 sps:$4 sm:$0xff]  }
  0x22   :  { %762 = vmatprep.subr.bf16.mxu0 %v865_v5  ;;  %828 = vmatpush3.bf16.msra.mxu1 %v876_v12  ;;  %v880_v22 = vld [vmem:[%s1305_s0] ss:$12 sps:$4 sm:$0xff]   ;;  %v887_v24 = vld [vmem:[%s1305_s0 + $0x38] ss:$12 sps:$4 sm:$0xff]   ;;  %v891_v27 = vld [vmem:[%s1305_s0 + $0x50] ss:$12 sps:$4 sm:$0xff]  }
  0x23   :  { %v886_v25 = vld [vmem:[%s1305_s0 + $0x18] ss:$12 sps:$4 sm:$0xff]   ;;  %v888_v26 = vld [vmem:[%s1305_s0 + $0x34] ss:$12 sps:$4 sm:$0xff]   ;;  %v890_v28 = vld [vmem:[%s1305_s0 + $0x30] ss:$12 sps:$4 sm:$0xff]  }
  0x24   :  { %v895_v30 = vld [vmem:[%s1305_s0 + $0x68] ss:$12 sps:$4 sm:$0xff]   ;;  %v896_v32 = vld [vmem:[%s1305_s0 + $0x64] ss:$12 sps:$4 sm:$0xff]   ;;  %v899_v33 = vld [vmem:[%s1305_s0 + $0x80] ss:$12 sps:$4 sm:$0xff]  }
  0x25   :  { %763 = vmatpush3.bf16.msra.mxu0 %v866_v6  ;;  %830 = vmatmul.mubr.msk.bf16.vlgmr.msra.gmra.mxu1 %vm321_vm1, %v879_v15  ;;  %v894_v31 = vld [vmem:[%s1305_s0 + $0x48] ss:$12 sps:$4 sm:$0xff]   ;;  %v898_v34 = vld [vmem:[%s1305_s0 + $0x60] ss:$12 sps:$4 sm:$0xff]   ;;  %v903_v36 = vld [vmem:[%s1305_s0 + $0x98] ss:$12 sps:$4 sm:$0xff]  }
  0x26   :  { %764 = vmatprep.subr.bf16.mxu0 %v867_v7  ;;  %833 = vmatprep.mubr.msk.bf16.mxu1 %vm956_vm0, %v955_v0  ;;  %v900_v35 = vld [vmem:[%s1305_s0 + $0x7c] ss:$12 sps:$4 sm:$0xff]   ;;  %v902_v37 = vld [vmem:[%s1305_s0 + $0x78] ss:$12 sps:$4 sm:$0xff]   ;;  %v904_v38 = vld [vmem:[%s1305_s0 + $0x94] ss:$12 sps:$4 sm:$0xff]  }
  0x27   :  { %v906_v39 = vld [vmem:[%s1305_s0 + $0x90] ss:$12 sps:$4 sm:$0xff]  }
  0x29   :  { %765 = vmatpush3.bf16.msra.mxu0 %v868_v8 }
  0x2a   :  { %766 = vmatprep.subr.bf16.mxu0 %v869_v9 }
  0x2d   :  { %767 = vmatpush3.bf16.msra.mxu0 %v870_v11  ;;  %834 = vmatmul.mubr.msk.bf16.gmra.mxu1 %vm321_vm1, %v883_v20 }
  0x2e   :  { %768 = vmatprep.subr.bf16.mxu0 %v871_v13  ;;  %837 = vmatprep.mubr.msk.bf16.mxu1 %vm956_vm0, %v955_v0 }
  0x31   :  { %769 = vmatpush3.bf16.msra.mxu0 %v872_v14 }
  0x32   :  { %770 = vmatprep.subr.bf16.mxu0 %v874_v16 }
  0x35   :  { %771 = vmatpush3.bf16.msra.mxu0 %v875_v18  ;;  %838 = vmatmul.mubr.msk.bf16.gmra.mxu1 %vm321_vm1, %v887_v24 }
  0x36   :  { %772 = vmatprep.subr.bf16.mxu0 %v877_v19  ;;  %841 = vmatprep.mubr.msk.bf16.mxu1 %vm956_vm0, %v955_v0 }
  0x39   :  { %773 = vmatpush3.bf16.msra.mxu0 %v878_v21 }
  0x3c   :  { %376 = vmatmul.mubr.bf16.vlgmr.msra.gmra.mxu0 %v880_v22 }
  0x3d   :  { %383 = vmatprep.mubr.bf16.mxu0 %v884_v23  ;;  %842 = vmatmul.mubr.msk.bf16.gmra.mxu1 %vm321_vm1, %v891_v27 }
  0x3e   :  { %845 = vmatprep.mubr.msk.bf16.mxu1 %vm956_vm0, %v955_v0 }
  0x44   :  { %384 = vmatmul.mubr.bf16.gmra.mxu0 %v886_v25 }
  0x45   :  { %391 = vmatprep.mubr.bf16.mxu0 %v888_v26  ;;  %846 = vmatmul.mubr.msk.bf16.gmra.mxu1 %vm321_vm1, %v895_v30 }
  0x46   :  { %849 = vmatprep.mubr.msk.bf16.mxu1 %vm956_vm0, %v955_v0 }
  0x4c   :  { %392 = vmatmul.mubr.bf16.gmra.mxu0 %v890_v28 }
  0x4d   :  { %399 = vmatprep.mubr.bf16.mxu0 %v892_v29  ;;  %850 = vmatmul.mubr.msk.bf16.gmra.mxu1 %vm321_vm1, %v899_v33 }
  0x4e   :  { %853 = vmatprep.mubr.msk.bf16.mxu1 %vm956_vm0, %v955_v0 }
  0x54   :  { %400 = vmatmul.mubr.bf16.gmra.mxu0 %v894_v31 }
  0x55   :  { %407 = vmatprep.mubr.bf16.mxu0 %v896_v32  ;;  %854 = vmatmul.mubr.msk.bf16.gmra.mxu1 %vm321_vm1, %v903_v36 }
  0x5c   :  { %408 = vmatmul.mubr.bf16.gmra.mxu0 %v898_v34 }
  0x5d   :  { %415 = vmatprep.mubr.bf16.mxu0 %v900_v35 }
  0x64   :  { %416 = vmatmul.mubr.bf16.gmra.mxu0 %v902_v37 }
  0x65   :  { %423 = vmatprep.mubr.bf16.mxu0 %v904_v38 }
  0x6c   :  { %424 = vmatmul.mubr.bf16.gmra.mxu0 %v906_v39 }
  0xe5   :  { %v466_v40 = vpop.f32.mrf.mxu1 }
  0xe7   :  { %v831_v41 = vpop.f32.mrf.mxu1 }
  0xe9   :  { %v469_v42 = vpop.f32.mrf.mxu1 }
  0xeb   :  { %v832_v43 = vpop.f32.mrf.mxu1 }
  0xed   :  { %v474_v44 = vpop.f32.mrf.mxu1 }
  0xef   :  { %v835_v45 = vpop.f32.mrf.mxu1 }
  0xf1   :  { %v477_v46 = vpop.f32.mrf.mxu1 }
  0xf3   :  { %v836_v48 = vpop.f32.mrf.mxu1 }
  0xf5   :  { %v482_v50 = vpop.f32.mrf.mxu1 }
  0xf7   :  { %v839_v52 = vpop.f32.mrf.mxu1 }
  0xf9   :  { %v485_v54 = vpop.f32.mrf.mxu1 }
  0xfb   :  { %v840_v56 = vpop.f32.mrf.mxu1 }
  0xfc   :  { %v774_v47 = vpop.f32.mrf.mxu0 }
  0xfd   :  { %v490_v58 = vpop.f32.mrf.mxu1 }
  0xfe   :  { %v775_v49 = vpop.f32.mrf.mxu0 }
  0xff   :  { %v843_v60 = vpop.f32.mrf.mxu1  ;;  %v776_v8 = vadd.f32 %v775_v49, %v774_v47 }
 0x100   :  { %v777_v51 = vpop.f32.mrf.mxu0 }
 0x101   :  { %v493_v62 = vpop.f32.mrf.mxu1  ;;  %v1136_v16 = vadd.f32 %v776_v8, %v466_v40 }
 0x102   :  { %v778_v53 = vpop.f32.mrf.mxu0 }
 0x103   :  { %v844_v0 = vpop.f32.mrf.mxu1  ;;  %v779_v6 = vadd.f32 %v778_v53, %v777_v51  ;;  %v556_v26 = vmul.f32 %v1136_v16, %v1136_v16  ;;  %v522_v33 = vsel %vm521_vm2, %v1136_v16, 0.0 }
 0x104   :  { %v780_v55 = vpop.f32.mrf.mxu0 }
 0x105   :  { %v1128_v2 = vpop.f32.mrf.mxu1  ;;  %v1132_v13 = vadd.f32 %v779_v6, %v469_v42  ;;  %v570_v41 = vsel %vm521_vm2, %v556_v26, 0.0 }
 0x106   :  { %v781_v57 = vpop.f32.mrf.mxu0 }
 0x107   :  { %v847_v4 = vpop.f32.mrf.mxu1  ;;  %v782_v9 = vadd.f32 %v781_v57, %v780_v55  ;;  %v557_v23 = vmul.f32 %v1132_v13, %v1132_v13  ;;  %v523_v29 = vsel %vm521_vm2, %v1132_v13, 0.0 }
 0x108   :  { %v783_v59 = vpop.f32.mrf.mxu0  ;;  %v524_v42 = vadd.f32 %v523_v29, %v522_v33 }
 0x109   :  { %v1130_v7 = vpop.f32.mrf.mxu1  ;;  %v1138_v17 = vadd.f32 %v782_v9, %v474_v44  ;;  %v571_v36 = vsel %vm521_vm2, %v557_v23, 0.0 }
 0x10a   :  { %v784_v61 = vpop.f32.mrf.mxu0 }
 0x10b   :  { %v848_v11 = vpop.f32.mrf.mxu1  ;;  %v785_v14 = vadd.f32 %v784_v61, %v783_v59  ;;  %v558_v27 = vmul.f32 %v1138_v17, %v1138_v17  ;;  %v525_v37 = vsel %vm521_vm2, %v1138_v17, 0.0 }
 0x10c   :  { %v786_v63 = vpop.f32.mrf.mxu0  ;;  %v526_v51 = vadd.f32 %v525_v37, %v524_v42 }
 0x10d   :  { %v1134_v15 = vpop.f32.mrf.mxu1  ;;  %v1142_v24 = vadd.f32 %v785_v14, %v477_v46  ;;  %v573_v43 = vsel %vm521_vm2, %v558_v27, 0.0 }
 0x10e   :  { %v787_v1 = vpop.f32.mrf.mxu0 }
 0x10f   :  { %v788_v19 = vadd.f32 %v787_v1, %v786_v63  ;;  %v851_v20 = vpop.f32.mrf.mxu1  ;;  %v559_v38 = vmul.f32 %v1142_v24, %v1142_v24  ;;  %v527_v45 = vsel %vm521_vm2, %v1142_v24, 0.0 }
 0x110   :  { %v789_v3 = vpop.f32.mrf.mxu0 }
 0x111   :  { %v1144_v25 = vpop.f32.mrf.mxu1  ;;  %v1152_v30 = vadd.f32 %v788_v19, %v482_v50  ;;  %v572_v50 = vadd.f32 %v571_v36, %v570_v41 }
 0x112   :  { %v790_v5 = vpop.f32.mrf.mxu0 }
 0x113   :  { %v791_v21 = vadd.f32 %v790_v5, %v789_v3  ;;  %v852_v32 = vpop.f32.mrf.mxu1  ;;  %v560_v46 = vmul.f32 %v1152_v30, %v1152_v30  ;;  %v529_v55 = vsel %vm521_vm2, %v1152_v30, 0.0  ;;  %v574_v60 = vadd.f32 %v573_v43, %v572_v50 }
 0x114   :  { %v792_v10 = vpop.f32.mrf.mxu0 }
 0x115   :  { %v1156_v34 = vadd.f32 %v791_v21, %v485_v54  ;;  %v1163_v40 = vpop.f32.mrf.mxu1  ;;  %v575_v54 = vsel %vm521_vm2, %v559_v38, 0.0  ;;  %v577_v63 = vsel %vm521_vm2, %v560_v46, 0.0 }
 0x116   :  { %v793_v12 = vpop.f32.mrf.mxu0  ;;  %v576_v5 = vadd.f32 %v575_v54, %v574_v60 }
 0x117   :  { %v794_v31 = vadd.f32 %v793_v12, %v792_v10  ;;  %v855_v49 = vpop.f32.mrf.mxu1  ;;  %v561_v52 = vmul.f32 %v1156_v34, %v1156_v34  ;;  %v531_v0 = vsel %vm521_vm2, %v1156_v34, 0.0 }
 0x118   :  { %v795_v18 = vpop.f32.mrf.mxu0  ;;  %v578_v14 = vadd.f32 %v577_v63, %v576_v5 }
 0x119   :  { %v1171_v47 = vadd.f32 %v794_v31, %v490_v58  ;;  %v517_v59 = vpop.f32.mrf.mxu1  ;;  %v528_v58 = vadd.f32 %v527_v45, %v526_v51  ;;  %v579_v6 = vsel %vm521_vm2, %v561_v52, 0.0 }
 0x11a   :  { %v796_v22 = vpop.f32.mrf.mxu0  ;;  %v580_v23 = vadd.f32 %v579_v6, %v578_v14 }
 0x11b   :  { %v797_v39 = vadd.f32 %v796_v22, %v795_v18  ;;  %v562_v1 = vmul.f32 %v1171_v47, %v1171_v47  ;;  %v856_v4 = vpop.f32.mrf.mxu1  ;;  %v533_v9 = vsel %vm521_vm2, %v1171_v47, 0.0 }
 0x11c   :  { %v798_v28 = vpop.f32.mrf.mxu0 }
 0x11d   :  { %v1178_v56 = vadd.f32 %v797_v39, %v493_v62  ;;  %v530_v62 = vadd.f32 %v529_v55, %v528_v58  ;;  %v581_v19 = vsel %vm521_vm2, %v562_v1, 0.0 }
 0x11e   :  { %v799_v35 = vpop.f32.mrf.mxu0  ;;  %v582_v32 = vadd.f32 %v581_v19, %v580_v23 }
 0x11f   :  { %v800_v48 = vadd.f32 %v799_v35, %v798_v28  ;;  %v563_v10 = vmul.f32 %v1178_v56, %v1178_v56  ;;  %v532_v18 = vadd.f32 %v531_v0, %v530_v62  ;;  %v535_v20 = vsel %vm521_vm2, %v1178_v56, 0.0 }
 0x120   :  { %v801_v44 = vpop.f32.mrf.mxu0 }
 0x121   :  { %v1186_v3 = vadd.f32 %v800_v48, %v1128_v2  ;;  %v534_v26 = vadd.f32 %v533_v9, %v532_v18 }
 0x122   :  { %v802_v53 = vpop.f32.mrf.mxu0 }
 0x123   :  { %v803_v57 = vadd.f32 %v802_v53, %v801_v44  ;;  %v564_v21 = vmul.f32 %v1186_v3, %v1186_v3  ;;  %v537_v28 = vsel %vm521_vm2, %v1186_v3, 0.0  ;;  %v536_v33 = vadd.f32 %v535_v20, %v534_v26 }
 0x124   :  { %v804_v61 = vpop.f32.mrf.mxu0 }
 0x125   :  { %v1194_v11 = vadd.f32 %v803_v57, %v1130_v7  ;;  %v583_v7 = vsel %vm521_vm2, %v563_v10, 0.0  ;;  %v585_v36 = vsel %vm521_vm2, %v564_v21, 0.0  ;;  %v538_v41 = vadd.f32 %v537_v28, %v536_v33 }
 0x126   :  { %v805_v8 = vpop.f32.mrf.mxu0  ;;  %v584_v39 = vadd.f32 %v583_v7, %v582_v32 }
 0x127   :  { %v806_v12 = vadd.f32 %v805_v8, %v804_v61  ;;  %v565_v29 = vmul.f32 %v1194_v11, %v1194_v11 }
 0x128   :  { %v807_v2 = vpop.f32.mrf.mxu0  ;;  %v586_v48 = vadd.f32 %v585_v36, %v584_v39 }
 0x129   :  { %v1202_v22 = vadd.f32 %v806_v12, %v1134_v15  ;;  %v539_v15 = vsel %vm521_vm2, %v1194_v11, 0.0  ;;  %v587_v43 = vsel %vm521_vm2, %v565_v29, 0.0 }
 0x12a   :  { %v808_v27 = vpop.f32.mrf.mxu0  ;;  %v540_v49 = vadd.f32 %v539_v15, %v538_v41  ;;  %v588_v53 = vadd.f32 %v587_v43, %v586_v48 }
 0x12b   :  { %v809_v31 = vadd.f32 %v808_v27, %v807_v2  ;;  %v566_v37 = vmul.f32 %v1202_v22, %v1202_v22  ;;  %v541_v44 = vsel %vm521_vm2, %v1202_v22, 0.0 }
 0x12c   :  { %v810_v35 = vpop.f32.mrf.mxu0  ;;  %v542_v54 = vadd.f32 %v541_v44, %v540_v49  ;;  %v756_v49 = vld [vmem:[#allocation2] ss:$0 sm:$0xff] }
 0x12d   :  { %v1215_v38 = vadd.f32 %v809_v31, %v1144_v25  ;;  %v589_v51 = vsel %vm521_vm2, %v566_v37, 0.0 }
 0x12e   :  { %v811_v42 = vpop.f32.mrf.mxu0  ;;  %v590_v63 = vadd.f32 %v589_v51, %v588_v53 }
 0x12f   :  { %v567_v45 = vmul.f32 %v1215_v38, %v1215_v38  ;;  %v812_v46 = vadd.f32 %v811_v42, %v810_v35  ;;  %v543_v25 = vsel %vm521_vm2, %v1215_v38, 0.0 }
 0x130   :  { %v813_v50 = vpop.f32.mrf.mxu0  ;;  %v544_v0 = vadd.f32 %v543_v25, %v542_v54 }
 0x131   :  { %v1226_v52 = vadd.f32 %v812_v46, %v1163_v40  ;;  %v591_v57 = vsel %vm521_vm2, %v567_v45, 0.0 }
 0x132   :  { %v814_v55 = vpop.f32.mrf.mxu0  ;;  %v592_v5 = vadd.f32 %v591_v57, %v590_v63 }
 0x133   :  { %v545_v60 = vsel %vm521_vm2, %v1226_v52, 0.0  ;;  %v568_v58 = vmul.f32 %v1226_v52, %v1226_v52  ;;  %v815_v61 = vadd.f32 %v814_v55, %v813_v50 }
 0x134   :  { %v546_v40 = vadd.f32 %v545_v60, %v544_v0 }
 0x135   :  { %v593_v1 = vsel %vm521_vm2, %v568_v58, 0.0  ;;  %v518_v4 = vadd.f32 %v815_v61, %v517_v59  ;;  %v757_v58 = vld [vmem:[#allocation4] ss:$0 sm:$0xff] }
 0x136   :  { %v594_v8 = vadd.f32 %v593_v1, %v592_v5 }
 0x137   :  { %v547_v62 = vsel %vm521_vm2, %v518_v4, 0.0  ;;  %v569_v6 = vmul.f32 %v518_v4, %v518_v4 }
 0x138   :  { %v548_v9 = vadd.f32 %v547_v62, %v546_v40 }
 0x139   :  { %v595_v10 = vsel %vm521_vm2, %v569_v6, 0.0 }
 0x13a   :  { %v549_v12 = vrot.slane %v548_v9, 4  ;;  %v596_v14 = vadd.f32 %v595_v10, %v594_v8 }
 0x13c   :  { %v550_v18 = vadd.f32 %v549_v12, %v548_v9  ;;  %v597_v2 = vrot.slane %v596_v14, 4 }
 0x13e   :  { %v551_v19 = vrot.slane %v550_v18, 2  ;;  %v598_v20 = vadd.f32 %v597_v2, %v596_v14 }
 0x140   :  { %v552_v21 = vadd.f32 %v551_v19, %v550_v18  ;;  %v599_v23 = vrot.slane %v598_v20, 2 }
 0x142   :  { %v553_v26 = vrot.slane %v552_v21, 1  ;;  %v600_v27 = vadd.f32 %v599_v23, %v598_v20 }
 0x144   :  { %v554_v59 = vadd.f32 %v553_v26, %v552_v21  ;;  %v601_v7 = vrot.slane %v600_v27, 1 }
 0x146   :  { %v555_v28 = vmul.f32 0.010204081, %v554_v59  ;;  %v602_v29 = vadd.f32 %v601_v7, %v600_v27 }
 0x148   :  { %v603_v31 = vmul.f32 0.010204081, %v602_v29  ;;  %v604_v32 = vmul.f32 %v555_v28, %v555_v28  ;;  %v606_v36 = vsub.f32 %v1136_v16, %v555_v28  ;;  %v607_v15 = vsub.f32 %v1132_v13, %v555_v28 }
 0x149   :  { %v608_v37 = vsub.f32 %v1138_v17, %v555_v28  ;;  %v609_v39 = vsub.f32 %v1142_v24, %v555_v28  ;;  %v610_v41 = vsub.f32 %v1152_v30, %v555_v28  ;;  %v611_v42 = vsub.f32 %v1156_v34, %v555_v28 }
 0x14a   :  { %v605_v33 = vsub.f32 %v603_v31, %v604_v32  ;;  %v612_v43 = vsub.f32 %v1171_v47, %v555_v28  ;;  %v613_v44 = vsub.f32 %v1178_v56, %v555_v28  ;;  %v614_v45 = vsub.f32 %v1186_v3, %v555_v28 }
 0x14b   :  { %v615_v46 = vsub.f32 %v1194_v11, %v555_v28  ;;  %v616_v16 = vsub.f32 %v1202_v22, %v555_v28  ;;  %v617_v13 = vsub.f32 %v1215_v38, %v555_v28  ;;  %v618_v17 = vsub.f32 %v1226_v52, %v555_v28 }
 0x14c   :  { %v620_v35 = vadd.f32 1e-05, %v605_v33  ;;  %v619_v24 = vsub.f32 %v518_v4, %v555_v28 }
 0x14e   :  { %907 = vrsqrt.f32 %v620_v35 }
 0x15b   :  { %v908_v48 = vpop.eup %907 }
 0x15c   :  { %v622_v30 = vmul.f32 %v908_v48, %v606_v36  ;;  %v623_v50 = vmul.f32 %v908_v48, %v607_v15  ;;  %v624_v34 = vmul.f32 %v908_v48, %v608_v37  ;;  %v625_v51 = vmul.f32 %v908_v48, %v609_v39 }
 0x15d   :  { %v626_v47 = vmul.f32 %v908_v48, %v610_v41  ;;  %v627_v25 = vmul.f32 %v908_v48, %v611_v42  ;;  %v628_v56 = vmul.f32 %v908_v48, %v612_v43  ;;  %v629_v53 = vmul.f32 %v908_v48, %v613_v44 }
 0x15e   :  { %v630_v3 = vmul.f32 %v908_v48, %v614_v45  ;;  %v631_v54 = vmul.f32 %v908_v48, %v615_v46  ;;  %v632_v11 = vmul.f32 %v908_v48, %v616_v16  ;;  %v633_v55 = vmul.f32 %v908_v48, %v617_v13 }
 0x15f   :  { %v634_v57 = vmul.f32 %v908_v48, %v618_v17  ;;  %v635_v22 = vmul.f32 %v908_v48, %v619_v24  ;;  %v642_v60 = vmul.f32 %v756_v49, %v622_v30  ;;  %v643_v38 = vmul.f32 %v756_v49, %v623_v50 }
 0x160   :  { %v644_v52 = vmul.f32 %v756_v49, %v624_v34  ;;  %v645_v61 = vmul.f32 %v756_v49, %v625_v51  ;;  %v646_v63 = vmul.f32 %v756_v49, %v626_v47  ;;  %v647_v0 = vmul.f32 %v756_v49, %v627_v25 }
 0x161   :  { %v648_v1 = vmul.f32 %v756_v49, %v628_v56  ;;  %v649_v4 = vmul.f32 %v756_v49, %v629_v53  ;;  %v650_v5 = vmul.f32 %v756_v49, %v630_v3  ;;  %v651_v40 = vmul.f32 %v756_v49, %v631_v54 }
 0x162   :  { %v652_v62 = vmul.f32 %v756_v49, %v632_v11  ;;  %v653_v6 = vmul.f32 %v756_v49, %v633_v55  ;;  %v654_v8 = vmul.f32 %v756_v49, %v634_v57  ;;  %v655_v9 = vmul.f32 %v756_v49, %v635_v22 }
 0x163   :  { %v662_v10 = vadd.f32 %v757_v58, %v642_v60  ;;  %v663_v12 = vadd.f32 %v757_v58, %v643_v38  ;;  %v664_v14 = vadd.f32 %v757_v58, %v644_v52  ;;  %v665_v18 = vadd.f32 %v757_v58, %v645_v61 }
 0x164   :  { %v666_v2 = vadd.f32 %v757_v58, %v646_v63  ;;  %v667_v19 = vadd.f32 %v757_v58, %v647_v0  ;;  %v668_v20 = vadd.f32 %v757_v58, %v648_v1  ;;  %v669_v21 = vadd.f32 %v757_v58, %v649_v4 }
 0x165   :  { %v670_v23 = vadd.f32 %v757_v58, %v650_v5  ;;  %v671_v26 = vadd.f32 %v757_v58, %v651_v40  ;;  %v672_v27 = vadd.f32 %v757_v58, %v652_v62  ;;  %v673_v59 = vadd.f32 %v757_v58, %v653_v6 }
 0x166   :  { %v674_v7 = vadd.f32 %v757_v58, %v654_v8  ;;  %v675_v28 = vadd.f32 %v757_v58, %v655_v9  ;;  %v676_v29 = vmax.f32 %v662_v10, 0.0  ;;  %v677_v31 = vmax.f32 %v663_v12, 0.0 }
 0x167   :  { %v678_v32 = vmax.f32 %v664_v14, 0.0  ;;  %v679_v33 = vmax.f32 %v665_v18, 0.0  ;;  %v680_v35 = vmax.f32 %v666_v2, 0.0  ;;  %v681_v36 = vmax.f32 %v667_v19, 0.0 }
 0x168   :  { %v682_v15 = vmax.f32 %v668_v20, 0.0  ;;  %v683_v37 = vmax.f32 %v669_v21, 0.0  ;;  %v684_v39 = vmax.f32 %v670_v23, 0.0  ;;  %v685_v41 = vmax.f32 %v671_v26, 0.0  ;;  %690 = vst.msk [vmem:[%s1309_s4] sm:$0xff] %vm521_vm2, %v676_v29  ;;  %691 = vst.msk [vmem:[%s1309_s4 + $0x8] sm:$0xff] %vm521_vm2, %v677_v31 }
 0x169   :  { %v686_v42 = vmax.f32 %v672_v27, 0.0  ;;  %v687_v43 = vmax.f32 %v673_v59, 0.0  ;;  %v688_v44 = vmax.f32 %v674_v7, 0.0  ;;  %v689_v45 = vmax.f32 %v675_v28, 0.0  ;;  %692 = vst.msk [vmem:[%s1309_s4 + $0x10] sm:$0xff] %vm521_vm2, %v678_v32  ;;  %693 = vst.msk [vmem:[%s1309_s4 + $0x18] sm:$0xff] %vm521_vm2, %v679_v33 }
 0x16a   :  { %694 = vst.msk [vmem:[%s1309_s4 + $0x20] sm:$0xff] %vm521_vm2, %v680_v35  ;;  %695 = vst.msk [vmem:[%s1309_s4 + $0x28] sm:$0xff] %vm521_vm2, %v681_v36 }
 0x16b   :  { %696 = vst.msk [vmem:[%s1309_s4 + $0x30] sm:$0xff] %vm521_vm2, %v682_v15  ;;  %697 = vst.msk [vmem:[%s1309_s4 + $0x38] sm:$0xff] %vm521_vm2, %v683_v37 }
 0x16c   :  { %698 = vst.msk [vmem:[%s1309_s4 + $0x40] sm:$0xff] %vm521_vm2, %v684_v39  ;;  %699 = vst.msk [vmem:[%s1309_s4 + $0x48] sm:$0xff] %vm521_vm2, %v685_v41 }
 0x16d   :  { %700 = vst.msk [vmem:[%s1309_s4 + $0x50] sm:$0xff] %vm521_vm2, %v686_v42  ;;  %701 = vst.msk [vmem:[%s1309_s4 + $0x58] sm:$0xff] %vm521_vm2, %v687_v43 }
 0x16e   :  { %702 = vst.msk [vmem:[%s1309_s4 + $0x60] sm:$0xff] %vm521_vm2, %v688_v44  ;;  %703 = vst.msk [vmem:[%s1309_s4 + $0x68] sm:$0xff] %vm521_vm2, %v689_v45 }
 0x16f   :  { %708 = vsyncpa [#allocation3], 1 }
 0x170   :  { %709 = vsyncpa [#allocation5], 1 }

// kernel: generator_forward.10
= control target key start
LH: loop header
LB: loop body
LE: loop exit
PB: predicated region body
PF: predicated region fallthrough
CT: control target
= control target key end

     0   :  { %9 = vsyncpa [#allocation3], 0  ;;  %s1023_s0 = inlined_call_operand.vmem [shape: bf16[32,576], index: 0, kind: input, shape index: {}]   ;;  %s1024_s1 = inlined_call_operand.vmem [shape: bf16[576,128], index: 1, kind: input, shape index: {}]   ;;  %s1025_s2 = inlined_call_operand.hbm [shape: f32[1,128], index: 2, kind: input, shape index: {}]   ;;  %s1026_s3 = inlined_call_operand.hbm [shape: f32[1,128], index: 3, kind: input, shape index: {}]   ;;  %s1027_s4 = inlined_call_operand.vmem [shape: f32[32,128], index: 4, kind: output, shape index: {}]  }
   0x1   :  { %10 = vsyncpa [#allocation5], 0  ;;  %s840_s15 = smov [#allocation2]   ;;  %s841_s17 = smov [#allocation4]  }
   0x2   :  { %s21_s16 = sshll.u32 %s840_s15, 4  ;;  %s31_s18 = sshll.u32 %s841_s17, 4  ;;  %s22_s16 = int_to_ptr.vmem [resolvable:$true] %s21_s16  ;;  %s32_s18 = int_to_ptr.vmem [resolvable:$true] %s31_s18 }
   0x3   :  { %s804_s19 = scalar_lea.vmem %s22_s16, 16  ;;  %s808_s20 = scalar_lea.vmem %s22_s16, 32 }
   0x4   :  { %p805_p0 = scmp.ne.s32.totalorder %s22_s16, %s804_s19  ;;  %p809_p1 = scmp.lt.s32.totalorder %s22_s16, %s22_s16 }
   0x5   :  { %p810_p2 = scmp.lt.s32.totalorder %s808_s20, %s804_s19 }
   0x7   :  { %p811_p3 = por %p810_p2, %p809_p1 }
   0x9   :  { %p812_p4 = pnand %p811_p3, %p805_p0 }
   0xb   :  { %815 = shalt.err (!%p812_p4)
}
   0xc   :  { %24 = dma.hbm_to_vmem [thread:$0]  %s1025_s2, 16, %s22_s16, [#allocation3]  }
   0xd   :  { %s824_s23 = scalar_lea.vmem %s32_s18, 16  ;;  %s828_s24 = scalar_lea.vmem %s32_s18, 32 }
   0xe   :  { %p825_p5 = scmp.ne.s32.totalorder %s32_s18, %s824_s23  ;;  %p829_p6 = scmp.lt.s32.totalorder %s32_s18, %s32_s18 }
   0xf   :  { %p830_p7 = scmp.lt.s32.totalorder %s828_s24, %s824_s23 }
  0x11   :  { %p831_p8 = por %p830_p7, %p829_p6 }
  0x13   :  { %p832_p9 = pnand %p831_p8, %p825_p5 }
  0x15   :  { %835 = shalt.err (!%p832_p9)
}
  0x16   :  { %34 = dma.hbm_to_vmem [thread:$0]  %s1026_s3, 16, %s32_s18, [#allocation5]  }
  0x17   :  { %836 = dma.done.wait [#allocation3], 16  }
  0x18   :  { %837 = vsyncadd [#allocation3], 4294967280 }
  0x19   :  { %838 = dma.done.wait [#allocation5], 16  }
  0x1a   :  { %839 = vsyncadd [#allocation5], 4294967280  ;;  %v744_v0 = vld [vmem:[%s1024_s1 + $0x78] sm:$0xff]   ;;  %v748_v4 = vld [vmem:[%s1024_s1 + $0x70] sm:$0xff]   ;;  %vm394_vm0 = vcmask 523264  }
  0x1b   :  { %v745_v1 = vld [vmem:[%s1024_s1 + $0xf8] sm:$0xff]   ;;  %668 = vmatprep.subr.bf16.mxu0 %v744_v0  ;;  %v749_v5 = vld [vmem:[%s1024_s1 + $0xf0] sm:$0xff]   ;;  %v752_v8 = vld [vmem:[%s1024_s1 + $0x68] sm:$0xff]  }
  0x1c   :  { %v746_v2 = vld [vmem:[%s1024_s1 + $0x38] sm:$0xff]   ;;  %696 = vmatprep.subr.bf16.mxu1 %v745_v1  ;;  %v750_v6 = vld [vmem:[%s1024_s1 + $0x30] sm:$0xff]   ;;  %v753_v9 = vld [vmem:[%s1024_s1 + $0xe8] sm:$0xff]  }
  0x1d   :  { %v747_v3 = vld [vmem:[%s1024_s1 + $0xb8] sm:$0xff]   ;;  %669 = vmatpush3.bf16.msra.mxu0 %v746_v2  ;;  %v751_v7 = vld [vmem:[%s1024_s1 + $0xb0] sm:$0xff]   ;;  %v754_v10 = vld [vmem:[%s1024_s1 + $0x28] sm:$0xff]  }
  0x1e   :  { %697 = vmatpush3.bf16.msra.mxu1 %v747_v3  ;;  %670 = vmatprep.subr.bf16.mxu0 %v748_v4  ;;  %v755_v11 = vld [vmem:[%s1024_s1 + $0xa8] sm:$0xff]   ;;  %v756_v12 = vld [vmem:[%s1024_s1 + $0x60] sm:$0xff]   ;;  %v760_v16 = vld [vmem:[%s1024_s1 + $0x58] sm:$0xff]  }
  0x1f   :  { %698 = vmatprep.subr.bf16.mxu1 %v749_v5  ;;  %v757_v13 = vld [vmem:[%s1024_s1 + $0xe0] sm:$0xff]   ;;  %v761_v17 = vld [vmem:[%s1024_s1 + $0xd8] sm:$0xff]   ;;  %v764_v20 = vld [vmem:[%s1024_s1 + $0x50] sm:$0xff]  }
  0x20   :  { %v758_v14 = vld [vmem:[%s1024_s1 + $0x20] sm:$0xff]   ;;  %v762_v18 = vld [vmem:[%s1024_s1 + $0x18] sm:$0xff]   ;;  %v765_v21 = vld [vmem:[%s1024_s1 + $0xd0] sm:$0xff]  }
  0x21   :  { %671 = vmatpush3.bf16.msra.mxu0 %v750_v6  ;;  %v759_v15 = vld [vmem:[%s1024_s1 + $0xa0] sm:$0xff]   ;;  %v763_v19 = vld [vmem:[%s1024_s1 + $0x98] sm:$0xff]   ;;  %v766_v22 = vld [vmem:[%s1024_s1 + $0x10] sm:$0xff]  }
  0x22   :  { %699 = vmatpush3.bf16.msra.mxu1 %v751_v7  ;;  %672 = vmatprep.subr.bf16.mxu0 %v752_v8  ;;  %v767_v23 = vld [vmem:[%s1024_s1 + $0x90] sm:$0xff]   ;;  %v768_v24 = vld [vmem:[%s1024_s1 + $0x48] sm:$0xff]   ;;  %v772_v28 = vld [vmem:[%s1024_s1 + $0x40] sm:$0xff]  }
  0x23   :  { %700 = vmatprep.subr.bf16.mxu1 %v753_v9  ;;  %v769_v25 = vld [vmem:[%s1024_s1 + $0xc8] sm:$0xff]   ;;  %v773_v29 = vld [vmem:[%s1024_s1 + $0xc0] sm:$0xff]   ;;  %v782_v36 = vld [vmem:[%s1024_s1 + $0x118] sm:$0xff]  }
  0x24   :  { %v770_v26 = vld [vmem:[%s1024_s1 + $0x8] sm:$0xff]   ;;  %v774_v30 = vld [vmem:[%s1024_s1] sm:$0xff]   ;;  %v783_v37 = vld [vmem:[%s1024_s1 + $0x110] sm:$0xff]  }
  0x25   :  { %673 = vmatpush3.bf16.msra.mxu0 %v754_v10  ;;  %v771_v27 = vld [vmem:[%s1024_s1 + $0x88] sm:$0xff]   ;;  %v775_v31 = vld [vmem:[%s1024_s1 + $0x80] sm:$0xff]  }
  0x26   :  { %701 = vmatpush3.bf16.msra.mxu1 %v755_v11  ;;  %674 = vmatprep.subr.bf16.mxu0 %v756_v12  ;;  %v776_v32 = vld [vmem:[%s1023_s0] ss:$20 sps:$4 sm:$0xff]   ;;  %v778_v33 = vld [vmem:[%s1023_s0 + $0x4] ss:$20 sps:$4 sm:$0xff]   ;;  %v779_v34 = vld [vmem:[%s1023_s0 + $0x8] ss:$20 sps:$4 sm:$0xff]  }
  0x27   :  { %702 = vmatprep.subr.bf16.mxu1 %v757_v13  ;;  %v781_v35 = vld [vmem:[%s1023_s0 + $0xc] ss:$20 sps:$4 sm:$0xff]   ;;  %433 = vmatprep.mubr.bf16.mxu0 %v778_v33  ;;  %v786_v39 = vld [vmem:[%s1023_s0 + $0x34] ss:$20 sps:$4 sm:$0xff]   ;;  %v789_v42 = vld [vmem:[%s1023_s0 + $0x30] ss:$20 sps:$4 sm:$0xff]  }
  0x28   :  { %482 = vmatprep.mubr.bf16.mxu1 %v781_v35  ;;  %v784_v38 = vld [vmem:[%s1023_s0 + $0x2c] ss:$20 sps:$4 sm:$0xff]   ;;  %v788_v40 = vld [vmem:[%s1023_s0 + $0x28] ss:$20 sps:$4 sm:$0xff]   ;;  %v792_v43 = vld [vmem:[%s1023_s0 + $0x10] ss:$20 sps:$4 sm:$0xff]  }
  0x29   :  { %675 = vmatpush3.bf16.msra.mxu0 %v758_v14  ;;  %v790_v41 = vld [vmem:[%s1024_s1 + $0x108] sm:$0xff]   ;;  %v791_v44 = vld [vmem:[%s1024_s1 + $0x100] sm:$0xff]  }
  0x2a   :  { %703 = vmatpush3.bf16.msra.mxu1 %v759_v15  ;;  %676 = vmatprep.subr.bf16.mxu0 %v760_v16  ;;  %v793_v45 = vld [vmem:[%s1023_s0 + $0x38] ss:$20 sps:$4 sm:$0xff]  }
  0x2b   :  { %704 = vmatprep.subr.bf16.mxu1 %v761_v17 }
  0x2d   :  { %677 = vmatpush3.bf16.msra.mxu0 %v762_v18 }
  0x2e   :  { %705 = vmatpush3.bf16.msra.mxu1 %v763_v19  ;;  %678 = vmatprep.subr.bf16.mxu0 %v764_v20 }
  0x2f   :  { %706 = vmatprep.subr.bf16.mxu1 %v765_v21 }
  0x31   :  { %679 = vmatpush3.bf16.msra.mxu0 %v766_v22 }
  0x32   :  { %707 = vmatpush3.bf16.msra.mxu1 %v767_v23  ;;  %680 = vmatprep.subr.bf16.mxu0 %v768_v24 }
  0x33   :  { %708 = vmatprep.subr.bf16.mxu1 %v769_v25 }
  0x35   :  { %681 = vmatpush3.bf16.msra.mxu0 %v770_v26 }
  0x36   :  { %709 = vmatpush3.bf16.msra.mxu1 %v771_v27  ;;  %682 = vmatprep.subr.bf16.mxu0 %v772_v28 }
  0x37   :  { %710 = vmatprep.subr.bf16.mxu1 %v773_v29 }
  0x39   :  { %683 = vmatpush3.bf16.msra.mxu0 %v774_v30 }
  0x3a   :  { %711 = vmatpush3.bf16.msra.mxu1 %v775_v31  ;;  %730 = vmatprep.subr.bf16.mxu0 %v782_v36 }
  0x3c   :  { %434 = vmatmul.mubr.bf16.vlgmr.msra.gmra.mxu0 %v776_v32 }
  0x3d   :  { %483 = vmatmul.mubr.bf16.vlgmr.msra.gmra.mxu1 %v779_v34  ;;  %731 = vmatpush3.bf16.msra.mxu0 %v782_v36 }
  0x3e   :  { %732 = vmatprep.subr.bf16.mxu0 %v783_v37  ;;  %441 = vmatprep.mubr.bf16.mxu0 %v784_v38 }
  0x3f   :  { %490 = vmatprep.mubr.bf16.mxu1 %v786_v39 }
  0x41   :  { %733 = vmatpush3.bf16.msra.mxu0 %v783_v37 }
  0x42   :  { %734 = vmatprep.subr.bf16.mxu0 %v790_v41 }
  0x44   :  { %442 = vmatmul.mubr.bf16.gmra.mxu0 %v788_v40 }
  0x45   :  { %491 = vmatmul.mubr.bf16.gmra.mxu1 %v789_v42  ;;  %738 = vmatprep.mubr.msk.bf16.mxu0 %vm394_vm0, %v792_v43 }
  0x46   :  { %735 = vmatpush3.bf16.msra.mxu0 %v790_v41 }
  0x47   :  { %736 = vmatprep.subr.bf16.mxu0 %v791_v44 }
  0x4a   :  { %737 = vmatpush3.bf16.msra.mxu0 %v791_v44 }
  0x4d   :  { %739 = vmatmul.mubr.msk.bf16.vlgmr.msra.gmra.mxu0 %vm394_vm0, %v793_v45 }
  0xfc   :  { %v684_v46 = vpop.f32.mrf.mxu0 }
  0xfd   :  { %v712_v47 = vpop.f32.mrf.mxu1 }
  0xfe   :  { %v685_v48 = vpop.f32.mrf.mxu0 }
  0xff   :  { %v713_v49 = vpop.f32.mrf.mxu1  ;;  %v686_v61 = vadd.f32 %v685_v48, %v684_v46 }
 0x100   :  { %v687_v50 = vpop.f32.mrf.mxu0  ;;  %v714_v62 = vadd.f32 %v713_v49, %v712_v47 }
 0x101   :  { %v715_v51 = vpop.f32.mrf.mxu1 }
 0x102   :  { %v688_v52 = vpop.f32.mrf.mxu0  ;;  %v485_v8 = vadd.f32 %v714_v62, %v686_v61 }
 0x103   :  { %v716_v53 = vpop.f32.mrf.mxu1  ;;  %v689_v1 = vadd.f32 %v688_v52, %v687_v50  ;;  %v666_v50 = vld [vmem:[#allocation2] ss:$0 sm:$0xff] }
 0x104   :  { %v690_v54 = vpop.f32.mrf.mxu0  ;;  %v717_v2 = vadd.f32 %v716_v53, %v715_v51 }
 0x105   :  { %v718_v55 = vpop.f32.mrf.mxu1 }
 0x106   :  { %v691_v56 = vpop.f32.mrf.mxu0  ;;  %v488_v12 = vadd.f32 %v717_v2, %v689_v1 }
 0x107   :  { %v719_v57 = vpop.f32.mrf.mxu1  ;;  %v692_v3 = vadd.f32 %v691_v56, %v690_v54 }
 0x108   :  { %v693_v58 = vpop.f32.mrf.mxu0  ;;  %v720_v4 = vadd.f32 %v719_v57, %v718_v55  ;;  %v667_v55 = vld [vmem:[#allocation4] ss:$0 sm:$0xff] }
 0x109   :  { %v721_v59 = vpop.f32.mrf.mxu1 }
 0x10a   :  { %v694_v60 = vpop.f32.mrf.mxu0  ;;  %v493_v10 = vadd.f32 %v720_v4, %v692_v3 }
 0x10b   :  { %v722_v63 = vpop.f32.mrf.mxu1  ;;  %v695_v6 = vadd.f32 %v694_v60, %v693_v58 }
 0x10c   :  { %v723_v7 = vadd.f32 %v722_v63, %v721_v59 }
 0x10d   :  { %v740_v0 = vpop.f32.mrf.mxu0 }
 0x10e   :  { %v542_v14 = vadd.f32 %v740_v0, %v493_v10  ;;  %v496_v15 = vadd.f32 %v723_v7, %v695_v6 }
 0x10f   :  { %v533_v5 = vpop.f32.mrf.mxu0 }
 0x110   :  { %v534_v11 = vadd.f32 %v533_v5, %v485_v8  ;;  %v560_v21 = vmul.f32 %v542_v14, %v542_v14 }
 0x111   :  { %v741_v9 = vpop.f32.mrf.mxu0 }
 0x112   :  { %v558_v17 = vmul.f32 %v534_v11, %v534_v11  ;;  %v545_v18 = vadd.f32 %v741_v9, %v496_v15 }
 0x113   :  { %v536_v13 = vpop.f32.mrf.mxu0 }
 0x114   :  { %v537_v16 = vadd.f32 %v536_v13, %v488_v12  ;;  %v561_v24 = vmul.f32 %v545_v18, %v545_v18 }
 0x116   :  { %v548_v19 = vadd.f32 %v537_v16, %v534_v11  ;;  %v559_v20 = vmul.f32 %v537_v16, %v537_v16 }
 0x118   :  { %v549_v22 = vadd.f32 %v548_v19, %v542_v14  ;;  %v562_v23 = vadd.f32 %v559_v20, %v558_v17 }
 0x11a   :  { %v550_v25 = vadd.f32 %v549_v22, %v545_v18  ;;  %v563_v26 = vadd.f32 %v562_v23, %v560_v21 }
 0x11c   :  { %v551_v27 = vrot.slane %v550_v25, 4  ;;  %v564_v28 = vadd.f32 %v563_v26, %v561_v24 }
 0x11e   :  { %v552_v29 = vadd.f32 %v551_v27, %v550_v25  ;;  %v565_v30 = vrot.slane %v564_v28, 4 }
 0x120   :  { %v553_v31 = vrot.slane %v552_v29, 2  ;;  %v566_v32 = vadd.f32 %v565_v30, %v564_v28 }
 0x122   :  { %v554_v33 = vadd.f32 %v553_v31, %v552_v29  ;;  %v567_v34 = vrot.slane %v566_v32, 2 }
 0x124   :  { %v555_v35 = vrot.slane %v554_v33, 1  ;;  %v568_v36 = vadd.f32 %v567_v34, %v566_v32 }
 0x126   :  { %v556_v37 = vadd.f32 %v555_v35, %v554_v33  ;;  %v569_v38 = vrot.slane %v568_v36, 1 }
 0x128   :  { %v557_v39 = vmul.f32 0.055555556, %v556_v37  ;;  %v570_v40 = vadd.f32 %v569_v38, %v568_v36 }
 0x12a   :  { %v571_v41 = vmul.f32 0.055555556, %v570_v40  ;;  %v572_v42 = vmul.f32 %v557_v39, %v557_v39  ;;  %v574_v45 = vsub.f32 %v534_v11, %v557_v39  ;;  %v575_v46 = vsub.f32 %v537_v16, %v557_v39 }
 0x12b   :  { %v576_v47 = vsub.f32 %v542_v14, %v557_v39  ;;  %v577_v48 = vsub.f32 %v545_v18, %v557_v39 }
 0x12c   :  { %v573_v43 = vsub.f32 %v571_v41, %v572_v42 }
 0x12e   :  { %v578_v44 = vadd.f32 1e-05, %v573_v43 }
 0x130   :  { %794 = vrsqrt.f32 %v578_v44 }
 0x13d   :  { %v795_v49 = vpop.eup %794 }
 0x13e   :  { %v580_v51 = vmul.f32 %v795_v49, %v574_v45  ;;  %v581_v52 = vmul.f32 %v795_v49, %v575_v46  ;;  %v582_v53 = vmul.f32 %v795_v49, %v576_v47  ;;  %v583_v54 = vmul.f32 %v795_v49, %v577_v48 }
 0x140   :  { %v590_v56 = vmul.f32 %v666_v50, %v580_v51  ;;  %v591_v57 = vmul.f32 %v666_v50, %v581_v52  ;;  %v592_v58 = vmul.f32 %v666_v50, %v582_v53  ;;  %v593_v59 = vmul.f32 %v666_v50, %v583_v54 }
 0x142   :  { %v600_v60 = vadd.f32 %v667_v55, %v590_v56  ;;  %v601_v61 = vadd.f32 %v667_v55, %v591_v57  ;;  %v602_v62 = vadd.f32 %v667_v55, %v592_v58  ;;  %v603_v63 = vadd.f32 %v667_v55, %v593_v59 }
 0x144   :  { %v604_v0 = vmax.f32 %v600_v60, 0.0  ;;  %v605_v1 = vmax.f32 %v601_v61, 0.0  ;;  %v606_v2 = vmax.f32 %v602_v62, 0.0  ;;  %v607_v3 = vmax.f32 %v603_v63, 0.0 }
 0x146   :  { %608 = vst [vmem:[%s1027_s4] sm:$0xff] %v604_v0  ;;  %609 = vst [vmem:[%s1027_s4 + $0x8] sm:$0xff] %v605_v1 }
 0x147   :  { %610 = vst [vmem:[%s1027_s4 + $0x10] sm:$0xff] %v606_v2  ;;  %611 = vst [vmem:[%s1027_s4 + $0x18] sm:$0xff] %v607_v3 }
 0x148   :  { %616 = vsyncpa [#allocation3], 1 }
 0x149   :  { %617 = vsyncpa [#allocation5], 1 }

// kernel: generator_forward.11
= control target key start
LH: loop header
LB: loop body
LE: loop exit
PB: predicated region body
PF: predicated region fallthrough
CT: control target
= control target key end

     0   :  { %9 = vsyncpa [#allocation3], 0  ;;  %s1552_s0 = inlined_call_operand.vmem [shape: bf16[16,1152], index: 0, kind: input, shape index: {}]   ;;  %s1553_s1 = inlined_call_operand.vmem [shape: bf16[1152,128], index: 1, kind: input, shape index: {}]   ;;  %s1554_s2 = inlined_call_operand.hbm [shape: f32[1,128], index: 2, kind: input, shape index: {}]   ;;  %s1555_s3 = inlined_call_operand.hbm [shape: f32[1,128], index: 3, kind: input, shape index: {}]   ;;  %s1556_s4 = inlined_call_operand.vmem [shape: f32[16,128], index: 4, kind: output, shape index: {}]  }
   0x1   :  { %10 = vsyncpa [#allocation5], 0  ;;  %s1268_s15 = smov [#allocation2]   ;;  %s1269_s17 = smov [#allocation4]  }
   0x2   :  { %s21_s16 = sshll.u32 %s1268_s15, 4  ;;  %s31_s18 = sshll.u32 %s1269_s17, 4  ;;  %s22_s16 = int_to_ptr.vmem [resolvable:$true] %s21_s16  ;;  %s32_s18 = int_to_ptr.vmem [resolvable:$true] %s31_s18 }
   0x3   :  { %s1232_s19 = scalar_lea.vmem %s22_s16, 16  ;;  %s1236_s20 = scalar_lea.vmem %s22_s16, 32 }
   0x4   :  { %p1233_p0 = scmp.ne.s32.totalorder %s22_s16, %s1232_s19  ;;  %p1237_p1 = scmp.lt.s32.totalorder %s22_s16, %s22_s16 }
   0x5   :  { %p1238_p2 = scmp.lt.s32.totalorder %s1236_s20, %s1232_s19 }
   0x7   :  { %p1239_p3 = por %p1238_p2, %p1237_p1 }
   0x9   :  { %p1240_p4 = pnand %p1239_p3, %p1233_p0 }
   0xb   :  { %1243 = shalt.err (!%p1240_p4)
}
   0xc   :  { %24 = dma.hbm_to_vmem [thread:$0]  %s1554_s2, 16, %s22_s16, [#allocation3]  }
   0xd   :  { %s1252_s23 = scalar_lea.vmem %s32_s18, 16  ;;  %s1256_s24 = scalar_lea.vmem %s32_s18, 32 }
   0xe   :  { %p1253_p5 = scmp.ne.s32.totalorder %s32_s18, %s1252_s23  ;;  %p1257_p6 = scmp.lt.s32.totalorder %s32_s18, %s32_s18 }
   0xf   :  { %p1258_p7 = scmp.lt.s32.totalorder %s1256_s24, %s1252_s23 }
  0x11   :  { %p1259_p8 = por %p1258_p7, %p1257_p6 }
  0x13   :  { %p1260_p9 = pnand %p1259_p8, %p1253_p5 }
  0x15   :  { %1263 = shalt.err (!%p1260_p9)
}
  0x16   :  { %34 = dma.hbm_to_vmem [thread:$0]  %s1555_s3, 16, %s32_s18, [#allocation5]  }
  0x17   :  { %1264 = dma.done.wait [#allocation3], 16  }
  0x18   :  { %1265 = vsyncadd [#allocation3], 4294967280 }
  0x19   :  { %1266 = dma.done.wait [#allocation5], 16  }
  0x1a   :  { %1267 = vsyncadd [#allocation5], 4294967280  ;;  %v1137_v0 = vld [vmem:[%s1553_s1 + $0x78] sm:$0xff]   ;;  %v1141_v4 = vld [vmem:[%s1553_s1 + $0x70] sm:$0xff]   ;;  %vm1271_vm0 = vmmov 0  }
  0x1b   :  { %v1138_v1 = vld [vmem:[%s1553_s1 + $0xf8] sm:$0xff]   ;;  %1016 = vmatprep.subr.bf16.mxu0 %v1137_v0  ;;  %v1142_v5 = vld [vmem:[%s1553_s1 + $0xf0] sm:$0xff]   ;;  %v1145_v8 = vld [vmem:[%s1553_s1 + $0x68] sm:$0xff]  }
  0x1c   :  { %v1139_v2 = vld [vmem:[%s1553_s1 + $0x38] sm:$0xff]   ;;  %1038 = vmatprep.subr.bf16.mxu1 %v1138_v1  ;;  %v1143_v6 = vld [vmem:[%s1553_s1 + $0x30] sm:$0xff]   ;;  %v1146_v9 = vld [vmem:[%s1553_s1 + $0xe8] sm:$0xff]  }
  0x1d   :  { %v1140_v3 = vld [vmem:[%s1553_s1 + $0xb8] sm:$0xff]   ;;  %1017 = vmatpush3.bf16.msra.mxu0 %v1139_v2  ;;  %v1144_v7 = vld [vmem:[%s1553_s1 + $0xb0] sm:$0xff]   ;;  %v1147_v10 = vld [vmem:[%s1553_s1 + $0x28] sm:$0xff]  }
  0x1e   :  { %1039 = vmatpush3.bf16.msra.mxu1 %v1140_v3  ;;  %1018 = vmatprep.subr.bf16.mxu0 %v1141_v4  ;;  %v1148_v11 = vld [vmem:[%s1553_s1 + $0xa8] sm:$0xff]   ;;  %v1149_v12 = vld [vmem:[%s1553_s1 + $0x60] sm:$0xff]   ;;  %v1153_v16 = vld [vmem:[%s1553_s1 + $0x58] sm:$0xff]  }
  0x1f   :  { %1040 = vmatprep.subr.bf16.mxu1 %v1142_v5  ;;  %v1150_v13 = vld [vmem:[%s1553_s1 + $0xe0] sm:$0xff]   ;;  %v1154_v17 = vld [vmem:[%s1553_s1 + $0xd8] sm:$0xff]   ;;  %v1157_v20 = vld [vmem:[%s1553_s1 + $0x50] sm:$0xff]  }
  0x20   :  { %v1151_v14 = vld [vmem:[%s1553_s1 + $0x20] sm:$0xff]   ;;  %v1155_v18 = vld [vmem:[%s1553_s1 + $0x18] sm:$0xff]   ;;  %v1158_v21 = vld [vmem:[%s1553_s1 + $0xd0] sm:$0xff]  }
  0x21   :  { %1019 = vmatpush3.bf16.msra.mxu0 %v1143_v6  ;;  %v1152_v15 = vld [vmem:[%s1553_s1 + $0xa0] sm:$0xff]   ;;  %v1156_v19 = vld [vmem:[%s1553_s1 + $0x98] sm:$0xff]   ;;  %v1159_v22 = vld [vmem:[%s1553_s1 + $0x10] sm:$0xff]   ;;  %v1270_v6 = vmov 0.0  }
  0x22   :  { %1041 = vmatpush3.bf16.msra.mxu1 %v1144_v7  ;;  %1020 = vmatprep.subr.bf16.mxu0 %v1145_v8  ;;  %v1160_v23 = vld [vmem:[%s1553_s1 + $0x90] sm:$0xff]   ;;  %v1161_v24 = vld [vmem:[%s1553_s1 + $0x48] sm:$0xff]   ;;  %v1165_v28 = vld [vmem:[%s1553_s1 + $0x40] sm:$0xff]  }
  0x23   :  { %1042 = vmatprep.subr.bf16.mxu1 %v1146_v9  ;;  %v1162_v25 = vld [vmem:[%s1553_s1 + $0xc8] sm:$0xff]   ;;  %v1166_v29 = vld [vmem:[%s1553_s1 + $0xc0] sm:$0xff]   ;;  %v1175_v36 = vld [vmem:[%s1553_s1 + $0x178] sm:$0xff]  }
  0x24   :  { %v1163_v26 = vld [vmem:[%s1553_s1 + $0x8] sm:$0xff]   ;;  %v1167_v30 = vld [vmem:[%s1553_s1] sm:$0xff]   ;;  %v1176_v37 = vld [vmem:[%s1553_s1 + $0x138] sm:$0xff]  }
  0x25   :  { %1021 = vmatpush3.bf16.msra.mxu0 %v1147_v10  ;;  %v1164_v27 = vld [vmem:[%s1553_s1 + $0x88] sm:$0xff]   ;;  %v1168_v31 = vld [vmem:[%s1553_s1 + $0x80] sm:$0xff]   ;;  %v1177_v38 = vld [vmem:[%s1553_s1 + $0x1f8] sm:$0xff]  }
  0x26   :  { %1043 = vmatpush3.bf16.msra.mxu1 %v1148_v11  ;;  %1022 = vmatprep.subr.bf16.mxu0 %v1149_v12  ;;  %v1169_v32 = vld [vmem:[%s1552_s0] ss:$36 sps:$4 sm:$0xff]   ;;  %v1172_v34 = vld [vmem:[%s1552_s0 + $0x8] ss:$36 sps:$4 sm:$0xff]   ;;  %v1178_v39 = vld [vmem:[%s1553_s1 + $0x1b8] sm:$0xff]  }
  0x27   :  { %1044 = vmatprep.subr.bf16.mxu1 %v1150_v13  ;;  %v1171_v33 = vld [vmem:[%s1552_s0 + $0x4] ss:$36 sps:$4 sm:$0xff]   ;;  %v1174_v35 = vld [vmem:[%s1552_s0 + $0xc] ss:$36 sps:$4 sm:$0xff]   ;;  %v1191_v52 = vld [vmem:[%s1553_s1 + $0x158] sm:$0xff]  }
  0x28   :  { %708 = vmatprep.mubr.bf16.mxu0 %v1171_v33  ;;  %749 = vmatprep.mubr.bf16.mxu1 %v1174_v35  ;;  %v1179_v40 = vld [vmem:[%s1553_s1 + $0x170] sm:$0xff]   ;;  %v1183_v44 = vld [vmem:[%s1553_s1 + $0x168] sm:$0xff]   ;;  %v1187_v48 = vld [vmem:[%s1553_s1 + $0x160] sm:$0xff]  }
  0x29   :  { %1023 = vmatpush3.bf16.msra.mxu0 %v1151_v14  ;;  %v1180_v41 = vld [vmem:[%s1553_s1 + $0x130] sm:$0xff]   ;;  %v1184_v45 = vld [vmem:[%s1553_s1 + $0x128] sm:$0xff]   ;;  %v1188_v49 = vld [vmem:[%s1553_s1 + $0x120] sm:$0xff]  }
  0x2a   :  { %1045 = vmatpush3.bf16.msra.mxu1 %v1152_v15  ;;  %1024 = vmatprep.subr.bf16.mxu0 %v1153_v16  ;;  %v1181_v42 = vld [vmem:[%s1553_s1 + $0x1f0] sm:$0xff]   ;;  %v1185_v46 = vld [vmem:[%s1553_s1 + $0x1e8] sm:$0xff]   ;;  %v1189_v50 = vld [vmem:[%s1553_s1 + $0x1e0] sm:$0xff]  }
  0x2b   :  { %1046 = vmatprep.subr.bf16.mxu1 %v1154_v17  ;;  %v1182_v43 = vld [vmem:[%s1553_s1 + $0x1b0] sm:$0xff]   ;;  %v1186_v47 = vld [vmem:[%s1553_s1 + $0x1a8] sm:$0xff]   ;;  %v1190_v51 = vld [vmem:[%s1553_s1 + $0x1a0] sm:$0xff]  }
  0x2c   :  { %v1192_v53 = vld [vmem:[%s1553_s1 + $0x118] sm:$0xff]   ;;  %v1195_v56 = vld [vmem:[%s1553_s1 + $0x150] sm:$0xff]   ;;  %v1199_v60 = vld [vmem:[%s1553_s1 + $0x148] sm:$0xff]  }
  0x2d   :  { %1025 = vmatpush3.bf16.msra.mxu0 %v1155_v18  ;;  %v1193_v54 = vld [vmem:[%s1553_s1 + $0x1d8] sm:$0xff]   ;;  %v1196_v57 = vld [vmem:[%s1553_s1 + $0x110] sm:$0xff]   ;;  %v1200_v61 = vld [vmem:[%s1553_s1 + $0x108] sm:$0xff]  }
  0x2e   :  { %1047 = vmatpush3.bf16.msra.mxu1 %v1156_v19  ;;  %1026 = vmatprep.subr.bf16.mxu0 %v1157_v20  ;;  %v1194_v55 = vld [vmem:[%s1553_s1 + $0x198] sm:$0xff]   ;;  %v1197_v58 = vld [vmem:[%s1553_s1 + $0x1d0] sm:$0xff]   ;;  %v1201_v62 = vld [vmem:[%s1553_s1 + $0x1c8] sm:$0xff]  }
  0x2f   :  { %1048 = vmatprep.subr.bf16.mxu1 %v1158_v21  ;;  %v1198_v59 = vld [vmem:[%s1553_s1 + $0x190] sm:$0xff]   ;;  %v1202_v63 = vld [vmem:[%s1553_s1 + $0x188] sm:$0xff]   ;;  %v1203_v0 = vld [vmem:[%s1553_s1 + $0x140] sm:$0xff]  }
  0x30   :  { %v1204_v1 = vld [vmem:[%s1553_s1 + $0x100] sm:$0xff]   ;;  %v1206_v3 = vld [vmem:[%s1552_s0 + $0x10] ss:$36 sps:$4 sm:$0xff]   ;;  %v1210_v7 = vld [vmem:[%s1552_s0 + $0x18] ss:$36 sps:$4 sm:$0xff]  }
  0x31   :  { %1027 = vmatpush3.bf16.msra.mxu0 %v1159_v22  ;;  %v1205_v2 = vld [vmem:[%s1553_s1 + $0x1c0] sm:$0xff]   ;;  %v1208_v4 = vld [vmem:[%s1552_s0 + $0x14] ss:$36 sps:$4 sm:$0xff]   ;;  %v1215_v11 = vld [vmem:[%s1553_s1 + $0x228] sm:$0xff]  }
  0x32   :  { %1049 = vmatpush3.bf16.msra.mxu1 %v1160_v23  ;;  %1028 = vmatprep.subr.bf16.mxu0 %v1161_v24  ;;  %v1209_v5 = vld [vmem:[%s1553_s1 + $0x180] sm:$0xff]   ;;  %v1213_v9 = vld [vmem:[%s1553_s1 + $0x238] sm:$0xff]   ;;  %v1214_v10 = vld [vmem:[%s1553_s1 + $0x230] sm:$0xff]  }
  0x33   :  { %1050 = vmatprep.subr.bf16.mxu1 %v1162_v25  ;;  %v1212_v8 = vld [vmem:[%s1552_s0 + $0x1c] ss:$36 sps:$4 sm:$0xff]   ;;  %v1218_v14 = vld [vmem:[%s1553_s1 + $0x210] sm:$0xff]   ;;  %v1219_v15 = vld [vmem:[%s1553_s1 + $0x208] sm:$0xff]  }
  0x34   :  { %v1216_v12 = vld [vmem:[%s1553_s1 + $0x220] sm:$0xff]   ;;  %v1217_v13 = vld [vmem:[%s1553_s1 + $0x218] sm:$0xff]  }
  0x35   :  { %1029 = vmatpush3.bf16.msra.mxu0 %v1163_v26  ;;  %v1220_v16 = vld [vmem:[%s1553_s1 + $0x200] sm:$0xff]  }
  0x36   :  { %1051 = vmatpush3.bf16.msra.mxu1 %v1164_v27  ;;  %1030 = vmatprep.subr.bf16.mxu0 %v1165_v28  ;;  %v1221_v17 = vld [vmem:[%s1552_s0 + $0x20] ss:$36 sps:$4 sm:$0xff]  }
  0x37   :  { %1052 = vmatprep.subr.bf16.mxu1 %v1166_v29 }
  0x39   :  { %1031 = vmatpush3.bf16.msra.mxu0 %v1167_v30 }
  0x3a   :  { %1053 = vmatpush3.bf16.msra.mxu1 %v1168_v31  ;;  %1060 = vmatprep.subr.bf16.mxu0 %v1175_v36 }
  0x3b   :  { %1082 = vmatprep.subr.bf16.mxu1 %v1177_v38 }
  0x3c   :  { %709 = vmatmul.mubr.bf16.vlgmr.msra.gmra.mxu0 %v1169_v32 }
  0x3d   :  { %750 = vmatmul.mubr.bf16.vlgmr.msra.gmra.mxu1 %v1172_v34  ;;  %1061 = vmatpush3.bf16.msra.mxu0 %v1176_v37 }
  0x3e   :  { %1083 = vmatpush3.bf16.msra.mxu1 %v1178_v39  ;;  %1062 = vmatprep.subr.bf16.mxu0 %v1179_v40 }
  0x3f   :  { %1084 = vmatprep.subr.bf16.mxu1 %v1181_v42  ;;  %790 = vmatprep.mubr.bf16.mxu0 %v1208_v4 }
  0x40   :  { %831 = vmatprep.mubr.bf16.mxu1 %v1212_v8 }
  0x41   :  { %1063 = vmatpush3.bf16.msra.mxu0 %v1180_v41 }
  0x42   :  { %1085 = vmatpush3.bf16.msra.mxu1 %v1182_v43  ;;  %1064 = vmatprep.subr.bf16.mxu0 %v1183_v44 }
  0x43   :  { %1086 = vmatprep.subr.bf16.mxu1 %v1185_v46 }
  0x45   :  { %1065 = vmatpush3.bf16.msra.mxu0 %v1184_v45 }
  0x46   :  { %1087 = vmatpush3.bf16.msra.mxu1 %v1186_v47  ;;  %1066 = vmatprep.subr.bf16.mxu0 %v1187_v48 }
  0x47   :  { %1088 = vmatprep.subr.bf16.mxu1 %v1189_v50 }
  0x49   :  { %1067 = vmatpush3.bf16.msra.mxu0 %v1188_v49 }
  0x4a   :  { %1089 = vmatpush3.bf16.msra.mxu1 %v1190_v51  ;;  %1068 = vmatprep.subr.bf16.mxu0 %v1191_v52 }
  0x4b   :  { %1090 = vmatprep.subr.bf16.mxu1 %v1193_v54 }
  0x4d   :  { %1069 = vmatpush3.bf16.msra.mxu0 %v1192_v53 }
  0x4e   :  { %1091 = vmatpush3.bf16.msra.mxu1 %v1194_v55  ;;  %1070 = vmatprep.subr.bf16.mxu0 %v1195_v56 }
  0x4f   :  { %1092 = vmatprep.subr.bf16.mxu1 %v1197_v58 }
  0x51   :  { %1071 = vmatpush3.bf16.msra.mxu0 %v1196_v57 }
  0x52   :  { %1093 = vmatpush3.bf16.msra.mxu1 %v1198_v59  ;;  %1072 = vmatprep.subr.bf16.mxu0 %v1199_v60 }
  0x53   :  { %1094 = vmatprep.subr.bf16.mxu1 %v1201_v62 }
  0x55   :  { %1073 = vmatpush3.bf16.msra.mxu0 %v1200_v61 }
  0x56   :  { %1095 = vmatpush3.bf16.msra.mxu1 %v1202_v63  ;;  %1074 = vmatprep.subr.bf16.mxu0 %v1203_v0 }
  0x57   :  { %1096 = vmatprep.subr.bf16.mxu1 %v1205_v2 }
  0x59   :  { %1075 = vmatpush3.bf16.msra.mxu0 %v1204_v1 }
  0x5a   :  { %1113 = vmatprep.subr.bf16.mxu0 %v1270_v6  ;;  %1097 = vmatpush3.bf16.msra.mxu1 %v1209_v5 }
  0x5c   :  { %791 = vmatmul.mubr.bf16.vlgmr.msra.gmra.mxu0 %v1206_v3 }
  0x5d   :  { %1129 = vmatprep.mubr.msk.bf16.mxu0 %vm1271_vm0, %v1270_v6  ;;  %1114 = vmatpush3.bf16.msra.mxu0 %v1213_v9 }
  0x5e   :  { %832 = vmatmul.mubr.bf16.vlgmr.msra.gmra.mxu1 %v1210_v7  ;;  %1115 = vmatprep.subr.bf16.mxu0 %v1270_v6 }
  0x61   :  { %1116 = vmatpush3.bf16.msra.mxu0 %v1214_v10 }
  0x62   :  { %1117 = vmatprep.subr.bf16.mxu0 %v1270_v6 }
  0x65   :  { %1118 = vmatpush3.bf16.msra.mxu0 %v1215_v11 }
  0x66   :  { %1119 = vmatprep.subr.bf16.mxu0 %v1270_v6 }
  0x69   :  { %1120 = vmatpush3.bf16.msra.mxu0 %v1216_v12 }
  0x6a   :  { %1121 = vmatprep.subr.bf16.mxu0 %v1270_v6 }
  0x6d   :  { %1122 = vmatpush3.bf16.msra.mxu0 %v1217_v13 }
  0x6e   :  { %1123 = vmatprep.subr.bf16.mxu0 %v1270_v6 }
  0x71   :  { %1124 = vmatpush3.bf16.msra.mxu0 %v1218_v14  ;;  %v1014_v14 = vld [vmem:[#allocation2] ss:$0 sm:$0xff] }
  0x72   :  { %1125 = vmatprep.subr.bf16.mxu0 %v1270_v6 }
  0x75   :  { %1126 = vmatpush3.bf16.msra.mxu0 %v1219_v15 }
  0x76   :  { %1127 = vmatprep.subr.bf16.mxu0 %v1270_v6 }
  0x79   :  { %1128 = vmatpush3.bf16.msra.mxu0 %v1220_v16 }
  0x7c   :  { %1130 = vmatmul.mubr.bf16.vlgmr.msra.gmra.mxu0 %v1221_v17  ;;  %v1015_v17 = vld [vmem:[#allocation4] ss:$0 sm:$0xff] }
  0xfc   :  { %v1032_v18 = vpop.f32.mrf.mxu0 }
  0xfd   :  { %v1054_v19 = vpop.f32.mrf.mxu1 }
  0xfe   :  { %v1033_v20 = vpop.f32.mrf.mxu0 }
  0xff   :  { %v1055_v21 = vpop.f32.mrf.mxu1  ;;  %v1034_v31 = vadd.f32 %v1033_v20, %v1032_v18 }
 0x100   :  { %v1035_v22 = vpop.f32.mrf.mxu0  ;;  %v1056_v32 = vadd.f32 %v1055_v21, %v1054_v19 }
 0x101   :  { %v1057_v23 = vpop.f32.mrf.mxu1 }
 0x102   :  { %v1036_v24 = vpop.f32.mrf.mxu0  ;;  %v752_v38 = vadd.f32 %v1056_v32, %v1034_v31 }
 0x103   :  { %v1058_v26 = vpop.f32.mrf.mxu1  ;;  %v1037_v35 = vadd.f32 %v1036_v24, %v1035_v22 }
 0x104   :  { %v1059_v36 = vadd.f32 %v1058_v26, %v1057_v23 }
 0x106   :  { %v755_v41 = vadd.f32 %v1059_v36, %v1037_v35 }
 0x11c   :  { %v1076_v25 = vpop.f32.mrf.mxu0 }
 0x11e   :  { %v1077_v27 = vpop.f32.mrf.mxu0  ;;  %v1098_v28 = vpop.f32.mrf.mxu1 }
 0x11f   :  { %v1078_v37 = vadd.f32 %v1077_v27, %v1076_v25 }
 0x120   :  { %v1079_v29 = vpop.f32.mrf.mxu0  ;;  %v1099_v30 = vpop.f32.mrf.mxu1 }
 0x121   :  { %v793_v42 = vadd.f32 %v1078_v37, %v752_v38  ;;  %v1100_v43 = vadd.f32 %v1099_v30, %v1098_v28 }
 0x122   :  { %v1080_v33 = vpop.f32.mrf.mxu0  ;;  %v1101_v34 = vpop.f32.mrf.mxu1 }
 0x123   :  { %v1081_v39 = vadd.f32 %v1080_v33, %v1079_v29  ;;  %v834_v47 = vadd.f32 %v1100_v43, %v793_v42 }
 0x124   :  { %v1102_v40 = vpop.f32.mrf.mxu1 }
 0x125   :  { %v796_v44 = vadd.f32 %v1081_v39, %v755_v41  ;;  %v1103_v45 = vadd.f32 %v1102_v40, %v1101_v34 }
 0x127   :  { %v837_v50 = vadd.f32 %v1103_v45, %v796_v44 }
 0x13c   :  { %v874_v46 = vpop.f32.mrf.mxu0 }
 0x13d   :  { %v875_v49 = vadd.f32 %v874_v46, %v834_v47 }
 0x13e   :  { %v1131_v48 = vpop.f32.mrf.mxu0 }
 0x13f   :  { %v889_v54 = vmul.f32 %v875_v49, %v875_v49 }
 0x140   :  { %v877_v51 = vpop.f32.mrf.mxu0 }
 0x141   :  { %v878_v52 = vadd.f32 %v877_v51, %v837_v50 }
 0x142   :  { %v1132_v53 = vpop.f32.mrf.mxu0 }
 0x143   :  { %v881_v55 = vadd.f32 %v878_v52, %v875_v49  ;;  %v890_v56 = vmul.f32 %v878_v52, %v878_v52 }
 0x145   :  { %v882_v57 = vrot.slane %v881_v55, 4  ;;  %v891_v58 = vadd.f32 %v890_v56, %v889_v54 }
 0x147   :  { %v883_v59 = vadd.f32 %v882_v57, %v881_v55  ;;  %v892_v60 = vrot.slane %v891_v58, 4 }
 0x149   :  { %v884_v61 = vrot.slane %v883_v59, 2  ;;  %v893_v62 = vadd.f32 %v892_v60, %v891_v58 }
 0x14b   :  { %v885_v63 = vadd.f32 %v884_v61, %v883_v59  ;;  %v894_v0 = vrot.slane %v893_v62, 2 }
 0x14d   :  { %v886_v1 = vrot.slane %v885_v63, 1  ;;  %v895_v2 = vadd.f32 %v894_v0, %v893_v62 }
 0x14f   :  { %v887_v3 = vadd.f32 %v886_v1, %v885_v63  ;;  %v896_v4 = vrot.slane %v895_v2, 1 }
 0x151   :  { %v888_v5 = vmul.f32 0.5, %v887_v3  ;;  %v897_v6 = vadd.f32 %v896_v4, %v895_v2 }
 0x153   :  { %v898_v7 = vmul.f32 0.5, %v897_v6  ;;  %v899_v8 = vmul.f32 %v888_v5, %v888_v5  ;;  %v901_v11 = vsub.f32 %v875_v49, %v888_v5  ;;  %v902_v12 = vsub.f32 %v878_v52, %v888_v5 }
 0x155   :  { %v900_v9 = vsub.f32 %v898_v7, %v899_v8 }
 0x157   :  { %v903_v10 = vadd.f32 1e-05, %v900_v9 }
 0x159   :  { %1222 = vrsqrt.f32 %v903_v10 }
 0x166   :  { %v1223_v13 = vpop.eup %1222 }
 0x167   :  { %v905_v15 = vmul.f32 %v1223_v13, %v901_v11  ;;  %v906_v16 = vmul.f32 %v1223_v13, %v902_v12 }
 0x169   :  { %v913_v18 = vmul.f32 %v1014_v14, %v905_v15  ;;  %v914_v19 = vmul.f32 %v1014_v14, %v906_v16 }
 0x16b   :  { %v921_v20 = vadd.f32 %v1015_v17, %v913_v18  ;;  %v922_v21 = vadd.f32 %v1015_v17, %v914_v19 }
 0x16d   :  { %v923_v22 = vmax.f32 %v921_v20, 0.0  ;;  %v924_v23 = vmax.f32 %v922_v21, 0.0 }
 0x16f   :  { %925 = vst [vmem:[%s1556_s4] sm:$0xff] %v923_v22  ;;  %926 = vst [vmem:[%s1556_s4 + $0x8] sm:$0xff] %v924_v23 }
 0x170   :  { %931 = vsyncpa [#allocation3], 1 }
 0x171   :  { %932 = vsyncpa [#allocation5], 1 }

// kernel: generator_forward.12
= control target key start
LH: loop header
LB: loop body
LE: loop exit
PB: predicated region body
PF: predicated region fallthrough
CT: control target
= control target key end

     0   :  { %s1696_s1 = inlined_call_operand.vmem [shape: bf16[1152,128], index: 1, kind: input, shape index: {}]   ;;  %s1697_s0 = inlined_call_operand.vmem [shape: bf16[32,1152], index: 0, kind: input, shape index: {}]   ;;  %s1698_s2 = inlined_call_operand.vmem [shape: f32[1,128], index: 2, kind: input, shape index: {}]   ;;  %s1699_s3 = inlined_call_operand.vmem [shape: f32[1,128], index: 3, kind: input, shape index: {}]   ;;  %s1700_s4 = inlined_call_operand.vmem [shape: f32[32,128], index: 4, kind: input, shape index: {}]   ;;  %s1701_s5 = inlined_call_operand.vmem [shape: f32[32,128], index: 5, kind: output, shape index: {}]  }
   0x1   :  { %v1266_v0 = vld [vmem:[%s1696_s1 + $0x78] sm:$0xff]   ;;  %v1270_v4 = vld [vmem:[%s1696_s1 + $0x70] sm:$0xff]   ;;  %v1274_v8 = vld [vmem:[%s1696_s1 + $0x68] sm:$0xff]  }
   0x2   :  { %v1267_v1 = vld [vmem:[%s1696_s1 + $0xf8] sm:$0xff]   ;;  %1124 = vmatprep.subr.bf16.mxu0 %v1266_v0  ;;  %v1271_v5 = vld [vmem:[%s1696_s1 + $0xf0] sm:$0xff]   ;;  %v1275_v9 = vld [vmem:[%s1696_s1 + $0xe8] sm:$0xff]  }
   0x3   :  { %v1268_v2 = vld [vmem:[%s1696_s1 + $0x38] sm:$0xff]   ;;  %1152 = vmatprep.subr.bf16.mxu1 %v1267_v1  ;;  %v1272_v6 = vld [vmem:[%s1696_s1 + $0x30] sm:$0xff]   ;;  %v1276_v10 = vld [vmem:[%s1696_s1 + $0x28] sm:$0xff]  }
   0x4   :  { %v1269_v3 = vld [vmem:[%s1696_s1 + $0xb8] sm:$0xff]   ;;  %1125 = vmatpush3.bf16.msra.mxu0 %v1268_v2  ;;  %v1273_v7 = vld [vmem:[%s1696_s1 + $0xb0] sm:$0xff]   ;;  %v1277_v11 = vld [vmem:[%s1696_s1 + $0xa8] sm:$0xff]  }
   0x5   :  { %1153 = vmatpush3.bf16.msra.mxu1 %v1269_v3  ;;  %1126 = vmatprep.subr.bf16.mxu0 %v1270_v4  ;;  %v1278_v12 = vld [vmem:[%s1696_s1 + $0x60] sm:$0xff]   ;;  %v1282_v16 = vld [vmem:[%s1696_s1 + $0x58] sm:$0xff]   ;;  %v1286_v20 = vld [vmem:[%s1696_s1 + $0x50] sm:$0xff]  }
   0x6   :  { %1154 = vmatprep.subr.bf16.mxu1 %v1271_v5  ;;  %v1279_v13 = vld [vmem:[%s1696_s1 + $0xe0] sm:$0xff]   ;;  %v1283_v17 = vld [vmem:[%s1696_s1 + $0xd8] sm:$0xff]   ;;  %v1287_v21 = vld [vmem:[%s1696_s1 + $0xd0] sm:$0xff]  }
   0x7   :  { %v1280_v14 = vld [vmem:[%s1696_s1 + $0x20] sm:$0xff]   ;;  %v1284_v18 = vld [vmem:[%s1696_s1 + $0x18] sm:$0xff]   ;;  %v1288_v22 = vld [vmem:[%s1696_s1 + $0x10] sm:$0xff]  }
   0x8   :  { %1127 = vmatpush3.bf16.msra.mxu0 %v1272_v6  ;;  %v1281_v15 = vld [vmem:[%s1696_s1 + $0xa0] sm:$0xff]   ;;  %v1285_v19 = vld [vmem:[%s1696_s1 + $0x98] sm:$0xff]   ;;  %v1289_v23 = vld [vmem:[%s1696_s1 + $0x90] sm:$0xff]  }
   0x9   :  { %1155 = vmatpush3.bf16.msra.mxu1 %v1273_v7  ;;  %1128 = vmatprep.subr.bf16.mxu0 %v1274_v8  ;;  %v1290_v24 = vld [vmem:[%s1696_s1 + $0x48] sm:$0xff]   ;;  %v1294_v28 = vld [vmem:[%s1696_s1 + $0x40] sm:$0xff]   ;;  %v1304_v36 = vld [vmem:[%s1696_s1 + $0x178] sm:$0xff]  }
   0xa   :  { %1156 = vmatprep.subr.bf16.mxu1 %v1275_v9  ;;  %v1291_v25 = vld [vmem:[%s1696_s1 + $0xc8] sm:$0xff]   ;;  %v1295_v29 = vld [vmem:[%s1696_s1 + $0xc0] sm:$0xff]   ;;  %v1305_v37 = vld [vmem:[%s1696_s1 + $0x138] sm:$0xff]  }
   0xb   :  { %v1292_v26 = vld [vmem:[%s1696_s1 + $0x8] sm:$0xff]   ;;  %v1296_v30 = vld [vmem:[%s1696_s1] sm:$0xff]   ;;  %v1306_v38 = vld [vmem:[%s1696_s1 + $0x1f8] sm:$0xff]  }
   0xc   :  { %1129 = vmatpush3.bf16.msra.mxu0 %v1276_v10  ;;  %v1293_v27 = vld [vmem:[%s1696_s1 + $0x88] sm:$0xff]   ;;  %v1297_v31 = vld [vmem:[%s1696_s1 + $0x80] sm:$0xff]   ;;  %v1307_v39 = vld [vmem:[%s1696_s1 + $0x1b8] sm:$0xff]  }
   0xd   :  { %1157 = vmatpush3.bf16.msra.mxu1 %v1277_v11  ;;  %1130 = vmatprep.subr.bf16.mxu0 %v1278_v12  ;;  %v1298_v32 = vld [vmem:[%s1697_s0] ss:$36 sps:$4 sm:$0xff]   ;;  %v1301_v34 = vld [vmem:[%s1697_s0 + $0x8] ss:$36 sps:$4 sm:$0xff]   ;;  %v1308_v40 = vld [vmem:[%s1696_s1 + $0x170] sm:$0xff]  }
   0xe   :  { %1158 = vmatprep.subr.bf16.mxu1 %v1279_v13  ;;  %v1300_v33 = vld [vmem:[%s1697_s0 + $0x4] ss:$36 sps:$4 sm:$0xff]   ;;  %v1303_v35 = vld [vmem:[%s1697_s0 + $0xc] ss:$36 sps:$4 sm:$0xff]   ;;  %v1320_v52 = vld [vmem:[%s1696_s1 + $0x158] sm:$0xff]  }
   0xf   :  { %747 = vmatprep.mubr.bf16.mxu0 %v1300_v33  ;;  %796 = vmatprep.mubr.bf16.mxu1 %v1303_v35  ;;  %v1309_v41 = vld [vmem:[%s1696_s1 + $0x130] sm:$0xff]   ;;  %v1312_v44 = vld [vmem:[%s1696_s1 + $0x168] sm:$0xff]   ;;  %v1316_v48 = vld [vmem:[%s1696_s1 + $0x160] sm:$0xff]  }
  0x10   :  { %1131 = vmatpush3.bf16.msra.mxu0 %v1280_v14  ;;  %v1310_v42 = vld [vmem:[%s1696_s1 + $0x1f0] sm:$0xff]   ;;  %v1313_v45 = vld [vmem:[%s1696_s1 + $0x128] sm:$0xff]   ;;  %v1317_v49 = vld [vmem:[%s1696_s1 + $0x120] sm:$0xff]  }
  0x11   :  { %1159 = vmatpush3.bf16.msra.mxu1 %v1281_v15  ;;  %1132 = vmatprep.subr.bf16.mxu0 %v1282_v16  ;;  %v1311_v43 = vld [vmem:[%s1696_s1 + $0x1b0] sm:$0xff]   ;;  %v1314_v46 = vld [vmem:[%s1696_s1 + $0x1e8] sm:$0xff]   ;;  %v1318_v50 = vld [vmem:[%s1696_s1 + $0x1e0] sm:$0xff]  }
  0x12   :  { %1160 = vmatprep.subr.bf16.mxu1 %v1283_v17  ;;  %v1315_v47 = vld [vmem:[%s1696_s1 + $0x1a8] sm:$0xff]   ;;  %v1319_v51 = vld [vmem:[%s1696_s1 + $0x1a0] sm:$0xff]   ;;  %v1321_v53 = vld [vmem:[%s1696_s1 + $0x118] sm:$0xff]  }
  0x13   :  { %v1322_v54 = vld [vmem:[%s1697_s0 + $0x4c] ss:$36 sps:$4 sm:$0xff]   ;;  %v1324_v55 = vld [vmem:[%s1697_s0 + $0x54] ss:$36 sps:$4 sm:$0xff]   ;;  %v1338_v4 = vld [vmem:[%s1696_s1 + $0x140] sm:$0xff]  }
  0x14   :  { %1133 = vmatpush3.bf16.msra.mxu0 %v1284_v18  ;;  %v1326_v56 = vld [vmem:[%s1696_s1 + $0x1d8] sm:$0xff]   ;;  %v1327_v57 = vld [vmem:[%s1697_s0 + $0x48] ss:$36 sps:$4 sm:$0xff]   ;;  %v1328_v58 = vld [vmem:[%s1697_s0 + $0x50] ss:$36 sps:$4 sm:$0xff]  }
  0x15   :  { %1161 = vmatpush3.bf16.msra.mxu1 %v1285_v19  ;;  %1134 = vmatprep.subr.bf16.mxu0 %v1286_v20  ;;  %v1329_v59 = vld [vmem:[%s1696_s1 + $0x198] sm:$0xff]   ;;  %v1330_v60 = vld [vmem:[%s1696_s1 + $0x150] sm:$0xff]   ;;  %v1334_v0 = vld [vmem:[%s1696_s1 + $0x148] sm:$0xff]  }
  0x16   :  { %1162 = vmatprep.subr.bf16.mxu1 %v1287_v21  ;;  %v1331_v61 = vld [vmem:[%s1696_s1 + $0x110] sm:$0xff]   ;;  %v1335_v1 = vld [vmem:[%s1696_s1 + $0x108] sm:$0xff]   ;;  %v1339_v5 = vld [vmem:[%s1696_s1 + $0x100] sm:$0xff]  }
  0x17   :  { %v1332_v62 = vld [vmem:[%s1696_s1 + $0x1d0] sm:$0xff]   ;;  %v1336_v2 = vld [vmem:[%s1696_s1 + $0x1c8] sm:$0xff]   ;;  %v1340_v6 = vld [vmem:[%s1696_s1 + $0x1c0] sm:$0xff]  }
  0x18   :  { %1135 = vmatpush3.bf16.msra.mxu0 %v1288_v22  ;;  %v1333_v63 = vld [vmem:[%s1696_s1 + $0x190] sm:$0xff]   ;;  %v1337_v3 = vld [vmem:[%s1696_s1 + $0x188] sm:$0xff]   ;;  %v1344_v9 = vld [vmem:[%s1696_s1 + $0x180] sm:$0xff]  }
  0x19   :  { %1163 = vmatpush3.bf16.msra.mxu1 %v1289_v23  ;;  %1136 = vmatprep.subr.bf16.mxu0 %v1290_v24  ;;  %v1341_v7 = vld [vmem:[%s1697_s0 + $0x10] ss:$36 sps:$4 sm:$0xff]   ;;  %v1345_v10 = vld [vmem:[%s1696_s1 + $0x238] sm:$0xff]   ;;  %v1353_v16 = vld [vmem:[%s1696_s1 + $0x228] sm:$0xff]  }
  0x1a   :  { %1164 = vmatprep.subr.bf16.mxu1 %v1291_v25  ;;  %v1343_v8 = vld [vmem:[%s1697_s0 + $0x14] ss:$36 sps:$4 sm:$0xff]   ;;  %v1348_v12 = vld [vmem:[%s1697_s0 + $0x1c] ss:$36 sps:$4 sm:$0xff]   ;;  %v1354_v17 = vld [vmem:[%s1697_s0 + $0x64] ss:$36 sps:$4 sm:$0xff]  }
  0x1b   :  { %v1346_v11 = vld [vmem:[%s1697_s0 + $0x18] ss:$36 sps:$4 sm:$0xff]   ;;  %v1349_v13 = vld [vmem:[%s1696_s1 + $0x230] sm:$0xff]   ;;  %v1356_v18 = vld [vmem:[%s1697_s0 + $0x60] ss:$36 sps:$4 sm:$0xff]  }
  0x1c   :  { %1137 = vmatpush3.bf16.msra.mxu0 %v1292_v26  ;;  %v1350_v14 = vld [vmem:[%s1697_s0 + $0x5c] ss:$36 sps:$4 sm:$0xff]   ;;  %v1359_v22 = vld [vmem:[%s1696_s1 + $0x210] sm:$0xff]   ;;  %v1360_v23 = vld [vmem:[%s1696_s1 + $0x208] sm:$0xff]  }
  0x1d   :  { %1165 = vmatpush3.bf16.msra.mxu1 %v1293_v27  ;;  %1138 = vmatprep.subr.bf16.mxu0 %v1294_v28  ;;  %v1352_v15 = vld [vmem:[%s1697_s0 + $0x58] ss:$36 sps:$4 sm:$0xff]   ;;  %v1357_v19 = vld [vmem:[%s1696_s1 + $0x220] sm:$0xff]   ;;  %v1363_v25 = vld [vmem:[%s1697_s0 + $0x68] ss:$36 sps:$4 sm:$0xff]  }
  0x1e   :  { %1166 = vmatprep.subr.bf16.mxu1 %v1295_v29  ;;  %v1358_v20 = vld [vmem:[%s1696_s1 + $0x218] sm:$0xff]   ;;  %v1362_v21 = vld [vmem:[%s1697_s0 + $0x20] ss:$36 sps:$4 sm:$0xff]  }
  0x1f   :  { %v1361_v24 = vld [vmem:[%s1696_s1 + $0x200] sm:$0xff]  }
  0x20   :  { %1139 = vmatpush3.bf16.msra.mxu0 %v1296_v30 }
  0x21   :  { %1167 = vmatpush3.bf16.msra.mxu1 %v1297_v31  ;;  %1180 = vmatprep.subr.bf16.mxu0 %v1304_v36 }
  0x22   :  { %1208 = vmatprep.subr.bf16.mxu1 %v1306_v38 }
  0x23   :  { %748 = vmatmul.mubr.bf16.vlgmr.msra.gmra.mxu0 %v1298_v32 }
  0x24   :  { %797 = vmatmul.mubr.bf16.vlgmr.msra.gmra.mxu1 %v1301_v34  ;;  %1181 = vmatpush3.bf16.msra.mxu0 %v1305_v37 }
  0x25   :  { %1209 = vmatpush3.bf16.msra.mxu1 %v1307_v39  ;;  %1182 = vmatprep.subr.bf16.mxu0 %v1308_v40 }
  0x26   :  { %1210 = vmatprep.subr.bf16.mxu1 %v1310_v42  ;;  %755 = vmatprep.mubr.bf16.mxu0 %v1322_v54 }
  0x27   :  { %804 = vmatprep.mubr.bf16.mxu1 %v1324_v55 }
  0x28   :  { %1183 = vmatpush3.bf16.msra.mxu0 %v1309_v41 }
  0x29   :  { %1211 = vmatpush3.bf16.msra.mxu1 %v1311_v43  ;;  %1184 = vmatprep.subr.bf16.mxu0 %v1312_v44 }
  0x2a   :  { %1212 = vmatprep.subr.bf16.mxu1 %v1314_v46 }
  0x2b   :  { %756 = vmatmul.mubr.bf16.gmra.mxu0 %v1327_v57 }
  0x2c   :  { %1185 = vmatpush3.bf16.msra.mxu0 %v1313_v45  ;;  %805 = vmatmul.mubr.bf16.gmra.mxu1 %v1328_v58 }
  0x2d   :  { %1213 = vmatpush3.bf16.msra.mxu1 %v1315_v47  ;;  %1186 = vmatprep.subr.bf16.mxu0 %v1316_v48 }
  0x2e   :  { %1214 = vmatprep.subr.bf16.mxu1 %v1318_v50  ;;  %845 = vmatprep.mubr.bf16.mxu0 %v1343_v8 }
  0x2f   :  { %894 = vmatprep.mubr.bf16.mxu1 %v1348_v12 }
  0x30   :  { %1187 = vmatpush3.bf16.msra.mxu0 %v1317_v49 }
  0x31   :  { %1215 = vmatpush3.bf16.msra.mxu1 %v1319_v51  ;;  %1188 = vmatprep.subr.bf16.mxu0 %v1320_v52 }
  0x32   :  { %1216 = vmatprep.subr.bf16.mxu1 %v1326_v56 }
  0x34   :  { %1189 = vmatpush3.bf16.msra.mxu0 %v1321_v53 }
  0x35   :  { %1217 = vmatpush3.bf16.msra.mxu1 %v1329_v59  ;;  %1190 = vmatprep.subr.bf16.mxu0 %v1330_v60 }
  0x36   :  { %1218 = vmatprep.subr.bf16.mxu1 %v1332_v62 }
  0x38   :  { %1191 = vmatpush3.bf16.msra.mxu0 %v1331_v61 }
  0x39   :  { %1219 = vmatpush3.bf16.msra.mxu1 %v1333_v63  ;;  %1192 = vmatprep.subr.bf16.mxu0 %v1334_v0 }
  0x3a   :  { %1220 = vmatprep.subr.bf16.mxu1 %v1336_v2 }
  0x3c   :  { %1193 = vmatpush3.bf16.msra.mxu0 %v1335_v1 }
  0x3d   :  { %1221 = vmatpush3.bf16.msra.mxu1 %v1337_v3  ;;  %1194 = vmatprep.subr.bf16.mxu0 %v1338_v4 }
  0x3e   :  { %1222 = vmatprep.subr.bf16.mxu1 %v1340_v6 }
  0x40   :  { %1195 = vmatpush3.bf16.msra.mxu0 %v1339_v5 }
  0x41   :  { %1223 = vmatpush3.bf16.msra.mxu1 %v1344_v9  ;;  %1246 = vmatprep.subr.bf16.mxu0 %v1345_v10 }
  0x43   :  { %846 = vmatmul.mubr.bf16.vlgmr.msra.gmra.mxu0 %v1341_v7 }
  0x44   :  { %1247 = vmatpush3.bf16.msra.mxu0 %v1345_v10  ;;  %895 = vmatmul.mubr.bf16.vlgmr.msra.gmra.mxu1 %v1346_v11 }
  0x45   :  { %1248 = vmatprep.subr.bf16.mxu0 %v1349_v13  ;;  %853 = vmatprep.mubr.bf16.mxu0 %v1350_v14 }
  0x46   :  { %902 = vmatprep.mubr.bf16.mxu1 %v1354_v17 }
  0x48   :  { %1249 = vmatpush3.bf16.msra.mxu0 %v1349_v13 }
  0x49   :  { %1250 = vmatprep.subr.bf16.mxu0 %v1353_v16 }
  0x4b   :  { %854 = vmatmul.mubr.bf16.gmra.mxu0 %v1352_v15 }
  0x4c   :  { %1251 = vmatpush3.bf16.msra.mxu0 %v1353_v16  ;;  %903 = vmatmul.mubr.bf16.gmra.mxu1 %v1356_v18 }
  0x4d   :  { %1252 = vmatprep.subr.bf16.mxu0 %v1357_v19  ;;  %1262 = vmatprep.mubr.bf16.mxu0 %v1362_v21 }
  0x50   :  { %1253 = vmatpush3.bf16.msra.mxu0 %v1357_v19 }
  0x51   :  { %1254 = vmatprep.subr.bf16.mxu0 %v1358_v20 }
  0x54   :  { %1255 = vmatpush3.bf16.msra.mxu0 %v1358_v20 }
  0x55   :  { %1256 = vmatprep.subr.bf16.mxu0 %v1359_v22 }
  0x58   :  { %1257 = vmatpush3.bf16.msra.mxu0 %v1359_v22 }
  0x59   :  { %1258 = vmatprep.subr.bf16.mxu0 %v1360_v23 }
  0x5c   :  { %1259 = vmatpush3.bf16.msra.mxu0 %v1360_v23 }
  0x5d   :  { %1260 = vmatprep.subr.bf16.mxu0 %v1361_v24 }
  0x60   :  { %1261 = vmatpush3.bf16.msra.mxu0 %v1361_v24 }
  0x63   :  { %1263 = vmatmul.mubr.bf16.vlgmr.msra.gmra.mxu0 %v1363_v25 }
  0xe3   :  { %v1140_v26 = vpop.f32.mrf.mxu0 }
  0xe4   :  { %v1168_v27 = vpop.f32.mrf.mxu1 }
  0xe5   :  { %v1141_v28 = vpop.f32.mrf.mxu0 }
  0xe6   :  { %v1169_v29 = vpop.f32.mrf.mxu1  ;;  %v1142_v55 = vadd.f32 %v1141_v28, %v1140_v26 }
  0xe7   :  { %v1143_v30 = vpop.f32.mrf.mxu0  ;;  %v1170_v56 = vadd.f32 %v1169_v29, %v1168_v27 }
  0xe8   :  { %v1171_v31 = vpop.f32.mrf.mxu1 }
  0xe9   :  { %v1144_v32 = vpop.f32.mrf.mxu0  ;;  %v799_v2 = vadd.f32 %v1170_v56, %v1142_v55 }
  0xea   :  { %v1172_v34 = vpop.f32.mrf.mxu1  ;;  %v1145_v57 = vadd.f32 %v1144_v32, %v1143_v30 }
  0xeb   :  { %v1146_v33 = vpop.f32.mrf.mxu0  ;;  %v1173_v58 = vadd.f32 %v1172_v34, %v1171_v31 }
  0xec   :  { %v1174_v35 = vpop.f32.mrf.mxu1 }
  0xed   :  { %v1147_v36 = vpop.f32.mrf.mxu0  ;;  %v802_v5 = vadd.f32 %v1173_v58, %v1145_v57 }
  0xee   :  { %v1175_v37 = vpop.f32.mrf.mxu1  ;;  %v1148_v59 = vadd.f32 %v1147_v36, %v1146_v33 }
  0xef   :  { %v1149_v38 = vpop.f32.mrf.mxu0  ;;  %v1176_v60 = vadd.f32 %v1175_v37, %v1174_v35 }
  0xf0   :  { %v1177_v39 = vpop.f32.mrf.mxu1 }
  0xf1   :  { %v1150_v40 = vpop.f32.mrf.mxu0  ;;  %v807_v6 = vadd.f32 %v1176_v60, %v1148_v59 }
  0xf2   :  { %v1178_v42 = vpop.f32.mrf.mxu1  ;;  %v1151_v62 = vadd.f32 %v1150_v40, %v1149_v38 }
  0xf3   :  { %v1179_v63 = vadd.f32 %v1178_v42, %v1177_v39 }
  0xf5   :  { %v810_v10 = vadd.f32 %v1179_v63, %v1151_v62  ;;  %v1122_v62 = vld [vmem:[%s1698_s2] ss:$0 sm:$0xff] }
 0x103   :  { %v1196_v41 = vpop.f32.mrf.mxu0 }
 0x104   :  { %v1224_v44 = vpop.f32.mrf.mxu1 }
 0x105   :  { %v1197_v43 = vpop.f32.mrf.mxu0 }
 0x106   :  { %v1225_v46 = vpop.f32.mrf.mxu1  ;;  %v1198_v61 = vadd.f32 %v1197_v43, %v1196_v41 }
 0x107   :  { %v1199_v45 = vpop.f32.mrf.mxu0  ;;  %v1226_v8 = vadd.f32 %v1225_v46, %v1224_v44 }
 0x108   :  { %v1227_v48 = vpop.f32.mrf.mxu1  ;;  %v848_v7 = vadd.f32 %v1198_v61, %v799_v2 }
 0x109   :  { %v1200_v47 = vpop.f32.mrf.mxu0 }
 0x10a   :  { %v1228_v50 = vpop.f32.mrf.mxu1  ;;  %v1201_v3 = vadd.f32 %v1200_v47, %v1199_v45  ;;  %v897_v20 = vadd.f32 %v1226_v8, %v848_v7  ;;  %v23_v8 = vld [vmem:[%s1700_s4] sm:$0xff] }
 0x10b   :  { %v1202_v49 = vpop.f32.mrf.mxu0  ;;  %v1229_v14 = vadd.f32 %v1228_v50, %v1227_v48 }
 0x10c   :  { %v1230_v52 = vpop.f32.mrf.mxu1  ;;  %v851_v13 = vadd.f32 %v1201_v3, %v802_v5  ;;  %v1123_v3 = vld [vmem:[%s1699_s3] ss:$0 sm:$0xff] }
 0x10d   :  { %v1203_v51 = vpop.f32.mrf.mxu0 }
 0x10e   :  { %v1231_v54 = vpop.f32.mrf.mxu1  ;;  %v1204_v4 = vadd.f32 %v1203_v51, %v1202_v49  ;;  %v900_v24 = vadd.f32 %v1229_v14, %v851_v13  ;;  %v24_v13 = vld [vmem:[%s1700_s4 + $0x8] sm:$0xff]  ;;  %v25_v14 = vld [vmem:[%s1700_s4 + $0x10] sm:$0xff] }
 0x10f   :  { %v1205_v53 = vpop.f32.mrf.mxu0  ;;  %v1232_v16 = vadd.f32 %v1231_v54, %v1230_v52 }
 0x110   :  { %v1233_v1 = vpop.f32.mrf.mxu1  ;;  %v856_v15 = vadd.f32 %v1204_v4, %v807_v6 }
 0x111   :  { %v1206_v0 = vpop.f32.mrf.mxu0 }
 0x112   :  { %v1207_v9 = vadd.f32 %v1206_v0, %v1205_v53  ;;  %v1234_v11 = vpop.f32.mrf.mxu1  ;;  %v905_v22 = vadd.f32 %v1232_v16, %v856_v15  ;;  %v26_v15 = vld [vmem:[%s1700_s4 + $0x18] sm:$0xff] }
 0x113   :  { %v1235_v19 = vadd.f32 %v1234_v11, %v1233_v1 }
 0x114   :  { %v859_v18 = vadd.f32 %v1207_v9, %v810_v10 }
 0x116   :  { %v908_v27 = vadd.f32 %v1235_v19, %v859_v18 }
 0x123   :  { %v1264_v12 = vpop.f32.mrf.mxu0 }
 0x124   :  { %v954_v26 = vadd.f32 %v1264_v12, %v905_v22 }
 0x125   :  { %v945_v17 = vpop.f32.mrf.mxu0 }
 0x126   :  { %v946_v23 = vadd.f32 %v945_v17, %v897_v20  ;;  %v972_v33 = vmul.f32 %v954_v26, %v954_v26 }
 0x127   :  { %v1265_v21 = vpop.f32.mrf.mxu0 }
 0x128   :  { %v970_v29 = vmul.f32 %v946_v23, %v946_v23  ;;  %v957_v30 = vadd.f32 %v1265_v21, %v908_v27 }
 0x129   :  { %v948_v25 = vpop.f32.mrf.mxu0 }
 0x12a   :  { %v949_v28 = vadd.f32 %v948_v25, %v900_v24  ;;  %v973_v36 = vmul.f32 %v957_v30, %v957_v30 }
 0x12c   :  { %v960_v31 = vadd.f32 %v949_v28, %v946_v23  ;;  %v971_v32 = vmul.f32 %v949_v28, %v949_v28 }
 0x12e   :  { %v961_v34 = vadd.f32 %v960_v31, %v954_v26  ;;  %v974_v35 = vadd.f32 %v971_v32, %v970_v29 }
 0x130   :  { %v962_v37 = vadd.f32 %v961_v34, %v957_v30  ;;  %v975_v38 = vadd.f32 %v974_v35, %v972_v33 }
 0x132   :  { %v963_v39 = vrot.slane %v962_v37, 4  ;;  %v976_v40 = vadd.f32 %v975_v38, %v973_v36 }
 0x134   :  { %v964_v41 = vadd.f32 %v963_v39, %v962_v37  ;;  %v977_v42 = vrot.slane %v976_v40, 4 }
 0x136   :  { %v965_v43 = vrot.slane %v964_v41, 2  ;;  %v978_v44 = vadd.f32 %v977_v42, %v976_v40 }
 0x138   :  { %v966_v45 = vadd.f32 %v965_v43, %v964_v41  ;;  %v979_v46 = vrot.slane %v978_v44, 2 }
 0x13a   :  { %v967_v47 = vrot.slane %v966_v45, 1  ;;  %v980_v48 = vadd.f32 %v979_v46, %v978_v44 }
 0x13c   :  { %v968_v49 = vadd.f32 %v967_v47, %v966_v45  ;;  %v981_v50 = vrot.slane %v980_v48, 1 }
 0x13e   :  { %v969_v51 = vmul.f32 0.055555556, %v968_v49  ;;  %v982_v52 = vadd.f32 %v981_v50, %v980_v48 }
 0x140   :  { %v983_v53 = vmul.f32 0.055555556, %v982_v52  ;;  %v984_v54 = vmul.f32 %v969_v51, %v969_v51  ;;  %v986_v57 = vsub.f32 %v946_v23, %v969_v51  ;;  %v987_v58 = vsub.f32 %v949_v28, %v969_v51 }
 0x141   :  { %v988_v59 = vsub.f32 %v954_v26, %v969_v51  ;;  %v989_v60 = vsub.f32 %v957_v30, %v969_v51 }
 0x142   :  { %v985_v55 = vsub.f32 %v983_v53, %v984_v54 }
 0x144   :  { %v990_v56 = vadd.f32 1e-05, %v985_v55 }
 0x146   :  { %1364 = vrsqrt.f32 %v990_v56 }
 0x153   :  { %v1365_v61 = vpop.eup %1364 }
 0x154   :  { %v992_v63 = vmul.f32 %v1365_v61, %v986_v57  ;;  %v993_v0 = vmul.f32 %v1365_v61, %v987_v58  ;;  %v994_v1 = vmul.f32 %v1365_v61, %v988_v59  ;;  %v995_v2 = vmul.f32 %v1365_v61, %v989_v60 }
 0x156   :  { %v1002_v4 = vmul.f32 %v1122_v62, %v992_v63  ;;  %v1003_v5 = vmul.f32 %v1122_v62, %v993_v0  ;;  %v1004_v6 = vmul.f32 %v1122_v62, %v994_v1  ;;  %v1005_v7 = vmul.f32 %v1122_v62, %v995_v2 }
 0x158   :  { %v1012_v9 = vadd.f32 %v1123_v3, %v1002_v4  ;;  %v1013_v10 = vadd.f32 %v1123_v3, %v1003_v5  ;;  %v1014_v11 = vadd.f32 %v1123_v3, %v1004_v6  ;;  %v1015_v12 = vadd.f32 %v1123_v3, %v1005_v7 }
 0x15a   :  { %v1016_v16 = vmax.f32 %v1012_v9, 0.0  ;;  %v1017_v17 = vmax.f32 %v1013_v10, 0.0  ;;  %v1018_v18 = vmax.f32 %v1014_v11, 0.0  ;;  %v1019_v19 = vmax.f32 %v1015_v12, 0.0 }
 0x15c   :  { %v1020_v20 = vadd.f32 %v1016_v16, %v23_v8  ;;  %v1021_v21 = vadd.f32 %v1017_v17, %v24_v13  ;;  %v1022_v22 = vadd.f32 %v1018_v18, %v25_v14  ;;  %v1023_v23 = vadd.f32 %v1019_v19, %v26_v15 }
 0x15e   :  { %1024 = vst [vmem:[%s1701_s5] sm:$0xff] %v1020_v20  ;;  %1025 = vst [vmem:[%s1701_s5 + $0x8] sm:$0xff] %v1021_v21 }
 0x15f   :  { %1026 = vst [vmem:[%s1701_s5 + $0x10] sm:$0xff] %v1022_v22  ;;  %1027 = vst [vmem:[%s1701_s5 + $0x18] sm:$0xff] %v1023_v23 }

// kernel: generator_forward.13
= control target key start
LH: loop header
LB: loop body
LE: loop exit
PB: predicated region body
PF: predicated region fallthrough
CT: control target
= control target key end

     0   :  { %vm2263_vm0 = vmmov 0   ;;  %vm1450_vm1 = vcmask 523264   ;;  %s3003_s1 = inlined_call_operand.vmem [shape: bf16[1152,64], index: 1, kind: input, shape index: {}]   ;;  %s3004_s0 = inlined_call_operand.vmem [shape: bf16[112,1152], index: 0, kind: input, shape index: {}]   ;;  %s3005_s2 = inlined_call_operand.vmem [shape: f32[1,64], index: 2, kind: input, shape index: {}]   ;;  %s3006_s3 = inlined_call_operand.vmem [shape: f32[1,64], index: 3, kind: input, shape index: {}]   ;;  %s3007_s4 = inlined_call_operand.vmem [shape: f32[112,64], index: 4, kind: input, shape index: {}]   ;;  %s3008_s5 = inlined_call_operand.vmem [shape: f32[112,64], index: 5, kind: output, shape index: {}]  }
   0x1   :  { %v2097_v0 = vld [vmem:[%s3003_s1 + $0x78] sm:$0xff]   ;;  %v2099_v2 = vld [vmem:[%s3003_s1 + $0x70] sm:$0xff]   ;;  %v2101_v4 = vld [vmem:[%s3003_s1 + $0x68] sm:$0xff]  }
   0x2   :  { %v2098_v1 = vld [vmem:[%s3003_s1 + $0x38] sm:$0xff]   ;;  %2079 = vmatprep.subr.bf16.mxu1 %v2097_v0  ;;  %1788 = vmatprep.subr.bf16.mxu0 %v2097_v0  ;;  %v2100_v3 = vld [vmem:[%s3003_s1 + $0x30] sm:$0xff]   ;;  %v2102_v5 = vld [vmem:[%s3003_s1 + $0x28] sm:$0xff]  }
   0x3   :  { %2087 = vmatpush3.bf16.msra.mxu1 %v2098_v1  ;;  %1789 = vmatpush3.bf16.msra.mxu0 %v2098_v1  ;;  %v2103_v6 = vld [vmem:[%s3003_s1 + $0x60] sm:$0xff]   ;;  %v2105_v8 = vld [vmem:[%s3003_s1 + $0x58] sm:$0xff]   ;;  %v2107_v10 = vld [vmem:[%s3003_s1 + $0x50] sm:$0xff]  }
   0x4   :  { %2080 = vmatprep.subr.bf16.mxu1 %v2099_v2  ;;  %1790 = vmatprep.subr.bf16.mxu0 %v2099_v2  ;;  %v2104_v7 = vld [vmem:[%s3003_s1 + $0x20] sm:$0xff]   ;;  %v2106_v9 = vld [vmem:[%s3003_s1 + $0x18] sm:$0xff]   ;;  %v2108_v13 = vld [vmem:[%s3003_s1 + $0x10] sm:$0xff]  }
   0x5   :  { %v2115_v11 = vld [vmem:[%s3004_s0 + $0x124] ss:$36 sps:$4 sm:$0xff]   ;;  %v2119_v20 = vld [vmem:[%s3003_s1 + $0xf8] sm:$0xff]   ;;  %v2123_v24 = vld [vmem:[%s3003_s1 + $0xf0] sm:$0xff]  }
   0x6   :  { %v2118_v12 = vld [vmem:[%s3004_s0 + $0x4] ss:$36 sps:$4 sm:$0xff]   ;;  %1069 = vmatprep.mubr.bf16.mxu1 %v2115_v11  ;;  %v2121_v21 = vld [vmem:[%s3003_s1 + $0x178] sm:$0xff]   ;;  %v2125_v25 = vld [vmem:[%s3003_s1 + $0x170] sm:$0xff]  }
   0x7   :  { %2088 = vmatpush3.bf16.msra.mxu1 %v2100_v3  ;;  %1791 = vmatpush3.bf16.msra.mxu0 %v2100_v3  ;;  %v2109_v14 = vld [vmem:[%s3003_s1 + $0x48] sm:$0xff]   ;;  %v2111_v16 = vld [vmem:[%s3003_s1 + $0x40] sm:$0xff]   ;;  %v2120_v22 = vld [vmem:[%s3003_s1 + $0xb8] sm:$0xff]  }
   0x8   :  { %2081 = vmatprep.subr.bf16.mxu1 %v2101_v4  ;;  %1792 = vmatprep.subr.bf16.mxu0 %v2101_v4  ;;  %v2110_v15 = vld [vmem:[%s3003_s1 + $0x8] sm:$0xff]   ;;  %v2112_v17 = vld [vmem:[%s3003_s1] sm:$0xff]   ;;  %v2122_v23 = vld [vmem:[%s3003_s1 + $0x138] sm:$0xff]  }
   0x9   :  { %1037 = vmatprep.mubr.bf16.mxu0 %v2118_v12  ;;  %v2113_v18 = vld [vmem:[%s3004_s0 + $0x120] ss:$36 sps:$4 sm:$0xff]   ;;  %v2127_v26 = vld [vmem:[%s3004_s0 + $0x4c] ss:$36 sps:$4 sm:$0xff]   ;;  %v2141_v39 = vld [vmem:[%s3004_s0 + $0x94] ss:$36 sps:$4 sm:$0xff]  }
   0xa   :  { %v2116_v19 = vld [vmem:[%s3004_s0] ss:$36 sps:$4 sm:$0xff]   ;;  %v2124_v27 = vld [vmem:[%s3003_s1 + $0xb0] sm:$0xff]   ;;  %v2129_v30 = vld [vmem:[%s3003_s1 + $0xe8] sm:$0xff]  }
   0xb   :  { %2089 = vmatpush3.bf16.msra.mxu1 %v2102_v5  ;;  %1793 = vmatpush3.bf16.msra.mxu0 %v2102_v5  ;;  %v2133_v28 = vld [vmem:[%s3004_s0 + $0x16c] ss:$36 sps:$4 sm:$0xff]   ;;  %v2137_v36 = vld [vmem:[%s3003_s1 + $0xe0] sm:$0xff]   ;;  %v2147_v40 = vld [vmem:[%s3004_s0 + $0x1b4] ss:$36 sps:$4 sm:$0xff]  }
   0xc   :  { %2082 = vmatprep.subr.bf16.mxu1 %v2103_v6  ;;  %1794 = vmatprep.subr.bf16.mxu0 %v2103_v6  ;;  %v2126_v29 = vld [vmem:[%s3003_s1 + $0x130] sm:$0xff]   ;;  %v2130_v31 = vld [vmem:[%s3004_s0 + $0x48] ss:$36 sps:$4 sm:$0xff]   ;;  %v2139_v37 = vld [vmem:[%s3003_s1 + $0x160] sm:$0xff]   ;;  %v2262_v6 = vmov 0.0  }
   0xd   :  { %v2132_v32 = vld [vmem:[%s3003_s1 + $0x168] sm:$0xff]   ;;  %v2138_v38 = vld [vmem:[%s3003_s1 + $0xa0] sm:$0xff]   ;;  %v2143_v42 = vld [vmem:[%s3003_s1 + $0xd8] sm:$0xff]  }
   0xe   :  { %v2131_v33 = vld [vmem:[%s3003_s1 + $0xa8] sm:$0xff]   ;;  %v2140_v41 = vld [vmem:[%s3003_s1 + $0x120] sm:$0xff]   ;;  %v2144_v43 = vld [vmem:[%s3004_s0 + $0x90] ss:$36 sps:$4 sm:$0xff]  }
   0xf   :  { %2090 = vmatpush3.bf16.msra.mxu1 %v2104_v7  ;;  %1795 = vmatpush3.bf16.msra.mxu0 %v2104_v7  ;;  %v2136_v34 = vld [vmem:[%s3004_s0 + $0x168] ss:$36 sps:$4 sm:$0xff]   ;;  %v2146_v44 = vld [vmem:[%s3003_s1 + $0x158] sm:$0xff]   ;;  %v2150_v47 = vld [vmem:[%s3004_s0 + $0x1b0] ss:$36 sps:$4 sm:$0xff]  }
  0x10   :  { %2083 = vmatprep.subr.bf16.mxu1 %v2105_v8  ;;  %1796 = vmatprep.subr.bf16.mxu0 %v2105_v8  ;;  %v2135_v35 = vld [vmem:[%s3003_s1 + $0x128] sm:$0xff]   ;;  %v2145_v45 = vld [vmem:[%s3003_s1 + $0x98] sm:$0xff]   ;;  %v2151_v48 = vld [vmem:[%s3003_s1 + $0xd0] sm:$0xff]  }
  0x11   :  { %v2149_v46 = vld [vmem:[%s3003_s1 + $0x118] sm:$0xff]   ;;  %v2153_v49 = vld [vmem:[%s3003_s1 + $0x150] sm:$0xff]   ;;  %v2157_v53 = vld [vmem:[%s3003_s1 + $0xc8] sm:$0xff]  }
  0x12   :  { %v2152_v50 = vld [vmem:[%s3003_s1 + $0x90] sm:$0xff]   ;;  %v2155_v51 = vld [vmem:[%s3004_s0 + $0xdc] ss:$36 sps:$4 sm:$0xff]   ;;  %v2160_v55 = vld [vmem:[%s3003_s1 + $0x148] sm:$0xff]  }
  0x13   :  { %2091 = vmatpush3.bf16.msra.mxu1 %v2106_v9  ;;  %1797 = vmatpush3.bf16.msra.mxu0 %v2106_v9  ;;  %v2154_v52 = vld [vmem:[%s3003_s1 + $0x110] sm:$0xff]   ;;  %v2158_v54 = vld [vmem:[%s3004_s0 + $0xd8] ss:$36 sps:$4 sm:$0xff]   ;;  %v2159_v56 = vld [vmem:[%s3003_s1 + $0x88] sm:$0xff]  }
  0x14   :  { %2084 = vmatprep.subr.bf16.mxu1 %v2107_v10  ;;  %1798 = vmatprep.subr.bf16.mxu0 %v2107_v10  ;;  %v2161_v57 = vld [vmem:[%s3003_s1 + $0x108] sm:$0xff]   ;;  %v2162_v58 = vld [vmem:[%s3003_s1 + $0xc0] sm:$0xff]   ;;  %v2171_v63 = vld [vmem:[%s3004_s0 + $0x14] ss:$36 sps:$4 sm:$0xff]  }
  0x15   :  { %v2164_v59 = vld [vmem:[%s3003_s1 + $0x140] sm:$0xff]   ;;  %v2168_v61 = vld [vmem:[%s3004_s0 + $0xc] ss:$36 sps:$4 sm:$0xff]   ;;  %v2172_v2 = vld [vmem:[%s3003_s1 + $0x1f8] sm:$0xff]  }
  0x16   :  { %v2163_v60 = vld [vmem:[%s3003_s1 + $0x80] sm:$0xff]   ;;  %v2166_v0 = vld [vmem:[%s3004_s0 + $0x8] ss:$36 sps:$4 sm:$0xff]   ;;  %v2169_v1 = vld [vmem:[%s3004_s0 + $0x10] ss:$36 sps:$4 sm:$0xff]  }
  0x17   :  { %2092 = vmatpush3.bf16.msra.mxu1 %v2108_v13  ;;  %1799 = vmatpush3.bf16.msra.mxu0 %v2108_v13  ;;  %v2165_v62 = vld [vmem:[%s3003_s1 + $0x100] sm:$0xff]   ;;  %v2173_v3 = vld [vmem:[%s3003_s1 + $0x1b8] sm:$0xff]   ;;  %v2176_v5 = vld [vmem:[%s3003_s1 + $0x1f0] sm:$0xff]  }
  0x18   :  { %2085 = vmatprep.subr.bf16.mxu1 %v2109_v14  ;;  %1800 = vmatprep.subr.bf16.mxu0 %v2109_v14  ;;  %v2174_v4 = vld [vmem:[%s3004_s0 + $0x54] ss:$36 sps:$4 sm:$0xff]   ;;  %v2179_v8 = vld [vmem:[%s3004_s0 + $0x5c] ss:$36 sps:$4 sm:$0xff]   ;;  %v2183_v11 = vld [vmem:[%s3003_s1 + $0x1e8] sm:$0xff]  }
  0x19   :  { %v2177_v7 = vld [vmem:[%s3003_s1 + $0x238] sm:$0xff]   ;;  %v2181_v9 = vld [vmem:[%s3003_s1 + $0x1b0] sm:$0xff]  }
  0x1a   :  { %v2178_v10 = vld [vmem:[%s3004_s0 + $0x50] ss:$36 sps:$4 sm:$0xff]   ;;  %v2182_v13 = vld [vmem:[%s3004_s0 + $0x58] ss:$36 sps:$4 sm:$0xff]  }
  0x1b   :  { %2093 = vmatpush3.bf16.msra.mxu1 %v2110_v15  ;;  %1801 = vmatpush3.bf16.msra.mxu0 %v2110_v15  ;;  %v2184_v12 = vld [vmem:[%s3003_s1 + $0x230] sm:$0xff]   ;;  %v2185_v14 = vld [vmem:[%s3004_s0 + $0x9c] ss:$36 sps:$4 sm:$0xff]   ;;  %v2187_v15 = vld [vmem:[%s3003_s1 + $0x1a8] sm:$0xff]  }
  0x1c   :  { %2086 = vmatprep.subr.bf16.mxu1 %v2111_v16  ;;  %1802 = vmatprep.subr.bf16.mxu0 %v2111_v16  ;;  %v2189_v16 = vld [vmem:[%s3004_s0 + $0xa4] ss:$36 sps:$4 sm:$0xff]  }
  0x1f   :  { %2094 = vmatpush3.bf16.msra.mxu1 %v2112_v17  ;;  %1803 = vmatpush3.bf16.msra.mxu0 %v2112_v17  ;;  %v2192_v17 = vld [vmem:[%s3003_s1 + $0x1e0] sm:$0xff]  }
  0x20   :  { %1846 = vmatprep.subr.bf16.mxu1 %v2119_v20  ;;  %1904 = vmatprep.subr.bf16.mxu0 %v2121_v21  ;;  %v2188_v20 = vld [vmem:[%s3004_s0 + $0x98] ss:$36 sps:$4 sm:$0xff]   ;;  %v2191_v21 = vld [vmem:[%s3004_s0 + $0xa0] ss:$36 sps:$4 sm:$0xff]  }
  0x22   :  { %1070 = vmatmul.mubr.bf16.vlgmr.msra.gmra.mxu1 %v2113_v18  ;;  %1038 = vmatmul.mubr.bf16.vlgmr.msra.gmra.mxu0 %v2116_v19  ;;  %v2193_v18 = vld [vmem:[%s3003_s1 + $0x228] sm:$0xff]   ;;  %v2194_v19 = vld [vmem:[%s3003_s1 + $0x1a0] sm:$0xff]  }
  0x23   :  { %1847 = vmatpush3.bf16.msra.mxu1 %v2120_v22  ;;  %1905 = vmatpush3.bf16.msra.mxu0 %v2122_v23  ;;  %v2195_v22 = vld [vmem:[%s3004_s0 + $0xe4] ss:$36 sps:$4 sm:$0xff]   ;;  %v2198_v23 = vld [vmem:[%s3004_s0 + $0xec] ss:$36 sps:$4 sm:$0xff]  }
  0x24   :  { %1848 = vmatprep.subr.bf16.mxu1 %v2123_v24  ;;  %1906 = vmatprep.subr.bf16.mxu0 %v2125_v25  ;;  %v2201_v24 = vld [vmem:[%s3003_s1 + $0x1d8] sm:$0xff]   ;;  %v2202_v25 = vld [vmem:[%s3003_s1 + $0x220] sm:$0xff]  }
  0x25   :  { %1045 = vmatprep.mubr.bf16.mxu0 %v2127_v26  ;;  %1077 = vmatprep.mubr.bf16.mxu1 %v2133_v28  ;;  %v2203_v26 = vld [vmem:[%s3003_s1 + $0x198] sm:$0xff]   ;;  %v2200_v28 = vld [vmem:[%s3004_s0 + $0xe8] ss:$36 sps:$4 sm:$0xff]  }
  0x27   :  { %1849 = vmatpush3.bf16.msra.mxu1 %v2124_v27  ;;  %1907 = vmatpush3.bf16.msra.mxu0 %v2126_v29  ;;  %v2197_v27 = vld [vmem:[%s3004_s0 + $0xe0] ss:$36 sps:$4 sm:$0xff]   ;;  %v2204_v29 = vld [vmem:[%s3004_s0 + $0x12c] ss:$36 sps:$4 sm:$0xff]  }
  0x28   :  { %1850 = vmatprep.subr.bf16.mxu1 %v2129_v30  ;;  %1908 = vmatprep.subr.bf16.mxu0 %v2132_v32  ;;  %v2207_v30 = vld [vmem:[%s3004_s0 + $0x134] ss:$36 sps:$4 sm:$0xff]  }
  0x29   :  { %v2211_v32 = vld [vmem:[%s3003_s1 + $0x218] sm:$0xff]  }
  0x2a   :  { %1046 = vmatmul.mubr.bf16.gmra.mxu0 %v2130_v31  ;;  %1078 = vmatmul.mubr.bf16.gmra.mxu1 %v2136_v34  ;;  %v2210_v31 = vld [vmem:[%s3003_s1 + $0x1d0] sm:$0xff]   ;;  %v2219_v34 = vld [vmem:[%s3003_s1 + $0x1c8] sm:$0xff]  }
  0x2b   :  { %1851 = vmatpush3.bf16.msra.mxu1 %v2131_v33  ;;  %1909 = vmatpush3.bf16.msra.mxu0 %v2135_v35  ;;  %v2212_v33 = vld [vmem:[%s3003_s1 + $0x190] sm:$0xff]  }
  0x2c   :  { %1852 = vmatprep.subr.bf16.mxu1 %v2137_v36  ;;  %1910 = vmatprep.subr.bf16.mxu0 %v2139_v37  ;;  %v2220_v35 = vld [vmem:[%s3003_s1 + $0x210] sm:$0xff]   ;;  %v2221_v36 = vld [vmem:[%s3003_s1 + $0x188] sm:$0xff]  }
  0x2d   :  { %1053 = vmatprep.mubr.bf16.mxu0 %v2141_v39  ;;  %1085 = vmatprep.mubr.bf16.mxu1 %v2147_v40  ;;  %v2206_v37 = vld [vmem:[%s3004_s0 + $0x128] ss:$36 sps:$4 sm:$0xff]   ;;  %v2213_v39 = vld [vmem:[%s3004_s0 + $0x174] ss:$36 sps:$4 sm:$0xff]   ;;  %v2216_v40 = vld [vmem:[%s3004_s0 + $0x17c] ss:$36 sps:$4 sm:$0xff]  }
  0x2f   :  { %1853 = vmatpush3.bf16.msra.mxu1 %v2138_v38  ;;  %1911 = vmatpush3.bf16.msra.mxu0 %v2140_v41  ;;  %v2209_v38 = vld [vmem:[%s3004_s0 + $0x130] ss:$36 sps:$4 sm:$0xff]   ;;  %v2228_v41 = vld [vmem:[%s3003_s1 + $0x1c0] sm:$0xff]  }
  0x30   :  { %1854 = vmatprep.subr.bf16.mxu1 %v2143_v42  ;;  %1912 = vmatprep.subr.bf16.mxu0 %v2146_v44  ;;  %v2229_v42 = vld [vmem:[%s3003_s1 + $0x208] sm:$0xff]   ;;  %v2231_v44 = vld [vmem:[%s3003_s1 + $0x200] sm:$0xff]  }
  0x32   :  { %1054 = vmatmul.mubr.bf16.gmra.mxu0 %v2144_v43  ;;  %1086 = vmatmul.mubr.bf16.gmra.mxu1 %v2150_v47  ;;  %v2230_v43 = vld [vmem:[%s3003_s1 + $0x180] sm:$0xff]  }
  0x33   :  { %1855 = vmatpush3.bf16.msra.mxu1 %v2145_v45  ;;  %1913 = vmatpush3.bf16.msra.mxu0 %v2149_v46  ;;  %v2215_v45 = vld [vmem:[%s3004_s0 + $0x170] ss:$36 sps:$4 sm:$0xff]   ;;  %v2218_v46 = vld [vmem:[%s3004_s0 + $0x178] ss:$36 sps:$4 sm:$0xff]  }
  0x34   :  { %1856 = vmatprep.subr.bf16.mxu1 %v2151_v48  ;;  %1914 = vmatprep.subr.bf16.mxu0 %v2153_v49  ;;  %v2222_v47 = vld [vmem:[%s3004_s0 + $0x1bc] ss:$36 sps:$4 sm:$0xff]   ;;  %v2225_v48 = vld [vmem:[%s3004_s0 + $0x1c4] ss:$36 sps:$4 sm:$0xff]  }
  0x35   :  { %1061 = vmatprep.mubr.bf16.mxu0 %v2155_v51  ;;  %1126 = vmatprep.mubr.bf16.mxu1 %v2168_v61  ;;  %v2224_v49 = vld [vmem:[%s3004_s0 + $0x1b8] ss:$36 sps:$4 sm:$0xff]   ;;  %v2246_v61 = vld [vmem:[%s3004_s0 + $0xf0] ss:$36 sps:$4 sm:$0xff]  }
  0x36   :  { %v2234_v51 = vld [vmem:[%s3004_s0 + $0x1c] ss:$36 sps:$4 sm:$0xff]  }
  0x37   :  { %1857 = vmatpush3.bf16.msra.mxu1 %v2152_v50  ;;  %1915 = vmatpush3.bf16.msra.mxu0 %v2154_v52  ;;  %v2227_v50 = vld [vmem:[%s3004_s0 + $0x1c0] ss:$36 sps:$4 sm:$0xff]   ;;  %v2232_v52 = vld [vmem:[%s3004_s0 + $0x18] ss:$36 sps:$4 sm:$0xff]  }
  0x38   :  { %1858 = vmatprep.subr.bf16.mxu1 %v2157_v53  ;;  %1916 = vmatprep.subr.bf16.mxu0 %v2160_v55  ;;  %v2235_v53 = vld [vmem:[%s3004_s0 + $0x20] ss:$36 sps:$4 sm:$0xff]  }
  0x39   :  { %v2238_v55 = vld [vmem:[%s3004_s0 + $0x60] ss:$36 sps:$4 sm:$0xff]  }
  0x3a   :  { %1062 = vmatmul.mubr.bf16.gmra.mxu0 %v2158_v54  ;;  %v2236_v54 = vld [vmem:[%s3004_s0 + $0x64] ss:$36 sps:$4 sm:$0xff]  }
  0x3b   :  { %1859 = vmatpush3.bf16.msra.mxu1 %v2159_v56  ;;  %1917 = vmatpush3.bf16.msra.mxu0 %v2161_v57  ;;  %v2239_v56 = vld [vmem:[%s3004_s0 + $0x68] ss:$36 sps:$4 sm:$0xff]  }
  0x3c   :  { %1860 = vmatprep.subr.bf16.mxu1 %v2162_v58  ;;  %1918 = vmatprep.subr.bf16.mxu0 %v2164_v59  ;;  %v2240_v57 = vld [vmem:[%s3004_s0 + $0xac] ss:$36 sps:$4 sm:$0xff]  }
  0x3d   :  { %1215 = vmatprep.mubr.bf16.mxu0 %v2171_v63  ;;  %v2242_v58 = vld [vmem:[%s3004_s0 + $0xa8] ss:$36 sps:$4 sm:$0xff]   ;;  %v2243_v59 = vld [vmem:[%s3004_s0 + $0xb0] ss:$36 sps:$4 sm:$0xff]   ;;  %v2248_v63 = vld [vmem:[%s3004_s0 + $0x13c] ss:$36 sps:$4 sm:$0xff]  }
  0x3f   :  { %1861 = vmatpush3.bf16.msra.mxu1 %v2163_v60  ;;  %1919 = vmatpush3.bf16.msra.mxu0 %v2165_v62  ;;  %v2244_v60 = vld [vmem:[%s3004_s0 + $0xf4] ss:$36 sps:$4 sm:$0xff]  }
  0x40   :  { %1962 = vmatprep.subr.bf16.mxu1 %v2172_v2  ;;  %2035 = vmatprep.subr.bf16.mxu0 %v2262_v6  ;;  %v2247_v62 = vld [vmem:[%s3004_s0 + $0xf8] ss:$36 sps:$4 sm:$0xff]   ;;  %v2252_v2 = vld [vmem:[%s3004_s0 + $0x184] ss:$36 sps:$4 sm:$0xff]  }
  0x42   :  { %1127 = vmatmul.mubr.bf16.vlgmr.msra.gmra.mxu1 %v2166_v0  ;;  %1216 = vmatmul.mubr.bf16.vlgmr.msra.gmra.mxu0 %v2169_v1  ;;  %v2250_v0 = vld [vmem:[%s3004_s0 + $0x138] ss:$36 sps:$4 sm:$0xff]   ;;  %v2251_v1 = vld [vmem:[%s3004_s0 + $0x140] ss:$36 sps:$4 sm:$0xff]  }
  0x43   :  { %1963 = vmatpush3.bf16.msra.mxu1 %v2173_v3  ;;  %1134 = vmatprep.mubr.bf16.mxu1 %v2174_v4  ;;  %v2254_v3 = vld [vmem:[%s3004_s0 + $0x180] ss:$36 sps:$4 sm:$0xff]   ;;  %v2255_v4 = vld [vmem:[%s3004_s0 + $0x188] ss:$36 sps:$4 sm:$0xff]  }
  0x44   :  { %1964 = vmatprep.subr.bf16.mxu1 %v2176_v5  ;;  %2036 = vmatpush3.bf16.msra.mxu0 %v2177_v7  ;;  %v2256_v5 = vld [vmem:[%s3004_s0 + $0x1cc] ss:$36 sps:$4 sm:$0xff]  }
  0x45   :  { %1223 = vmatprep.mubr.bf16.mxu0 %v2179_v8  ;;  %2037 = vmatprep.subr.bf16.mxu0 %v2262_v6  ;;  %v2258_v7 = vld [vmem:[%s3004_s0 + $0x1c8] ss:$36 sps:$4 sm:$0xff]   ;;  %v2259_v8 = vld [vmem:[%s3004_s0 + $0x1d0] ss:$36 sps:$4 sm:$0xff]  }
  0x47   :  { %1965 = vmatpush3.bf16.msra.mxu1 %v2181_v9 }
  0x48   :  { %1966 = vmatprep.subr.bf16.mxu1 %v2183_v11  ;;  %2038 = vmatpush3.bf16.msra.mxu0 %v2184_v12 }
  0x49   :  { %2039 = vmatprep.subr.bf16.mxu0 %v2262_v6 }
  0x4a   :  { %1135 = vmatmul.mubr.bf16.gmra.mxu1 %v2178_v10  ;;  %1224 = vmatmul.mubr.bf16.gmra.mxu0 %v2182_v13 }
  0x4b   :  { %1142 = vmatprep.mubr.bf16.mxu1 %v2185_v14  ;;  %1967 = vmatpush3.bf16.msra.mxu1 %v2187_v15 }
  0x4c   :  { %1231 = vmatprep.mubr.bf16.mxu0 %v2189_v16  ;;  %1968 = vmatprep.subr.bf16.mxu1 %v2192_v17 }
  0x4d   :  { %2040 = vmatpush3.bf16.msra.mxu0 %v2193_v18 }
  0x4e   :  { %2041 = vmatprep.subr.bf16.mxu0 %v2262_v6 }
  0x4f   :  { %1969 = vmatpush3.bf16.msra.mxu1 %v2194_v19 }
  0x50   :  { %1970 = vmatprep.subr.bf16.mxu1 %v2201_v24 }
  0x51   :  { %2042 = vmatpush3.bf16.msra.mxu0 %v2202_v25 }
  0x52   :  { %1143 = vmatmul.mubr.bf16.gmra.mxu1 %v2188_v20  ;;  %1232 = vmatmul.mubr.bf16.gmra.mxu0 %v2191_v21 }
  0x53   :  { %1150 = vmatprep.mubr.bf16.mxu1 %v2195_v22  ;;  %1239 = vmatprep.mubr.bf16.mxu0 %v2198_v23 }
  0x54   :  { %1971 = vmatpush3.bf16.msra.mxu1 %v2203_v26  ;;  %2043 = vmatprep.subr.bf16.mxu0 %v2262_v6 }
  0x55   :  { %1972 = vmatprep.subr.bf16.mxu1 %v2210_v31  ;;  %2044 = vmatpush3.bf16.msra.mxu0 %v2211_v32 }
  0x56   :  { %2045 = vmatprep.subr.bf16.mxu0 %v2262_v6 }
  0x58   :  { %1973 = vmatpush3.bf16.msra.mxu1 %v2212_v33 }
  0x59   :  { %1974 = vmatprep.subr.bf16.mxu1 %v2219_v34  ;;  %2046 = vmatpush3.bf16.msra.mxu0 %v2220_v35 }
  0x5a   :  { %1151 = vmatmul.mubr.bf16.gmra.mxu1 %v2197_v27  ;;  %1240 = vmatmul.mubr.bf16.gmra.mxu0 %v2200_v28 }
  0x5b   :  { %1158 = vmatprep.mubr.bf16.mxu1 %v2204_v29  ;;  %1247 = vmatprep.mubr.bf16.mxu0 %v2207_v30 }
  0x5c   :  { %1975 = vmatpush3.bf16.msra.mxu1 %v2221_v36  ;;  %2047 = vmatprep.subr.bf16.mxu0 %v2262_v6 }
  0x5d   :  { %1976 = vmatprep.subr.bf16.mxu1 %v2228_v41  ;;  %2048 = vmatpush3.bf16.msra.mxu0 %v2229_v42 }
  0x5e   :  { %2049 = vmatprep.subr.bf16.mxu0 %v2262_v6 }
  0x60   :  { %1977 = vmatpush3.bf16.msra.mxu1 %v2230_v43 }
  0x61   :  { %2050 = vmatpush3.bf16.msra.mxu0 %v2231_v44 }
  0x62   :  { %1159 = vmatmul.mubr.bf16.gmra.mxu1 %v2206_v37  ;;  %1248 = vmatmul.mubr.bf16.gmra.mxu0 %v2209_v38 }
  0x63   :  { %1166 = vmatprep.mubr.bf16.mxu1 %v2213_v39  ;;  %1255 = vmatprep.mubr.bf16.mxu0 %v2216_v40 }
  0x6a   :  { %1167 = vmatmul.mubr.bf16.gmra.mxu1 %v2215_v45  ;;  %1256 = vmatmul.mubr.bf16.gmra.mxu0 %v2218_v46 }
  0x6b   :  { %1174 = vmatprep.mubr.bf16.mxu1 %v2222_v47  ;;  %1263 = vmatprep.mubr.bf16.mxu0 %v2225_v48 }
  0x72   :  { %1175 = vmatmul.mubr.bf16.gmra.mxu1 %v2224_v49  ;;  %1264 = vmatmul.mubr.bf16.gmra.mxu0 %v2227_v50 }
  0x73   :  { %1304 = vmatprep.mubr.bf16.mxu1 %v2234_v51  ;;  %2051 = vmatprep.mubr.msk.bf16.mxu0 %vm2263_vm0, %v2262_v6 }
  0x7a   :  { %1305 = vmatmul.mubr.bf16.vlgmr.msra.gmra.mxu1 %v2232_v52  ;;  %2052 = vmatmul.mubr.bf16.vlgmr.msra.gmra.mxu0 %v2235_v53 }
  0x7b   :  { %1312 = vmatprep.mubr.bf16.mxu1 %v2236_v54  ;;  %2055 = vmatprep.mubr.msk.bf16.mxu0 %vm2263_vm0, %v2262_v6 }
  0x82   :  { %1313 = vmatmul.mubr.bf16.gmra.mxu1 %v2238_v55  ;;  %2056 = vmatmul.mubr.bf16.gmra.mxu0 %v2239_v56 }
  0x83   :  { %1320 = vmatprep.mubr.bf16.mxu1 %v2240_v57  ;;  %2059 = vmatprep.mubr.msk.bf16.mxu0 %vm2263_vm0, %v2262_v6 }
  0x8a   :  { %1321 = vmatmul.mubr.bf16.gmra.mxu1 %v2242_v58  ;;  %2060 = vmatmul.mubr.bf16.gmra.mxu0 %v2243_v59 }
  0x8b   :  { %1328 = vmatprep.mubr.bf16.mxu1 %v2244_v60  ;;  %2063 = vmatprep.mubr.msk.bf16.mxu0 %vm2263_vm0, %v2262_v6 }
  0x92   :  { %1329 = vmatmul.mubr.bf16.gmra.mxu1 %v2246_v61  ;;  %2064 = vmatmul.mubr.bf16.gmra.mxu0 %v2247_v62 }
  0x93   :  { %1336 = vmatprep.mubr.bf16.mxu1 %v2248_v63  ;;  %2067 = vmatprep.mubr.msk.bf16.mxu0 %vm2263_vm0, %v2262_v6 }
  0x9a   :  { %1337 = vmatmul.mubr.bf16.gmra.mxu1 %v2250_v0  ;;  %2068 = vmatmul.mubr.bf16.gmra.mxu0 %v2251_v1 }
  0x9b   :  { %1344 = vmatprep.mubr.bf16.mxu1 %v2252_v2  ;;  %2071 = vmatprep.mubr.msk.bf16.mxu0 %vm2263_vm0, %v2262_v6 }
  0xa2   :  { %1345 = vmatmul.mubr.bf16.gmra.mxu1 %v2254_v3  ;;  %2072 = vmatmul.mubr.bf16.gmra.mxu0 %v2255_v4 }
  0xa3   :  { %1352 = vmatprep.mubr.bf16.mxu1 %v2256_v5  ;;  %2075 = vmatprep.mubr.msk.bf16.mxu0 %vm2263_vm0, %v2262_v6 }
  0xaa   :  { %1353 = vmatmul.mubr.bf16.gmra.mxu1 %v2258_v7  ;;  %2076 = vmatmul.mubr.bf16.gmra.mxu0 %v2259_v8 }
  0xe2   :  { %v1828_v9 = vpop.f32.mrf.mxu1  ;;  %v1804_v10 = vpop.f32.mrf.mxu0 }
  0xe4   :  { %v1829_v11 = vpop.f32.mrf.mxu1  ;;  %v1805_v12 = vpop.f32.mrf.mxu0 }
  0xe5   :  { %v2721_v13 = vadd.f32 %v1829_v11, %v1828_v9  ;;  %v1806_v14 = vadd.f32 %v1805_v12, %v1804_v10 }
  0xe6   :  { %v1831_v15 = vpop.f32.mrf.mxu1  ;;  %v1807_v16 = vpop.f32.mrf.mxu0 }
  0xe8   :  { %v1832_v6 = vpop.f32.mrf.mxu1  ;;  %v1808_v17 = vpop.f32.mrf.mxu0 }
  0xe9   :  { %v2723_v18 = vadd.f32 %v1832_v6, %v1831_v15  ;;  %v1809_v19 = vadd.f32 %v1808_v17, %v1807_v16 }
  0xea   :  { %v1810_v20 = vpop.f32.mrf.mxu0  ;;  %v1834_v21 = vpop.f32.mrf.mxu1 }
  0xec   :  { %v1811_v22 = vpop.f32.mrf.mxu0  ;;  %v1835_v23 = vpop.f32.mrf.mxu1 }
  0xed   :  { %v1812_v24 = vadd.f32 %v1811_v22, %v1810_v20  ;;  %v2725_v25 = vadd.f32 %v1835_v23, %v1834_v21 }
  0xee   :  { %v1813_v26 = vpop.f32.mrf.mxu0  ;;  %v1837_v27 = vpop.f32.mrf.mxu1 }
  0xf0   :  { %v1814_v28 = vpop.f32.mrf.mxu0  ;;  %v1838_v29 = vpop.f32.mrf.mxu1 }
  0xf1   :  { %v1815_v30 = vadd.f32 %v1814_v28, %v1813_v26  ;;  %v2727_v31 = vadd.f32 %v1838_v29, %v1837_v27 }
  0xf2   :  { %v1816_v32 = vpop.f32.mrf.mxu0  ;;  %v1840_v33 = vpop.f32.mrf.mxu1 }
  0xf4   :  { %v1817_v34 = vpop.f32.mrf.mxu0  ;;  %v1841_v35 = vpop.f32.mrf.mxu1 }
  0xf5   :  { %v1818_v36 = vadd.f32 %v1817_v34, %v1816_v32  ;;  %v2729_v37 = vadd.f32 %v1841_v35, %v1840_v33 }
  0xf6   :  { %v1819_v38 = vpop.f32.mrf.mxu0  ;;  %v1843_v39 = vpop.f32.mrf.mxu1 }
  0xf8   :  { %v1820_v40 = vpop.f32.mrf.mxu0  ;;  %v1844_v41 = vpop.f32.mrf.mxu1 }
  0xf9   :  { %v1821_v42 = vadd.f32 %v1820_v40, %v1819_v38  ;;  %v2731_v43 = vadd.f32 %v1844_v41, %v1843_v39 }
  0xfa   :  { %v1822_v44 = vpop.f32.mrf.mxu0 }
  0xfc   :  { %v1823_v45 = vpop.f32.mrf.mxu0 }
  0xfd   :  { %v1824_v46 = vadd.f32 %v1823_v45, %v1822_v44 }
  0xfe   :  { %v1825_v47 = vpop.f32.mrf.mxu0 }
 0x100   :  { %v1826_v48 = vpop.f32.mrf.mxu0 }
 0x101   :  { %v2733_v49 = vadd.f32 %v1826_v48, %v1825_v47 }
 0x102   :  { %v1862_v50 = vpop.f32.mrf.mxu1  ;;  %v1920_v51 = vpop.f32.mrf.mxu0 }
 0x104   :  { %v1863_v52 = vpop.f32.mrf.mxu1  ;;  %v1921_v53 = vpop.f32.mrf.mxu0 }
 0x105   :  { %v1864_v54 = vadd.f32 %v1863_v52, %v1862_v50  ;;  %v1922_v55 = vadd.f32 %v1921_v53, %v1920_v51 }
 0x106   :  { %v1865_v56 = vpop.f32.mrf.mxu1  ;;  %v1923_v57 = vpop.f32.mrf.mxu0 }
 0x107   :  { %v1129_v58 = vadd.f32 %v1864_v54, %v1806_v14 }
 0x108   :  { %v1866_v59 = vpop.f32.mrf.mxu1  ;;  %v1924_v60 = vpop.f32.mrf.mxu0 }
 0x109   :  { %v2735_v61 = vadd.f32 %v1922_v55, %v1129_v58  ;;  %v1867_v62 = vadd.f32 %v1866_v59, %v1865_v56  ;;  %v1925_v63 = vadd.f32 %v1924_v60, %v1923_v57 }
 0x10a   :  { %v1868_v0 = vpop.f32.mrf.mxu1  ;;  %v1926_v1 = vpop.f32.mrf.mxu0 }
 0x10b   :  { %v1132_v2 = vadd.f32 %v1867_v62, %v1809_v19 }
 0x10c   :  { %v1869_v3 = vpop.f32.mrf.mxu1  ;;  %v1927_v4 = vpop.f32.mrf.mxu0 }
 0x10d   :  { %v2737_v5 = vadd.f32 %v1925_v63, %v1132_v2  ;;  %v1870_v7 = vadd.f32 %v1869_v3, %v1868_v0  ;;  %v1928_v8 = vadd.f32 %v1927_v4, %v1926_v1 }
 0x10e   :  { %v1871_v9 = vpop.f32.mrf.mxu1  ;;  %v1929_v10 = vpop.f32.mrf.mxu0 }
 0x10f   :  { %v1137_v11 = vadd.f32 %v1870_v7, %v1812_v24 }
 0x110   :  { %v1872_v12 = vpop.f32.mrf.mxu1  ;;  %v1930_v14 = vpop.f32.mrf.mxu0 }
 0x111   :  { %v2739_v15 = vadd.f32 %v1928_v8, %v1137_v11  ;;  %v1873_v16 = vadd.f32 %v1872_v12, %v1871_v9  ;;  %v1931_v6 = vadd.f32 %v1930_v14, %v1929_v10 }
 0x112   :  { %v1874_v17 = vpop.f32.mrf.mxu1  ;;  %v1932_v20 = vpop.f32.mrf.mxu0 }
 0x113   :  { %v1140_v21 = vadd.f32 %v1873_v16, %v1815_v30 }
 0x114   :  { %v1875_v22 = vpop.f32.mrf.mxu1  ;;  %v1933_v19 = vpop.f32.mrf.mxu0 }
 0x115   :  { %v2741_v23 = vadd.f32 %v1931_v6, %v1140_v21  ;;  %v1876_v26 = vadd.f32 %v1875_v22, %v1874_v17  ;;  %v1934_v27 = vadd.f32 %v1933_v19, %v1932_v20 }
 0x116   :  { %v1877_v28 = vpop.f32.mrf.mxu1  ;;  %v1935_v29 = vpop.f32.mrf.mxu0 }
 0x117   :  { %v1145_v32 = vadd.f32 %v1876_v26, %v1818_v36 }
 0x118   :  { %v1878_v33 = vpop.f32.mrf.mxu1  ;;  %v1936_v24 = vpop.f32.mrf.mxu0 }
 0x119   :  { %v2743_v34 = vadd.f32 %v1934_v27, %v1145_v32  ;;  %v1879_v35 = vadd.f32 %v1878_v33, %v1877_v28  ;;  %v1937_v38 = vadd.f32 %v1936_v24, %v1935_v29 }
 0x11a   :  { %v1880_v39 = vpop.f32.mrf.mxu1  ;;  %v1938_v40 = vpop.f32.mrf.mxu0 }
 0x11b   :  { %v1148_v41 = vadd.f32 %v1879_v35, %v1821_v42 }
 0x11c   :  { %v1881_v44 = vpop.f32.mrf.mxu1  ;;  %v1939_v30 = vpop.f32.mrf.mxu0 }
 0x11d   :  { %v2745_v45 = vadd.f32 %v1937_v38, %v1148_v41  ;;  %v1882_v47 = vadd.f32 %v1881_v44, %v1880_v39  ;;  %v1940_v48 = vadd.f32 %v1939_v30, %v1938_v40 }
 0x11e   :  { %v1883_v50 = vpop.f32.mrf.mxu1  ;;  %v1941_v51 = vpop.f32.mrf.mxu0 }
 0x11f   :  { %v1153_v52 = vadd.f32 %v1882_v47, %v1824_v46 }
 0x120   :  { %v1884_v53 = vpop.f32.mrf.mxu1  ;;  %v1942_v36 = vpop.f32.mrf.mxu0 }
 0x121   :  { %v2747_v54 = vadd.f32 %v1940_v48, %v1153_v52  ;;  %v1885_v55 = vadd.f32 %v1884_v53, %v1883_v50  ;;  %v1943_v56 = vadd.f32 %v1942_v36, %v1941_v51 }
 0x122   :  { %v1886_v57 = vpop.f32.mrf.mxu1  ;;  %v1944_v58 = vpop.f32.mrf.mxu0 }
 0x123   :  { %v1156_v59 = vadd.f32 %v1885_v55, %v2733_v49 }
 0x124   :  { %v1887_v42 = vpop.f32.mrf.mxu1  ;;  %v1945_v60 = vpop.f32.mrf.mxu0 }
 0x125   :  { %v2750_v62 = vadd.f32 %v1943_v56, %v1156_v59  ;;  %v1888_v63 = vadd.f32 %v1887_v42, %v1886_v57  ;;  %v1946_v0 = vadd.f32 %v1945_v60, %v1944_v58 }
 0x126   :  { %v1889_v1 = vpop.f32.mrf.mxu1  ;;  %v1947_v2 = vpop.f32.mrf.mxu0 }
 0x127   :  { %v1161_v46 = vadd.f32 %v1888_v63, %v2721_v13 }
 0x128   :  { %v1890_v3 = vpop.f32.mrf.mxu1  ;;  %v1948_v4 = vpop.f32.mrf.mxu0 }
 0x129   :  { %v2753_v7 = vadd.f32 %v1946_v0, %v1161_v46  ;;  %v1891_v8 = vadd.f32 %v1890_v3, %v1889_v1  ;;  %v1949_v9 = vadd.f32 %v1948_v4, %v1947_v2 }
 0x12a   :  { %v1892_v10 = vpop.f32.mrf.mxu1  ;;  %v1950_v11 = vpop.f32.mrf.mxu0 }
 0x12b   :  { %v1164_v49 = vadd.f32 %v1891_v8, %v2723_v18 }
 0x12c   :  { %v1893_v12 = vpop.f32.mrf.mxu1  ;;  %v1951_v14 = vpop.f32.mrf.mxu0 }
 0x12d   :  { %v2756_v16 = vadd.f32 %v1949_v9, %v1164_v49  ;;  %v1894_v6 = vadd.f32 %v1893_v12, %v1892_v10  ;;  %v1952_v17 = vadd.f32 %v1951_v14, %v1950_v11 }
 0x12e   :  { %v1895_v20 = vpop.f32.mrf.mxu1  ;;  %v1953_v21 = vpop.f32.mrf.mxu0 }
 0x12f   :  { %v1169_v13 = vadd.f32 %v1894_v6, %v2725_v25 }
 0x130   :  { %v1896_v22 = vpop.f32.mrf.mxu1  ;;  %v1954_v19 = vpop.f32.mrf.mxu0 }
 0x131   :  { %v2759_v26 = vadd.f32 %v1952_v17, %v1169_v13  ;;  %v1897_v27 = vadd.f32 %v1896_v22, %v1895_v20  ;;  %v1955_v28 = vadd.f32 %v1954_v19, %v1953_v21 }
 0x132   :  { %v1898_v29 = vpop.f32.mrf.mxu1  ;;  %v1956_v32 = vpop.f32.mrf.mxu0 }
 0x133   :  { %v1172_v18 = vadd.f32 %v1897_v27, %v2727_v31 }
 0x134   :  { %v1899_v33 = vpop.f32.mrf.mxu1  ;;  %v1957_v24 = vpop.f32.mrf.mxu0 }
 0x135   :  { %v2762_v35 = vadd.f32 %v1955_v28, %v1172_v18  ;;  %v1900_v38 = vadd.f32 %v1899_v33, %v1898_v29  ;;  %v1958_v39 = vadd.f32 %v1957_v24, %v1956_v32 }
 0x136   :  { %v2764_v40 = vpop.f32.mrf.mxu1  ;;  %v2766_v41 = vpop.f32.mrf.mxu0 }
 0x137   :  { %v1177_v25 = vadd.f32 %v1900_v38, %v2729_v37 }
 0x138   :  { %v2769_v44 = vpop.f32.mrf.mxu1  ;;  %v2771_v30 = vpop.f32.mrf.mxu0 }
 0x139   :  { %v2773_v47 = vadd.f32 %v1958_v39, %v1177_v25 }
 0x13a   :  { %v1978_v48 = vpop.f32.mrf.mxu1  ;;  %v1395_v31 = vpop.f32.mrf.mxu0 }
 0x13c   :  { %v1979_v50 = vpop.f32.mrf.mxu1  ;;  %v2053_v51 = vpop.f32.mrf.mxu0 }
 0x13d   :  { %v1980_v52 = vadd.f32 %v1979_v50, %v1978_v48 }
 0x13e   :  { %v1981_v53 = vpop.f32.mrf.mxu1  ;;  %v1398_v36 = vpop.f32.mrf.mxu0 }
 0x13f   :  { %v1307_v55 = vadd.f32 %v1980_v52, %v2735_v61 }
 0x140   :  { %v1982_v56 = vpop.f32.mrf.mxu1  ;;  %v2054_v57 = vpop.f32.mrf.mxu0 }
 0x141   :  { %v2776_v58 = vadd.f32 %v1395_v31, %v1307_v55  ;;  %v1983_v37 = vadd.f32 %v1982_v56, %v1981_v53 }
 0x142   :  { %v1984_v59 = vpop.f32.mrf.mxu1  ;;  %v1403_v42 = vpop.f32.mrf.mxu0 }
 0x143   :  { %v1310_v60 = vadd.f32 %v1983_v37, %v2737_v5  ;;  %v1485_v1 = vmul.f32 %v2776_v58, %v2776_v58  ;;  %v1451_v4 = vsel %vm1450_vm1, %v2776_v58, 0.0 }
 0x144   :  { %v1985_v63 = vpop.f32.mrf.mxu1  ;;  %v2057_v0 = vpop.f32.mrf.mxu0 }
 0x145   :  { %v2781_v2 = vadd.f32 %v1398_v36, %v1310_v60  ;;  %v1986_v46 = vadd.f32 %v1985_v63, %v1984_v59  ;;  %v1499_v12 = vsel %vm1450_vm1, %v1485_v1, 0.0 }
 0x146   :  { %v1987_v3 = vpop.f32.mrf.mxu1  ;;  %v1406_v61 = vpop.f32.mrf.mxu0 }
 0x147   :  { %v1452_v8 = vsel %vm1450_vm1, %v2781_v2, 0.0  ;;  %v1486_v5 = vmul.f32 %v2781_v2, %v2781_v2  ;;  %v1315_v9 = vadd.f32 %v1986_v46, %v2739_v15 }
 0x148   :  { %v1453_v10 = vadd.f32 %v1452_v8, %v1451_v4  ;;  %v1988_v11 = vpop.f32.mrf.mxu1  ;;  %v2058_v49 = vpop.f32.mrf.mxu0 }
 0x149   :  { %v1500_v14 = vsel %vm1450_vm1, %v1486_v5, 0.0  ;;  %v2792_v6 = vadd.f32 %v1403_v42, %v1315_v9  ;;  %v1989_v17 = vadd.f32 %v1988_v11, %v1987_v3 }
 0x14a   :  { %v1501_v20 = vadd.f32 %v1500_v14, %v1499_v12  ;;  %v1990_v21 = vpop.f32.mrf.mxu1  ;;  %v1411_v13 = vpop.f32.mrf.mxu0 }
 0x14b   :  { %v1454_v22 = vsel %vm1450_vm1, %v2792_v6, 0.0  ;;  %v1487_v19 = vmul.f32 %v2792_v6, %v2792_v6  ;;  %v1318_v15 = vadd.f32 %v1989_v17, %v2741_v23 }
 0x14c   :  { %v1455_v27 = vadd.f32 %v1454_v22, %v1453_v10  ;;  %v1991_v28 = vpop.f32.mrf.mxu1  ;;  %v2061_v29 = vpop.f32.mrf.mxu0 }
 0x14d   :  { %v1502_v32 = vsel %vm1450_vm1, %v1487_v19, 0.0  ;;  %v2800_v18 = vadd.f32 %v1406_v61, %v1318_v15  ;;  %v1992_v33 = vadd.f32 %v1991_v28, %v1990_v21 }
 0x14e   :  { %v1503_v24 = vadd.f32 %v1502_v32, %v1501_v20  ;;  %v1993_v38 = vpop.f32.mrf.mxu1  ;;  %v1414_v39 = vpop.f32.mrf.mxu0 }
 0x14f   :  { %v1456_v25 = vsel %vm1450_vm1, %v2800_v18, 0.0  ;;  %v1488_v48 = vmul.f32 %v2800_v18, %v2800_v18  ;;  %v1323_v31 = vadd.f32 %v1992_v33, %v2743_v34 }
 0x150   :  { %v1457_v23 = vadd.f32 %v1456_v25, %v1455_v27  ;;  %v1994_v50 = vpop.f32.mrf.mxu1  ;;  %v2062_v51 = vpop.f32.mrf.mxu0 }
 0x151   :  { %v1504_v52 = vsel %vm1450_vm1, %v1488_v48, 0.0  ;;  %v2808_v53 = vadd.f32 %v1411_v13, %v1323_v31  ;;  %v1995_v36 = vadd.f32 %v1994_v50, %v1993_v38 }
 0x152   :  { %v1505_v55 = vadd.f32 %v1504_v52, %v1503_v24  ;;  %v1996_v56 = vpop.f32.mrf.mxu1  ;;  %v1419_v57 = vpop.f32.mrf.mxu0 }
 0x153   :  { %v1458_v37 = vsel %vm1450_vm1, %v2808_v53, 0.0  ;;  %v1489_v59 = vmul.f32 %v2808_v53, %v2808_v53  ;;  %v1326_v42 = vadd.f32 %v1995_v36, %v2745_v45 }
 0x154   :  { %v1459_v34 = vadd.f32 %v1458_v37, %v1457_v23  ;;  %v1997_v60 = vpop.f32.mrf.mxu1  ;;  %v2065_v63 = vpop.f32.mrf.mxu0 }
 0x155   :  { %v1506_v0 = vsel %vm1450_vm1, %v1489_v59, 0.0  ;;  %v2816_v1 = vadd.f32 %v1414_v39, %v1326_v42  ;;  %v1998_v46 = vadd.f32 %v1997_v60, %v1996_v56 }
 0x156   :  { %v1507_v3 = vadd.f32 %v1506_v0, %v1505_v55  ;;  %v1999_v61 = vpop.f32.mrf.mxu1  ;;  %v1422_v4 = vpop.f32.mrf.mxu0 }
 0x157   :  { %v1460_v8 = vsel %vm1450_vm1, %v2816_v1, 0.0  ;;  %v1490_v5 = vmul.f32 %v2816_v1, %v2816_v1  ;;  %v1331_v9 = vadd.f32 %v1998_v46, %v2747_v54 }
 0x158   :  { %v1461_v45 = vadd.f32 %v1460_v8, %v1459_v34  ;;  %v2000_v10 = vpop.f32.mrf.mxu1  ;;  %v2066_v11 = vpop.f32.mrf.mxu0 }
 0x159   :  { %v1508_v49 = vsel %vm1450_vm1, %v1490_v5, 0.0  ;;  %v2824_v12 = vadd.f32 %v1419_v57, %v1331_v9  ;;  %v2001_v14 = vadd.f32 %v2000_v10, %v1999_v61  ;;  %v1903_v10 = vadd.f32 %v2769_v44, %v2764_v40 }
 0x15a   :  { %v1509_v17 = vadd.f32 %v1508_v49, %v1507_v3  ;;  %v2002_v20 = vpop.f32.mrf.mxu1  ;;  %v1427_v21 = vpop.f32.mrf.mxu0 }
 0x15b   :  { %v1462_v13 = vsel %vm1450_vm1, %v2824_v12, 0.0  ;;  %v1491_v22 = vmul.f32 %v2824_v12, %v2824_v12  ;;  %v1334_v19 = vadd.f32 %v2001_v14, %v2750_v62  ;;  %v1180_v40 = vadd.f32 %v1903_v10, %v2731_v43 }
 0x15c   :  { %v1463_v54 = vadd.f32 %v1462_v13, %v1461_v45  ;;  %v2003_v15 = vpop.f32.mrf.mxu1  ;;  %v2069_v27 = vpop.f32.mrf.mxu0 }
 0x15d   :  { %v1510_v28 = vsel %vm1450_vm1, %v1491_v22, 0.0  ;;  %v2832_v29 = vadd.f32 %v1422_v4, %v1334_v19  ;;  %v2004_v32 = vadd.f32 %v2003_v15, %v2002_v20 }
 0x15e   :  { %v1511_v33 = vadd.f32 %v1510_v28, %v1509_v17  ;;  %v2005_v24 = vpop.f32.mrf.mxu1  ;;  %v1430_v38 = vpop.f32.mrf.mxu0 }
 0x15f   :  { %v1464_v39 = vsel %vm1450_vm1, %v2832_v29, 0.0  ;;  %v1492_v25 = vmul.f32 %v2832_v29, %v2832_v29  ;;  %v1339_v48 = vadd.f32 %v2004_v32, %v2753_v7 }
 0x160   :  { %v1465_v62 = vadd.f32 %v1464_v39, %v1463_v54  ;;  %v2006_v31 = vpop.f32.mrf.mxu1  ;;  %v2070_v23 = vpop.f32.mrf.mxu0 }
 0x161   :  { %v1512_v50 = vsel %vm1450_vm1, %v1492_v25, 0.0  ;;  %v2840_v51 = vadd.f32 %v1427_v21, %v1339_v48  ;;  %v2007_v52 = vadd.f32 %v2006_v31, %v2005_v24 }
 0x162   :  { %v1513_v36 = vadd.f32 %v1512_v50, %v1511_v33  ;;  %v2008_v55 = vpop.f32.mrf.mxu1  ;;  %v1435_v56 = vpop.f32.mrf.mxu0 }
 0x163   :  { %v1466_v57 = vsel %vm1450_vm1, %v2840_v51, 0.0  ;;  %v1493_v37 = vmul.f32 %v2840_v51, %v2840_v51  ;;  %v1342_v59 = vadd.f32 %v2007_v52, %v2756_v16 }
 0x164   :  { %v1467_v7 = vadd.f32 %v1466_v57, %v1465_v62  ;;  %v2009_v42 = vpop.f32.mrf.mxu1  ;;  %v2073_v34 = vpop.f32.mrf.mxu0 }
 0x165   :  { %v1514_v60 = vsel %vm1450_vm1, %v1493_v37, 0.0  ;;  %v2848_v63 = vadd.f32 %v1430_v38, %v1342_v59  ;;  %v2010_v0 = vadd.f32 %v2009_v42, %v2008_v55  ;;  %v1961_v38 = vadd.f32 %v2771_v30, %v2766_v41 }
 0x166   :  { %v1515_v46 = vadd.f32 %v1514_v60, %v1513_v36  ;;  %v2011_v3 = vpop.f32.mrf.mxu1  ;;  %v1438_v61 = vpop.f32.mrf.mxu0 }
 0x167   :  { %v1468_v4 = vsel %vm1450_vm1, %v2848_v63, 0.0  ;;  %v1494_v8 = vmul.f32 %v2848_v63, %v2848_v63  ;;  %v1347_v5 = vadd.f32 %v2010_v0, %v2759_v26  ;;  %v1269_v31 = vadd.f32 %v1961_v38, %v1180_v40 }
 0x168   :  { %v1469_v16 = vadd.f32 %v1468_v4, %v1467_v7  ;;  %v2012_v9 = vpop.f32.mrf.mxu1  ;;  %v2074_v45 = vpop.f32.mrf.mxu0 }
 0x169   :  { %v1516_v11 = vsel %vm1450_vm1, %v1494_v8, 0.0  ;;  %v2858_v49 = vadd.f32 %v1435_v56, %v1347_v5  ;;  %v2013_v14 = vadd.f32 %v2012_v9, %v2011_v3 }
 0x16a   :  { %v1517_v17 = vadd.f32 %v1516_v11, %v1515_v46  ;;  %v2014_v20 = vpop.f32.mrf.mxu1  ;;  %v1443_v21 = vpop.f32.mrf.mxu0 }
 0x16b   :  { %v1470_v13 = vsel %vm1450_vm1, %v2858_v49, 0.0  ;;  %v1495_v26 = vmul.f32 %v2858_v49, %v2858_v49  ;;  %v1350_v22 = vadd.f32 %v2013_v14, %v2762_v35 }
 0x16c   :  { %v1471_v19 = vadd.f32 %v1470_v13, %v1469_v16  ;;  %v2015_v54 = vpop.f32.mrf.mxu1  ;;  %v2077_v15 = vpop.f32.mrf.mxu0 }
 0x16d   :  { %v1518_v44 = vsel %vm1450_vm1, %v1495_v26, 0.0  ;;  %v2867_v27 = vadd.f32 %v1438_v61, %v1350_v22  ;;  %v2016_v28 = vadd.f32 %v2015_v54, %v2014_v20 }
 0x16e   :  { %v1519_v32 = vadd.f32 %v1518_v44, %v1517_v17  ;;  %v2017_v33 = vpop.f32.mrf.mxu1  ;;  %v1446_v24 = vpop.f32.mrf.mxu0 }
 0x16f   :  { %v1472_v39 = vsel %vm1450_vm1, %v2867_v27, 0.0  ;;  %v1496_v35 = vmul.f32 %v2867_v27, %v2867_v27  ;;  %v1355_v25 = vadd.f32 %v2016_v28, %v2773_v47 }
 0x170   :  { %v1473_v43 = vadd.f32 %v1472_v39, %v1471_v19  ;;  %v2018_v48 = vpop.f32.mrf.mxu1  ;;  %v2078_v62 = vpop.f32.mrf.mxu0 }
 0x171   :  { %v1520_v23 = vsel %vm1450_vm1, %v1496_v35, 0.0  ;;  %v2877_v50 = vadd.f32 %v1443_v21, %v1355_v25  ;;  %v2019_v52 = vadd.f32 %v2018_v48, %v2017_v33 }
 0x172   :  { %v1521_v36 = vadd.f32 %v1520_v23, %v1519_v32 }
 0x173   :  { %v1474_v41 = vsel %vm1450_vm1, %v2877_v50, 0.0  ;;  %v1497_v30 = vmul.f32 %v2877_v50, %v2877_v50  ;;  %v1358_v55 = vadd.f32 %v2019_v52, %v1269_v31 }
 0x174   :  { %v1475_v56 = vadd.f32 %v1474_v41, %v1473_v43 }
 0x175   :  { %v1522_v47 = vsel %vm1450_vm1, %v1497_v30, 0.0  ;;  %v1447_v57 = vadd.f32 %v1446_v24, %v1358_v55 }
 0x176   :  { %v1523_v37 = vadd.f32 %v1522_v47, %v1521_v36 }
 0x177   :  { %v1476_v59 = vsel %vm1450_vm1, %v1447_v57, 0.0  ;;  %v1498_v7 = vmul.f32 %v1447_v57, %v1447_v57 }
 0x178   :  { %v1477_v42 = vadd.f32 %v1476_v59, %v1475_v56 }
 0x179   :  { %v1524_v34 = vsel %vm1450_vm1, %v1498_v7, 0.0 }
 0x17a   :  { %v1478_v60 = vrot.slane %v1477_v42, 4  ;;  %v1525_v0 = vadd.f32 %v1524_v34, %v1523_v37 }
 0x17c   :  { %v1479_v46 = vadd.f32 %v1478_v60, %v1477_v42  ;;  %v1526_v3 = vrot.slane %v1525_v0, 4 }
 0x17e   :  { %v1480_v61 = vrot.slane %v1479_v46, 2  ;;  %v1527_v4 = vadd.f32 %v1526_v3, %v1525_v0 }
 0x180   :  { %v1481_v8 = vadd.f32 %v1480_v61, %v1479_v46  ;;  %v1528_v5 = vrot.slane %v1527_v4, 2 }
 0x182   :  { %v1482_v16 = vrot.slane %v1481_v8, 1  ;;  %v1529_v9 = vadd.f32 %v1528_v5, %v1527_v4  ;;  %v23_v5 = vld [vmem:[%s3007_s4] sm:$0xff] }
 0x184   :  { %v1483_v45 = vadd.f32 %v1482_v16, %v1481_v8  ;;  %v1530_v10 = vrot.slane %v1529_v9, 1  ;;  %v24_v16 = vld [vmem:[%s3007_s4 + $0x8] sm:$0xff] }
 0x186   :  { %v1484_v11 = vmul.f32 0.010204081, %v1483_v45  ;;  %v1531_v14 = vadd.f32 %v1530_v10, %v1529_v9  ;;  %v25_v9 = vld [vmem:[%s3007_s4 + $0x10] sm:$0xff] }
 0x188   :  { %v1532_v17 = vmul.f32 0.010204081, %v1531_v14  ;;  %v1533_v20 = vmul.f32 %v1484_v11, %v1484_v11  ;;  %v1535_v21 = vsub.f32 %v2776_v58, %v1484_v11  ;;  %v1536_v13 = vsub.f32 %v2781_v2, %v1484_v11 }
 0x189   :  { %v1537_v26 = vsub.f32 %v2792_v6, %v1484_v11  ;;  %v1538_v22 = vsub.f32 %v2800_v18, %v1484_v11  ;;  %v1539_v19 = vsub.f32 %v2808_v53, %v1484_v11  ;;  %v1540_v54 = vsub.f32 %v2816_v1, %v1484_v11  ;;  %v1786_v1 = vld [vmem:[%s3005_s2] ss:$0 sm:$0xff] }
 0x18a   :  { %v1534_v15 = vsub.f32 %v1532_v17, %v1533_v20  ;;  %v1541_v40 = vsub.f32 %v2824_v12, %v1484_v11  ;;  %v1542_v44 = vsub.f32 %v2832_v29, %v1484_v11  ;;  %v1543_v28 = vsub.f32 %v2840_v51, %v1484_v11  ;;  %v26_v17 = vld [vmem:[%s3007_s4 + $0x18] sm:$0xff]  ;;  %v27_v20 = vld [vmem:[%s3007_s4 + $0x20] sm:$0xff] }
 0x18b   :  { %v1544_v32 = vsub.f32 %v2848_v63, %v1484_v11  ;;  %v1545_v58 = vsub.f32 %v2858_v49, %v1484_v11  ;;  %v1546_v2 = vsub.f32 %v2867_v27, %v1484_v11  ;;  %v1547_v6 = vsub.f32 %v2877_v50, %v1484_v11  ;;  %v1787_v50 = vld [vmem:[%s3006_s3] ss:$0 sm:$0xff] }
 0x18c   :  { %v1548_v18 = vsub.f32 %v1447_v57, %v1484_v11  ;;  %v1549_v33 = vadd.f32 1e-05, %v1534_v15  ;;  %v30_v15 = vld [vmem:[%s3007_s4 + $0x38] sm:$0xff] }
 0x18e   :  { %2260 = vrsqrt.f32 %v1549_v33 }
 0x19b   :  { %v2261_v53 = vpop.eup %2260 }
 0x19c   :  { %v1551_v12 = vmul.f32 %v2261_v53, %v1535_v21  ;;  %v1552_v29 = vmul.f32 %v2261_v53, %v1536_v13  ;;  %v1553_v24 = vmul.f32 %v2261_v53, %v1537_v26  ;;  %v1554_v51 = vmul.f32 %v2261_v53, %v1538_v22  ;;  %v28_v21 = vld [vmem:[%s3007_s4 + $0x28] sm:$0xff] }
 0x19d   :  { %v1555_v38 = vmul.f32 %v2261_v53, %v1539_v19  ;;  %v1556_v63 = vmul.f32 %v2261_v53, %v1540_v54  ;;  %v1557_v39 = vmul.f32 %v2261_v53, %v1541_v40  ;;  %v1558_v49 = vmul.f32 %v2261_v53, %v1542_v44  ;;  %v29_v54 = vld [vmem:[%s3007_s4 + $0x30] sm:$0xff] }
 0x19e   :  { %v1559_v35 = vmul.f32 %v2261_v53, %v1543_v28  ;;  %v1560_v27 = vmul.f32 %v2261_v53, %v1544_v32  ;;  %v1561_v25 = vmul.f32 %v2261_v53, %v1545_v58  ;;  %v1562_v43 = vmul.f32 %v2261_v53, %v1546_v2  ;;  %v31_v58 = vld [vmem:[%s3007_s4 + $0x40] sm:$0xff]  ;;  %v32_v2 = vld [vmem:[%s3007_s4 + $0x48] sm:$0xff] }
 0x19f   :  { %v1563_v48 = vmul.f32 %v2261_v53, %v1547_v6  ;;  %v1564_v62 = vmul.f32 %v2261_v53, %v1548_v18  ;;  %v1571_v31 = vmul.f32 %v1786_v1, %v1551_v12  ;;  %v1572_v23 = vmul.f32 %v1786_v1, %v1552_v29  ;;  %v34_v12 = vld [vmem:[%s3007_s4 + $0x58] sm:$0xff] }
 0x1a0   :  { %v1573_v52 = vmul.f32 %v1786_v1, %v1553_v24  ;;  %v1574_v36 = vmul.f32 %v1786_v1, %v1554_v51  ;;  %v1575_v41 = vmul.f32 %v1786_v1, %v1555_v38  ;;  %v1576_v30 = vmul.f32 %v1786_v1, %v1556_v63  ;;  %v35_v63 = vld [vmem:[%s3007_s4 + $0x60] sm:$0xff] }
 0x1a1   :  { %v1577_v55 = vmul.f32 %v1786_v1, %v1557_v39  ;;  %v1578_v56 = vmul.f32 %v1786_v1, %v1558_v49  ;;  %v1579_v47 = vmul.f32 %v1786_v1, %v1559_v35  ;;  %v1580_v57 = vmul.f32 %v1786_v1, %v1560_v27  ;;  %v36_v39 = vld [vmem:[%s3007_s4 + $0x68] sm:$0xff] }
 0x1a2   :  { %v1581_v37 = vmul.f32 %v1786_v1, %v1561_v25  ;;  %v1582_v59 = vmul.f32 %v1786_v1, %v1562_v43  ;;  %v1583_v7 = vmul.f32 %v1786_v1, %v1563_v48  ;;  %v1584_v42 = vmul.f32 %v1786_v1, %v1564_v62  ;;  %v33_v1 = vld [vmem:[%s3007_s4 + $0x50] sm:$0xff] }
 0x1a3   :  { %v1591_v34 = vadd.f32 %v1787_v50, %v1571_v31  ;;  %v1592_v60 = vadd.f32 %v1787_v50, %v1572_v23  ;;  %v1593_v0 = vadd.f32 %v1787_v50, %v1573_v52  ;;  %v1594_v46 = vadd.f32 %v1787_v50, %v1574_v36 }
 0x1a4   :  { %v1595_v3 = vadd.f32 %v1787_v50, %v1575_v41  ;;  %v1596_v61 = vadd.f32 %v1787_v50, %v1576_v30  ;;  %v1597_v4 = vadd.f32 %v1787_v50, %v1577_v55  ;;  %v1598_v8 = vadd.f32 %v1787_v50, %v1578_v56 }
 0x1a5   :  { %v1599_v45 = vadd.f32 %v1787_v50, %v1579_v47  ;;  %v1600_v10 = vadd.f32 %v1787_v50, %v1580_v57  ;;  %v1601_v11 = vadd.f32 %v1787_v50, %v1581_v37  ;;  %v1602_v14 = vadd.f32 %v1787_v50, %v1582_v59 }
 0x1a6   :  { %v1603_v13 = vadd.f32 %v1787_v50, %v1583_v7  ;;  %v1604_v26 = vadd.f32 %v1787_v50, %v1584_v42  ;;  %v1605_v22 = vmax.f32 %v1591_v34, 0.0  ;;  %v1606_v19 = vmax.f32 %v1592_v60, 0.0 }
 0x1a7   :  { %v1607_v40 = vmax.f32 %v1593_v0, 0.0  ;;  %v1608_v44 = vmax.f32 %v1594_v46, 0.0  ;;  %v1609_v28 = vmax.f32 %v1595_v3, 0.0  ;;  %v1610_v32 = vmax.f32 %v1596_v61, 0.0 }
 0x1a8   :  { %v1611_v6 = vmax.f32 %v1597_v4, 0.0  ;;  %v1612_v18 = vmax.f32 %v1598_v8, 0.0  ;;  %v1613_v33 = vmax.f32 %v1599_v45, 0.0  ;;  %v1614_v53 = vmax.f32 %v1600_v10, 0.0 }
 0x1a9   :  { %v1615_v29 = vmax.f32 %v1601_v11, 0.0  ;;  %v1616_v24 = vmax.f32 %v1602_v14, 0.0  ;;  %v1617_v51 = vmax.f32 %v1603_v13, 0.0  ;;  %v1618_v38 = vmax.f32 %v1604_v26, 0.0 }
 0x1aa   :  { %v1619_v49 = vadd.f32 %v1605_v22, %v23_v5  ;;  %v1620_v35 = vadd.f32 %v1606_v19, %v24_v16  ;;  %v1621_v27 = vadd.f32 %v1607_v40, %v25_v9  ;;  %v1622_v25 = vadd.f32 %v1608_v44, %v26_v17 }
 0x1ab   :  { %v1623_v43 = vadd.f32 %v1609_v28, %v27_v20  ;;  %v1624_v48 = vadd.f32 %v1610_v32, %v28_v21  ;;  %v1625_v62 = vadd.f32 %v1611_v6, %v29_v54  ;;  %v1626_v31 = vadd.f32 %v1612_v18, %v30_v15 }
 0x1ac   :  { %v1627_v23 = vadd.f32 %v1613_v33, %v31_v58  ;;  %v1628_v50 = vadd.f32 %v1614_v53, %v32_v2  ;;  %v1629_v52 = vadd.f32 %v1615_v29, %v33_v1  ;;  %v1630_v36 = vadd.f32 %v1616_v24, %v34_v12  ;;  %1633 = vst.msk [vmem:[%s3008_s5] sm:$0xff] %vm1450_vm1, %v1619_v49 }
 0x1ad   :  { %1634 = vst.msk [vmem:[%s3008_s5 + $0x8] sm:$0xff] %vm1450_vm1, %v1620_v35  ;;  %1635 = vst.msk [vmem:[%s3008_s5 + $0x10] sm:$0xff] %vm1450_vm1, %v1621_v27  ;;  %v1631_v41 = vadd.f32 %v1617_v51, %v35_v63  ;;  %v1632_v30 = vadd.f32 %v1618_v38, %v36_v39 }
 0x1ae   :  { %1636 = vst.msk [vmem:[%s3008_s5 + $0x18] sm:$0xff] %vm1450_vm1, %v1622_v25  ;;  %1637 = vst.msk [vmem:[%s3008_s5 + $0x20] sm:$0xff] %vm1450_vm1, %v1623_v43 }
 0x1af   :  { %1638 = vst.msk [vmem:[%s3008_s5 + $0x28] sm:$0xff] %vm1450_vm1, %v1624_v48  ;;  %1639 = vst.msk [vmem:[%s3008_s5 + $0x30] sm:$0xff] %vm1450_vm1, %v1625_v62 }
 0x1b0   :  { %1640 = vst.msk [vmem:[%s3008_s5 + $0x38] sm:$0xff] %vm1450_vm1, %v1626_v31  ;;  %1641 = vst.msk [vmem:[%s3008_s5 + $0x40] sm:$0xff] %vm1450_vm1, %v1627_v23 }
 0x1b1   :  { %1642 = vst.msk [vmem:[%s3008_s5 + $0x48] sm:$0xff] %vm1450_vm1, %v1628_v50  ;;  %1643 = vst.msk [vmem:[%s3008_s5 + $0x50] sm:$0xff] %vm1450_vm1, %v1629_v52 }
 0x1b2   :  { %1644 = vst.msk [vmem:[%s3008_s5 + $0x58] sm:$0xff] %vm1450_vm1, %v1630_v36  ;;  %1645 = vst.msk [vmem:[%s3008_s5 + $0x60] sm:$0xff] %vm1450_vm1, %v1631_v41 }
 0x1b3   :  { %1646 = vst.msk [vmem:[%s3008_s5 + $0x68] sm:$0xff] %vm1450_vm1, %v1632_v30 }

// kernel: generator_forward.14
= control target key start
LH: loop header
LB: loop body
LE: loop exit
PB: predicated region body
PF: predicated region fallthrough
CT: control target
= control target key end

     0   :  { %v3525_v0 = vmov 0   ;;  %v5855_v24 = vmov 0.0   ;;  %vm3527_vm0 = vmmov 0   ;;  %vm1268_vm1 = vcmask 523264   ;;  %s5849_s1 = inlined_call_operand.vmem [shape: bf16[576,32], index: 1, kind: input, shape index: {}]   ;;  %s5850_s0 = inlined_call_operand.vmem [shape: bf16[464,576], index: 0, kind: input, shape index: {}]   ;;  %s5851_s2 = inlined_call_operand.vmem [shape: f32[1,32], index: 2, kind: input, shape index: {}]   ;;  %s5852_s3 = inlined_call_operand.vmem [shape: f32[1,32], index: 3, kind: input, shape index: {}]   ;;  %s5853_s4 = inlined_call_operand.vmem [shape: f32[464,32], index: 4, kind: input, shape index: {}]   ;;  %s5854_s5 = inlined_call_operand.vmem [shape: f32[464,32], index: 5, kind: output, shape index: {}]  }
   0x1   :  { %1356 = vmatprep.subr.bf16.mxu0 %v3525_v0  ;;  %3249 = vmatprep.subr.bf16.mxu1 %v3525_v0  ;;  %v3284_v1 = vld [vmem:[%s5849_s1 + $0x38] sm:$0xff]   ;;  %v3285_v2 = vld [vmem:[%s5849_s1 + $0x30] sm:$0xff]   ;;  %v3286_v3 = vld [vmem:[%s5849_s1 + $0x28] sm:$0xff]   ;;  %vm2151_vm2 = vcmask 261120  }
   0x2   :  { %1357 = vmatpush1.bf16.msra.mxu0 %v3284_v1  ;;  %3265 = vmatpush1.bf16.msra.mxu1 %v3284_v1  ;;  %v3287_v4 = vld [vmem:[%s5849_s1 + $0x20] sm:$0xff]   ;;  %v3288_v5 = vld [vmem:[%s5849_s1 + $0x18] sm:$0xff]   ;;  %v3289_v7 = vld [vmem:[%s5849_s1 + $0x10] sm:$0xff]  }
   0x3   :  { %1358 = vmatprep.subr.bf16.mxu0 %v3525_v0  ;;  %3250 = vmatprep.subr.bf16.mxu1 %v3525_v0  ;;  %v3302_v6 = vld [vmem:[%s5850_s0 + $0x4] ss:$20 sps:$4 sm:$0xff]   ;;  %v3305_v8 = vld [vmem:[%s5850_s0 + $0x25c] ss:$20 sps:$4 sm:$0xff]   ;;  %v3290_v9 = vld [vmem:[%s5849_s1 + $0x8] sm:$0xff]  }
   0x4   :  { %1388 = vmatprep.mubr.bf16.mxu0 %v3302_v6  ;;  %1508 = vmatprep.mubr.bf16.mxu1 %v3305_v8  ;;  %v3291_v10 = vld [vmem:[%s5849_s1] sm:$0xff]   ;;  %v3292_v11 = vld [vmem:[%s5849_s1 + $0x78] sm:$0xff]   ;;  %v3293_v12 = vld [vmem:[%s5849_s1 + $0x70] sm:$0xff]  }
   0x5   :  { %v3294_v13 = vld [vmem:[%s5849_s1 + $0x68] sm:$0xff]   ;;  %v3295_v14 = vld [vmem:[%s5849_s1 + $0x60] sm:$0xff]   ;;  %v3296_v15 = vld [vmem:[%s5849_s1 + $0x58] sm:$0xff]  }
   0x6   :  { %1359 = vmatpush1.bf16.msra.mxu0 %v3285_v2  ;;  %3266 = vmatpush1.bf16.msra.mxu1 %v3285_v2  ;;  %v3297_v16 = vld [vmem:[%s5849_s1 + $0x50] sm:$0xff]   ;;  %v3298_v17 = vld [vmem:[%s5849_s1 + $0x48] sm:$0xff]   ;;  %v3299_v18 = vld [vmem:[%s5849_s1 + $0x40] sm:$0xff]  }
   0x7   :  { %1360 = vmatprep.subr.bf16.mxu0 %v3525_v0  ;;  %3251 = vmatprep.subr.bf16.mxu1 %v3525_v0  ;;  %v3300_v19 = vld [vmem:[%s5850_s0] ss:$20 sps:$4 sm:$0xff]   ;;  %v3303_v20 = vld [vmem:[%s5850_s0 + $0x258] ss:$20 sps:$4 sm:$0xff]   ;;  %v3312_v27 = vld [vmem:[%s5850_s0 + $0x28] ss:$20 sps:$4 sm:$0xff]  }
   0x8   :  { %v3306_v21 = vld [vmem:[%s5849_s1 + $0x118] sm:$0xff]   ;;  %v3307_v22 = vld [vmem:[%s5850_s0 + $0x2c] ss:$20 sps:$4 sm:$0xff]   ;;  %v3333_v26 = vld [vmem:[%s5849_s1 + $0x110] sm:$0xff]  }
   0x9   :  { %v3309_v23 = vld [vmem:[%s5850_s0 + $0x284] ss:$20 sps:$4 sm:$0xff]   ;;  %v3314_v28 = vld [vmem:[%s5849_s1 + $0xb0] sm:$0xff]   ;;  %v3317_v31 = vld [vmem:[%s5850_s0 + $0x2ac] ss:$20 sps:$4 sm:$0xff]  }
   0xa   :  { %1361 = vmatpush1.bf16.msra.mxu0 %v3286_v3  ;;  %3267 = vmatpush1.bf16.msra.mxu1 %v3286_v3  ;;  %v3311_v25 = vld [vmem:[%s5849_s1 + $0xb8] sm:$0xff]   ;;  %v3313_v29 = vld [vmem:[%s5850_s0 + $0x280] ss:$20 sps:$4 sm:$0xff]   ;;  %v3321_v32 = vld [vmem:[%s5849_s1 + $0xa8] sm:$0xff]  }
   0xb   :  { %1362 = vmatprep.subr.bf16.mxu0 %v3525_v0  ;;  %3252 = vmatprep.subr.bf16.mxu1 %v3525_v0  ;;  %v3315_v30 = vld [vmem:[%s5850_s0 + $0x54] ss:$20 sps:$4 sm:$0xff]   ;;  %v3319_v34 = vld [vmem:[%s5850_s0 + $0x50] ss:$20 sps:$4 sm:$0xff]   ;;  %v3336_v40 = vld [vmem:[%s5849_s1 + $0x98] sm:$0xff]  }
   0xc   :  { %v3358_v33 = vld [vmem:[%s5849_s1 + $0x108] sm:$0xff]   ;;  %v3328_v35 = vld [vmem:[%s5849_s1 + $0xa0] sm:$0xff]   ;;  %v3322_v38 = vld [vmem:[%s5850_s0 + $0x7c] ss:$20 sps:$4 sm:$0xff]  }
   0xd   :  { %v3388_v36 = vld [vmem:[%s5849_s1 + $0x100] sm:$0xff]   ;;  %v3320_v37 = vld [vmem:[%s5850_s0 + $0x2a8] ss:$20 sps:$4 sm:$0xff]   ;;  %v3343_v41 = vld [vmem:[%s5849_s1 + $0x90] sm:$0xff]  }
   0xe   :  { %1363 = vmatpush1.bf16.msra.mxu0 %v3287_v4  ;;  %3268 = vmatpush1.bf16.msra.mxu1 %v3287_v4  ;;  %v3324_v39 = vld [vmem:[%s5850_s0 + $0x2d4] ss:$20 sps:$4 sm:$0xff]   ;;  %v3326_v42 = vld [vmem:[%s5850_s0 + $0x78] ss:$20 sps:$4 sm:$0xff]   ;;  %v3327_v43 = vld [vmem:[%s5850_s0 + $0x2d0] ss:$20 sps:$4 sm:$0xff]  }
   0xf   :  { %1364 = vmatprep.subr.bf16.mxu0 %v3525_v0  ;;  %3253 = vmatprep.subr.bf16.mxu1 %v3525_v0  ;;  %v3329_v44 = vld [vmem:[%s5850_s0 + $0xa4] ss:$20 sps:$4 sm:$0xff]   ;;  %v3331_v45 = vld [vmem:[%s5850_s0 + $0x2fc] ss:$20 sps:$4 sm:$0xff]   ;;  %v3350_v46 = vld [vmem:[%s5849_s1 + $0x88] sm:$0xff]  }
  0x10   :  { %v3357_v47 = vld [vmem:[%s5849_s1 + $0x80] sm:$0xff]   ;;  %v3335_v49 = vld [vmem:[%s5850_s0 + $0x2f8] ss:$20 sps:$4 sm:$0xff]   ;;  %v3366_v53 = vld [vmem:[%s5849_s1 + $0xf0] sm:$0xff]  }
  0x11   :  { %v3334_v48 = vld [vmem:[%s5850_s0 + $0xa0] ss:$20 sps:$4 sm:$0xff]   ;;  %v3339_v51 = vld [vmem:[%s5850_s0 + $0x324] ss:$20 sps:$4 sm:$0xff]   ;;  %v3341_v54 = vld [vmem:[%s5850_s0 + $0xc8] ss:$20 sps:$4 sm:$0xff]  }
  0x12   :  { %1365 = vmatpush1.bf16.msra.mxu0 %v3288_v5  ;;  %3269 = vmatpush1.bf16.msra.mxu1 %v3288_v5  ;;  %v3337_v50 = vld [vmem:[%s5850_s0 + $0xcc] ss:$20 sps:$4 sm:$0xff]   ;;  %v3363_v52 = vld [vmem:[%s5849_s1 + $0xf8] sm:$0xff]   ;;  %v3344_v56 = vld [vmem:[%s5850_s0 + $0xf4] ss:$20 sps:$4 sm:$0xff]  }
  0x13   :  { %1366 = vmatprep.subr.bf16.mxu0 %v3525_v0  ;;  %3254 = vmatprep.subr.bf16.mxu1 %v3525_v0  ;;  %v3342_v55 = vld [vmem:[%s5850_s0 + $0x320] ss:$20 sps:$4 sm:$0xff]   ;;  %v3373_v58 = vld [vmem:[%s5849_s1 + $0xe8] sm:$0xff]   ;;  %v3348_v60 = vld [vmem:[%s5850_s0 + $0xf0] ss:$20 sps:$4 sm:$0xff]  }
  0x14   :  { %v3346_v57 = vld [vmem:[%s5850_s0 + $0x34c] ss:$20 sps:$4 sm:$0xff]   ;;  %v3349_v61 = vld [vmem:[%s5850_s0 + $0x348] ss:$20 sps:$4 sm:$0xff]   ;;  %v3395_v2 = vld [vmem:[%s5849_s1 + $0xd0] sm:$0xff]  }
  0x15   :  { %v3380_v59 = vld [vmem:[%s5849_s1 + $0xe0] sm:$0xff]   ;;  %v3351_v62 = vld [vmem:[%s5850_s0 + $0x11c] ss:$20 sps:$4 sm:$0xff]   ;;  %v3353_v63 = vld [vmem:[%s5850_s0 + $0x374] ss:$20 sps:$4 sm:$0xff]  }
  0x16   :  { %1367 = vmatpush1.bf16.msra.mxu0 %v3289_v7  ;;  %3270 = vmatpush1.bf16.msra.mxu1 %v3289_v7  ;;  %v3387_v1 = vld [vmem:[%s5849_s1 + $0xd8] sm:$0xff]   ;;  %v3356_v4 = vld [vmem:[%s5850_s0 + $0x370] ss:$20 sps:$4 sm:$0xff]   ;;  %v3402_v7 = vld [vmem:[%s5849_s1 + $0xc8] sm:$0xff]  }
  0x17   :  { %1368 = vmatprep.subr.bf16.mxu0 %v3525_v0  ;;  %3255 = vmatprep.subr.bf16.mxu1 %v3525_v0  ;;  %v3355_v3 = vld [vmem:[%s5850_s0 + $0x118] ss:$20 sps:$4 sm:$0xff]   ;;  %v3361_v6 = vld [vmem:[%s5850_s0 + $0x39c] ss:$20 sps:$4 sm:$0xff]   ;;  %v3403_v8 = vld [vmem:[%s5849_s1 + $0xc0] sm:$0xff]  }
  0x18   :  { %v3359_v5 = vld [vmem:[%s5850_s0 + $0x144] ss:$20 sps:$4 sm:$0xff]  }
  0x1a   :  { %1369 = vmatpush1.bf16.msra.mxu0 %v3290_v9  ;;  %3271 = vmatpush1.bf16.msra.mxu1 %v3290_v9  ;;  %v3364_v9 = vld [vmem:[%s5850_s0 + $0x140] ss:$20 sps:$4 sm:$0xff]  }
  0x1b   :  { %1370 = vmatprep.subr.bf16.mxu0 %v3525_v0  ;;  %3256 = vmatprep.subr.bf16.mxu1 %v3525_v0 }
  0x1e   :  { %1371 = vmatpush1.bf16.msra.mxu0 %v3291_v10  ;;  %3272 = vmatpush1.bf16.msra.mxu1 %v3291_v10  ;;  %v3365_v10 = vld [vmem:[%s5850_s0 + $0x398] ss:$20 sps:$4 sm:$0xff]  }
  0x1f   :  { %1372 = vmatprep.subr.bf16.mxu0 %v3525_v0  ;;  %3257 = vmatprep.subr.bf16.mxu1 %v3525_v0 }
  0x22   :  { %1373 = vmatpush2.bf16.msra.mxu0 %v3292_v11  ;;  %3273 = vmatpush2.bf16.msra.mxu1 %v3292_v11  ;;  %v3367_v11 = vld [vmem:[%s5850_s0 + $0x16c] ss:$20 sps:$4 sm:$0xff]  }
  0x23   :  { %1374 = vmatprep.subr.bf16.mxu0 %v3525_v0  ;;  %3258 = vmatprep.subr.bf16.mxu1 %v3525_v0 }
  0x26   :  { %1375 = vmatpush2.bf16.msra.mxu0 %v3293_v12  ;;  %3274 = vmatpush2.bf16.msra.mxu1 %v3293_v12  ;;  %v3369_v12 = vld [vmem:[%s5850_s0 + $0x3c4] ss:$20 sps:$4 sm:$0xff]  }
  0x27   :  { %1376 = vmatprep.subr.bf16.mxu0 %v3525_v0  ;;  %3259 = vmatprep.subr.bf16.mxu1 %v3525_v0 }
  0x2a   :  { %1377 = vmatpush2.bf16.msra.mxu0 %v3294_v13  ;;  %3275 = vmatpush2.bf16.msra.mxu1 %v3294_v13  ;;  %v3372_v13 = vld [vmem:[%s5850_s0 + $0x3c0] ss:$20 sps:$4 sm:$0xff]  }
  0x2b   :  { %1378 = vmatprep.subr.bf16.mxu0 %v3525_v0  ;;  %3260 = vmatprep.subr.bf16.mxu1 %v3525_v0 }
  0x2e   :  { %1379 = vmatpush2.bf16.msra.mxu0 %v3295_v14  ;;  %3276 = vmatpush2.bf16.msra.mxu1 %v3295_v14  ;;  %v3374_v14 = vld [vmem:[%s5850_s0 + $0x194] ss:$20 sps:$4 sm:$0xff]  }
  0x2f   :  { %1380 = vmatprep.subr.bf16.mxu0 %v3525_v0  ;;  %3261 = vmatprep.subr.bf16.mxu1 %v3525_v0 }
  0x32   :  { %1381 = vmatpush2.bf16.msra.mxu0 %v3296_v15  ;;  %3277 = vmatpush2.bf16.msra.mxu1 %v3296_v15  ;;  %v3376_v15 = vld [vmem:[%s5850_s0 + $0x3ec] ss:$20 sps:$4 sm:$0xff]  }
  0x33   :  { %1382 = vmatprep.subr.bf16.mxu0 %v3525_v0  ;;  %3262 = vmatprep.subr.bf16.mxu1 %v3525_v0 }
  0x36   :  { %1383 = vmatpush2.bf16.msra.mxu0 %v3297_v16  ;;  %3278 = vmatpush2.bf16.msra.mxu1 %v3297_v16  ;;  %v3378_v16 = vld [vmem:[%s5850_s0 + $0x190] ss:$20 sps:$4 sm:$0xff]  }
  0x37   :  { %1384 = vmatprep.subr.bf16.mxu0 %v3525_v0  ;;  %3263 = vmatprep.subr.bf16.mxu1 %v3525_v0 }
  0x3a   :  { %1385 = vmatpush2.bf16.msra.mxu0 %v3298_v17  ;;  %3279 = vmatpush2.bf16.msra.mxu1 %v3298_v17  ;;  %v3379_v17 = vld [vmem:[%s5850_s0 + $0x3e8] ss:$20 sps:$4 sm:$0xff]  }
  0x3b   :  { %1386 = vmatprep.subr.bf16.mxu0 %v3525_v0  ;;  %3264 = vmatprep.subr.bf16.mxu1 %v3525_v0 }
  0x3e   :  { %1387 = vmatpush2.bf16.msra.mxu0 %v3299_v18  ;;  %3280 = vmatpush2.bf16.msra.mxu1 %v3299_v18  ;;  %v3381_v18 = vld [vmem:[%s5850_s0 + $0x1bc] ss:$20 sps:$4 sm:$0xff]  }
  0x3f   :  { %3125 = vmatprep.subr.bf16.mxu0 %v5855_v24  ;;  %1621 = vmatprep.subr.bf16.mxu1 %v3525_v0 }
  0x41   :  { %1389 = vmatmul.mubr.bf16.vlgmr.msra.gmra.mxu0 %v3300_v19  ;;  %1509 = vmatmul.mubr.bf16.vlgmr.msra.gmra.mxu1 %v3303_v20  ;;  %v3383_v19 = vld [vmem:[%s5850_s0 + $0x414] ss:$20 sps:$4 sm:$0xff]   ;;  %v3385_v20 = vld [vmem:[%s5850_s0 + $0x1b8] ss:$20 sps:$4 sm:$0xff]  }
  0x42   :  { %3126 = vmatpush3.bf16.msra.mxu0 %v3306_v21  ;;  %1396 = vmatprep.mubr.bf16.mxu0 %v3307_v22  ;;  %v3386_v21 = vld [vmem:[%s5850_s0 + $0x410] ss:$20 sps:$4 sm:$0xff]  }
  0x43   :  { %1516 = vmatprep.mubr.bf16.mxu1 %v3309_v23  ;;  %1622 = vmatpush1.bf16.msra.mxu1 %v3311_v25  ;;  %v3389_v22 = vld [vmem:[%s5850_s0 + $0x1e4] ss:$20 sps:$4 sm:$0xff]   ;;  %v3391_v23 = vld [vmem:[%s5850_s0 + $0x43c] ss:$20 sps:$4 sm:$0xff]   ;;  %v3393_v25 = vld [vmem:[%s5850_s0 + $0x1e0] ss:$20 sps:$4 sm:$0xff]  }
  0x44   :  { %1623 = vmatprep.subr.bf16.mxu1 %v3525_v0  ;;  %3127 = vmatprep.subr.bf16.mxu0 %v5855_v24 }
  0x46   :  { %3128 = vmatpush3.bf16.msra.mxu0 %v3333_v26  ;;  %v3394_v26 = vld [vmem:[%s5850_s0 + $0x438] ss:$20 sps:$4 sm:$0xff]  }
  0x47   :  { %1624 = vmatpush1.bf16.msra.mxu1 %v3314_v28  ;;  %3129 = vmatprep.subr.bf16.mxu0 %v5855_v24  ;;  %v3398_v28 = vld [vmem:[%s5850_s0 + $0x464] ss:$20 sps:$4 sm:$0xff]  }
  0x48   :  { %1625 = vmatprep.subr.bf16.mxu1 %v3525_v0 }
  0x49   :  { %1397 = vmatmul.mubr.bf16.gmra.mxu0 %v3312_v27  ;;  %1517 = vmatmul.mubr.bf16.gmra.mxu1 %v3313_v29  ;;  %v3396_v27 = vld [vmem:[%s5850_s0 + $0x20c] ss:$20 sps:$4 sm:$0xff]   ;;  %v3400_v29 = vld [vmem:[%s5850_s0 + $0x208] ss:$20 sps:$4 sm:$0xff]  }
  0x4a   :  { %1404 = vmatprep.mubr.bf16.mxu0 %v3315_v30  ;;  %1524 = vmatprep.mubr.bf16.mxu1 %v3317_v31  ;;  %v3401_v30 = vld [vmem:[%s5850_s0 + $0x460] ss:$20 sps:$4 sm:$0xff]  }
  0x4b   :  { %1626 = vmatpush1.bf16.msra.mxu1 %v3321_v32  ;;  %3130 = vmatpush3.bf16.msra.mxu0 %v3358_v33  ;;  %v3404_v31 = vld [vmem:[%s5850_s0 + $0x234] ss:$20 sps:$4 sm:$0xff]   ;;  %v3408_v32 = vld [vmem:[%s5850_s0 + $0xc] ss:$20 sps:$4 sm:$0xff]  }
  0x4c   :  { %1627 = vmatprep.subr.bf16.mxu1 %v3525_v0  ;;  %3131 = vmatprep.subr.bf16.mxu0 %v5855_v24  ;;  %v3406_v33 = vld [vmem:[%s5850_s0 + $0x8] ss:$20 sps:$4 sm:$0xff]  }
  0x4f   :  { %1628 = vmatpush1.bf16.msra.mxu1 %v3328_v35  ;;  %3132 = vmatpush3.bf16.msra.mxu0 %v3388_v36  ;;  %v3410_v35 = vld [vmem:[%s5850_s0 + $0x34] ss:$20 sps:$4 sm:$0xff]   ;;  %v3412_v36 = vld [vmem:[%s5850_s0 + $0x30] ss:$20 sps:$4 sm:$0xff]  }
  0x50   :  { %1629 = vmatprep.subr.bf16.mxu1 %v3525_v0 }
  0x51   :  { %1405 = vmatmul.mubr.bf16.gmra.mxu0 %v3319_v34  ;;  %1525 = vmatmul.mubr.bf16.gmra.mxu1 %v3320_v37  ;;  %v3409_v34 = vld [vmem:[%s5850_s0 + $0x230] ss:$20 sps:$4 sm:$0xff]  }
  0x52   :  { %1412 = vmatprep.mubr.bf16.mxu0 %v3322_v38  ;;  %1532 = vmatprep.mubr.bf16.mxu1 %v3324_v39  ;;  %v3413_v37 = vld [vmem:[%s5850_s0 + $0x10] ss:$20 sps:$4 sm:$0xff]   ;;  %v3416_v39 = vld [vmem:[%s5850_s0 + $0x58] ss:$20 sps:$4 sm:$0xff]  }
  0x53   :  { %1630 = vmatpush1.bf16.msra.mxu1 %v3336_v40  ;;  %v3414_v38 = vld [vmem:[%s5850_s0 + $0x5c] ss:$20 sps:$4 sm:$0xff]   ;;  %v3417_v40 = vld [vmem:[%s5850_s0 + $0x38] ss:$20 sps:$4 sm:$0xff]  }
  0x54   :  { %1631 = vmatprep.subr.bf16.mxu1 %v3525_v0 }
  0x57   :  { %1632 = vmatpush1.bf16.msra.mxu1 %v3343_v41  ;;  %v3418_v41 = vld [vmem:[%s5850_s0 + $0x84] ss:$20 sps:$4 sm:$0xff]  }
  0x58   :  { %1633 = vmatprep.subr.bf16.mxu1 %v3525_v0 }
  0x59   :  { %1413 = vmatmul.mubr.bf16.gmra.mxu0 %v3326_v42  ;;  %1533 = vmatmul.mubr.bf16.gmra.mxu1 %v3327_v43  ;;  %v3420_v42 = vld [vmem:[%s5850_s0 + $0x80] ss:$20 sps:$4 sm:$0xff]  }
  0x5a   :  { %1420 = vmatprep.mubr.bf16.mxu0 %v3329_v44  ;;  %1540 = vmatprep.mubr.bf16.mxu1 %v3331_v45  ;;  %v3421_v43 = vld [vmem:[%s5850_s0 + $0x60] ss:$20 sps:$4 sm:$0xff]   ;;  %v3424_v45 = vld [vmem:[%s5850_s0 + $0xa8] ss:$20 sps:$4 sm:$0xff]  }
  0x5b   :  { %1634 = vmatpush1.bf16.msra.mxu1 %v3350_v46  ;;  %v3422_v44 = vld [vmem:[%s5850_s0 + $0xac] ss:$20 sps:$4 sm:$0xff]   ;;  %v3425_v46 = vld [vmem:[%s5850_s0 + $0x88] ss:$20 sps:$4 sm:$0xff]  }
  0x5c   :  { %1635 = vmatprep.subr.bf16.mxu1 %v3525_v0 }
  0x5f   :  { %1636 = vmatpush1.bf16.msra.mxu1 %v3357_v47  ;;  %v3426_v47 = vld [vmem:[%s5850_s0 + $0xd4] ss:$20 sps:$4 sm:$0xff]  }
  0x60   :  { %1637 = vmatprep.subr.bf16.mxu1 %v3525_v0 }
  0x61   :  { %1421 = vmatmul.mubr.bf16.gmra.mxu0 %v3334_v48  ;;  %1541 = vmatmul.mubr.bf16.gmra.mxu1 %v3335_v49  ;;  %v3428_v48 = vld [vmem:[%s5850_s0 + $0xd0] ss:$20 sps:$4 sm:$0xff]  }
  0x62   :  { %1428 = vmatprep.mubr.bf16.mxu0 %v3337_v50  ;;  %1548 = vmatprep.mubr.bf16.mxu1 %v3339_v51  ;;  %v3429_v49 = vld [vmem:[%s5850_s0 + $0xb0] ss:$20 sps:$4 sm:$0xff]   ;;  %v3432_v51 = vld [vmem:[%s5850_s0 + $0xf8] ss:$20 sps:$4 sm:$0xff]  }
  0x63   :  { %1638 = vmatpush2.bf16.msra.mxu1 %v3363_v52  ;;  %v3430_v50 = vld [vmem:[%s5850_s0 + $0xfc] ss:$20 sps:$4 sm:$0xff]   ;;  %v3433_v52 = vld [vmem:[%s5850_s0 + $0xd8] ss:$20 sps:$4 sm:$0xff]  }
  0x64   :  { %1639 = vmatprep.subr.bf16.mxu1 %v3525_v0 }
  0x67   :  { %1640 = vmatpush2.bf16.msra.mxu1 %v3366_v53  ;;  %v3434_v53 = vld [vmem:[%s5850_s0 + $0x124] ss:$20 sps:$4 sm:$0xff]  }
  0x68   :  { %1641 = vmatprep.subr.bf16.mxu1 %v3525_v0 }
  0x69   :  { %1429 = vmatmul.mubr.bf16.gmra.mxu0 %v3341_v54  ;;  %1549 = vmatmul.mubr.bf16.gmra.mxu1 %v3342_v55  ;;  %v3436_v54 = vld [vmem:[%s5850_s0 + $0x120] ss:$20 sps:$4 sm:$0xff]  }
  0x6a   :  { %1436 = vmatprep.mubr.bf16.mxu0 %v3344_v56  ;;  %1556 = vmatprep.mubr.bf16.mxu1 %v3346_v57  ;;  %v3437_v55 = vld [vmem:[%s5850_s0 + $0x100] ss:$20 sps:$4 sm:$0xff]   ;;  %v3440_v57 = vld [vmem:[%s5850_s0 + $0x148] ss:$20 sps:$4 sm:$0xff]  }
  0x6b   :  { %1642 = vmatpush2.bf16.msra.mxu1 %v3373_v58  ;;  %v3438_v56 = vld [vmem:[%s5850_s0 + $0x14c] ss:$20 sps:$4 sm:$0xff]   ;;  %v3441_v58 = vld [vmem:[%s5850_s0 + $0x128] ss:$20 sps:$4 sm:$0xff]  }
  0x6c   :  { %1643 = vmatprep.subr.bf16.mxu1 %v3525_v0 }
  0x6f   :  { %1644 = vmatpush2.bf16.msra.mxu1 %v3380_v59  ;;  %v3442_v59 = vld [vmem:[%s5850_s0 + $0x174] ss:$20 sps:$4 sm:$0xff]  }
  0x70   :  { %1645 = vmatprep.subr.bf16.mxu1 %v3525_v0 }
  0x71   :  { %1437 = vmatmul.mubr.bf16.gmra.mxu0 %v3348_v60  ;;  %1557 = vmatmul.mubr.bf16.gmra.mxu1 %v3349_v61  ;;  %v3444_v60 = vld [vmem:[%s5850_s0 + $0x170] ss:$20 sps:$4 sm:$0xff]  }
  0x72   :  { %1444 = vmatprep.mubr.bf16.mxu0 %v3351_v62  ;;  %1564 = vmatprep.mubr.bf16.mxu1 %v3353_v63  ;;  %v3445_v61 = vld [vmem:[%s5850_s0 + $0x150] ss:$20 sps:$4 sm:$0xff]   ;;  %v3448_v63 = vld [vmem:[%s5850_s0 + $0x198] ss:$20 sps:$4 sm:$0xff]  }
  0x73   :  { %1646 = vmatpush2.bf16.msra.mxu1 %v3387_v1  ;;  %v3446_v62 = vld [vmem:[%s5850_s0 + $0x19c] ss:$20 sps:$4 sm:$0xff]   ;;  %v3449_v1 = vld [vmem:[%s5850_s0 + $0x178] ss:$20 sps:$4 sm:$0xff]  }
  0x74   :  { %1647 = vmatprep.subr.bf16.mxu1 %v3525_v0 }
  0x77   :  { %1648 = vmatpush2.bf16.msra.mxu1 %v3395_v2  ;;  %v3450_v2 = vld [vmem:[%s5850_s0 + $0x1c4] ss:$20 sps:$4 sm:$0xff]  }
  0x78   :  { %1649 = vmatprep.subr.bf16.mxu1 %v3525_v0 }
  0x79   :  { %1445 = vmatmul.mubr.bf16.gmra.mxu0 %v3355_v3  ;;  %1565 = vmatmul.mubr.bf16.gmra.mxu1 %v3356_v4 }
  0x7a   :  { %1452 = vmatprep.mubr.bf16.mxu0 %v3359_v5  ;;  %1572 = vmatprep.mubr.bf16.mxu1 %v3361_v6 }
  0x7b   :  { %1650 = vmatpush2.bf16.msra.mxu1 %v3402_v7 }
  0x7c   :  { %1651 = vmatprep.subr.bf16.mxu1 %v3525_v0  ;;  %v3371_v0 = vld [vmem:[%s5850_s0 + $0x168] ss:$20 sps:$4 sm:$0xff]  }
  0x7f   :  { %1652 = vmatpush2.bf16.msra.mxu1 %v3403_v8 }
  0x81   :  { %1453 = vmatmul.mubr.bf16.gmra.mxu0 %v3364_v9  ;;  %1573 = vmatmul.mubr.bf16.gmra.mxu1 %v3365_v10  ;;  %v3452_v9 = vld [vmem:[%s5850_s0 + $0x1c0] ss:$20 sps:$4 sm:$0xff]  }
  0x82   :  { %1460 = vmatprep.mubr.bf16.mxu0 %v3367_v11  ;;  %1580 = vmatprep.mubr.bf16.mxu1 %v3369_v12  ;;  %v3453_v10 = vld [vmem:[%s5850_s0 + $0x1a0] ss:$20 sps:$4 sm:$0xff]  }
  0x83   :  { %v3454_v11 = vld [vmem:[%s5850_s0 + $0x1ec] ss:$20 sps:$4 sm:$0xff]  }
  0x89   :  { %1461 = vmatmul.mubr.bf16.gmra.mxu0 %v3371_v0  ;;  %1581 = vmatmul.mubr.bf16.gmra.mxu1 %v3372_v13 }
  0x8a   :  { %1468 = vmatprep.mubr.bf16.mxu0 %v3374_v14  ;;  %1588 = vmatprep.mubr.bf16.mxu1 %v3376_v15 }
  0x91   :  { %1469 = vmatmul.mubr.bf16.gmra.mxu0 %v3378_v16  ;;  %1589 = vmatmul.mubr.bf16.gmra.mxu1 %v3379_v17 }
  0x92   :  { %1476 = vmatprep.mubr.bf16.mxu0 %v3381_v18  ;;  %1596 = vmatprep.mubr.bf16.mxu1 %v3383_v19  ;;  %v3456_v19 = vld [vmem:[%s5850_s0 + $0x1e8] ss:$20 sps:$4 sm:$0xff]  }
  0x99   :  { %1477 = vmatmul.mubr.bf16.gmra.mxu0 %v3385_v20  ;;  %1597 = vmatmul.mubr.bf16.gmra.mxu1 %v3386_v21  ;;  %v3457_v20 = vld [vmem:[%s5850_s0 + $0x1c8] ss:$20 sps:$4 sm:$0xff]  }
  0x9a   :  { %1484 = vmatprep.mubr.bf16.mxu0 %v3389_v22  ;;  %1604 = vmatprep.mubr.bf16.mxu1 %v3391_v23  ;;  %v3458_v21 = vld [vmem:[%s5850_s0 + $0x214] ss:$20 sps:$4 sm:$0xff]  }
  0xa1   :  { %1485 = vmatmul.mubr.bf16.gmra.mxu0 %v3393_v25  ;;  %1605 = vmatmul.mubr.bf16.gmra.mxu1 %v3394_v26 }
  0xa2   :  { %1492 = vmatprep.mubr.bf16.mxu0 %v3396_v27  ;;  %1612 = vmatprep.mubr.bf16.mxu1 %v3398_v28 }
  0xa9   :  { %1493 = vmatmul.mubr.bf16.gmra.mxu0 %v3400_v29  ;;  %1613 = vmatmul.mubr.bf16.gmra.mxu1 %v3401_v30 }
  0xaa   :  { %1500 = vmatprep.mubr.bf16.mxu0 %v3404_v31  ;;  %1653 = vmatprep.mubr.bf16.mxu1 %v3408_v32  ;;  %v3460_v31 = vld [vmem:[%s5850_s0 + $0x210] ss:$20 sps:$4 sm:$0xff]  }
  0xab   :  { %v3461_v32 = vld [vmem:[%s5850_s0 + $0x1f0] ss:$20 sps:$4 sm:$0xff]  }
  0xb1   :  { %1501 = vmatmul.mubr.bf16.gmra.mxu0 %v3409_v34  ;;  %1654 = vmatmul.mubr.bf16.vlgmr.msra.gmra.mxu1 %v3406_v33  ;;  %v3464_v33 = vld [vmem:[%s5850_s0 + $0x23c] ss:$20 sps:$4 sm:$0xff]  }
  0xb2   :  { %1661 = vmatprep.mubr.bf16.mxu1 %v3410_v35  ;;  %3133 = vmatprep.mubr.msk.bf16.mxu0 %vm3527_vm0, %v5855_v24 }
  0xb9   :  { %1662 = vmatmul.mubr.bf16.gmra.mxu1 %v3412_v36  ;;  %3134 = vmatmul.mubr.msk.bf16.vlgmr.msra.gmra.mxu0 %vm1268_vm1, %v3413_v37 }
  0xba   :  { %1669 = vmatprep.mubr.bf16.mxu1 %v3414_v38  ;;  %3137 = vmatprep.mubr.msk.bf16.mxu0 %vm3527_vm0, %v5855_v24 }
  0xc1   :  { %1670 = vmatmul.mubr.bf16.gmra.mxu1 %v3416_v39  ;;  %3138 = vmatmul.mubr.msk.bf16.gmra.mxu0 %vm1268_vm1, %v3417_v40 }
  0xc2   :  { %1677 = vmatprep.mubr.bf16.mxu1 %v3418_v41  ;;  %3141 = vmatprep.mubr.msk.bf16.mxu0 %vm3527_vm0, %v5855_v24 }
  0xc9   :  { %1678 = vmatmul.mubr.bf16.gmra.mxu1 %v3420_v42  ;;  %3142 = vmatmul.mubr.msk.bf16.gmra.mxu0 %vm1268_vm1, %v3421_v43  ;;  %v3462_v42 = vld [vmem:[%s5850_s0 + $0x238] ss:$20 sps:$4 sm:$0xff]  }
  0xca   :  { %1685 = vmatprep.mubr.bf16.mxu1 %v3422_v44  ;;  %3145 = vmatprep.mubr.msk.bf16.mxu0 %vm3527_vm0, %v5855_v24  ;;  %v3465_v43 = vld [vmem:[%s5850_s0 + $0x218] ss:$20 sps:$4 sm:$0xff]  }
  0xcb   :  { %v3468_v44 = vld [vmem:[%s5850_s0 + $0x264] ss:$20 sps:$4 sm:$0xff]  }
  0xd1   :  { %1686 = vmatmul.mubr.bf16.gmra.mxu1 %v3424_v45  ;;  %3146 = vmatmul.mubr.msk.bf16.gmra.mxu0 %vm1268_vm1, %v3425_v46 }
  0xd2   :  { %1693 = vmatprep.mubr.bf16.mxu1 %v3426_v47  ;;  %3149 = vmatprep.mubr.msk.bf16.mxu0 %vm3527_vm0, %v5855_v24 }
  0xd9   :  { %1694 = vmatmul.mubr.bf16.gmra.mxu1 %v3428_v48  ;;  %3150 = vmatmul.mubr.msk.bf16.gmra.mxu0 %vm1268_vm1, %v3429_v49 }
  0xda   :  { %1701 = vmatprep.mubr.bf16.mxu1 %v3430_v50  ;;  %3153 = vmatprep.mubr.msk.bf16.mxu0 %vm3527_vm0, %v5855_v24 }
  0xe1   :  { %1702 = vmatmul.mubr.bf16.gmra.mxu1 %v3432_v51  ;;  %3154 = vmatmul.mubr.msk.bf16.gmra.mxu0 %vm1268_vm1, %v3433_v52 }
  0xe2   :  { %1709 = vmatprep.mubr.bf16.mxu1 %v3434_v53  ;;  %3157 = vmatprep.mubr.msk.bf16.mxu0 %vm3527_vm0, %v5855_v24  ;;  %v3466_v53 = vld [vmem:[%s5850_s0 + $0x260] ss:$20 sps:$4 sm:$0xff]  }
  0xe9   :  { %1710 = vmatmul.mubr.bf16.gmra.mxu1 %v3436_v54  ;;  %3158 = vmatmul.mubr.msk.bf16.gmra.mxu0 %vm1268_vm1, %v3437_v55  ;;  %v3469_v54 = vld [vmem:[%s5850_s0 + $0x240] ss:$20 sps:$4 sm:$0xff]  }
  0xea   :  { %1717 = vmatprep.mubr.bf16.mxu1 %v3438_v56  ;;  %3161 = vmatprep.mubr.msk.bf16.mxu0 %vm3527_vm0, %v5855_v24  ;;  %v3472_v55 = vld [vmem:[%s5850_s0 + $0x28c] ss:$20 sps:$4 sm:$0xff]  }
  0xf1   :  { %1718 = vmatmul.mubr.bf16.gmra.mxu1 %v3440_v57  ;;  %3162 = vmatmul.mubr.msk.bf16.gmra.mxu0 %vm1268_vm1, %v3441_v58 }
  0xf2   :  { %1725 = vmatprep.mubr.bf16.mxu1 %v3442_v59  ;;  %3165 = vmatprep.mubr.msk.bf16.mxu0 %vm3527_vm0, %v5855_v24 }
  0xf9   :  { %1726 = vmatmul.mubr.bf16.gmra.mxu1 %v3444_v60  ;;  %3166 = vmatmul.mubr.msk.bf16.gmra.mxu0 %vm1268_vm1, %v3445_v61 }
  0xfa   :  { %1733 = vmatprep.mubr.bf16.mxu1 %v3446_v62  ;;  %3169 = vmatprep.mubr.msk.bf16.mxu0 %vm3527_vm0, %v5855_v24 }
 0x101   :  { %v4020_v3 = vpop.f32.mrf.mxu0  ;;  %v4022_v4 = vpop.f32.mrf.mxu1  ;;  %1734 = vmatmul.mubr.bf16.gmra.mxu1 %v3448_v63  ;;  %3170 = vmatmul.mubr.msk.bf16.gmra.mxu0 %vm1268_vm1, %v3449_v1  ;;  %v3470_v1 = vld [vmem:[%s5850_s0 + $0x288] ss:$20 sps:$4 sm:$0xff]  }
 0x102   :  { %1741 = vmatprep.mubr.bf16.mxu1 %v3450_v2  ;;  %3173 = vmatprep.mubr.msk.bf16.mxu0 %vm3527_vm0, %v5855_v24  ;;  %v3473_v2 = vld [vmem:[%s5850_s0 + $0x268] ss:$20 sps:$4 sm:$0xff]  }
 0x103   :  { %v1392_v5 = vpop.f32.mrf.mxu0  ;;  %v1512_v6 = vpop.f32.mrf.mxu1 }
 0x104   :  { %v3476_v5 = vld [vmem:[%s5850_s0 + $0x2b4] ss:$20 sps:$4 sm:$0xff]  }
 0x105   :  { %v4027_v7 = vpop.f32.mrf.mxu0  ;;  %v4029_v8 = vpop.f32.mrf.mxu1 }
 0x107   :  { %v1395_v12 = vpop.f32.mrf.mxu0  ;;  %v1515_v0 = vpop.f32.mrf.mxu1 }
 0x109   :  { %v4040_v13 = vpop.f32.mrf.mxu0  ;;  %v4042_v14 = vpop.f32.mrf.mxu1  ;;  %1742 = vmatmul.mubr.bf16.gmra.mxu1 %v3452_v9  ;;  %3174 = vmatmul.mubr.msk.bf16.gmra.mxu0 %vm1268_vm1, %v3453_v10 }
 0x10a   :  { %1749 = vmatprep.mubr.bf16.mxu1 %v3454_v11  ;;  %3177 = vmatprep.mubr.msk.bf16.mxu0 %vm3527_vm0, %v5855_v24 }
 0x10b   :  { %v1400_v15 = vpop.f32.mrf.mxu0  ;;  %v1520_v16 = vpop.f32.mrf.mxu1 }
 0x10d   :  { %v4047_v17 = vpop.f32.mrf.mxu0  ;;  %v4049_v18 = vpop.f32.mrf.mxu1 }
 0x10f   :  { %v1403_v22 = vpop.f32.mrf.mxu0  ;;  %v1523_v23 = vpop.f32.mrf.mxu1 }
 0x111   :  { %v4060_v25 = vpop.f32.mrf.mxu0  ;;  %v4062_v26 = vpop.f32.mrf.mxu1  ;;  %1750 = vmatmul.mubr.bf16.gmra.mxu1 %v3456_v19  ;;  %3178 = vmatmul.mubr.msk.bf16.gmra.mxu0 %vm1268_vm1, %v3457_v20  ;;  %v3474_v19 = vld [vmem:[%s5850_s0 + $0x2b0] ss:$20 sps:$4 sm:$0xff]  }
 0x112   :  { %1757 = vmatprep.mubr.bf16.mxu1 %v3458_v21  ;;  %3181 = vmatprep.mubr.msk.bf16.mxu0 %vm3527_vm0, %v5855_v24  ;;  %v3477_v20 = vld [vmem:[%s5850_s0 + $0x290] ss:$20 sps:$4 sm:$0xff]  }
 0x113   :  { %v1408_v27 = vpop.f32.mrf.mxu0  ;;  %v1528_v28 = vpop.f32.mrf.mxu1  ;;  %v3480_v21 = vld [vmem:[%s5850_s0 + $0x2dc] ss:$20 sps:$4 sm:$0xff]  }
 0x115   :  { %v4067_v29 = vpop.f32.mrf.mxu0  ;;  %v4069_v30 = vpop.f32.mrf.mxu1 }
 0x117   :  { %v1411_v34 = vpop.f32.mrf.mxu0  ;;  %v1531_v35 = vpop.f32.mrf.mxu1 }
 0x118   :  { %v3478_v35 = vld [vmem:[%s5850_s0 + $0x2d8] ss:$20 sps:$4 sm:$0xff]  }
 0x119   :  { %v4080_v36 = vpop.f32.mrf.mxu0  ;;  %v4082_v37 = vpop.f32.mrf.mxu1  ;;  %1758 = vmatmul.mubr.bf16.gmra.mxu1 %v3460_v31  ;;  %3182 = vmatmul.mubr.msk.bf16.gmra.mxu0 %vm1268_vm1, %v3461_v32 }
 0x11a   :  { %1765 = vmatprep.mubr.bf16.mxu1 %v3464_v33  ;;  %3185 = vmatprep.mubr.msk.bf16.mxu0 %vm3527_vm0, %v5855_v24 }
 0x11b   :  { %v1416_v38 = vpop.f32.mrf.mxu0  ;;  %v1536_v39 = vpop.f32.mrf.mxu1 }
 0x11c   :  { %v3481_v38 = vld [vmem:[%s5850_s0 + $0x2b8] ss:$20 sps:$4 sm:$0xff]  }
 0x11d   :  { %v4087_v40 = vpop.f32.mrf.mxu0  ;;  %v4089_v41 = vpop.f32.mrf.mxu1  ;;  %v3484_v39 = vld [vmem:[%s5850_s0 + $0x304] ss:$20 sps:$4 sm:$0xff]  }
 0x11f   :  { %v1419_v45 = vpop.f32.mrf.mxu0  ;;  %v1539_v46 = vpop.f32.mrf.mxu1 }
 0x121   :  { %v4100_v47 = vpop.f32.mrf.mxu0  ;;  %v4102_v48 = vpop.f32.mrf.mxu1  ;;  %1766 = vmatmul.mubr.bf16.gmra.mxu1 %v3462_v42  ;;  %3186 = vmatmul.mubr.msk.bf16.gmra.mxu0 %vm1268_vm1, %v3465_v43 }
 0x122   :  { %1773 = vmatprep.mubr.bf16.mxu1 %v3468_v44  ;;  %3189 = vmatprep.mubr.msk.bf16.mxu0 %vm3527_vm0, %v5855_v24 }
 0x123   :  { %v1424_v49 = vpop.f32.mrf.mxu0  ;;  %v1544_v50 = vpop.f32.mrf.mxu1 }
 0x125   :  { %v4107_v51 = vpop.f32.mrf.mxu0  ;;  %v4109_v52 = vpop.f32.mrf.mxu1 }
 0x127   :  { %v1427_v56 = vpop.f32.mrf.mxu0  ;;  %v1547_v57 = vpop.f32.mrf.mxu1 }
 0x128   :  { %v3488_v56 = vld [vmem:[%s5850_s0 + $0x32c] ss:$20 sps:$4 sm:$0xff]  }
 0x129   :  { %v4120_v58 = vpop.f32.mrf.mxu0  ;;  %v4122_v59 = vpop.f32.mrf.mxu1  ;;  %1774 = vmatmul.mubr.bf16.gmra.mxu1 %v3466_v53  ;;  %3190 = vmatmul.mubr.msk.bf16.gmra.mxu0 %vm1268_vm1, %v3469_v54  ;;  %v3482_v54 = vld [vmem:[%s5850_s0 + $0x300] ss:$20 sps:$4 sm:$0xff]  }
 0x12a   :  { %1781 = vmatprep.mubr.bf16.mxu1 %v3472_v55  ;;  %3193 = vmatprep.mubr.msk.bf16.mxu0 %vm3527_vm0, %v5855_v24  ;;  %v3485_v55 = vld [vmem:[%s5850_s0 + $0x2e0] ss:$20 sps:$4 sm:$0xff]  }
 0x12b   :  { %v1432_v60 = vpop.f32.mrf.mxu0  ;;  %v1552_v61 = vpop.f32.mrf.mxu1 }
 0x12d   :  { %v4127_v62 = vpop.f32.mrf.mxu0  ;;  %v4129_v63 = vpop.f32.mrf.mxu1 }
 0x12f   :  { %v1435_v6 = vpop.f32.mrf.mxu0  ;;  %v1555_v9 = vpop.f32.mrf.mxu1 }
 0x131   :  { %v4140_v10 = vpop.f32.mrf.mxu0  ;;  %v4142_v11 = vpop.f32.mrf.mxu1  ;;  %1782 = vmatmul.mubr.bf16.gmra.mxu1 %v3470_v1  ;;  %3194 = vmatmul.mubr.msk.bf16.gmra.mxu0 %vm1268_vm1, %v3473_v2 }
 0x132   :  { %1789 = vmatprep.mubr.bf16.mxu1 %v3476_v5  ;;  %3197 = vmatprep.mubr.msk.bf16.mxu0 %vm3527_vm0, %v5855_v24 }
 0x133   :  { %v1440_v12 = vpop.f32.mrf.mxu0  ;;  %v1560_v0 = vpop.f32.mrf.mxu1 }
 0x134   :  { %v3486_v12 = vld [vmem:[%s5850_s0 + $0x328] ss:$20 sps:$4 sm:$0xff]  }
 0x135   :  { %v4147_v15 = vpop.f32.mrf.mxu0  ;;  %v4149_v16 = vpop.f32.mrf.mxu1  ;;  %v3489_v0 = vld [vmem:[%s5850_s0 + $0x308] ss:$20 sps:$4 sm:$0xff]  }
 0x137   :  { %v1443_v22 = vpop.f32.mrf.mxu0  ;;  %v1563_v23 = vpop.f32.mrf.mxu1 }
 0x139   :  { %v4160_v27 = vpop.f32.mrf.mxu0  ;;  %v4162_v28 = vpop.f32.mrf.mxu1  ;;  %1790 = vmatmul.mubr.bf16.gmra.mxu1 %v3474_v19  ;;  %3198 = vmatmul.mubr.msk.bf16.gmra.mxu0 %vm1268_vm1, %v3477_v20  ;;  %v3492_v19 = vld [vmem:[%s5850_s0 + $0x354] ss:$20 sps:$4 sm:$0xff]  }
 0x13a   :  { %1797 = vmatprep.mubr.bf16.mxu1 %v3480_v21  ;;  %3201 = vmatprep.mubr.msk.bf16.mxu0 %vm3527_vm0, %v5855_v24 }
 0x13b   :  { %v1448_v31 = vpop.f32.mrf.mxu0  ;;  %v1568_v32 = vpop.f32.mrf.mxu1 }
 0x13d   :  { %v4167_v33 = vpop.f32.mrf.mxu0  ;;  %v4169_v34 = vpop.f32.mrf.mxu1 }
 0x13e   :  { %5910 = vst [vmem:[#allocation2_spill] sm:$0xff] %v4169_v34 }
 0x13f   :  { %v1451_v42 = vpop.f32.mrf.mxu0  ;;  %v1571_v43 = vpop.f32.mrf.mxu1 }
 0x140   :  { %v3493_v42 = vld [vmem:[%s5850_s0 + $0x330] ss:$20 sps:$4 sm:$0xff]  }
 0x141   :  { %v4180_v44 = vpop.f32.mrf.mxu0  ;;  %v4182_v45 = vpop.f32.mrf.mxu1  ;;  %1798 = vmatmul.mubr.bf16.gmra.mxu1 %v3478_v35  ;;  %3202 = vmatmul.mubr.msk.bf16.gmra.mxu0 %vm1268_vm1, %v3481_v38  ;;  %v3496_v43 = vld [vmem:[%s5850_s0 + $0x37c] ss:$20 sps:$4 sm:$0xff]  }
 0x142   :  { %5911 = vst [vmem:[#allocation3_spill] sm:$0xff] %v4182_v45  ;;  %1805 = vmatprep.mubr.bf16.mxu1 %v3484_v39  ;;  %3205 = vmatprep.mubr.msk.bf16.mxu0 %vm3527_vm0, %v5855_v24  ;;  %v3490_v39 = vld [vmem:[%s5850_s0 + $0x350] ss:$20 sps:$4 sm:$0xff]  }
 0x143   :  { %v1456_v46 = vpop.f32.mrf.mxu0  ;;  %v1576_v49 = vpop.f32.mrf.mxu1 }
 0x145   :  { %v4187_v50 = vpop.f32.mrf.mxu0  ;;  %v4189_v53 = vpop.f32.mrf.mxu1 }
 0x146   :  { %5912 = vst [vmem:[#allocation4_spill] sm:$0xff] %v4189_v53 }
 0x147   :  { %v1459_v57 = vpop.f32.mrf.mxu0  ;;  %v1579_v60 = vpop.f32.mrf.mxu1 }
 0x149   :  { %v4200_v61 = vpop.f32.mrf.mxu0  ;;  %v4202_v1 = vpop.f32.mrf.mxu1  ;;  %1806 = vmatmul.mubr.bf16.gmra.mxu1 %v3482_v54  ;;  %3206 = vmatmul.mubr.msk.bf16.gmra.mxu0 %vm1268_vm1, %v3485_v55 }
 0x14a   :  { %5913 = vst [vmem:[#allocation5_spill] sm:$0xff] %v4202_v1  ;;  %1813 = vmatprep.mubr.bf16.mxu1 %v3488_v56  ;;  %3209 = vmatprep.mubr.msk.bf16.mxu0 %vm3527_vm0, %v5855_v24 }
 0x14b   :  { %v1464_v2 = vpop.f32.mrf.mxu0  ;;  %v1584_v5 = vpop.f32.mrf.mxu1 }
 0x14c   :  { %v3494_v5 = vld [vmem:[%s5850_s0 + $0x378] ss:$20 sps:$4 sm:$0xff]  }
 0x14d   :  { %v4207_v6 = vpop.f32.mrf.mxu0  ;;  %v4209_v9 = vpop.f32.mrf.mxu1 }
 0x14e   :  { %5914 = vst [vmem:[#allocation6_spill] sm:$0xff] %v4209_v9 }
 0x14f   :  { %v1467_v20 = vpop.f32.mrf.mxu0  ;;  %v1587_v21 = vpop.f32.mrf.mxu1 }
 0x151   :  { %v4220_v22 = vpop.f32.mrf.mxu0  ;;  %v4222_v23 = vpop.f32.mrf.mxu1  ;;  %1814 = vmatmul.mubr.bf16.gmra.mxu1 %v3486_v12  ;;  %3210 = vmatmul.mubr.msk.bf16.gmra.mxu0 %vm1268_vm1, %v3489_v0  ;;  %v3497_v12 = vld [vmem:[%s5850_s0 + $0x358] ss:$20 sps:$4 sm:$0xff]  }
 0x152   :  { %5915 = vst [vmem:[#allocation7_spill] sm:$0xff] %v4222_v23  ;;  %1821 = vmatprep.mubr.bf16.mxu1 %v3492_v19  ;;  %3213 = vmatprep.mubr.msk.bf16.mxu0 %vm3527_vm0, %v5855_v24  ;;  %v3500_v0 = vld [vmem:[%s5850_s0 + $0x3a4] ss:$20 sps:$4 sm:$0xff]  }
 0x153   :  { %v1472_v31 = vpop.f32.mrf.mxu0  ;;  %v1592_v32 = vpop.f32.mrf.mxu1 }
 0x155   :  { %v4227_v35 = vpop.f32.mrf.mxu0  ;;  %v4229_v38 = vpop.f32.mrf.mxu1 }
 0x156   :  { %5916 = vst [vmem:[#allocation8_spill] sm:$0xff] %v4229_v38 }
 0x157   :  { %v1475_v46 = vpop.f32.mrf.mxu0  ;;  %v1595_v49 = vpop.f32.mrf.mxu1 }
 0x158   :  { %v3498_v46 = vld [vmem:[%s5850_s0 + $0x3a0] ss:$20 sps:$4 sm:$0xff]  }
 0x159   :  { %v4240_v54 = vpop.f32.mrf.mxu0  ;;  %v4242_v55 = vpop.f32.mrf.mxu1  ;;  %1822 = vmatmul.mubr.bf16.gmra.mxu1 %v3490_v39  ;;  %3214 = vmatmul.mubr.msk.bf16.gmra.mxu0 %vm1268_vm1, %v3493_v42  ;;  %v3501_v49 = vld [vmem:[%s5850_s0 + $0x380] ss:$20 sps:$4 sm:$0xff]  }
 0x15a   :  { %5917 = vst [vmem:[#allocation9_spill] sm:$0xff] %v4242_v55  ;;  %1829 = vmatprep.mubr.bf16.mxu1 %v3496_v43  ;;  %3217 = vmatprep.mubr.msk.bf16.mxu0 %vm3527_vm0, %v5855_v24  ;;  %v5924_v55 = vmov 0.0  }
 0x15b   :  { %v1480_v56 = vpop.f32.mrf.mxu0  ;;  %v1600_v57 = vpop.f32.mrf.mxu1 }
 0x15c   :  { %v3504_v56 = vld [vmem:[%s5850_s0 + $0x3cc] ss:$20 sps:$4 sm:$0xff]  }
 0x15d   :  { %v4247_v60 = vpop.f32.mrf.mxu0  ;;  %v4249_v2 = vpop.f32.mrf.mxu1 }
 0x15e   :  { %5918 = vst [vmem:[#allocation10_spill] sm:$0xff] %v4249_v2 }
 0x15f   :  { %v1483_v19 = vpop.f32.mrf.mxu0  ;;  %v1603_v20 = vpop.f32.mrf.mxu1 }
 0x161   :  { %v4260_v21 = vpop.f32.mrf.mxu0  ;;  %v4262_v31 = vpop.f32.mrf.mxu1  ;;  %1830 = vmatmul.mubr.bf16.gmra.mxu1 %v3494_v5  ;;  %3218 = vmatmul.mubr.msk.bf16.gmra.mxu0 %vm1268_vm1, %v3497_v12 }
 0x162   :  { %5919 = vst [vmem:[#allocation11_spill] sm:$0xff] %v4262_v31  ;;  %1837 = vmatprep.mubr.bf16.mxu1 %v3500_v0  ;;  %3221 = vmatprep.mubr.msk.bf16.mxu0 %vm3527_vm0, %v5855_v24 }
 0x163   :  { %v1488_v32 = vpop.f32.mrf.mxu0  ;;  %v1608_v39 = vpop.f32.mrf.mxu1 }
 0x165   :  { %v4267_v42 = vpop.f32.mrf.mxu0  ;;  %v4269_v43 = vpop.f32.mrf.mxu1 }
 0x166   :  { %5920 = vst [vmem:[#allocation12_spill] sm:$0xff] %v4269_v43 }
 0x167   :  { %v1491_v57 = vpop.f32.mrf.mxu0  ;;  %v1611_v5 = vpop.f32.mrf.mxu1 }
 0x168   :  { %v3502_v57 = vld [vmem:[%s5850_s0 + $0x3c8] ss:$20 sps:$4 sm:$0xff]  }
 0x169   :  { %v4280_v12 = vpop.f32.mrf.mxu0  ;;  %v4282_v0 = vpop.f32.mrf.mxu1  ;;  %1838 = vmatmul.mubr.bf16.gmra.mxu1 %v3498_v46  ;;  %3222 = vmatmul.mubr.msk.bf16.gmra.mxu0 %vm1268_vm1, %v3501_v49  ;;  %v3505_v46 = vld [vmem:[%s5850_s0 + $0x3a8] ss:$20 sps:$4 sm:$0xff]  }
 0x16a   :  { %5921 = vst [vmem:[#allocation13_spill] sm:$0xff] %v4282_v0  ;;  %1845 = vmatprep.mubr.bf16.mxu1 %v3504_v56  ;;  %3225 = vmatprep.mubr.msk.bf16.mxu0 %vm3527_vm0, %v5855_v24  ;;  %v3508_v49 = vld [vmem:[%s5850_s0 + $0x3f4] ss:$20 sps:$4 sm:$0xff]  }
 0x16b   :  { %v1496_v19 = vpop.f32.mrf.mxu0  ;;  %v1616_v20 = vpop.f32.mrf.mxu1 }
 0x16d   :  { %v4287_v32 = vpop.f32.mrf.mxu0  ;;  %v4289_v39 = vpop.f32.mrf.mxu1 }
 0x16e   :  { %5922 = vst [vmem:[#allocation14_spill] sm:$0xff] %v4289_v39 }
 0x16f   :  { %v1499_v56 = vpop.f32.mrf.mxu0  ;;  %v1619_v5 = vpop.f32.mrf.mxu1 }
 0x170   :  { %v3506_v56 = vld [vmem:[%s5850_s0 + $0x3f0] ss:$20 sps:$4 sm:$0xff]  }
 0x171   :  { %v4300_v19 = vpop.f32.mrf.mxu0  ;;  %v1655_v20 = vpop.f32.mrf.mxu1  ;;  %1846 = vmatmul.mubr.bf16.gmra.mxu1 %v3502_v57  ;;  %3226 = vmatmul.mubr.msk.bf16.gmra.mxu0 %vm1268_vm1, %v3505_v46  ;;  %v3509_v5 = vld [vmem:[%s5850_s0 + $0x3d0] ss:$20 sps:$4 sm:$0xff]  }
 0x172   :  { %1853 = vmatprep.mubr.bf16.mxu1 %v3508_v49  ;;  %3229 = vmatprep.mubr.msk.bf16.mxu0 %vm3527_vm0, %v5855_v24  ;;  %v3512_v57 = vld [vmem:[%s5850_s0 + $0x41c] ss:$20 sps:$4 sm:$0xff]  }
 0x173   :  { %v1504_v39 = vpop.f32.mrf.mxu0  ;;  %v1657_v0 = vpop.f32.mrf.mxu1 }
 0x174   :  { %v1656_v39 = vadd.f32 %v1655_v20, %v4020_v3  ;;  %v3510_v3 = vld [vmem:[%s5850_s0 + $0x418] ss:$20 sps:$4 sm:$0xff]  }
 0x175   :  { %v4305_v43 = vpop.f32.mrf.mxu0  ;;  %v1658_v31 = vpop.f32.mrf.mxu1  ;;  %v3513_v20 = vld [vmem:[%s5850_s0 + $0x3f8] ss:$20 sps:$4 sm:$0xff]  }
 0x176   :  { %v1659_v9 = vadd.f32 %v1658_v31, %v4027_v7 }
 0x177   :  { %v1507_v46 = vpop.f32.mrf.mxu0  ;;  %v1660_v49 = vpop.f32.mrf.mxu1 }
 0x179   :  { %v1663_v0 = vpop.f32.mrf.mxu1  ;;  %1854 = vmatmul.mubr.bf16.gmra.mxu1 %v3506_v56  ;;  %v1920_v24 = vpop.f32.mrf.mxu0  ;;  %3230 = vmatmul.mubr.msk.bf16.gmra.mxu0 %vm1268_vm1, %v3509_v5  ;;  %v3516_v56 = vld [vmem:[%s5850_s0 + $0x444] ss:$20 sps:$4 sm:$0xff]  }
 0x17a   :  { %v4318_v2 = vadd.f32 %v1920_v24, %v1656_v39  ;;  %1861 = vmatprep.mubr.bf16.mxu1 %v3512_v57  ;;  %3233 = vmatprep.mubr.msk.bf16.mxu0 %vm3527_vm0, %v5924_v55  ;;  %v1664_v7 = vadd.f32 %v1663_v0, %v4040_v13  ;;  %v3514_v13 = vld [vmem:[%s5850_s0 + $0x440] ss:$20 sps:$4 sm:$0xff]  }
 0x17b   :  { %v1665_v38 = vpop.f32.mrf.mxu1  ;;  %v3135_v23 = vpop.f32.mrf.mxu0  ;;  %v3517_v0 = vld [vmem:[%s5850_s0 + $0x420] ss:$20 sps:$4 sm:$0xff]  }
 0x17c   :  { %5923 = vst [vmem:[#allocation15_spill] sm:$0xff] %v4318_v2 }
 0x17d   :  { %v1666_v1 = vpop.f32.mrf.mxu1  ;;  %v1923_v46 = vpop.f32.mrf.mxu0 }
 0x17e   :  { %v4329_v24 = vadd.f32 %v1923_v46, %v1659_v9  ;;  %v1667_v39 = vadd.f32 %v1666_v1, %v4047_v17 }
 0x17f   :  { %v1668_v38 = vpop.f32.mrf.mxu1  ;;  %v3136_v23 = vpop.f32.mrf.mxu0 }
 0x180   :  { %5925 = vst [vmem:[#allocation16_spill] sm:$0xff] %v4329_v24 }
 0x181   :  { %v1671_v31 = vpop.f32.mrf.mxu1  ;;  %1862 = vmatmul.mubr.bf16.gmra.mxu1 %v3510_v3  ;;  %v1928_v5 = vpop.f32.mrf.mxu0  ;;  %3234 = vmatmul.mubr.msk.bf16.gmra.mxu0 %vm1268_vm1, %v3513_v20  ;;  %v3520_v20 = vld [vmem:[%s5850_s0 + $0x46c] ss:$20 sps:$4 sm:$0xff]  }
 0x182   :  { %v4336_v57 = vadd.f32 %v1928_v5, %v1664_v7  ;;  %1869 = vmatprep.mubr.bf16.mxu1 %v3516_v56  ;;  %3237 = vmatprep.mubr.msk.bf16.mxu0 %vm3527_vm0, %v5924_v55  ;;  %v1672_v17 = vadd.f32 %v1671_v31, %v4060_v25  ;;  %v3518_v25 = vld [vmem:[%s5850_s0 + $0x468] ss:$20 sps:$4 sm:$0xff]  }
 0x183   :  { %v1673_v9 = vpop.f32.mrf.mxu1  ;;  %v3139_v49 = vpop.f32.mrf.mxu0  ;;  %v3521_v31 = vld [vmem:[%s5850_s0 + $0x448] ss:$20 sps:$4 sm:$0xff]  }
 0x184   :  { %5926 = vst [vmem:[#allocation17_spill] sm:$0xff] %v4336_v57 }
 0x185   :  { %v1674_v46 = vpop.f32.mrf.mxu1  ;;  %v1931_v38 = vpop.f32.mrf.mxu0 }
 0x186   :  { %v4347_v3 = vadd.f32 %v1931_v38, %v1667_v39  ;;  %v1675_v39 = vadd.f32 %v1674_v46, %v4067_v29 }
 0x187   :  { %v1676_v56 = vpop.f32.mrf.mxu1  ;;  %v3140_v23 = vpop.f32.mrf.mxu0 }
 0x188   :  { %5927 = vst [vmem:[#allocation18_spill] sm:$0xff] %v4347_v3 }
 0x189   :  { %v1679_v1 = vpop.f32.mrf.mxu1  ;;  %1870 = vmatmul.mubr.bf16.gmra.mxu1 %v3514_v13  ;;  %v1936_v7 = vpop.f32.mrf.mxu0  ;;  %3238 = vmatmul.mubr.msk.bf16.gmra.mxu0 %vm1268_vm1, %v3517_v0 }
 0x18a   :  { %v4354_v5 = vadd.f32 %v1936_v7, %v1672_v17  ;;  %1877 = vmatprep.mubr.bf16.mxu1 %v3520_v20  ;;  %3241 = vmatprep.mubr.msk.bf16.mxu0 %vm3527_vm0, %v5924_v55  ;;  %v1680_v23 = vadd.f32 %v1679_v1, %v4080_v36  ;;  %v3522_v36 = vld [vmem:[%s5850_s0 + $0x470] ss:$20 sps:$4 sm:$0xff]  }
 0x18b   :  { %v1681_v9 = vpop.f32.mrf.mxu1  ;;  %v3143_v49 = vpop.f32.mrf.mxu0 }
 0x18c   :  { %5928 = vst [vmem:[#allocation19_spill] sm:$0xff] %v4354_v5 }
 0x18d   :  { %v1682_v38 = vpop.f32.mrf.mxu1  ;;  %v1939_v56 = vpop.f32.mrf.mxu0 }
 0x18e   :  { %v4365_v13 = vadd.f32 %v1939_v56, %v1675_v39  ;;  %v1683_v49 = vadd.f32 %v1682_v38, %v4087_v40 }
 0x18f   :  { %v1684_v0 = vpop.f32.mrf.mxu1  ;;  %v3144_v20 = vpop.f32.mrf.mxu0 }
 0x191   :  { %v1687_v17 = vpop.f32.mrf.mxu1  ;;  %1878 = vmatmul.mubr.bf16.gmra.mxu1 %v3518_v25  ;;  %v1944_v7 = vpop.f32.mrf.mxu0  ;;  %3242 = vmatmul.mubr.msk.bf16.gmra.mxu0 %vm1268_vm1, %v3521_v31 }
 0x192   :  { %v4369_v29 = vadd.f32 %v1944_v7, %v1680_v23  ;;  %3245 = vmatprep.mubr.msk.bf16.mxu0 %vm3527_vm0, %v5924_v55  ;;  %v1688_v31 = vadd.f32 %v1687_v17, %v4100_v47 }
 0x193   :  { %v1689_v46 = vpop.f32.mrf.mxu1  ;;  %v3147_v9 = vpop.f32.mrf.mxu0 }
 0x195   :  { %v1690_v39 = vpop.f32.mrf.mxu1  ;;  %v1947_v56 = vpop.f32.mrf.mxu0 }
 0x196   :  { %v4377_v1 = vadd.f32 %v1947_v56, %v1683_v49  ;;  %v1691_v38 = vadd.f32 %v1690_v39, %v4107_v51 }
 0x197   :  { %v1692_v25 = vpop.f32.mrf.mxu1  ;;  %v3148_v0 = vpop.f32.mrf.mxu0 }
 0x199   :  { %v1695_v20 = vpop.f32.mrf.mxu1  ;;  %v1952_v23 = vpop.f32.mrf.mxu0  ;;  %3246 = vmatmul.mubr.msk.bf16.gmra.mxu0 %vm1268_vm1, %v3522_v36 }
 0x19a   :  { %v4381_v55 = vadd.f32 %v1952_v23, %v1688_v31  ;;  %v1696_v25 = vadd.f32 %v1695_v20, %v4120_v58 }
 0x19b   :  { %v1697_v7 = vpop.f32.mrf.mxu1  ;;  %v3151_v40 = vpop.f32.mrf.mxu0 }
 0x19d   :  { %v1698_v46 = vpop.f32.mrf.mxu1  ;;  %v1955_v9 = vpop.f32.mrf.mxu0 }
 0x19e   :  { %v4384_v53 = vadd.f32 %v1955_v9, %v1691_v38  ;;  %v1699_v31 = vadd.f32 %v1698_v46, %v4127_v62 }
 0x19f   :  { %v1700_v49 = vpop.f32.mrf.mxu1  ;;  %v3152_v56 = vpop.f32.mrf.mxu0 }
 0x1a1   :  { %v1703_v0 = vpop.f32.mrf.mxu1  ;;  %v1960_v47 = vpop.f32.mrf.mxu0 }
 0x1a2   :  { %v4387_v17 = vadd.f32 %v1960_v47, %v1696_v25  ;;  %v1704_v38 = vadd.f32 %v1703_v0, %v4140_v10 }
 0x1a3   :  { %v1705_v45 = vpop.f32.mrf.mxu1  ;;  %v3155_v36 = vpop.f32.mrf.mxu0 }
 0x1a5   :  { %v1706_v23 = vpop.f32.mrf.mxu1  ;;  %v1963_v7 = vpop.f32.mrf.mxu0 }
 0x1a6   :  { %v4390_v40 = vadd.f32 %v1963_v7, %v1699_v31  ;;  %v1707_v25 = vadd.f32 %v1706_v23, %v4147_v15 }
 0x1a7   :  { %v1708_v51 = vpop.f32.mrf.mxu1  ;;  %v3156_v39 = vpop.f32.mrf.mxu0 }
 0x1a9   :  { %v1711_v9 = vpop.f32.mrf.mxu1  ;;  %v1968_v49 = vpop.f32.mrf.mxu0 }
 0x1aa   :  { %v4393_v56 = vadd.f32 %v1968_v49, %v1704_v38  ;;  %v1712_v31 = vadd.f32 %v1711_v9, %v4160_v27 }
 0x1ab   :  { %v1713_v58 = vpop.f32.mrf.mxu1  ;;  %v3159_v20 = vpop.f32.mrf.mxu0 }
 0x1ad   :  { %v1714_v45 = vpop.f32.mrf.mxu1  ;;  %v1971_v47 = vpop.f32.mrf.mxu0 }
 0x1ae   :  { %v4396_v36 = vadd.f32 %v1971_v47, %v1707_v25  ;;  %v1715_v38 = vadd.f32 %v1714_v45, %v4167_v33 }
 0x1af   :  { %v1716_v62 = vpop.f32.mrf.mxu1  ;;  %v3160_v46 = vpop.f32.mrf.mxu0 }
 0x1b1   :  { %v1719_v7 = vpop.f32.mrf.mxu1  ;;  %v1976_v51 = vpop.f32.mrf.mxu0 }
 0x1b2   :  { %v4399_v39 = vadd.f32 %v1976_v51, %v1712_v31  ;;  %v1720_v25 = vadd.f32 %v1719_v7, %v4180_v44 }
 0x1b3   :  { %v1721_v10 = vpop.f32.mrf.mxu1  ;;  %v3163_v0 = vpop.f32.mrf.mxu0 }
 0x1b5   :  { %v1722_v49 = vpop.f32.mrf.mxu1  ;;  %v1979_v58 = vpop.f32.mrf.mxu0 }
 0x1b6   :  { %v4402_v20 = vadd.f32 %v1979_v58, %v1715_v38  ;;  %v1723_v31 = vadd.f32 %v1722_v49, %v4187_v50 }
 0x1b7   :  { %v1724_v15 = vpop.f32.mrf.mxu1  ;;  %v3164_v23 = vpop.f32.mrf.mxu0 }
 0x1b9   :  { %v1727_v47 = vpop.f32.mrf.mxu1  ;;  %v1984_v62 = vpop.f32.mrf.mxu0 }
 0x1ba   :  { %v4405_v46 = vadd.f32 %v1984_v62, %v1720_v25  ;;  %v1728_v38 = vadd.f32 %v1727_v47, %v4200_v61 }
 0x1bb   :  { %v1729_v27 = vpop.f32.mrf.mxu1  ;;  %v3167_v9 = vpop.f32.mrf.mxu0 }
 0x1bd   :  { %v1730_v51 = vpop.f32.mrf.mxu1  ;;  %v1987_v10 = vpop.f32.mrf.mxu0 }
 0x1be   :  { %v4408_v0 = vadd.f32 %v1987_v10, %v1723_v31  ;;  %v1731_v25 = vadd.f32 %v1730_v51, %v4207_v6 }
 0x1bf   :  { %v1732_v33 = vpop.f32.mrf.mxu1  ;;  %v3168_v45 = vpop.f32.mrf.mxu0 }
 0x1c1   :  { %v1735_v58 = vpop.f32.mrf.mxu1  ;;  %v1992_v15 = vpop.f32.mrf.mxu0 }
 0x1c2   :  { %v4411_v23 = vadd.f32 %v1992_v15, %v1728_v38  ;;  %v1736_v31 = vadd.f32 %v1735_v58, %v4220_v22 }
 0x1c3   :  { %v1737_v44 = vpop.f32.mrf.mxu1  ;;  %v3171_v7 = vpop.f32.mrf.mxu0 }
 0x1c5   :  { %v1738_v62 = vpop.f32.mrf.mxu1  ;;  %v1995_v27 = vpop.f32.mrf.mxu0 }
 0x1c6   :  { %v4414_v9 = vadd.f32 %v1995_v27, %v1731_v25  ;;  %v1739_v38 = vadd.f32 %v1738_v62, %v4227_v35 }
 0x1c7   :  { %v1740_v50 = vpop.f32.mrf.mxu1  ;;  %v3172_v49 = vpop.f32.mrf.mxu0 }
 0x1c9   :  { %v1743_v10 = vpop.f32.mrf.mxu1  ;;  %v2000_v33 = vpop.f32.mrf.mxu0 }
 0x1ca   :  { %v4417_v45 = vadd.f32 %v2000_v33, %v1736_v31  ;;  %v1744_v25 = vadd.f32 %v1743_v10, %v4240_v54 }
 0x1cb   :  { %v1745_v61 = vpop.f32.mrf.mxu1  ;;  %v3175_v47 = vpop.f32.mrf.mxu0 }
 0x1cd   :  { %v1746_v15 = vpop.f32.mrf.mxu1  ;;  %v2003_v44 = vpop.f32.mrf.mxu0 }
 0x1ce   :  { %v4420_v7 = vadd.f32 %v2003_v44, %v1739_v38  ;;  %v1747_v31 = vadd.f32 %v1746_v15, %v4247_v60  ;;  %v2275_v60 = vmul.f32 %v4329_v24, %v4329_v24 }
 0x1cf   :  { %v1748_v6 = vpop.f32.mrf.mxu1  ;;  %v3176_v51 = vpop.f32.mrf.mxu0 }
 0x1d1   :  { %v1751_v27 = vpop.f32.mrf.mxu1  ;;  %v2008_v50 = vpop.f32.mrf.mxu0 }
 0x1d2   :  { %v4423_v49 = vadd.f32 %v2008_v50, %v1744_v25  ;;  %v1752_v38 = vadd.f32 %v1751_v27, %v4260_v21 }
 0x1d3   :  { %v1753_v22 = vpop.f32.mrf.mxu1  ;;  %v3179_v58 = vpop.f32.mrf.mxu0 }
 0x1d4   :  { %v2274_v58 = vmul.f32 %v4318_v2, %v4318_v2 }
 0x1d5   :  { %v1754_v33 = vpop.f32.mrf.mxu1  ;;  %v2011_v61 = vpop.f32.mrf.mxu0 }
 0x1d6   :  { %v4426_v47 = vadd.f32 %v2011_v61, %v1747_v31  ;;  %v1755_v25 = vadd.f32 %v1754_v33, %v4267_v42  ;;  %v2153_v31 = vsel %vm2151_vm2, %v4329_v24, 0.0  ;;  %v2276_v61 = vmul.f32 %v4336_v57, %v4336_v57 }
 0x1d7   :  { %v1756_v35 = vpop.f32.mrf.mxu1  ;;  %v3180_v62 = vpop.f32.mrf.mxu0  ;;  %v2152_v33 = vsel %vm2151_vm2, %v4318_v2, 0.0 }
 0x1d9   :  { %v1759_v44 = vpop.f32.mrf.mxu1  ;;  %v2016_v6 = vpop.f32.mrf.mxu0 }
 0x1da   :  { %v4429_v51 = vadd.f32 %v2016_v6, %v1752_v38  ;;  %v1760_v42 = vadd.f32 %v1759_v44, %v4280_v12  ;;  %v2333_v38 = vsel %vm2151_vm2, %v2275_v60, 0.0  ;;  %v2155_v6 = vsel %vm2151_vm2, %v4336_v57, 0.0 }
 0x1db   :  { %v1761_v54 = vpop.f32.mrf.mxu1  ;;  %v3183_v10 = vpop.f32.mrf.mxu0  ;;  %v2335_v44 = vsel %vm2151_vm2, %v2276_v61, 0.0  ;;  %v2278_v60 = vmul.f32 %v4354_v5, %v4354_v5 }
 0x1dc   :  { %v2277_v54 = vmul.f32 %v4347_v3, %v4347_v3 }
 0x1dd   :  { %v1762_v50 = vpop.f32.mrf.mxu1  ;;  %v2019_v22 = vpop.f32.mrf.mxu0 }
 0x1de   :  { %v4434_v15 = vadd.f32 %v2019_v22, %v1755_v25  ;;  %v2332_v25 = vsel %vm2151_vm2, %v2274_v58, 0.0  ;;  %v2154_v22 = vadd.f32 %v2153_v31, %v2152_v33  ;;  %v1763_v57 = vadd.f32 %v1762_v50, %v4287_v32 }
 0x1df   :  { %v1764_v21 = vpop.f32.mrf.mxu1  ;;  %v3184_v27 = vpop.f32.mrf.mxu0  ;;  %v2334_v24 = vadd.f32 %v2333_v38, %v2332_v25  ;;  %v2159_v58 = vsel %vm2151_vm2, %v4354_v5, 0.0  ;;  %v2279_v31 = vmul.f32 %v4365_v13, %v4365_v13  ;;  %v2339_v32 = vsel %vm2151_vm2, %v2278_v60, 0.0 }
 0x1e0   :  { %v2157_v27 = vsel %vm2151_vm2, %v4347_v3, 0.0  ;;  %v2156_v2 = vadd.f32 %v2155_v6, %v2154_v22  ;;  %v2161_v50 = vsel %vm2151_vm2, %v4365_v13, 0.0  ;;  %v2280_v38 = vmul.f32 %v4369_v29, %v4369_v29 }
 0x1e1   :  { %v1767_v35 = vpop.f32.mrf.mxu1  ;;  %v2024_v62 = vpop.f32.mrf.mxu0  ;;  %v2336_v33 = vadd.f32 %v2335_v44, %v2334_v24  ;;  %v2281_v24 = vmul.f32 %v4377_v1, %v4377_v1 }
 0x1e2   :  { %v4450_v10 = vadd.f32 %v2024_v62, %v1760_v42  ;;  %v2337_v62 = vsel %vm2151_vm2, %v2277_v54, 0.0  ;;  %v1768_v6 = vadd.f32 %v1767_v35, %v4300_v19  ;;  %v2343_v19 = vsel %vm2151_vm2, %v2280_v38, 0.0 }
 0x1e3   :  { %v1769_v21 = vpop.f32.mrf.mxu1  ;;  %v3187_v12 = vpop.f32.mrf.mxu0  ;;  %v2338_v54 = vadd.f32 %v2337_v62, %v2336_v33  ;;  %v2165_v35 = vsel %vm2151_vm2, %v4377_v1, 0.0  ;;  %v2282_v62 = vmul.f32 %v4381_v55, %v4381_v55 }
 0x1e4   :  { %v2158_v21 = vadd.f32 %v2157_v27, %v2156_v2  ;;  %v2163_v2 = vsel %vm2151_vm2, %v4369_v29, 0.0 }
 0x1e5   :  { %v1770_v34 = vpop.f32.mrf.mxu1  ;;  %v2027_v42 = vpop.f32.mrf.mxu0  ;;  %v2340_v44 = vadd.f32 %v2339_v32, %v2338_v54  ;;  %v2167_v32 = vsel %vm2151_vm2, %v4381_v55, 0.0 }
 0x1e6   :  { %v4464_v61 = vadd.f32 %v2027_v42, %v1763_v57  ;;  %v2160_v25 = vadd.f32 %v2159_v58, %v2158_v21  ;;  %v2341_v57 = vsel %vm2151_vm2, %v2279_v31, 0.0  ;;  %v1771_v58 = vadd.f32 %v1770_v34, %v4305_v43 }
 0x1e7   :  { %v1772_v12 = vpop.f32.mrf.mxu1  ;;  %v3188_v3 = vpop.f32.mrf.mxu0  ;;  %v2342_v31 = vadd.f32 %v2341_v57, %v2340_v44  ;;  %v2347_v34 = vsel %vm2151_vm2, %v2282_v62, 0.0  ;;  %v2169_v43 = vsel %vm2151_vm2, %v4384_v53, 0.0  ;;  %v2284_v57 = vmul.f32 %v4387_v17, %v4387_v17 }
 0x1e8   :  { %v2162_v27 = vadd.f32 %v2161_v50, %v2160_v25  ;;  %v2283_v50 = vmul.f32 %v4384_v53, %v4384_v53 }
 0x1e9   :  { %v1775_v22 = vpop.f32.mrf.mxu1  ;;  %v2032_v5 = vpop.f32.mrf.mxu0 }
 0x1ea   :  { %v4477_v3 = vadd.f32 %v2032_v5, %v1768_v6  ;;  %v2164_v33 = vadd.f32 %v2163_v2, %v2162_v27  ;;  %v2345_v5 = vsel %vm2151_vm2, %v2281_v24, 0.0  ;;  %v2344_v6 = vadd.f32 %v2343_v19, %v2342_v31 }
 0x1eb   :  { %v1777_v60 = vpop.f32.mrf.mxu1  ;;  %v3191_v42 = vpop.f32.mrf.mxu0  ;;  %v1776_v2 = vadd.f32 %v1775_v22, %v4022_v4  ;;  %v2171_v19 = vsel %vm2151_vm2, %v4387_v17, 0.0  ;;  %v2351_v4 = vsel %vm2151_vm2, %v2284_v57, 0.0  ;;  %v2173_v22 = vsel %vm2151_vm2, %v4390_v40, 0.0 }
 0x1ec   :  { %v2166_v54 = vadd.f32 %v2165_v35, %v2164_v33  ;;  %v2346_v24 = vadd.f32 %v2345_v5, %v2344_v6  ;;  %v2285_v35 = vmul.f32 %v4390_v40, %v4390_v40  ;;  %v2286_v5 = vmul.f32 %v4393_v56, %v4393_v56 }
 0x1ed   :  { %v1778_v21 = vpop.f32.mrf.mxu1  ;;  %v2035_v12 = vpop.f32.mrf.mxu0 }
 0x1ee   :  { %v4490_v38 = vadd.f32 %v2035_v12, %v1771_v58  ;;  %v2168_v44 = vadd.f32 %v2167_v32, %v2166_v54  ;;  %v2349_v58 = vsel %vm2151_vm2, %v2283_v50, 0.0  ;;  %v2348_v31 = vadd.f32 %v2347_v34, %v2346_v24 }
 0x1ef   :  { %v1780_v25 = vpop.f32.mrf.mxu1  ;;  %v3192_v60 = vpop.f32.mrf.mxu0  ;;  %v1779_v32 = vadd.f32 %v1778_v21, %v4029_v8  ;;  %v2175_v34 = vsel %vm2151_vm2, %v4393_v56, 0.0  ;;  %v2355_v8 = vsel %vm2151_vm2, %v2286_v5, 0.0  ;;  %v2177_v21 = vsel %vm2151_vm2, %v4396_v36, 0.0 }
 0x1f0   :  { %v2170_v33 = vadd.f32 %v2169_v43, %v2168_v44  ;;  %v2350_v50 = vadd.f32 %v2349_v58, %v2348_v31  ;;  %v2287_v43 = vmul.f32 %v4396_v36, %v4396_v36  ;;  %v2288_v58 = vmul.f32 %v4399_v39, %v4399_v39 }
 0x1f1   :  { %v1783_v27 = vpop.f32.mrf.mxu1  ;;  %v2040_v42 = vpop.f32.mrf.mxu0 }
 0x1f2   :  { %v4503_v62 = vadd.f32 %v2040_v42, %v1776_v2  ;;  %v2172_v6 = vadd.f32 %v2171_v19, %v2170_v33  ;;  %v2353_v2 = vsel %vm2151_vm2, %v2285_v35, 0.0  ;;  %v2352_v24 = vadd.f32 %v2351_v4, %v2350_v50 }
 0x1f3   :  { %v1785_v12 = vpop.f32.mrf.mxu1  ;;  %v3195_v25 = vpop.f32.mrf.mxu0  ;;  %v1784_v19 = vadd.f32 %v1783_v27, %v4042_v14  ;;  %v2179_v4 = vsel %vm2151_vm2, %v4399_v39, 0.0  ;;  %v2359_v14 = vsel %vm2151_vm2, %v2288_v58, 0.0  ;;  %v2181_v27 = vsel %vm2151_vm2, %v4402_v20, 0.0 }
 0x1f4   :  { %v2174_v44 = vadd.f32 %v2173_v22, %v2172_v6  ;;  %v2354_v35 = vadd.f32 %v2353_v2, %v2352_v24  ;;  %v2289_v22 = vmul.f32 %v4402_v20, %v4402_v20  ;;  %v2290_v2 = vmul.f32 %v4405_v46, %v4405_v46 }
 0x1f5   :  { %v1786_v54 = vpop.f32.mrf.mxu1  ;;  %v2043_v60 = vpop.f32.mrf.mxu0 }
 0x1f6   :  { %v4516_v57 = vadd.f32 %v2043_v60, %v1779_v32  ;;  %v2176_v31 = vadd.f32 %v2175_v34, %v2174_v44  ;;  %v2357_v32 = vsel %vm2151_vm2, %v2287_v43, 0.0  ;;  %v2356_v50 = vadd.f32 %v2355_v8, %v2354_v35 }
 0x1f7   :  { %v1788_v42 = vpop.f32.mrf.mxu1  ;;  %v3196_v12 = vpop.f32.mrf.mxu0  ;;  %v1787_v34 = vadd.f32 %v1786_v54, %v4049_v18  ;;  %v2183_v8 = vsel %vm2151_vm2, %v4405_v46, 0.0  ;;  %v2363_v18 = vsel %vm2151_vm2, %v2290_v2, 0.0  ;;  %v2185_v54 = vsel %vm2151_vm2, %v4408_v0, 0.0 }
 0x1f8   :  { %v2178_v6 = vadd.f32 %v2177_v21, %v2176_v31  ;;  %v2358_v43 = vadd.f32 %v2357_v32, %v2356_v50  ;;  %v2291_v21 = vmul.f32 %v4408_v0, %v4408_v0  ;;  %v2292_v32 = vmul.f32 %v4411_v23, %v4411_v23 }
 0x1f9   :  { %v1791_v33 = vpop.f32.mrf.mxu1  ;;  %v2048_v25 = vpop.f32.mrf.mxu0 }
 0x1fa   :  { %v4529_v5 = vadd.f32 %v2048_v25, %v1784_v19  ;;  %v2180_v24 = vadd.f32 %v2179_v4, %v2178_v6  ;;  %v2361_v19 = vsel %vm2151_vm2, %v2289_v22, 0.0  ;;  %v2360_v35 = vadd.f32 %v2359_v14, %v2358_v43 }
 0x1fb   :  { %v1793_v60 = vpop.f32.mrf.mxu1  ;;  %v3199_v42 = vpop.f32.mrf.mxu0  ;;  %v1792_v4 = vadd.f32 %v1791_v33, %v4062_v26  ;;  %v2187_v14 = vsel %vm2151_vm2, %v4411_v23, 0.0  ;;  %v2367_v26 = vsel %vm2151_vm2, %v2292_v32, 0.0  ;;  %v2189_v33 = vsel %vm2151_vm2, %v4414_v9, 0.0 }
 0x1fc   :  { %v2182_v31 = vadd.f32 %v2181_v27, %v2180_v24  ;;  %v2362_v22 = vadd.f32 %v2361_v19, %v2360_v35  ;;  %v2293_v27 = vmul.f32 %v4414_v9, %v4414_v9  ;;  %v2294_v19 = vmul.f32 %v4417_v45, %v4417_v45 }
 0x1fd   :  { %v1794_v44 = vpop.f32.mrf.mxu1  ;;  %v2051_v12 = vpop.f32.mrf.mxu0 }
 0x1fe   :  { %v4542_v58 = vadd.f32 %v2051_v12, %v1787_v34  ;;  %v2184_v50 = vadd.f32 %v2183_v8, %v2182_v31  ;;  %v2365_v34 = vsel %vm2151_vm2, %v2291_v21, 0.0  ;;  %v2364_v43 = vadd.f32 %v2363_v18, %v2362_v22 }
 0x1ff   :  { %v1796_v25 = vpop.f32.mrf.mxu1  ;;  %v3200_v60 = vpop.f32.mrf.mxu0  ;;  %v1795_v8 = vadd.f32 %v1794_v44, %v4069_v30  ;;  %v2191_v18 = vsel %vm2151_vm2, %v4417_v45, 0.0  ;;  %v2371_v30 = vsel %vm2151_vm2, %v2294_v19, 0.0  ;;  %v2193_v44 = vsel %vm2151_vm2, %v4420_v7, 0.0 }
 0x200   :  { %v2186_v24 = vadd.f32 %v2185_v54, %v2184_v50  ;;  %v2366_v21 = vadd.f32 %v2365_v34, %v2364_v43  ;;  %v2295_v54 = vmul.f32 %v4420_v7, %v4420_v7  ;;  %v2296_v34 = vmul.f32 %v4423_v49, %v4423_v49 }
 0x201   :  { %v1799_v6 = vpop.f32.mrf.mxu1  ;;  %v2056_v42 = vpop.f32.mrf.mxu0 }
 0x202   :  { %v4555_v2 = vadd.f32 %v2056_v42, %v1792_v4  ;;  %v2188_v35 = vadd.f32 %v2187_v14, %v2186_v24  ;;  %v2369_v4 = vsel %vm2151_vm2, %v2293_v27, 0.0  ;;  %v2368_v22 = vadd.f32 %v2367_v26, %v2366_v21 }
 0x203   :  { %v1801_v12 = vpop.f32.mrf.mxu1  ;;  %v3203_v25 = vpop.f32.mrf.mxu0  ;;  %v1800_v14 = vadd.f32 %v1799_v6, %v4082_v37  ;;  %v2195_v26 = vsel %vm2151_vm2, %v4423_v49, 0.0  ;;  %v2375_v37 = vsel %vm2151_vm2, %v2296_v34, 0.0  ;;  %v2197_v6 = vsel %vm2151_vm2, %v4426_v47, 0.0 }
 0x204   :  { %v2190_v50 = vadd.f32 %v2189_v33, %v2188_v35  ;;  %v2370_v27 = vadd.f32 %v2369_v4, %v2368_v22  ;;  %v2297_v33 = vmul.f32 %v4426_v47, %v4426_v47  ;;  %v2298_v4 = vmul.f32 %v4429_v51, %v4429_v51 }
 0x205   :  { %v1802_v31 = vpop.f32.mrf.mxu1  ;;  %v2059_v60 = vpop.f32.mrf.mxu0 }
 0x206   :  { %v4568_v32 = vadd.f32 %v2059_v60, %v1795_v8  ;;  %v2192_v43 = vadd.f32 %v2191_v18, %v2190_v50  ;;  %v2373_v8 = vsel %vm2151_vm2, %v2295_v54, 0.0  ;;  %v2372_v21 = vadd.f32 %v2371_v30, %v2370_v27 }
 0x207   :  { %v1804_v42 = vpop.f32.mrf.mxu1  ;;  %v3204_v12 = vpop.f32.mrf.mxu0  ;;  %v1803_v18 = vadd.f32 %v1802_v31, %v4089_v41  ;;  %v2199_v30 = vsel %vm2151_vm2, %v4429_v51, 0.0  ;;  %v2379_v41 = vsel %vm2151_vm2, %v2298_v4, 0.0  ;;  %v2201_v31 = vsel %vm2151_vm2, %v4434_v15, 0.0 }
 0x208   :  { %v2194_v35 = vadd.f32 %v2193_v44, %v2192_v43  ;;  %v2374_v54 = vadd.f32 %v2373_v8, %v2372_v21  ;;  %v2299_v44 = vmul.f32 %v4434_v15, %v4434_v15  ;;  %v2300_v8 = vmul.f32 %v4450_v10, %v4450_v10 }
 0x209   :  { %v1807_v24 = vpop.f32.mrf.mxu1  ;;  %v2064_v25 = vpop.f32.mrf.mxu0 }
 0x20a   :  { %v4581_v19 = vadd.f32 %v2064_v25, %v1800_v14  ;;  %v2196_v22 = vadd.f32 %v2195_v26, %v2194_v35  ;;  %v2377_v14 = vsel %vm2151_vm2, %v2297_v33, 0.0  ;;  %v2376_v27 = vadd.f32 %v2375_v37, %v2374_v54 }
 0x20b   :  { %v1809_v60 = vpop.f32.mrf.mxu1  ;;  %v3207_v42 = vpop.f32.mrf.mxu0  ;;  %v1808_v26 = vadd.f32 %v1807_v24, %v4102_v48  ;;  %v2203_v37 = vsel %vm2151_vm2, %v4450_v10, 0.0  ;;  %v2383_v48 = vsel %vm2151_vm2, %v2300_v8, 0.0  ;;  %v2205_v24 = vsel %vm2151_vm2, %v4464_v61, 0.0 }
 0x20c   :  { %v2198_v43 = vadd.f32 %v2197_v6, %v2196_v22  ;;  %v2378_v33 = vadd.f32 %v2377_v14, %v2376_v27  ;;  %v2301_v6 = vmul.f32 %v4464_v61, %v4464_v61  ;;  %v2302_v14 = vmul.f32 %v4477_v3, %v4477_v3 }
 0x20d   :  { %v1810_v50 = vpop.f32.mrf.mxu1  ;;  %v2067_v12 = vpop.f32.mrf.mxu0 }
 0x20e   :  { %v4594_v34 = vadd.f32 %v2067_v12, %v1803_v18  ;;  %v2200_v21 = vadd.f32 %v2199_v30, %v2198_v43  ;;  %v2381_v18 = vsel %vm2151_vm2, %v2299_v44, 0.0  ;;  %v2380_v54 = vadd.f32 %v2379_v41, %v2378_v33 }
 0x20f   :  { %v1812_v25 = vpop.f32.mrf.mxu1  ;;  %v3208_v60 = vpop.f32.mrf.mxu0  ;;  %v1811_v30 = vadd.f32 %v1810_v50, %v4109_v52  ;;  %v2207_v41 = vsel %vm2151_vm2, %v4477_v3, 0.0  ;;  %v2387_v52 = vsel %vm2151_vm2, %v2302_v14, 0.0  ;;  %v2209_v50 = vsel %vm2151_vm2, %v4490_v38, 0.0 }
 0x210   :  { %v2202_v22 = vadd.f32 %v2201_v31, %v2200_v21  ;;  %v2382_v44 = vadd.f32 %v2381_v18, %v2380_v54  ;;  %v2303_v31 = vmul.f32 %v4490_v38, %v4490_v38  ;;  %v2304_v18 = vmul.f32 %v4503_v62, %v4503_v62 }
 0x211   :  { %v1815_v35 = vpop.f32.mrf.mxu1  ;;  %v2072_v42 = vpop.f32.mrf.mxu0 }
 0x212   :  { %v4607_v4 = vadd.f32 %v2072_v42, %v1808_v26  ;;  %v2204_v27 = vadd.f32 %v2203_v37, %v2202_v22  ;;  %v2385_v26 = vsel %vm2151_vm2, %v2301_v6, 0.0  ;;  %v2384_v33 = vadd.f32 %v2383_v48, %v2382_v44 }
 0x213   :  { %v1817_v12 = vpop.f32.mrf.mxu1  ;;  %v3211_v25 = vpop.f32.mrf.mxu0  ;;  %v1816_v37 = vadd.f32 %v1815_v35, %v4122_v59  ;;  %v2211_v48 = vsel %vm2151_vm2, %v4503_v62, 0.0  ;;  %v2391_v59 = vsel %vm2151_vm2, %v2304_v18, 0.0  ;;  %v2213_v35 = vsel %vm2151_vm2, %v4516_v57, 0.0 }
 0x214   :  { %5929 = vst [vmem:[#allocation20_spill] sm:$0xff] %v4607_v4  ;;  %v2206_v21 = vadd.f32 %v2205_v24, %v2204_v27  ;;  %v2386_v6 = vadd.f32 %v2385_v26, %v2384_v33  ;;  %v2305_v24 = vmul.f32 %v4516_v57, %v4516_v57  ;;  %v2306_v26 = vmul.f32 %v4529_v5, %v4529_v5 }
 0x215   :  { %v1818_v43 = vpop.f32.mrf.mxu1  ;;  %v2075_v60 = vpop.f32.mrf.mxu0 }
 0x216   :  { %v4620_v8 = vadd.f32 %v2075_v60, %v1811_v30  ;;  %v2208_v54 = vadd.f32 %v2207_v41, %v2206_v21  ;;  %v2389_v30 = vsel %vm2151_vm2, %v2303_v31, 0.0  ;;  %v2388_v44 = vadd.f32 %v2387_v52, %v2386_v6 }
 0x217   :  { %v1820_v42 = vpop.f32.mrf.mxu1  ;;  %v3212_v12 = vpop.f32.mrf.mxu0  ;;  %v1819_v41 = vadd.f32 %v1818_v43, %v4129_v63  ;;  %v2215_v52 = vsel %vm2151_vm2, %v4529_v5, 0.0  ;;  %v2395_v63 = vsel %vm2151_vm2, %v2306_v26, 0.0  ;;  %v2217_v43 = vsel %vm2151_vm2, %v4542_v58, 0.0 }
 0x218   :  { %v2210_v27 = vadd.f32 %v2209_v50, %v2208_v54  ;;  %v2390_v31 = vadd.f32 %v2389_v30, %v2388_v44  ;;  %v2307_v50 = vmul.f32 %v4542_v58, %v4542_v58  ;;  %v2308_v30 = vmul.f32 %v4555_v2, %v4555_v2 }
 0x219   :  { %v1823_v22 = vpop.f32.mrf.mxu1  ;;  %v2080_v25 = vpop.f32.mrf.mxu0 }
 0x21a   :  { %v4633_v14 = vadd.f32 %v2080_v25, %v1816_v37  ;;  %v2212_v33 = vadd.f32 %v2211_v48, %v2210_v27  ;;  %v2393_v37 = vsel %vm2151_vm2, %v2305_v24, 0.0  ;;  %v2392_v6 = vadd.f32 %v2391_v59, %v2390_v31 }
 0x21b   :  { %v1825_v60 = vpop.f32.mrf.mxu1  ;;  %v3215_v42 = vpop.f32.mrf.mxu0  ;;  %v1824_v48 = vadd.f32 %v1823_v22, %v4142_v11  ;;  %v2219_v59 = vsel %vm2151_vm2, %v4555_v2, 0.0  ;;  %v2399_v11 = vsel %vm2151_vm2, %v2308_v30, 0.0  ;;  %v2221_v22 = vsel %vm2151_vm2, %v4568_v32, 0.0 }
 0x21c   :  { %5930 = vst [vmem:[#allocation21_spill] sm:$0xff] %v4633_v14  ;;  %v2214_v54 = vadd.f32 %v2213_v35, %v2212_v33  ;;  %v2394_v24 = vadd.f32 %v2393_v37, %v2392_v6  ;;  %v2309_v35 = vmul.f32 %v4568_v32, %v4568_v32  ;;  %v2310_v37 = vmul.f32 %v4581_v19, %v4581_v19 }
 0x21d   :  { %v1826_v21 = vpop.f32.mrf.mxu1  ;;  %v2083_v12 = vpop.f32.mrf.mxu0 }
 0x21e   :  { %v4646_v18 = vadd.f32 %v2083_v12, %v1819_v41  ;;  %v2216_v44 = vadd.f32 %v2215_v52, %v2214_v54  ;;  %v2397_v41 = vsel %vm2151_vm2, %v2307_v50, 0.0  ;;  %v2396_v31 = vadd.f32 %v2395_v63, %v2394_v24 }
 0x21f   :  { %v1828_v25 = vpop.f32.mrf.mxu1  ;;  %v3216_v60 = vpop.f32.mrf.mxu0  ;;  %v1827_v52 = vadd.f32 %v1826_v21, %v4149_v16  ;;  %v2223_v63 = vsel %vm2151_vm2, %v4581_v19, 0.0  ;;  %v2403_v16 = vsel %vm2151_vm2, %v2310_v37, 0.0  ;;  %v2225_v21 = vsel %vm2151_vm2, %v4594_v34, 0.0 }
 0x220   :  { %5931 = vst [vmem:[#allocation22_spill] sm:$0xff] %v4646_v18  ;;  %v2218_v33 = vadd.f32 %v2217_v43, %v2216_v44  ;;  %v2398_v50 = vadd.f32 %v2397_v41, %v2396_v31  ;;  %v2311_v43 = vmul.f32 %v4594_v34, %v4594_v34  ;;  %v2312_v41 = vmul.f32 %v4607_v4, %v4607_v4 }
 0x221   :  { %v1831_v27 = vpop.f32.mrf.mxu1  ;;  %v2088_v42 = vpop.f32.mrf.mxu0 }
 0x222   :  { %v4659_v26 = vadd.f32 %v2088_v42, %v1824_v48  ;;  %v2220_v6 = vadd.f32 %v2219_v59, %v2218_v33  ;;  %v2401_v48 = vsel %vm2151_vm2, %v2309_v35, 0.0  ;;  %v2400_v24 = vadd.f32 %v2399_v11, %v2398_v50 }
 0x223   :  { %v1833_v12 = vpop.f32.mrf.mxu1  ;;  %v3219_v25 = vpop.f32.mrf.mxu0  ;;  %v1832_v59 = vadd.f32 %v1831_v27, %v4162_v28  ;;  %v2227_v11 = vsel %vm2151_vm2, %v4607_v4, 0.0  ;;  %v2407_v28 = vsel %vm2151_vm2, %v2312_v41, 0.0  ;;  %v2229_v27 = vsel %vm2151_vm2, %v4620_v8, 0.0 }
 0x224   :  { %5932 = vst [vmem:[#allocation23_spill] sm:$0xff] %v4659_v26  ;;  %v2222_v44 = vadd.f32 %v2221_v22, %v2220_v6  ;;  %v2402_v35 = vadd.f32 %v2401_v48, %v2400_v24  ;;  %v2313_v22 = vmul.f32 %v4620_v8, %v4620_v8  ;;  %v2314_v48 = vmul.f32 %v4633_v14, %v4633_v14 }
 0x225   :  { %v1834_v54 = vpop.f32.mrf.mxu1  ;;  %v2091_v60 = vpop.f32.mrf.mxu0 }
 0x226   :  { %v4672_v30 = vadd.f32 %v2091_v60, %v1827_v52  ;;  %v2224_v31 = vadd.f32 %v2223_v63, %v2222_v44  ;;  %v2405_v52 = vsel %vm2151_vm2, %v2311_v43, 0.0  ;;  %v2404_v50 = vadd.f32 %v2403_v16, %v2402_v35  ;;  %v5935_v63 = vld [vmem:[#allocation2_spill] sm:$0xff] }
 0x227   :  { %v1836_v42 = vpop.f32.mrf.mxu1  ;;  %v3220_v12 = vpop.f32.mrf.mxu0  ;;  %v1835_v43 = vadd.f32 %v1834_v54, %v5935_v63  ;;  %v2231_v16 = vsel %vm2151_vm2, %v4633_v14, 0.0  ;;  %v2411_v54 = vsel %vm2151_vm2, %v2314_v48, 0.0 }
 0x228   :  { %5933 = vst [vmem:[#allocation24_spill] sm:$0xff] %v4672_v30  ;;  %v2226_v6 = vadd.f32 %v2225_v21, %v2224_v31  ;;  %v2406_v24 = vadd.f32 %v2405_v52, %v2404_v50  ;;  %v2315_v21 = vmul.f32 %v4646_v18, %v4646_v18  ;;  %v2233_v52 = vsel %vm2151_vm2, %v4646_v18, 0.0 }
 0x229   :  { %v1839_v33 = vpop.f32.mrf.mxu1  ;;  %v2096_v25 = vpop.f32.mrf.mxu0 }
 0x22a   :  { %v4685_v37 = vadd.f32 %v2096_v25, %v1832_v59  ;;  %v2228_v44 = vadd.f32 %v2227_v11, %v2226_v6  ;;  %v2409_v59 = vsel %vm2151_vm2, %v2313_v22, 0.0  ;;  %v2408_v35 = vadd.f32 %v2407_v28, %v2406_v24  ;;  %v5937_v22 = vld [vmem:[#allocation3_spill] sm:$0xff] }
 0x22b   :  { %v1841_v60 = vpop.f32.mrf.mxu1  ;;  %v3223_v42 = vpop.f32.mrf.mxu0  ;;  %v2316_v11 = vmul.f32 %v4659_v26, %v4659_v26  ;;  %v1840_v50 = vadd.f32 %v1839_v33, %v5937_v22  ;;  %v2235_v28 = vsel %vm2151_vm2, %v4659_v26, 0.0 }
 0x22c   :  { %5934 = vst [vmem:[#allocation25_spill] sm:$0xff] %v4685_v37  ;;  %v2230_v31 = vadd.f32 %v2229_v27, %v2228_v44  ;;  %v2410_v6 = vadd.f32 %v2409_v59, %v2408_v35  ;;  %v2317_v27 = vmul.f32 %v4672_v30, %v4672_v30  ;;  %v2237_v59 = vsel %vm2151_vm2, %v4672_v30, 0.0 }
 0x22d   :  { %v1842_v12 = vpop.f32.mrf.mxu1  ;;  %v2099_v4 = vpop.f32.mrf.mxu0  ;;  %v2415_v33 = vsel %vm2151_vm2, %v2316_v11, 0.0 }
 0x22e   :  { %v4698_v41 = vadd.f32 %v2099_v4, %v1835_v43  ;;  %v2232_v42 = vadd.f32 %v2231_v16, %v2230_v31  ;;  %v2413_v4 = vsel %vm2151_vm2, %v2315_v21, 0.0  ;;  %v2412_v43 = vadd.f32 %v2411_v54, %v2410_v6  ;;  %v5939_v21 = vld [vmem:[#allocation4_spill] sm:$0xff] }
 0x22f   :  { %v1844_v25 = vpop.f32.mrf.mxu1  ;;  %v3224_v60 = vpop.f32.mrf.mxu0  ;;  %v2318_v16 = vmul.f32 %v4685_v37, %v4685_v37  ;;  %v1843_v35 = vadd.f32 %v1842_v12, %v5939_v21  ;;  %v2239_v54 = vsel %vm2151_vm2, %v4685_v37, 0.0 }
 0x230   :  { %5936 = vst [vmem:[#allocation2_spill] sm:$0xff] %v4698_v41  ;;  %v2234_v24 = vadd.f32 %v2233_v52, %v2232_v42  ;;  %v2414_v31 = vadd.f32 %v2413_v4, %v2412_v43  ;;  %v2319_v52 = vmul.f32 %v4698_v41, %v4698_v41  ;;  %v2241_v4 = vsel %vm2151_vm2, %v4698_v41, 0.0 }
 0x231   :  { %v1847_v63 = vpop.f32.mrf.mxu1  ;;  %v2104_v14 = vpop.f32.mrf.mxu0  ;;  %v2419_v12 = vsel %vm2151_vm2, %v2318_v16, 0.0 }
 0x232   :  { %v4711_v48 = vadd.f32 %v2104_v14, %v1840_v50  ;;  %v2236_v60 = vadd.f32 %v2235_v28, %v2234_v24  ;;  %v2417_v14 = vsel %vm2151_vm2, %v2317_v27, 0.0  ;;  %v2416_v50 = vadd.f32 %v2415_v33, %v2414_v31  ;;  %v5941_v28 = vld [vmem:[#allocation5_spill] sm:$0xff] }
 0x233   :  { %v1849_v44 = vpop.f32.mrf.mxu1  ;;  %v3227_v25 = vpop.f32.mrf.mxu0  ;;  %v1848_v43 = vadd.f32 %v1847_v63, %v5941_v28 }
 0x234   :  { %5938 = vst [vmem:[#allocation3_spill] sm:$0xff] %v4711_v48  ;;  %v2238_v6 = vadd.f32 %v2237_v59, %v2236_v60  ;;  %v2320_v27 = vmul.f32 %v4711_v48, %v4711_v48  ;;  %v2418_v24 = vadd.f32 %v2417_v14, %v2416_v50  ;;  %v2243_v33 = vsel %vm2151_vm2, %v4711_v48, 0.0  ;;  %v5943_v14 = vld [vmem:[#allocation6_spill] sm:$0xff] }
 0x235   :  { %v1850_v22 = vpop.f32.mrf.mxu1  ;;  %v2107_v26 = vpop.f32.mrf.mxu0 }
 0x236   :  { %v4724_v11 = vadd.f32 %v2107_v26, %v1843_v35  ;;  %v2240_v25 = vadd.f32 %v2239_v54, %v2238_v6  ;;  %v2421_v26 = vsel %vm2151_vm2, %v2319_v52, 0.0  ;;  %v2420_v35 = vadd.f32 %v2419_v12, %v2418_v24 }
 0x237   :  { %v1852_v42 = vpop.f32.mrf.mxu1  ;;  %v3228_v44 = vpop.f32.mrf.mxu0  ;;  %v1851_v54 = vadd.f32 %v1850_v22, %v5943_v14 }
 0x238   :  { %5940 = vst [vmem:[#allocation4_spill] sm:$0xff] %v4724_v11  ;;  %v2321_v59 = vmul.f32 %v4724_v11, %v4724_v11  ;;  %v2242_v31 = vadd.f32 %v2241_v4, %v2240_v25  ;;  %v2423_v42 = vsel %vm2151_vm2, %v2320_v27, 0.0  ;;  %v2245_v50 = vsel %vm2151_vm2, %v4724_v11, 0.0  ;;  %v5944_v25 = vld [vmem:[#allocation7_spill] sm:$0xff] }
 0x239   :  { %v1855_v21 = vpop.f32.mrf.mxu1  ;;  %v2112_v37 = vpop.f32.mrf.mxu0  ;;  %v2422_v6 = vadd.f32 %v2421_v26, %v2420_v35 }
 0x23a   :  { %v4737_v16 = vadd.f32 %v2112_v37, %v1848_v43  ;;  %v2244_v44 = vadd.f32 %v2243_v33, %v2242_v31  ;;  %v2425_v37 = vsel %vm2151_vm2, %v2321_v59, 0.0 }
 0x23b   :  { %v1857_v63 = vpop.f32.mrf.mxu1  ;;  %v3231_v60 = vpop.f32.mrf.mxu0  ;;  %v2424_v43 = vadd.f32 %v2423_v42, %v2422_v6 }
 0x23c   :  { %5942 = vst [vmem:[#allocation5_spill] sm:$0xff] %v4737_v16  ;;  %v2322_v52 = vmul.f32 %v4737_v16, %v4737_v16  ;;  %v2247_v12 = vsel %vm2151_vm2, %v4737_v16, 0.0  ;;  %v2246_v27 = vadd.f32 %v2245_v50, %v2244_v44  ;;  %v1856_v63 = vadd.f32 %v1855_v21, %v5944_v25  ;;  %v5945_v44 = vld [vmem:[#allocation8_spill] sm:$0xff] }
 0x23d   :  { %v1858_v28 = vpop.f32.mrf.mxu1  ;;  %v2115_v48 = vpop.f32.mrf.mxu0  ;;  %v2426_v59 = vadd.f32 %v2425_v37, %v2424_v43 }
 0x23e   :  { %v4748_v4 = vadd.f32 %v2115_v48, %v1851_v54  ;;  %v2427_v60 = vsel %vm2151_vm2, %v2322_v52, 0.0  ;;  %v2248_v35 = vadd.f32 %v2247_v12, %v2246_v27  ;;  %v1859_v52 = vadd.f32 %v1858_v28, %v5945_v44 }
 0x23f   :  { %v1860_v22 = vpop.f32.mrf.mxu1  ;;  %v3232_v24 = vpop.f32.mrf.mxu0  ;;  %v2428_v54 = vadd.f32 %v2427_v60, %v2426_v59  ;;  %v5946_v59 = vld [vmem:[#allocation9_spill] sm:$0xff] }
 0x240   :  { %v2249_v26 = vsel %vm2151_vm2, %v4748_v4, 0.0  ;;  %v2323_v33 = vmul.f32 %v4748_v4, %v4748_v4 }
 0x241   :  { %v1863_v31 = vpop.f32.mrf.mxu1  ;;  %v2120_v14 = vpop.f32.mrf.mxu0  ;;  %v2250_v50 = vadd.f32 %v2249_v26, %v2248_v35 }
 0x242   :  { %v2429_v48 = vsel %vm2151_vm2, %v2323_v33, 0.0  ;;  %v4757_v42 = vadd.f32 %v2120_v14, %v1856_v63  ;;  %v1864_v35 = vadd.f32 %v1863_v31, %v5946_v59 }
 0x243   :  { %v1865_v6 = vpop.f32.mrf.mxu1  ;;  %v3235_v21 = vpop.f32.mrf.mxu0  ;;  %v2430_v37 = vadd.f32 %v2429_v48, %v2428_v54 }
 0x244   :  { %v2251_v22 = vsel %vm2151_vm2, %v4757_v42, 0.0  ;;  %v2324_v24 = vmul.f32 %v4757_v42, %v4757_v42 }
 0x245   :  { %v2252_v12 = vadd.f32 %v2251_v22, %v2250_v50  ;;  %v1866_v43 = vpop.f32.mrf.mxu1  ;;  %v2123_v27 = vpop.f32.mrf.mxu0 }
 0x246   :  { %v2431_v25 = vsel %vm2151_vm2, %v2324_v24, 0.0  ;;  %v4765_v63 = vadd.f32 %v2123_v27, %v1859_v52  ;;  %v5948_v24 = vld [vmem:[#allocation10_spill] sm:$0xff] }
 0x247   :  { %v2432_v60 = vadd.f32 %v2431_v25, %v2430_v37  ;;  %v1868_v26 = vpop.f32.mrf.mxu1  ;;  %v3236_v33 = vpop.f32.mrf.mxu0  ;;  %v1867_v37 = vadd.f32 %v1866_v43, %v5948_v24 }
 0x248   :  { %v2253_v28 = vsel %vm2151_vm2, %v4765_v63, 0.0  ;;  %v2325_v14 = vmul.f32 %v4765_v63, %v4765_v63 }
 0x249   :  { %v2254_v6 = vadd.f32 %v2253_v28, %v2252_v12  ;;  %v1871_v48 = vpop.f32.mrf.mxu1  ;;  %v2128_v54 = vpop.f32.mrf.mxu0 }
 0x24a   :  { %v2433_v50 = vsel %vm2151_vm2, %v2325_v14, 0.0  ;;  %v4773_v21 = vadd.f32 %v2128_v54, %v1864_v35  ;;  %v5950_v14 = vld [vmem:[#allocation11_spill] sm:$0xff] }
 0x24b   :  { %v2434_v44 = vadd.f32 %v2433_v50, %v2432_v60  ;;  %v1873_v52 = vpop.f32.mrf.mxu1  ;;  %v3239_v22 = vpop.f32.mrf.mxu0  ;;  %v1872_v54 = vadd.f32 %v1871_v48, %v5950_v14 }
 0x24c   :  { %5947 = vst [vmem:[#allocation6_spill] sm:$0xff] %v4773_v21  ;;  %v2255_v31 = vsel %vm2151_vm2, %v4773_v21, 0.0  ;;  %v2326_v27 = vmul.f32 %v4773_v21, %v4773_v21 }
 0x24d   :  { %v2256_v25 = vadd.f32 %v2255_v31, %v2254_v6  ;;  %v1874_v26 = vpop.f32.mrf.mxu1  ;;  %v2131_v12 = vpop.f32.mrf.mxu0 }
 0x24e   :  { %v2435_v33 = vsel %vm2151_vm2, %v2326_v27, 0.0  ;;  %v4781_v59 = vadd.f32 %v2131_v12, %v1867_v37  ;;  %v5952_v12 = vld [vmem:[#allocation12_spill] sm:$0xff] }
 0x24f   :  { %v2436_v35 = vadd.f32 %v2435_v33, %v2434_v44  ;;  %v1876_v28 = vpop.f32.mrf.mxu1  ;;  %v3240_v60 = vpop.f32.mrf.mxu0  ;;  %v1875_v33 = vadd.f32 %v1874_v26, %v5952_v12 }
 0x250   :  { %5949 = vst [vmem:[#allocation7_spill] sm:$0xff] %v4781_v59  ;;  %v2257_v43 = vsel %vm2151_vm2, %v4781_v59, 0.0  ;;  %v2327_v50 = vmul.f32 %v4781_v59, %v4781_v59 }
 0x251   :  { %v2258_v52 = vadd.f32 %v2257_v43, %v2256_v25  ;;  %v1879_v22 = vpop.f32.mrf.mxu1  ;;  %v2136_v6 = vpop.f32.mrf.mxu0 }
 0x252   :  { %v2437_v24 = vsel %vm2151_vm2, %v2327_v50, 0.0  ;;  %v4789_v31 = vadd.f32 %v2136_v6, %v1872_v54  ;;  %v5954_v6 = vld [vmem:[#allocation13_spill] sm:$0xff] }
 0x253   :  { %v2438_v37 = vadd.f32 %v2437_v24, %v2436_v35  ;;  %v1881_v27 = vpop.f32.mrf.mxu1  ;;  %v3243_v44 = vpop.f32.mrf.mxu0  ;;  %v1880_v24 = vadd.f32 %v1879_v22, %v5954_v6 }
 0x254   :  { %5951 = vst [vmem:[#allocation8_spill] sm:$0xff] %v4789_v31  ;;  %v2259_v48 = vsel %vm2151_vm2, %v4789_v31, 0.0  ;;  %v2328_v28 = vmul.f32 %v4789_v31, %v4789_v31 }
 0x255   :  { %v2260_v60 = vadd.f32 %v2259_v48, %v2258_v52  ;;  %v1882_v14 = vpop.f32.mrf.mxu1  ;;  %v2139_v25 = vpop.f32.mrf.mxu0 }
 0x256   :  { %v2439_v43 = vsel %vm2151_vm2, %v2328_v28, 0.0  ;;  %v4797_v16 = vadd.f32 %v2139_v25, %v1875_v33  ;;  %v5956_v25 = vld [vmem:[#allocation14_spill] sm:$0xff] }
 0x257   :  { %v2440_v54 = vadd.f32 %v2439_v43, %v2438_v37  ;;  %v3244_v50 = vpop.f32.mrf.mxu0  ;;  %v1884_v35 = vpop.f32.mrf.mxu1  ;;  %v1883_v37 = vadd.f32 %v1882_v14, %v5956_v25 }
 0x258   :  { %5953 = vst [vmem:[#allocation9_spill] sm:$0xff] %v4797_v16  ;;  %v2261_v26 = vsel %vm2151_vm2, %v4797_v16, 0.0  ;;  %v2329_v27 = vmul.f32 %v4797_v16, %v4797_v16 }
 0x259   :  { %v2262_v44 = vadd.f32 %v2261_v26, %v2260_v60  ;;  %v2144_v12 = vpop.f32.mrf.mxu0 }
 0x25a   :  { %v2441_v52 = vsel %vm2151_vm2, %v2329_v27, 0.0  ;;  %v4805_v48 = vadd.f32 %v2144_v12, %v1880_v24 }
 0x25b   :  { %v2442_v28 = vadd.f32 %v2441_v52, %v2440_v54  ;;  %v3247_v33 = vpop.f32.mrf.mxu0 }
 0x25c   :  { %5955 = vst [vmem:[#allocation10_spill] sm:$0xff] %v4805_v48  ;;  %v2263_v43 = vsel %vm2151_vm2, %v4805_v48, 0.0  ;;  %v2330_v22 = vmul.f32 %v4805_v48, %v4805_v48  ;;  %v5972_v48 = vld [vmem:[#allocation5_spill] sm:$0xff] }
 0x25d   :  { %v2264_v50 = vadd.f32 %v2263_v43, %v2262_v44  ;;  %v2147_v35 = vpop.f32.mrf.mxu0 }
 0x25e   :  { %v2443_v6 = vsel %vm2151_vm2, %v2330_v22, 0.0  ;;  %v4813_v60 = vadd.f32 %v2147_v35, %v1883_v37 }
 0x25f   :  { %v2444_v26 = vadd.f32 %v2443_v6, %v2442_v28  ;;  %v3248_v27 = vpop.f32.mrf.mxu0 }
 0x260   :  { %5957 = vst [vmem:[#allocation11_spill] sm:$0xff] %v4813_v60  ;;  %v2265_v54 = vsel %vm2151_vm2, %v4813_v60, 0.0  ;;  %v2331_v14 = vmul.f32 %v4813_v60, %v4813_v60  ;;  %v5971_v60 = vld [vmem:[#allocation4_spill] sm:$0xff] }
 0x261   :  { %v2266_v24 = vadd.f32 %v2265_v54, %v2264_v50 }
 0x262   :  { %v2445_v12 = vsel %vm2151_vm2, %v2331_v14, 0.0 }
 0x263   :  { %v2267_v52 = vrot.slane %v2266_v24, 4  ;;  %v2446_v33 = vadd.f32 %v2445_v12, %v2444_v26  ;;  %v5970_v26 = vld [vmem:[#allocation3_spill] sm:$0xff] }
 0x265   :  { %v2268_v25 = vadd.f32 %v2267_v52, %v2266_v24  ;;  %v2447_v44 = vrot.slane %v2446_v33, 4 }
 0x267   :  { %v2269_v43 = vrot.slane %v2268_v25, 2  ;;  %v2448_v11 = vadd.f32 %v2447_v44, %v2446_v33  ;;  %v5958_v44 = vld [vmem:[#allocation15_spill] sm:$0xff] }
 0x269   :  { %v2270_v22 = vadd.f32 %v2269_v43, %v2268_v25  ;;  %v2449_v37 = vrot.slane %v2448_v11, 2 }
 0x26b   :  { %v2271_v35 = vrot.slane %v2270_v22, 1  ;;  %v2450_v28 = vadd.f32 %v2449_v37, %v2448_v11 }
 0x26d   :  { %v2272_v6 = vadd.f32 %v2271_v35, %v2270_v22  ;;  %v2451_v27 = vrot.slane %v2450_v28, 1  ;;  %v5959_v22 = vld [vmem:[#allocation16_spill] sm:$0xff]  ;;  %v5960_v35 = vld [vmem:[#allocation17_spill] sm:$0xff] }
 0x26f   :  { %v4820_v41 = vmul.f32 0.0022222223, %v2272_v6  ;;  %v2452_v30 = vadd.f32 %v2451_v27, %v2450_v28  ;;  %v5961_v6 = vld [vmem:[#allocation18_spill] sm:$0xff] }
 0x271   :  { %v2453_v18 = vmul.f32 0.0022222223, %v2452_v30  ;;  %v2454_v50 = vmul.f32 %v4820_v41, %v4820_v41  ;;  %v2456_v43 = vsub.f32 %v5958_v44, %v4820_v41  ;;  %v2457_v37 = vsub.f32 %v5959_v22, %v4820_v41 }
 0x272   :  { %v2458_v28 = vsub.f32 %v5960_v35, %v4820_v41  ;;  %v2459_v27 = vsub.f32 %v5961_v6, %v4820_v41  ;;  %v2461_v33 = vsub.f32 %v4365_v13, %v4820_v41  ;;  %v2464_v44 = vsub.f32 %v4381_v55, %v4820_v41 }
 0x273   :  { %v2455_v54 = vsub.f32 %v2453_v18, %v2454_v50  ;;  %v5962_v50 = vld [vmem:[#allocation19_spill] sm:$0xff]  ;;  %v2465_v22 = vsub.f32 %v4384_v53, %v4820_v41  ;;  %v2466_v35 = vsub.f32 %v4387_v17, %v4820_v41  ;;  %v2467_v6 = vsub.f32 %v4390_v40, %v4820_v41 }
 0x274   :  { %v2460_v52 = vsub.f32 %v5962_v50, %v4820_v41  ;;  %v2468_v13 = vsub.f32 %v4393_v56, %v4820_v41  ;;  %v2471_v55 = vsub.f32 %v4402_v20, %v4820_v41  ;;  %v2472_v53 = vsub.f32 %v4405_v46, %v4820_v41 }
 0x275   :  { %v2514_v25 = vadd.f32 1e-05, %v2455_v54  ;;  %v2462_v54 = vsub.f32 %v4369_v29, %v4820_v41  ;;  %v2469_v29 = vsub.f32 %v4396_v36, %v4820_v41  ;;  %v2473_v17 = vsub.f32 %v4408_v0, %v4820_v41 }
 0x276   :  { %v2474_v40 = vsub.f32 %v4411_v23, %v4820_v41  ;;  %v2475_v56 = vsub.f32 %v4414_v9, %v4820_v41  ;;  %v2476_v36 = vsub.f32 %v4417_v45, %v4820_v41  ;;  %v2478_v20 = vsub.f32 %v4423_v49, %v4820_v41 }
 0x277   :  { %3523 = vrsqrt.f32 %v2514_v25  ;;  %v2463_v25 = vsub.f32 %v4377_v1, %v4820_v41  ;;  %v2470_v1 = vsub.f32 %v4399_v39, %v4820_v41  ;;  %v2477_v39 = vsub.f32 %v4420_v7, %v4820_v41 }
 0x278   :  { %v2479_v46 = vsub.f32 %v4426_v47, %v4820_v41  ;;  %v2480_v0 = vsub.f32 %v4429_v51, %v4820_v41  ;;  %v2481_v23 = vsub.f32 %v4434_v15, %v4820_v41  ;;  %v2482_v9 = vsub.f32 %v4450_v10, %v4820_v41 }
 0x279   :  { %v2483_v45 = vsub.f32 %v4464_v61, %v4820_v41  ;;  %v2484_v7 = vsub.f32 %v4477_v3, %v4820_v41  ;;  %v2485_v49 = vsub.f32 %v4490_v38, %v4820_v41  ;;  %v2486_v47 = vsub.f32 %v4503_v62, %v4820_v41 }
 0x27a   :  { %v2487_v51 = vsub.f32 %v4516_v57, %v4820_v41  ;;  %v2488_v15 = vsub.f32 %v4529_v5, %v4820_v41  ;;  %v2489_v10 = vsub.f32 %v4542_v58, %v4820_v41  ;;  %v2490_v61 = vsub.f32 %v4555_v2, %v4820_v41  ;;  %v5963_v57 = vld [vmem:[#allocation20_spill] sm:$0xff]  ;;  %v5964_v58 = vld [vmem:[#allocation21_spill] sm:$0xff]  ;;  %v5965_v2 = vld [vmem:[#allocation22_spill] sm:$0xff] }
 0x27b   :  { %v2491_v3 = vsub.f32 %v4568_v32, %v4820_v41  ;;  %v2492_v38 = vsub.f32 %v4581_v19, %v4820_v41  ;;  %v2493_v62 = vsub.f32 %v4594_v34, %v4820_v41  ;;  %v2494_v50 = vsub.f32 %v5963_v57, %v4820_v41  ;;  %v5966_v32 = vld [vmem:[#allocation23_spill] sm:$0xff]  ;;  %v5967_v19 = vld [vmem:[#allocation24_spill] sm:$0xff]  ;;  %v5968_v34 = vld [vmem:[#allocation25_spill] sm:$0xff] }
 0x27c   :  { %v2495_v5 = vsub.f32 %v4620_v8, %v4820_v41  ;;  %v2496_v18 = vsub.f32 %v5964_v58, %v4820_v41  ;;  %v2497_v30 = vsub.f32 %v5965_v2, %v4820_v41  ;;  %v2498_v12 = vsub.f32 %v5966_v32, %v4820_v41  ;;  %v5969_v57 = vld [vmem:[#allocation2_spill] sm:$0xff] }
 0x27d   :  { %v2499_v11 = vsub.f32 %v5967_v19, %v4820_v41  ;;  %v2500_v24 = vsub.f32 %v5968_v34, %v4820_v41  ;;  %v2501_v8 = vsub.f32 %v5969_v57, %v4820_v41  ;;  %v2502_v58 = vsub.f32 %v5970_v26, %v4820_v41 }
 0x27e   :  { %v2503_v2 = vsub.f32 %v5971_v60, %v4820_v41  ;;  %v2504_v32 = vsub.f32 %v5972_v48, %v4820_v41 }
 0x284   :  { %v4932_v14 = vpop.eup %3523 }
 0x285   :  { %v2516_v16 = vmul.f32 %v4932_v14, %v2456_v43  ;;  %v2517_v19 = vmul.f32 %v4932_v14, %v2457_v37  ;;  %v2518_v34 = vmul.f32 %v4932_v14, %v2458_v28  ;;  %v2519_v31 = vmul.f32 %v4932_v14, %v2459_v27 }
 0x286   :  { %v2520_v59 = vmul.f32 %v4932_v14, %v2460_v52  ;;  %v2521_v57 = vmul.f32 %v4932_v14, %v2461_v33  ;;  %v2522_v26 = vmul.f32 %v4932_v14, %v2462_v54  ;;  %v2523_v21 = vmul.f32 %v4932_v14, %v2463_v25 }
 0x287   :  { %v2524_v60 = vmul.f32 %v4932_v14, %v2464_v44  ;;  %v2525_v48 = vmul.f32 %v4932_v14, %v2465_v22  ;;  %v2526_v43 = vmul.f32 %v4932_v14, %v2466_v35  ;;  %v2527_v37 = vmul.f32 %v4932_v14, %v2467_v6 }
 0x288   :  { %v2528_v28 = vmul.f32 %v4932_v14, %v2468_v13  ;;  %v2529_v27 = vmul.f32 %v4932_v14, %v2469_v29  ;;  %v2530_v52 = vmul.f32 %v4932_v14, %v2470_v1  ;;  %v2531_v33 = vmul.f32 %v4932_v14, %v2471_v55 }
 0x289   :  { %v2532_v54 = vmul.f32 %v4932_v14, %v2472_v53  ;;  %v2533_v25 = vmul.f32 %v4932_v14, %v2473_v17  ;;  %v2534_v44 = vmul.f32 %v4932_v14, %v2474_v40  ;;  %v2535_v22 = vmul.f32 %v4932_v14, %v2475_v56 }
 0x28a   :  { %v2536_v35 = vmul.f32 %v4932_v14, %v2476_v36  ;;  %v2537_v6 = vmul.f32 %v4932_v14, %v2477_v39  ;;  %v2538_v13 = vmul.f32 %v4932_v14, %v2478_v20  ;;  %v2539_v29 = vmul.f32 %v4932_v14, %v2479_v46 }
 0x28b   :  { %v2540_v1 = vmul.f32 %v4932_v14, %v2480_v0  ;;  %v2541_v55 = vmul.f32 %v4932_v14, %v2481_v23  ;;  %v2542_v53 = vmul.f32 %v4932_v14, %v2482_v9  ;;  %v2543_v17 = vmul.f32 %v4932_v14, %v2483_v45 }
 0x28c   :  { %v2544_v40 = vmul.f32 %v4932_v14, %v2484_v7  ;;  %v2545_v56 = vmul.f32 %v4932_v14, %v2485_v49  ;;  %v2546_v36 = vmul.f32 %v4932_v14, %v2486_v47  ;;  %v2547_v39 = vmul.f32 %v4932_v14, %v2487_v51 }
 0x28d   :  { %v2548_v20 = vmul.f32 %v4932_v14, %v2488_v15  ;;  %v2549_v46 = vmul.f32 %v4932_v14, %v2489_v10  ;;  %v2550_v0 = vmul.f32 %v4932_v14, %v2490_v61  ;;  %v2551_v23 = vmul.f32 %v4932_v14, %v2491_v3  ;;  %v4989_v61 = vld [vmem:[%s5851_s2] ss:$0 sm:$0xff] }
 0x28e   :  { %v2552_v9 = vmul.f32 %v4932_v14, %v2492_v38  ;;  %v2553_v45 = vmul.f32 %v4932_v14, %v2493_v62  ;;  %v2554_v7 = vmul.f32 %v4932_v14, %v2494_v50  ;;  %v2555_v49 = vmul.f32 %v4932_v14, %v2495_v5  ;;  %5973 = vst [vmem:[#allocation12_spill] sm:$0xff] %v4989_v61  ;;  %v5979_v61 = vld [vmem:[#allocation7_spill] sm:$0xff] }
 0x28f   :  { %v2556_v47 = vmul.f32 %v4932_v14, %v2496_v18  ;;  %v2557_v51 = vmul.f32 %v4932_v14, %v2497_v30  ;;  %v2558_v15 = vmul.f32 %v4932_v14, %v2498_v12  ;;  %v2559_v10 = vmul.f32 %v4932_v14, %v2499_v11 }
 0x290   :  { %v2560_v3 = vmul.f32 %v4932_v14, %v2500_v24  ;;  %v2561_v38 = vmul.f32 %v4932_v14, %v2501_v8  ;;  %v2562_v62 = vmul.f32 %v4932_v14, %v2502_v58  ;;  %v2563_v50 = vmul.f32 %v4932_v14, %v2503_v2  ;;  %v5977_v58 = vld [vmem:[#allocation6_spill] sm:$0xff] }
 0x291   :  { %v2564_v18 = vmul.f32 %v4932_v14, %v2504_v32  ;;  %v5974_v12 = vsub.f32 %v4748_v4, %v4820_v41  ;;  %v5975_v30 = vsub.f32 %v4757_v42, %v4820_v41  ;;  %v5976_v24 = vsub.f32 %v4765_v63, %v4820_v41  ;;  %v5981_v42 = vld [vmem:[#allocation8_spill] sm:$0xff] }
 0x292   :  { %v5978_v2 = vsub.f32 %v5977_v58, %v4820_v41  ;;  %v5980_v4 = vsub.f32 %v5979_v61, %v4820_v41  ;;  %v5985_v61 = vld [vmem:[#allocation10_spill] sm:$0xff] }
 0x293   :  { %v2565_v11 = vmul.f32 %v4932_v14, %v5974_v12  ;;  %v2566_v5 = vmul.f32 %v4932_v14, %v5975_v30  ;;  %v2567_v8 = vmul.f32 %v4932_v14, %v5976_v24  ;;  %v5982_v30 = vsub.f32 %v5981_v42, %v4820_v41  ;;  %v5983_v24 = vld [vmem:[#allocation9_spill] sm:$0xff] }
 0x294   :  { %v2568_v32 = vmul.f32 %v4932_v14, %v5978_v2  ;;  %v2569_v12 = vmul.f32 %v4932_v14, %v5980_v4  ;;  %v5984_v58 = vsub.f32 %v5983_v24, %v4820_v41  ;;  %v5986_v4 = vsub.f32 %v5985_v61, %v4820_v41 }
 0x295   :  { %v2570_v63 = vmul.f32 %v4932_v14, %v5982_v30  ;;  %v5987_v30 = vld [vmem:[#allocation11_spill] sm:$0xff]  ;;  %v5989_v61 = vld [vmem:[#allocation12_spill] sm:$0xff] }
 0x296   :  { %v2571_v2 = vmul.f32 %v4932_v14, %v5984_v58  ;;  %v2572_v42 = vmul.f32 %v4932_v14, %v5986_v4  ;;  %v5988_v24 = vsub.f32 %v5987_v30, %v4820_v41  ;;  %v2580_v4 = vmul.f32 %v5989_v61, %v2516_v16 }
 0x297   :  { %v2581_v30 = vmul.f32 %v5989_v61, %v2517_v19  ;;  %v2582_v41 = vmul.f32 %v5989_v61, %v2518_v34  ;;  %v2585_v16 = vmul.f32 %v5989_v61, %v2521_v57  ;;  %v2586_v19 = vmul.f32 %v5989_v61, %v2522_v26 }
 0x298   :  { %v2573_v58 = vmul.f32 %v4932_v14, %v5988_v24  ;;  %v2583_v14 = vmul.f32 %v5989_v61, %v2519_v31  ;;  %v2584_v24 = vmul.f32 %v5989_v61, %v2520_v59  ;;  %v2587_v34 = vmul.f32 %v5989_v61, %v2523_v21 }
 0x299   :  { %v2588_v31 = vmul.f32 %v5989_v61, %v2524_v60  ;;  %v2589_v59 = vmul.f32 %v5989_v61, %v2525_v48  ;;  %v2590_v57 = vmul.f32 %v5989_v61, %v2526_v43  ;;  %v2591_v26 = vmul.f32 %v5989_v61, %v2527_v37 }
 0x29a   :  { %v2592_v21 = vmul.f32 %v5989_v61, %v2528_v28  ;;  %v2593_v60 = vmul.f32 %v5989_v61, %v2529_v27  ;;  %v2594_v48 = vmul.f32 %v5989_v61, %v2530_v52  ;;  %v2595_v43 = vmul.f32 %v5989_v61, %v2531_v33 }
 0x29b   :  { %v2596_v37 = vmul.f32 %v5989_v61, %v2532_v54  ;;  %v2597_v28 = vmul.f32 %v5989_v61, %v2533_v25  ;;  %v2598_v27 = vmul.f32 %v5989_v61, %v2534_v44  ;;  %v2599_v52 = vmul.f32 %v5989_v61, %v2535_v22 }
 0x29c   :  { %v2600_v33 = vmul.f32 %v5989_v61, %v2536_v35  ;;  %v2601_v54 = vmul.f32 %v5989_v61, %v2537_v6  ;;  %v2602_v25 = vmul.f32 %v5989_v61, %v2538_v13  ;;  %v2603_v44 = vmul.f32 %v5989_v61, %v2539_v29 }
 0x29d   :  { %v2604_v22 = vmul.f32 %v5989_v61, %v2540_v1  ;;  %v2605_v35 = vmul.f32 %v5989_v61, %v2541_v55  ;;  %v2606_v6 = vmul.f32 %v5989_v61, %v2542_v53  ;;  %v2607_v13 = vmul.f32 %v5989_v61, %v2543_v17 }
 0x29e   :  { %v2608_v29 = vmul.f32 %v5989_v61, %v2544_v40  ;;  %v2609_v1 = vmul.f32 %v5989_v61, %v2545_v56  ;;  %v2610_v55 = vmul.f32 %v5989_v61, %v2546_v36  ;;  %v2611_v53 = vmul.f32 %v5989_v61, %v2547_v39 }
 0x29f   :  { %v2612_v17 = vmul.f32 %v5989_v61, %v2548_v20  ;;  %v2613_v40 = vmul.f32 %v5989_v61, %v2549_v46  ;;  %v2614_v56 = vmul.f32 %v5989_v61, %v2550_v0  ;;  %v2615_v36 = vmul.f32 %v5989_v61, %v2551_v23 }
 0x2a0   :  { %v2616_v39 = vmul.f32 %v5989_v61, %v2552_v9  ;;  %v2617_v20 = vmul.f32 %v5989_v61, %v2553_v45  ;;  %v2618_v46 = vmul.f32 %v5989_v61, %v2554_v7  ;;  %v2619_v0 = vmul.f32 %v5989_v61, %v2555_v49 }
 0x2a1   :  { %v2620_v23 = vmul.f32 %v5989_v61, %v2556_v47  ;;  %v2621_v9 = vmul.f32 %v5989_v61, %v2557_v51  ;;  %v2622_v45 = vmul.f32 %v5989_v61, %v2558_v15  ;;  %v2623_v7 = vmul.f32 %v5989_v61, %v2559_v10  ;;  %v5081_v51 = vld [vmem:[%s5852_s3] ss:$0 sm:$0xff] }
 0x2a2   :  { %v2624_v49 = vmul.f32 %v5989_v61, %v2560_v3  ;;  %v2625_v47 = vmul.f32 %v5989_v61, %v2561_v38  ;;  %5990 = vst [vmem:[#allocation13_spill] sm:$0xff] %v5081_v51  ;;  %v2626_v15 = vmul.f32 %v5989_v61, %v2562_v62  ;;  %v2627_v10 = vmul.f32 %v5989_v61, %v2563_v50 }
 0x2a3   :  { %v2628_v3 = vmul.f32 %v5989_v61, %v2564_v18  ;;  %v2629_v38 = vmul.f32 %v5989_v61, %v2565_v11  ;;  %v2630_v51 = vmul.f32 %v5989_v61, %v2566_v5  ;;  %v2631_v62 = vmul.f32 %v5989_v61, %v2567_v8 }
 0x2a4   :  { %v2632_v50 = vmul.f32 %v5989_v61, %v2568_v32  ;;  %v2633_v18 = vmul.f32 %v5989_v61, %v2569_v12  ;;  %v2634_v11 = vmul.f32 %v5989_v61, %v2570_v63  ;;  %v2635_v5 = vmul.f32 %v5989_v61, %v2571_v2 }
 0x2a5   :  { %v2636_v8 = vmul.f32 %v5989_v61, %v2572_v42  ;;  %v2637_v32 = vmul.f32 %v5989_v61, %v2573_v58 }
 0x2a9   :  { %v5991_v12 = vld [vmem:[#allocation13_spill] sm:$0xff] }
 0x2aa   :  { %v5096_v63 = vadd.f32 %v5991_v12, %v2580_v4  ;;  %v5099_v2 = vadd.f32 %v5991_v12, %v2581_v30  ;;  %v5102_v42 = vadd.f32 %v5991_v12, %v2582_v41  ;;  %v5105_v58 = vadd.f32 %v5991_v12, %v2583_v14 }
 0x2ab   :  { %v5108_v61 = vadd.f32 %v5991_v12, %v2584_v24  ;;  %v5111_v4 = vadd.f32 %v5991_v12, %v2585_v16  ;;  %v5117_v30 = vadd.f32 %v5991_v12, %v2587_v34  ;;  %v5123_v41 = vadd.f32 %v5991_v12, %v2589_v59 }
 0x2ac   :  { %5992 = vst [vmem:[#allocation14_spill] sm:$0xff] %v5096_v63  ;;  %5993 = vst [vmem:[#allocation15_spill] sm:$0xff] %v5099_v2  ;;  %v5114_v63 = vadd.f32 %v5991_v12, %v2586_v19  ;;  %v5120_v2 = vadd.f32 %v5991_v12, %v2588_v31  ;;  %v5126_v14 = vadd.f32 %v5991_v12, %v2590_v57 }
 0x2ad   :  { %v5129_v24 = vadd.f32 %v5991_v12, %v2591_v26  ;;  %v5132_v16 = vadd.f32 %v5991_v12, %v2592_v21  ;;  %v5135_v19 = vadd.f32 %v5991_v12, %v2593_v60  ;;  %v5138_v34 = vadd.f32 %v5991_v12, %v2594_v48 }
 0x2ae   :  { %v5141_v31 = vadd.f32 %v5991_v12, %v2595_v43  ;;  %v5144_v59 = vadd.f32 %v5991_v12, %v2596_v37  ;;  %v5147_v57 = vadd.f32 %v5991_v12, %v2597_v28  ;;  %v5150_v26 = vadd.f32 %v5991_v12, %v2598_v27 }
 0x2af   :  { %v5153_v21 = vadd.f32 %v5991_v12, %v2599_v52  ;;  %v5156_v60 = vadd.f32 %v5991_v12, %v2600_v33  ;;  %v5159_v48 = vadd.f32 %v5991_v12, %v2601_v54  ;;  %v5162_v43 = vadd.f32 %v5991_v12, %v2602_v25 }
 0x2b0   :  { %v5165_v37 = vadd.f32 %v5991_v12, %v2603_v44  ;;  %v5168_v28 = vadd.f32 %v5991_v12, %v2604_v22  ;;  %v5171_v27 = vadd.f32 %v5991_v12, %v2605_v35  ;;  %v5174_v52 = vadd.f32 %v5991_v12, %v2606_v6 }
 0x2b1   :  { %v5177_v33 = vadd.f32 %v5991_v12, %v2607_v13  ;;  %v5180_v54 = vadd.f32 %v5991_v12, %v2608_v29  ;;  %v5183_v25 = vadd.f32 %v5991_v12, %v2609_v1  ;;  %v5186_v44 = vadd.f32 %v5991_v12, %v2610_v55 }
 0x2b2   :  { %v5189_v22 = vadd.f32 %v5991_v12, %v2611_v53  ;;  %v5192_v35 = vadd.f32 %v5991_v12, %v2612_v17  ;;  %v5195_v6 = vadd.f32 %v5991_v12, %v2613_v40  ;;  %v5198_v13 = vadd.f32 %v5991_v12, %v2614_v56 }
 0x2b3   :  { %5994 = vst [vmem:[#allocation16_spill] sm:$0xff] %v5186_v44  ;;  %v5201_v29 = vadd.f32 %v5991_v12, %v2615_v36  ;;  %v5204_v1 = vadd.f32 %v5991_v12, %v2616_v39  ;;  %v5207_v55 = vadd.f32 %v5991_v12, %v2617_v20  ;;  %v5210_v53 = vadd.f32 %v5991_v12, %v2618_v46  ;;  %v48_v44 = vld [vmem:[%s5853_s4 + $0xc8] sm:$0xff] }
 0x2b4   :  { %5995 = vst [vmem:[#allocation17_spill] sm:$0xff] %v5189_v22  ;;  %5996 = vst [vmem:[#allocation18_spill] sm:$0xff] %v5192_v35  ;;  %v5213_v17 = vadd.f32 %v5991_v12, %v2619_v0  ;;  %v5216_v40 = vadd.f32 %v5991_v12, %v2620_v23  ;;  %v5219_v56 = vadd.f32 %v5991_v12, %v2621_v9  ;;  %v47_v22 = vld [vmem:[%s5853_s4 + $0xc0] sm:$0xff] }
 0x2b5   :  { %5997 = vst [vmem:[#allocation19_spill] sm:$0xff] %v5195_v6  ;;  %5998 = vst [vmem:[#allocation20_spill] sm:$0xff] %v5198_v13  ;;  %v5222_v36 = vadd.f32 %v5991_v12, %v2622_v45  ;;  %v5225_v39 = vadd.f32 %v5991_v12, %v2623_v7  ;;  %v5228_v20 = vadd.f32 %v5991_v12, %v2624_v49  ;;  %v44_v13 = vld [vmem:[%s5853_s4 + $0xa8] sm:$0xff]  ;;  %v45_v6 = vld [vmem:[%s5853_s4 + $0xb0] sm:$0xff] }
 0x2b6   :  { %5999 = vst [vmem:[#allocation21_spill] sm:$0xff] %v5201_v29  ;;  %6000 = vst [vmem:[#allocation22_spill] sm:$0xff] %v5204_v1  ;;  %v5231_v46 = vadd.f32 %v5991_v12, %v2625_v47  ;;  %v5234_v0 = vadd.f32 %v5991_v12, %v2626_v15  ;;  %v5237_v23 = vadd.f32 %v5991_v12, %v2627_v10  ;;  %v40_v1 = vld [vmem:[%s5853_s4 + $0x88] sm:$0xff]  ;;  %v41_v29 = vld [vmem:[%s5853_s4 + $0x90] sm:$0xff] }
 0x2b7   :  { %6001 = vst [vmem:[#allocation23_spill] sm:$0xff] %v5207_v55  ;;  %6002 = vst [vmem:[#allocation24_spill] sm:$0xff] %v5210_v53  ;;  %v5240_v9 = vadd.f32 %v5991_v12, %v2628_v3  ;;  %v5243_v45 = vadd.f32 %v5991_v12, %v2629_v38  ;;  %v5246_v7 = vadd.f32 %v5991_v12, %v2630_v51  ;;  %v33_v53 = vld [vmem:[%s5853_s4 + $0x50] sm:$0xff]  ;;  %v39_v55 = vld [vmem:[%s5853_s4 + $0x80] sm:$0xff] }
 0x2b8   :  { %6003 = vst [vmem:[#allocation25_spill] sm:$0xff] %v5213_v17  ;;  %6004 = vst [vmem:[#allocation2_spill] sm:$0xff] %v5216_v40  ;;  %v5249_v49 = vadd.f32 %v5991_v12, %v2631_v62  ;;  %v5252_v47 = vadd.f32 %v5991_v12, %v2632_v50  ;;  %v5255_v15 = vadd.f32 %v5991_v12, %v2633_v18  ;;  %v6022_v62 = vld [vmem:[#allocation14_spill] sm:$0xff]  ;;  %v24_v50 = vld [vmem:[%s5853_s4 + $0x8] sm:$0xff] }
 0x2b9   :  { %6005 = vst [vmem:[#allocation3_spill] sm:$0xff] %v5219_v56  ;;  %6006 = vst [vmem:[#allocation4_spill] sm:$0xff] %v5222_v36  ;;  %v5258_v10 = vadd.f32 %v5991_v12, %v2634_v11  ;;  %v5261_v3 = vadd.f32 %v5991_v12, %v2635_v5  ;;  %v5264_v38 = vadd.f32 %v5991_v12, %v2636_v8  ;;  %v25_v18 = vld [vmem:[%s5853_s4 + $0x10] sm:$0xff]  ;;  %v30_v8 = vld [vmem:[%s5853_s4 + $0x38] sm:$0xff]  ;;  %v6032_v11 = vmax.f32 %v5105_v58, 0.0 }
 0x2ba   :  { %6007 = vst [vmem:[#allocation5_spill] sm:$0xff] %v5225_v39  ;;  %6008 = vst [vmem:[#allocation6_spill] sm:$0xff] %v5228_v20  ;;  %v5267_v51 = vadd.f32 %v5991_v12, %v2637_v32  ;;  %v23_v32 = vld [vmem:[%s5853_s4] sm:$0xff]  ;;  %v32_v17 = vld [vmem:[%s5853_s4 + $0x48] sm:$0xff] }
 0x2bb   :  { %6009 = vst [vmem:[#allocation7_spill] sm:$0xff] %v5231_v46  ;;  %6010 = vst [vmem:[#allocation8_spill] sm:$0xff] %v5234_v0  ;;  %v27_v12 = vld [vmem:[%s5853_s4 + $0x20] sm:$0xff]  ;;  %v36_v39 = vld [vmem:[%s5853_s4 + $0x68] sm:$0xff] }
 0x2bc   :  { %6011 = vst [vmem:[#allocation9_spill] sm:$0xff] %v5237_v23  ;;  %6012 = vst [vmem:[#allocation10_spill] sm:$0xff] %v5240_v9  ;;  %v31_v40 = vld [vmem:[%s5853_s4 + $0x40] sm:$0xff]  ;;  %v37_v36 = vld [vmem:[%s5853_s4 + $0x70] sm:$0xff] }
 0x2bd   :  { %6013 = vst [vmem:[#allocation11_spill] sm:$0xff] %v5243_v45  ;;  %6014 = vst [vmem:[#allocation12_spill] sm:$0xff] %v5246_v7  ;;  %v6023_v7 = vld [vmem:[#allocation15_spill] sm:$0xff]  ;;  %v35_v20 = vld [vmem:[%s5853_s4 + $0x60] sm:$0xff]  ;;  %v6029_v45 = vmax.f32 %v6022_v62, 0.0 }
 0x2be   :  { %6015 = vst [vmem:[#allocation13_spill] sm:$0xff] %v5249_v49  ;;  %6016 = vst [vmem:[#allocation26_spill] sm:$0xff] %v5252_v47  ;;  %v29_v49 = vld [vmem:[%s5853_s4 + $0x30] sm:$0xff]  ;;  %v34_v47 = vld [vmem:[%s5853_s4 + $0x58] sm:$0xff]  ;;  %v6030_v9 = vmax.f32 %v6023_v7, 0.0  ;;  %v6034_v7 = vmax.f32 %v5111_v4, 0.0 }
 0x2bf   :  { %6017 = vst [vmem:[#allocation27_spill] sm:$0xff] %v5255_v15  ;;  %6018 = vst [vmem:[#allocation28_spill] sm:$0xff] %v5258_v10  ;;  %v26_v10 = vld [vmem:[%s5853_s4 + $0x18] sm:$0xff]  ;;  %v43_v5 = vld [vmem:[%s5853_s4 + $0xa0] sm:$0xff]  ;;  %v2760_v23 = vadd.f32 %v6029_v45, %v23_v32  ;;  %v6031_v15 = vmax.f32 %v5102_v42, 0.0  ;;  %v6037_v4 = vmax.f32 %v5120_v2, 0.0 }
 0x2c0   :  { %6019 = vst [vmem:[#allocation29_spill] sm:$0xff] %v5261_v3  ;;  %6020 = vst [vmem:[#allocation30_spill] sm:$0xff] %v5264_v38  ;;  %v28_v38 = vld [vmem:[%s5853_s4 + $0x28] sm:$0xff]  ;;  %v38_v56 = vld [vmem:[%s5853_s4 + $0x78] sm:$0xff]  ;;  %v2763_v35 = vadd.f32 %v6032_v11, %v26_v10  ;;  %v6035_v10 = vmax.f32 %v5114_v63, 0.0 }
 0x2c1   :  { %6021 = vst [vmem:[#allocation31_spill] sm:$0xff] %v5267_v51  ;;  %v42_v46 = vld [vmem:[%s5853_s4 + $0x98] sm:$0xff]  ;;  %v2761_v51 = vadd.f32 %v6030_v9, %v24_v50  ;;  %v2762_v3 = vadd.f32 %v6031_v15, %v25_v18  ;;  %v49_v45 = vld [vmem:[%s5853_s4 + $0xd0] sm:$0xff]  ;;  %v6033_v9 = vmax.f32 %v5108_v61, 0.0  ;;  %v2765_v15 = vadd.f32 %v6034_v7, %v28_v38  ;;  %v51_v11 = vld [vmem:[%s5853_s4 + $0xe0] sm:$0xff] }
 0x2c2   :  { %v46_v0 = vld [vmem:[%s5853_s4 + $0xb8] sm:$0xff]  ;;  %v2766_v62 = vadd.f32 %v6035_v10, %v29_v49  ;;  %v6036_v50 = vmax.f32 %v5117_v30, 0.0  ;;  %v52_v32 = vld [vmem:[%s5853_s4 + $0xe8] sm:$0xff]  ;;  %v53_v61 = vld [vmem:[%s5853_s4 + $0xf0] sm:$0xff]  ;;  %v2768_v30 = vadd.f32 %v6037_v4, %v31_v40  ;;  %v6038_v49 = vmax.f32 %v5123_v41, 0.0  ;;  %2818 = vst.msk [vmem:[%s5854_s5] sm:$0xff] %vm2151_vm2, %v2760_v23 }
 0x2c3   :  { %v50_v42 = vld [vmem:[%s5853_s4 + $0xd8] sm:$0xff]  ;;  %v2764_v58 = vadd.f32 %v6033_v9, %v27_v12  ;;  %v6040_v9 = vmax.f32 %v5129_v24, 0.0  ;;  %2819 = vst.msk [vmem:[%s5854_s5 + $0x8] sm:$0xff] %vm2151_vm2, %v2761_v51  ;;  %2820 = vst.msk [vmem:[%s5854_s5 + $0x10] sm:$0xff] %vm2151_vm2, %v2762_v3  ;;  %v55_v2 = vld [vmem:[%s5853_s4 + $0x100] sm:$0xff]  ;;  %v6041_v24 = vmax.f32 %v5132_v16, 0.0 }
 0x2c4   :  { %v2767_v18 = vadd.f32 %v6036_v50, %v30_v8  ;;  %v54_v63 = vld [vmem:[%s5853_s4 + $0xf8] sm:$0xff]  ;;  %v2769_v38 = vadd.f32 %v6038_v49, %v32_v17  ;;  %v6039_v8 = vmax.f32 %v5126_v14, 0.0  ;;  %2821 = vst.msk [vmem:[%s5854_s5 + $0x18] sm:$0xff] %vm2151_vm2, %v2763_v35  ;;  %v56_v41 = vld [vmem:[%s5853_s4 + $0x108] sm:$0xff]  ;;  %v57_v14 = vld [vmem:[%s5853_s4 + $0x110] sm:$0xff]  ;;  %v6042_v17 = vmax.f32 %v5135_v19, 0.0 }
 0x2c5   :  { %v2771_v7 = vadd.f32 %v6040_v9, %v34_v47  ;;  %v6043_v35 = vmax.f32 %v5138_v34, 0.0  ;;  %v6044_v47 = vmax.f32 %v5141_v31, 0.0  ;;  %2822 = vst.msk [vmem:[%s5854_s5 + $0x20] sm:$0xff] %vm2151_vm2, %v2764_v58  ;;  %2823 = vst.msk [vmem:[%s5854_s5 + $0x28] sm:$0xff] %vm2151_vm2, %v2765_v15  ;;  %v58_v16 = vld [vmem:[%s5853_s4 + $0x118] sm:$0xff]  ;;  %v59_v19 = vld [vmem:[%s5853_s4 + $0x120] sm:$0xff] }
 0x2c6   :  { %v2770_v12 = vadd.f32 %v6039_v8, %v33_v53  ;;  %v2772_v53 = vadd.f32 %v6041_v24, %v35_v20  ;;  %v2773_v40 = vadd.f32 %v6042_v17, %v36_v39  ;;  %2824 = vst.msk [vmem:[%s5854_s5 + $0x30] sm:$0xff] %vm2151_vm2, %v2766_v62  ;;  %2825 = vst.msk [vmem:[%s5854_s5 + $0x38] sm:$0xff] %vm2151_vm2, %v2767_v18  ;;  %v60_v34 = vld [vmem:[%s5853_s4 + $0x128] sm:$0xff]  ;;  %v6045_v31 = vmax.f32 %v5144_v59, 0.0  ;;  %v61_v59 = vld [vmem:[%s5853_s4 + $0x130] sm:$0xff] }
 0x2c7   :  { %v2774_v23 = vadd.f32 %v6043_v35, %v37_v36  ;;  %v2775_v3 = vadd.f32 %v6044_v47, %v38_v56  ;;  %v6046_v36 = vmax.f32 %v5147_v57, 0.0  ;;  %v6047_v20 = vmax.f32 %v5150_v26, 0.0  ;;  %2826 = vst.msk [vmem:[%s5854_s5 + $0x40] sm:$0xff] %vm2151_vm2, %v2768_v30  ;;  %2827 = vst.msk [vmem:[%s5854_s5 + $0x48] sm:$0xff] %vm2151_vm2, %v2769_v38  ;;  %v62_v57 = vld [vmem:[%s5853_s4 + $0x138] sm:$0xff]  ;;  %v63_v26 = vld [vmem:[%s5853_s4 + $0x140] sm:$0xff] }
 0x2c8   :  { %v2776_v56 = vadd.f32 %v6045_v31, %v39_v55  ;;  %v6048_v58 = vmax.f32 %v5153_v21, 0.0  ;;  %2828 = vst.msk [vmem:[%s5854_s5 + $0x50] sm:$0xff] %vm2151_vm2, %v2770_v12  ;;  %2829 = vst.msk [vmem:[%s5854_s5 + $0x58] sm:$0xff] %vm2151_vm2, %v2771_v7  ;;  %v6049_v21 = vmax.f32 %v5156_v60, 0.0  ;;  %v6052_v62 = vmax.f32 %v5165_v37, 0.0  ;;  %v64_v60 = vld [vmem:[%s5853_s4 + $0x148] sm:$0xff] }
 0x2c9   :  { %v2777_v39 = vadd.f32 %v6046_v36, %v40_v1  ;;  %v2778_v51 = vadd.f32 %v6047_v20, %v41_v29  ;;  %v6050_v1 = vmax.f32 %v5159_v48, 0.0  ;;  %2830 = vst.msk [vmem:[%s5854_s5 + $0x60] sm:$0xff] %vm2151_vm2, %v2772_v53  ;;  %2831 = vst.msk [vmem:[%s5854_s5 + $0x68] sm:$0xff] %vm2151_vm2, %v2773_v40  ;;  %v65_v48 = vld [vmem:[%s5853_s4 + $0x150] sm:$0xff]  ;;  %v6053_v37 = vmax.f32 %v5168_v28, 0.0  ;;  %v67_v28 = vld [vmem:[%s5853_s4 + $0x160] sm:$0xff] }
 0x2ca   :  { %v2779_v15 = vadd.f32 %v6048_v58, %v42_v46  ;;  %v2780_v29 = vadd.f32 %v6049_v21, %v43_v5  ;;  %v6051_v46 = vmax.f32 %v5162_v43, 0.0  ;;  %v2783_v50 = vadd.f32 %v6052_v62, %v46_v0  ;;  %2832 = vst.msk [vmem:[%s5854_s5 + $0x70] sm:$0xff] %vm2151_vm2, %v2774_v23  ;;  %2833 = vst.msk [vmem:[%s5854_s5 + $0x78] sm:$0xff] %vm2151_vm2, %v2775_v3  ;;  %v66_v43 = vld [vmem:[%s5853_s4 + $0x158] sm:$0xff]  ;;  %v6065_v7 = vld [vmem:[#allocation19_spill] sm:$0xff] }
 0x2cb   :  { %v2781_v55 = vadd.f32 %v6050_v1, %v44_v13  ;;  %v6054_v13 = vmax.f32 %v5171_v27, 0.0  ;;  %v6055_v5 = vmax.f32 %v5174_v52, 0.0  ;;  %v6056_v4 = vmax.f32 %v5177_v33, 0.0  ;;  %2834 = vst.msk [vmem:[%s5854_s5 + $0x80] sm:$0xff] %vm2151_vm2, %v2776_v56  ;;  %2835 = vst.msk [vmem:[%s5854_s5 + $0x88] sm:$0xff] %vm2151_vm2, %v2777_v39  ;;  %v68_v27 = vld [vmem:[%s5853_s4 + $0x168] sm:$0xff] }
 0x2cc   :  { %v2782_v10 = vadd.f32 %v6051_v46, %v45_v6  ;;  %v2784_v6 = vadd.f32 %v6053_v37, %v47_v22  ;;  %2836 = vst.msk [vmem:[%s5854_s5 + $0x90] sm:$0xff] %vm2151_vm2, %v2778_v51  ;;  %2837 = vst.msk [vmem:[%s5854_s5 + $0x98] sm:$0xff] %vm2151_vm2, %v2779_v15  ;;  %v69_v52 = vld [vmem:[%s5853_s4 + $0x170] sm:$0xff]  ;;  %v6057_v33 = vmax.f32 %v5180_v54, 0.0  ;;  %v6058_v22 = vmax.f32 %v5183_v25, 0.0  ;;  %v6061_v8 = vld [vmem:[#allocation17_spill] sm:$0xff] }
 0x2cd   :  { %v2785_v0 = vadd.f32 %v6054_v13, %v48_v44  ;;  %v2786_v18 = vadd.f32 %v6055_v5, %v49_v45  ;;  %v2787_v30 = vadd.f32 %v6056_v4, %v50_v42  ;;  %v6059_v42 = vld [vmem:[#allocation16_spill] sm:$0xff]  ;;  %v6062_v12 = vmax.f32 %v6061_v8, 0.0  ;;  %2838 = vst.msk [vmem:[%s5854_s5 + $0xa0] sm:$0xff] %vm2151_vm2, %v2780_v29  ;;  %2839 = vst.msk [vmem:[%s5854_s5 + $0xa8] sm:$0xff] %vm2151_vm2, %v2781_v55  ;;  %v70_v54 = vld [vmem:[%s5853_s4 + $0x178] sm:$0xff] }
 0x2ce   :  { %v2788_v44 = vadd.f32 %v6057_v33, %v51_v11  ;;  %v2789_v45 = vadd.f32 %v6058_v22, %v52_v32  ;;  %v6060_v49 = vmax.f32 %v6059_v42, 0.0  ;;  %2840 = vst.msk [vmem:[%s5854_s5 + $0xb0] sm:$0xff] %vm2151_vm2, %v2782_v10  ;;  %2841 = vst.msk [vmem:[%s5854_s5 + $0xb8] sm:$0xff] %vm2151_vm2, %v2783_v50  ;;  %v71_v25 = vld [vmem:[%s5853_s4 + $0x180] sm:$0xff]  ;;  %v72_v11 = vld [vmem:[%s5853_s4 + $0x188] sm:$0xff]  ;;  %v6066_v24 = vmax.f32 %v6065_v7, 0.0 }
 0x2cf   :  { %v2791_v9 = vadd.f32 %v6062_v12, %v54_v63  ;;  %v6063_v32 = vld [vmem:[#allocation18_spill] sm:$0xff]  ;;  %v6067_v17 = vld [vmem:[#allocation20_spill] sm:$0xff]  ;;  %v6069_v23 = vld [vmem:[#allocation21_spill] sm:$0xff]  ;;  %2842 = vst.msk [vmem:[%s5854_s5 + $0xc0] sm:$0xff] %vm2151_vm2, %v2784_v6 }
 0x2d0   :  { %v2790_v38 = vadd.f32 %v6060_v49, %v53_v61  ;;  %v6064_v61 = vmax.f32 %v6063_v32, 0.0  ;;  %v2793_v53 = vadd.f32 %v6066_v24, %v56_v41  ;;  %v6068_v40 = vmax.f32 %v6067_v17, 0.0  ;;  %2843 = vst.msk [vmem:[%s5854_s5 + $0xc8] sm:$0xff] %vm2151_vm2, %v2785_v0  ;;  %2844 = vst.msk [vmem:[%s5854_s5 + $0xd0] sm:$0xff] %vm2151_vm2, %v2786_v18  ;;  %v74_v41 = vld [vmem:[%s5853_s4 + $0x198] sm:$0xff]  ;;  %v6073_v36 = vld [vmem:[#allocation23_spill] sm:$0xff] }
 0x2d1   :  { %v6070_v47 = vmax.f32 %v6069_v23, 0.0  ;;  %2845 = vst.msk [vmem:[%s5854_s5 + $0xd8] sm:$0xff] %vm2151_vm2, %v2787_v30  ;;  %v6074_v39 = vmax.f32 %v6073_v36, 0.0  ;;  %v6075_v51 = vld [vmem:[#allocation24_spill] sm:$0xff]  ;;  %v6077_v21 = vld [vmem:[#allocation25_spill] sm:$0xff]  ;;  %2846 = vst.msk [vmem:[%s5854_s5 + $0xe0] sm:$0xff] %vm2151_vm2, %v2788_v44 }
 0x2d2   :  { %v2792_v63 = vadd.f32 %v6064_v61, %v55_v2  ;;  %v2794_v35 = vadd.f32 %v6068_v40, %v57_v14  ;;  %v73_v2 = vld [vmem:[%s5853_s4 + $0x190] sm:$0xff]  ;;  %v75_v14 = vld [vmem:[%s5853_s4 + $0x1a0] sm:$0xff]  ;;  %v6076_v58 = vmax.f32 %v6075_v51, 0.0  ;;  %v6078_v29 = vmax.f32 %v6077_v21, 0.0  ;;  %2847 = vst.msk [vmem:[%s5854_s5 + $0xe8] sm:$0xff] %vm2151_vm2, %v2789_v45  ;;  %2848 = vst.msk [vmem:[%s5854_s5 + $0xf0] sm:$0xff] %vm2151_vm2, %v2790_v38 }
 0x2d3   :  { %v2795_v3 = vadd.f32 %v6070_v47, %v58_v16  ;;  %v6071_v16 = vld [vmem:[#allocation22_spill] sm:$0xff]  ;;  %v2797_v20 = vadd.f32 %v6074_v39, %v60_v34  ;;  %2849 = vst.msk [vmem:[%s5854_s5 + $0xf8] sm:$0xff] %vm2151_vm2, %v2791_v9  ;;  %v77_v34 = vld [vmem:[%s5853_s4 + $0x1b0] sm:$0xff]  ;;  %v6081_v10 = vld [vmem:[#allocation3_spill] sm:$0xff] }
 0x2d4   :  { %v6072_v31 = vmax.f32 %v6071_v16, 0.0  ;;  %v2798_v15 = vadd.f32 %v6076_v58, %v61_v59  ;;  %v2799_v1 = vadd.f32 %v6078_v29, %v62_v57  ;;  %v78_v59 = vld [vmem:[%s5853_s4 + $0x1b8] sm:$0xff]  ;;  %v6079_v57 = vld [vmem:[#allocation2_spill] sm:$0xff]  ;;  %v6082_v62 = vmax.f32 %v6081_v10, 0.0  ;;  %v6083_v37 = vld [vmem:[#allocation4_spill] sm:$0xff]  ;;  %2850 = vst.msk [vmem:[%s5854_s5 + $0x100] sm:$0xff] %vm2151_vm2, %v2792_v63 }
 0x2d5   :  { %v6080_v55 = vmax.f32 %v6079_v57, 0.0  ;;  %v6084_v6 = vmax.f32 %v6083_v37, 0.0  ;;  %v6085_v0 = vld [vmem:[#allocation5_spill] sm:$0xff]  ;;  %2851 = vst.msk [vmem:[%s5854_s5 + $0x108] sm:$0xff] %vm2151_vm2, %v2793_v53  ;;  %2852 = vst.msk [vmem:[%s5854_s5 + $0x110] sm:$0xff] %vm2151_vm2, %v2794_v35  ;;  %v6089_v30 = vld [vmem:[#allocation7_spill] sm:$0xff] }
 0x2d6   :  { %v2796_v56 = vadd.f32 %v6072_v31, %v59_v19  ;;  %v76_v19 = vld [vmem:[%s5853_s4 + $0x1a8] sm:$0xff]  ;;  %v2801_v50 = vadd.f32 %v6082_v62, %v64_v60  ;;  %v6086_v5 = vmax.f32 %v6085_v0, 0.0  ;;  %2853 = vst.msk [vmem:[%s5854_s5 + $0x118] sm:$0xff] %vm2151_vm2, %v2795_v3  ;;  %v6090_v33 = vmax.f32 %v6089_v30, 0.0  ;;  %v6091_v22 = vld [vmem:[#allocation8_spill] sm:$0xff]  ;;  %v6093_v49 = vld [vmem:[#allocation9_spill] sm:$0xff] }
 0x2d7   :  { %v2800_v46 = vadd.f32 %v6080_v55, %v63_v26  ;;  %v2802_v13 = vadd.f32 %v6084_v6, %v65_v48  ;;  %v79_v26 = vld [vmem:[%s5853_s4 + $0x1c0] sm:$0xff]  ;;  %v80_v60 = vld [vmem:[%s5853_s4 + $0x1c8] sm:$0xff]  ;;  %v6092_v45 = vmax.f32 %v6091_v22, 0.0  ;;  %v6094_v38 = vmax.f32 %v6093_v49, 0.0  ;;  %2855 = vst.msk [vmem:[%s5854_s5 + $0x128] sm:$0xff] %vm2151_vm2, %v2797_v20  ;;  %2856 = vst.msk [vmem:[%s5854_s5 + $0x130] sm:$0xff] %vm2151_vm2, %v2798_v15 }
 0x2d8   :  { %v2803_v18 = vadd.f32 %v6086_v5, %v66_v43  ;;  %v6087_v48 = vld [vmem:[#allocation6_spill] sm:$0xff]  ;;  %v2805_v44 = vadd.f32 %v6090_v33, %v68_v27  ;;  %2854 = vst.msk [vmem:[%s5854_s5 + $0x120] sm:$0xff] %vm2151_vm2, %v2796_v56  ;;  %2857 = vst.msk [vmem:[%s5854_s5 + $0x138] sm:$0xff] %vm2151_vm2, %v2799_v1  ;;  %v6097_v12 = vld [vmem:[#allocation11_spill] sm:$0xff] }
 0x2d9   :  { %v6088_v43 = vmax.f32 %v6087_v48, 0.0  ;;  %v2806_v42 = vadd.f32 %v6092_v45, %v69_v52  ;;  %v2807_v8 = vadd.f32 %v6094_v38, %v70_v54  ;;  %v6098_v9 = vmax.f32 %v6097_v12, 0.0  ;;  %v6099_v32 = vld [vmem:[#allocation12_spill] sm:$0xff]  ;;  %v6101_v7 = vld [vmem:[#allocation13_spill] sm:$0xff]  ;;  %2858 = vst.msk [vmem:[%s5854_s5 + $0x140] sm:$0xff] %vm2151_vm2, %v2800_v46  ;;  %2859 = vst.msk [vmem:[%s5854_s5 + $0x148] sm:$0xff] %vm2151_vm2, %v2801_v50 }
 0x2da   :  { %v6100_v61 = vmax.f32 %v6099_v32, 0.0  ;;  %v6102_v24 = vmax.f32 %v6101_v7, 0.0  ;;  %2860 = vst.msk [vmem:[%s5854_s5 + $0x150] sm:$0xff] %vm2151_vm2, %v2802_v13  ;;  %2861 = vst.msk [vmem:[%s5854_s5 + $0x158] sm:$0xff] %vm2151_vm2, %v2803_v18  ;;  %v6105_v40 = vld [vmem:[#allocation27_spill] sm:$0xff]  ;;  %v6107_v47 = vld [vmem:[#allocation28_spill] sm:$0xff] }
 0x2db   :  { %v2804_v4 = vadd.f32 %v6088_v43, %v67_v28  ;;  %v6095_v28 = vld [vmem:[#allocation10_spill] sm:$0xff]  ;;  %v2809_v54 = vadd.f32 %v6098_v9, %v72_v11  ;;  %v6106_v35 = vmax.f32 %v6105_v40, 0.0  ;;  %v6108_v3 = vmax.f32 %v6107_v47, 0.0  ;;  %2863 = vst.msk [vmem:[%s5854_s5 + $0x168] sm:$0xff] %vm2151_vm2, %v2805_v44  ;;  %2864 = vst.msk [vmem:[%s5854_s5 + $0x170] sm:$0xff] %vm2151_vm2, %v2806_v42  ;;  %v6113_v39 = vld [vmem:[#allocation31_spill] sm:$0xff] }
 0x2dc   :  { %v6096_v27 = vmax.f32 %v6095_v28, 0.0  ;;  %v2810_v63 = vadd.f32 %v6100_v61, %v73_v2  ;;  %v2811_v53 = vadd.f32 %v6102_v24, %v74_v41  ;;  %v6109_v41 = vld [vmem:[#allocation29_spill] sm:$0xff]  ;;  %2865 = vst.msk [vmem:[%s5854_s5 + $0x178] sm:$0xff] %vm2151_vm2, %v2807_v8  ;;  %v6114_v20 = vmax.f32 %v6113_v39, 0.0 }
 0x2dd   :  { %v2813_v23 = vadd.f32 %v6106_v35, %v76_v19  ;;  %v2814_v2 = vadd.f32 %v6108_v3, %v77_v34  ;;  %v6110_v16 = vmax.f32 %v6109_v41, 0.0  ;;  %2862 = vst.msk [vmem:[%s5854_s5 + $0x160] sm:$0xff] %vm2151_vm2, %v2804_v4  ;;  %2867 = vst.msk [vmem:[%s5854_s5 + $0x188] sm:$0xff] %vm2151_vm2, %v2809_v54 }
 0x2de   :  { %v2808_v52 = vadd.f32 %v6096_v27, %v71_v25  ;;  %v6103_v25 = vld [vmem:[#allocation26_spill] sm:$0xff]  ;;  %v2817_v51 = vadd.f32 %v6114_v20, %v80_v60  ;;  %2868 = vst.msk [vmem:[%s5854_s5 + $0x190] sm:$0xff] %vm2151_vm2, %v2810_v63  ;;  %2869 = vst.msk [vmem:[%s5854_s5 + $0x198] sm:$0xff] %vm2151_vm2, %v2811_v53 }
 0x2df   :  { %v6104_v11 = vmax.f32 %v6103_v25, 0.0  ;;  %v2815_v31 = vadd.f32 %v6110_v16, %v78_v59  ;;  %2871 = vst.msk [vmem:[%s5854_s5 + $0x1a8] sm:$0xff] %vm2151_vm2, %v2813_v23  ;;  %2872 = vst.msk [vmem:[%s5854_s5 + $0x1b0] sm:$0xff] %vm2151_vm2, %v2814_v2 }
 0x2e0   :  { %2866 = vst.msk [vmem:[%s5854_s5 + $0x180] sm:$0xff] %vm2151_vm2, %v2808_v52  ;;  %2875 = vst.msk [vmem:[%s5854_s5 + $0x1c8] sm:$0xff] %vm2151_vm2, %v2817_v51 }
 0x2e1   :  { %v2812_v17 = vadd.f32 %v6104_v11, %v75_v14  ;;  %v6111_v14 = vld [vmem:[#allocation30_spill] sm:$0xff]  ;;  %2873 = vst.msk [vmem:[%s5854_s5 + $0x1b8] sm:$0xff] %vm2151_vm2, %v2815_v31 }
 0x2e2   :  { %v6112_v56 = vmax.f32 %v6111_v14, 0.0 }
 0x2e3   :  { %2870 = vst.msk [vmem:[%s5854_s5 + $0x1a0] sm:$0xff] %vm2151_vm2, %v2812_v17 }
 0x2e4   :  { %v2816_v36 = vadd.f32 %v6112_v56, %v79_v26 }
 0x2e6   :  { %2874 = vst.msk [vmem:[%s5854_s5 + $0x1c0] sm:$0xff] %vm2151_vm2, %v2816_v36 }

// kernel: generator_forward.15
= control target key start
LH: loop header
LB: loop body
LE: loop exit
PB: predicated region body
PF: predicated region fallthrough
CT: control target
= control target key end

     0   :  { %s1789_s9 = smov 0   ;;  %s2008_s0 = inlined_call_operand.vmem [shape: bf16[2048,512], index: 0, kind: input, shape index: {}]   ;;  %s2009_s1 = inlined_call_operand.vmem [shape: bf16[512,128], index: 1, kind: input, shape index: {}]   ;;  %s2010_s2 = inlined_call_operand.vmem [shape: f32[2048,128], index: 2, kind: output, shape index: {}]  }
   0x1 LB: > { %s1233_s10 = sadd.s32 4294967295, %s1772_s9   ;;  %p1237_p0 = scmp.ge.s32.totalorder %s1772_s9, 1  ;;  %s1772_s9 = sphi %s1789_s9, %s12_s9  }
   0x2   : > { %p114_p1 = scmp.lt.s32.totalorder %s1772_s9, 9 }
   0x4   : > { %p115_p2 = pnand %p1237_p0, %p114_p1 }
   0x5   : > { %s1238_s17 = sshll.u32 (!%p115_p2), %s1233_s10, 5 }
   0x6   : > { %118 = sbr.rel (%p115_p2) target bundleno = 384 (0x180), region = 28  ;;  %p138_p3 = scmp.lt.s32.totalorder (!%p115_p2), %s1238_s17, 255 }
   0xb   : > { %v1574_v0 = vld [vmem:[%s2009_s1 + $0x78] sm:$0xff]   ;;  %v1578_v4 = vld [vmem:[%s2009_s1 + $0x70] sm:$0xff]   ;;  %v1582_v8 = vld [vmem:[%s2009_s1 + $0x68] sm:$0xff]   ;;  %s2012_s17 = smov (!%p138_p3, %s1238_s17), 255 }
   0xc   : > { %v1575_v1 = vld [vmem:[%s2009_s1 + $0xf8] sm:$0xff]   ;;  %1342 = vmatprep.subr.bf16.mxu0 %v1574_v0  ;;  %v1579_v5 = vld [vmem:[%s2009_s1 + $0xf0] sm:$0xff]   ;;  %v1583_v9 = vld [vmem:[%s2009_s1 + $0xe8] sm:$0xff]   ;;  %s1341_s13 = sshll.u32 %s2012_s17, 4  ;;  %s1242_s27 = sshll.u32 %s2012_s17, 3 }
   0xd   : > { %v1576_v2 = vld [vmem:[%s2009_s1 + $0x38] sm:$0xff]   ;;  %1454 = vmatprep.subr.bf16.mxu1 %v1575_v1  ;;  %v1580_v6 = vld [vmem:[%s2009_s1 + $0x30] sm:$0xff]   ;;  %v1584_v10 = vld [vmem:[%s2009_s1 + $0x28] sm:$0xff]   ;;  %s1895_s23 = scalar_lea.vmem %s2008_s0, %s1341_s13  ;;  %s1971_s30 = scalar_lea.vmem %s2010_s2, %s1242_s27 }
   0xe   : > { %v1577_v3 = vld [vmem:[%s2009_s1 + $0xb8] sm:$0xff]   ;;  %1343 = vmatpush3.bf16.msra.mxu0 %v1576_v2  ;;  %v1581_v7 = vld [vmem:[%s2009_s1 + $0xb0] sm:$0xff]   ;;  %v1585_v11 = vld [vmem:[%s2009_s1 + $0xa8] sm:$0xff]  }
   0xf   : > { %1455 = vmatpush3.bf16.msra.mxu1 %v1577_v3  ;;  %1344 = vmatprep.subr.bf16.mxu0 %v1578_v4  ;;  %v1586_v12 = vld [vmem:[%s2009_s1 + $0x60] sm:$0xff]   ;;  %v1590_v16 = vld [vmem:[%s2009_s1 + $0x58] sm:$0xff]   ;;  %v1594_v20 = vld [vmem:[%s2009_s1 + $0x50] sm:$0xff]  }
  0x10   : > { %1456 = vmatprep.subr.bf16.mxu1 %v1579_v5  ;;  %v1587_v13 = vld [vmem:[%s2009_s1 + $0xe0] sm:$0xff]   ;;  %v1591_v17 = vld [vmem:[%s2009_s1 + $0xd8] sm:$0xff]   ;;  %v1595_v21 = vld [vmem:[%s2009_s1 + $0xd0] sm:$0xff]  }
  0x11   : > { %v1588_v14 = vld [vmem:[%s2009_s1 + $0x20] sm:$0xff]   ;;  %v1592_v18 = vld [vmem:[%s2009_s1 + $0x18] sm:$0xff]   ;;  %v1596_v22 = vld [vmem:[%s2009_s1 + $0x10] sm:$0xff]  }
  0x12   : > { %1345 = vmatpush3.bf16.msra.mxu0 %v1580_v6  ;;  %v1589_v15 = vld [vmem:[%s2009_s1 + $0xa0] sm:$0xff]   ;;  %v1593_v19 = vld [vmem:[%s2009_s1 + $0x98] sm:$0xff]   ;;  %v1597_v23 = vld [vmem:[%s2009_s1 + $0x90] sm:$0xff]  }
  0x13   : > { %1457 = vmatpush3.bf16.msra.mxu1 %v1581_v7  ;;  %1346 = vmatprep.subr.bf16.mxu0 %v1582_v8  ;;  %v1598_v24 = vld [vmem:[%s2009_s1 + $0x48] sm:$0xff]   ;;  %v1602_v28 = vld [vmem:[%s2009_s1 + $0x40] sm:$0xff]  }
  0x14   : > { %1458 = vmatprep.subr.bf16.mxu1 %v1583_v9  ;;  %v1599_v25 = vld [vmem:[%s2009_s1 + $0xc8] sm:$0xff]   ;;  %v1603_v29 = vld [vmem:[%s2009_s1 + $0xc0] sm:$0xff]  }
  0x15   : > { %v1600_v26 = vld [vmem:[%s2009_s1 + $0x8] sm:$0xff]   ;;  %v1604_v30 = vld [vmem:[%s2009_s1] sm:$0xff]  }
  0x16   : > { %1347 = vmatpush3.bf16.msra.mxu0 %v1584_v10  ;;  %v1601_v27 = vld [vmem:[%s2009_s1 + $0x88] sm:$0xff]   ;;  %v1605_v31 = vld [vmem:[%s2009_s1 + $0x80] sm:$0xff]  }
  0x17   : > { %1459 = vmatpush3.bf16.msra.mxu1 %v1585_v11  ;;  %1348 = vmatprep.subr.bf16.mxu0 %v1586_v12  ;;  %v1606_v32 = vld [vmem:[%s1895_s23] ss:$16 sps:$4 sm:$0xff]   ;;  %v1608_v33 = vld [vmem:[%s1895_s23 + $0x4] ss:$16 sps:$4 sm:$0xff]   ;;  %v1609_v34 = vld [vmem:[%s1895_s23 + $0x8] ss:$16 sps:$4 sm:$0xff]  }
  0x18   : > { %1460 = vmatprep.subr.bf16.mxu1 %v1587_v13  ;;  %v1611_v35 = vld [vmem:[%s1895_s23 + $0xc] ss:$16 sps:$4 sm:$0xff]   ;;  %823 = vmatprep.mubr.bf16.mxu0 %v1608_v33  ;;  %v1612_v36 = vld [vmem:[%s1895_s23 + $0x24] ss:$16 sps:$4 sm:$0xff]   ;;  %v1616_v38 = vld [vmem:[%s1895_s23 + $0x20] ss:$16 sps:$4 sm:$0xff]  }
  0x19   : > { %984 = vmatprep.mubr.bf16.mxu1 %v1611_v35  ;;  %v1614_v37 = vld [vmem:[%s1895_s23 + $0x2c] ss:$16 sps:$4 sm:$0xff]   ;;  %v1617_v39 = vld [vmem:[%s1895_s23 + $0x28] ss:$16 sps:$4 sm:$0xff]   ;;  %v1618_v40 = vld [vmem:[%s1895_s23 + $0x44] ss:$16 sps:$4 sm:$0xff]  }
  0x1a   : > { %1349 = vmatpush3.bf16.msra.mxu0 %v1588_v14  ;;  %v1620_v41 = vld [vmem:[%s1895_s23 + $0x4c] ss:$16 sps:$4 sm:$0xff]   ;;  %v1622_v42 = vld [vmem:[%s1895_s23 + $0x40] ss:$16 sps:$4 sm:$0xff]   ;;  %v1623_v43 = vld [vmem:[%s1895_s23 + $0x48] ss:$16 sps:$4 sm:$0xff]  }
  0x1b   : > { %1461 = vmatpush3.bf16.msra.mxu1 %v1589_v15  ;;  %1350 = vmatprep.subr.bf16.mxu0 %v1590_v16  ;;  %v1624_v44 = vld [vmem:[%s1895_s23 + $0x64] ss:$16 sps:$4 sm:$0xff]   ;;  %v1626_v45 = vld [vmem:[%s1895_s23 + $0x6c] ss:$16 sps:$4 sm:$0xff]   ;;  %v1628_v46 = vld [vmem:[%s1895_s23 + $0x60] ss:$16 sps:$4 sm:$0xff]  }
  0x1c   : > { %1462 = vmatprep.subr.bf16.mxu1 %v1591_v17  ;;  %v1629_v47 = vld [vmem:[%s1895_s23 + $0x68] ss:$16 sps:$4 sm:$0xff]   ;;  %v1630_v48 = vld [vmem:[%s1895_s23 + $0x84] ss:$16 sps:$4 sm:$0xff]   ;;  %v1632_v49 = vld [vmem:[%s1895_s23 + $0x8c] ss:$16 sps:$4 sm:$0xff]  }
  0x1d   : > { %v1634_v50 = vld [vmem:[%s1895_s23 + $0x80] ss:$16 sps:$4 sm:$0xff]   ;;  %v1635_v51 = vld [vmem:[%s1895_s23 + $0x88] ss:$16 sps:$4 sm:$0xff]   ;;  %v1636_v52 = vld [vmem:[%s1895_s23 + $0xa4] ss:$16 sps:$4 sm:$0xff]  }
  0x1e   : > { %1351 = vmatpush3.bf16.msra.mxu0 %v1592_v18  ;;  %v1638_v53 = vld [vmem:[%s1895_s23 + $0xac] ss:$16 sps:$4 sm:$0xff]   ;;  %v1640_v54 = vld [vmem:[%s1895_s23 + $0xa0] ss:$16 sps:$4 sm:$0xff]   ;;  %v1641_v55 = vld [vmem:[%s1895_s23 + $0xa8] ss:$16 sps:$4 sm:$0xff]  }
  0x1f   : > { %1463 = vmatpush3.bf16.msra.mxu1 %v1593_v19  ;;  %1352 = vmatprep.subr.bf16.mxu0 %v1594_v20  ;;  %v1642_v56 = vld [vmem:[%s1895_s23 + $0xc4] ss:$16 sps:$4 sm:$0xff]   ;;  %v1644_v57 = vld [vmem:[%s1895_s23 + $0xcc] ss:$16 sps:$4 sm:$0xff]   ;;  %v1646_v58 = vld [vmem:[%s1895_s23 + $0xc0] ss:$16 sps:$4 sm:$0xff]  }
  0x20   : > { %1464 = vmatprep.subr.bf16.mxu1 %v1595_v21  ;;  %v1647_v59 = vld [vmem:[%s1895_s23 + $0xc8] ss:$16 sps:$4 sm:$0xff]   ;;  %v1648_v60 = vld [vmem:[%s1895_s23 + $0xe4] ss:$16 sps:$4 sm:$0xff]   ;;  %v1650_v61 = vld [vmem:[%s1895_s23 + $0xec] ss:$16 sps:$4 sm:$0xff]  }
  0x21   : > { %v1652_v62 = vld [vmem:[%s1895_s23 + $0xe0] ss:$16 sps:$4 sm:$0xff]   ;;  %v1653_v63 = vld [vmem:[%s1895_s23 + $0xe8] ss:$16 sps:$4 sm:$0xff]   ;;  %v1654_v0 = vld [vmem:[%s1895_s23 + $0x104] ss:$16 sps:$4 sm:$0xff]  }
  0x22   : > { %1353 = vmatpush3.bf16.msra.mxu0 %v1596_v22  ;;  %v1656_v1 = vld [vmem:[%s1895_s23 + $0x10c] ss:$16 sps:$4 sm:$0xff]   ;;  %v1658_v2 = vld [vmem:[%s1895_s23 + $0x100] ss:$16 sps:$4 sm:$0xff]   ;;  %v1659_v3 = vld [vmem:[%s1895_s23 + $0x108] ss:$16 sps:$4 sm:$0xff]  }
  0x23   : > { %1465 = vmatpush3.bf16.msra.mxu1 %v1597_v23  ;;  %1354 = vmatprep.subr.bf16.mxu0 %v1598_v24  ;;  %v1660_v4 = vld [vmem:[%s1895_s23 + $0x124] ss:$16 sps:$4 sm:$0xff]   ;;  %v1662_v5 = vld [vmem:[%s1895_s23 + $0x12c] ss:$16 sps:$4 sm:$0xff]   ;;  %v1664_v6 = vld [vmem:[%s1895_s23 + $0x120] ss:$16 sps:$4 sm:$0xff]  }
  0x24   : > { %1466 = vmatprep.subr.bf16.mxu1 %v1599_v25  ;;  %v1665_v7 = vld [vmem:[%s1895_s23 + $0x128] ss:$16 sps:$4 sm:$0xff]   ;;  %v1666_v8 = vld [vmem:[%s1895_s23 + $0x144] ss:$16 sps:$4 sm:$0xff]   ;;  %v1668_v9 = vld [vmem:[%s1895_s23 + $0x14c] ss:$16 sps:$4 sm:$0xff]  }
  0x25   : > { %v1670_v10 = vld [vmem:[%s1895_s23 + $0x140] ss:$16 sps:$4 sm:$0xff]   ;;  %v1671_v11 = vld [vmem:[%s1895_s23 + $0x148] ss:$16 sps:$4 sm:$0xff]   ;;  %v1672_v12 = vld [vmem:[%s1895_s23 + $0x164] ss:$16 sps:$4 sm:$0xff]  }
  0x26   : > { %1355 = vmatpush3.bf16.msra.mxu0 %v1600_v26  ;;  %v1674_v13 = vld [vmem:[%s1895_s23 + $0x16c] ss:$16 sps:$4 sm:$0xff]   ;;  %v1676_v14 = vld [vmem:[%s1895_s23 + $0x160] ss:$16 sps:$4 sm:$0xff]   ;;  %v1677_v15 = vld [vmem:[%s1895_s23 + $0x168] ss:$16 sps:$4 sm:$0xff]  }
  0x27   : > { %1467 = vmatpush3.bf16.msra.mxu1 %v1601_v27  ;;  %1356 = vmatprep.subr.bf16.mxu0 %v1602_v28  ;;  %v1678_v16 = vld [vmem:[%s1895_s23 + $0x184] ss:$16 sps:$4 sm:$0xff]   ;;  %v1680_v17 = vld [vmem:[%s1895_s23 + $0x18c] ss:$16 sps:$4 sm:$0xff]   ;;  %v1682_v18 = vld [vmem:[%s1895_s23 + $0x180] ss:$16 sps:$4 sm:$0xff]  }
  0x28   : > { %1468 = vmatprep.subr.bf16.mxu1 %v1603_v29  ;;  %v1683_v19 = vld [vmem:[%s1895_s23 + $0x188] ss:$16 sps:$4 sm:$0xff]   ;;  %v1684_v20 = vld [vmem:[%s1895_s23 + $0x1a4] ss:$16 sps:$4 sm:$0xff]   ;;  %v1686_v21 = vld [vmem:[%s1895_s23 + $0x1ac] ss:$16 sps:$4 sm:$0xff]  }
  0x29   : > { %v1688_v22 = vld [vmem:[%s1895_s23 + $0x1a0] ss:$16 sps:$4 sm:$0xff]   ;;  %v1689_v23 = vld [vmem:[%s1895_s23 + $0x1a8] ss:$16 sps:$4 sm:$0xff]   ;;  %v1690_v24 = vld [vmem:[%s1895_s23 + $0x1c4] ss:$16 sps:$4 sm:$0xff]  }
  0x2a   : > { %1357 = vmatpush3.bf16.msra.mxu0 %v1604_v30  ;;  %v1692_v25 = vld [vmem:[%s1895_s23 + $0x1cc] ss:$16 sps:$4 sm:$0xff]   ;;  %v1694_v26 = vld [vmem:[%s1895_s23 + $0x1c0] ss:$16 sps:$4 sm:$0xff]   ;;  %v1695_v27 = vld [vmem:[%s1895_s23 + $0x1c8] ss:$16 sps:$4 sm:$0xff]  }
  0x2b   : > { %1469 = vmatpush3.bf16.msra.mxu1 %v1605_v31  ;;  %v1696_v28 = vld [vmem:[%s1895_s23 + $0x1e4] ss:$16 sps:$4 sm:$0xff]   ;;  %v1698_v29 = vld [vmem:[%s1895_s23 + $0x1ec] ss:$16 sps:$4 sm:$0xff]   ;;  %v1700_v30 = vld [vmem:[%s1895_s23 + $0x1e0] ss:$16 sps:$4 sm:$0xff]  }
  0x2c   : > { %v1701_v31 = vld [vmem:[%s1895_s23 + $0x1e8] ss:$16 sps:$4 sm:$0xff]  }
  0x2d   : > { %824 = vmatmul.mubr.bf16.vlgmr.msra.gmra.mxu0 %v1606_v32 }
  0x2e   : > { %985 = vmatmul.mubr.bf16.vlgmr.msra.gmra.mxu1 %v1609_v34  ;;  %831 = vmatprep.mubr.bf16.mxu0 %v1612_v36 }
  0x2f   : > { %992 = vmatprep.mubr.bf16.mxu1 %v1614_v37 }
  0x35   : > { %832 = vmatmul.mubr.bf16.gmra.mxu0 %v1616_v38 }
  0x36   : > { %993 = vmatmul.mubr.bf16.gmra.mxu1 %v1617_v39  ;;  %839 = vmatprep.mubr.bf16.mxu0 %v1618_v40 }
  0x37   : > { %1000 = vmatprep.mubr.bf16.mxu1 %v1620_v41 }
  0x3d   : > { %840 = vmatmul.mubr.bf16.gmra.mxu0 %v1622_v42 }
  0x3e   : > { %1001 = vmatmul.mubr.bf16.gmra.mxu1 %v1623_v43  ;;  %847 = vmatprep.mubr.bf16.mxu0 %v1624_v44 }
  0x3f   : > { %1008 = vmatprep.mubr.bf16.mxu1 %v1626_v45 }
  0x45   : > { %848 = vmatmul.mubr.bf16.gmra.mxu0 %v1628_v46 }
  0x46   : > { %1009 = vmatmul.mubr.bf16.gmra.mxu1 %v1629_v47  ;;  %855 = vmatprep.mubr.bf16.mxu0 %v1630_v48 }
  0x47   : > { %1016 = vmatprep.mubr.bf16.mxu1 %v1632_v49 }
  0x4d   : > { %856 = vmatmul.mubr.bf16.gmra.mxu0 %v1634_v50 }
  0x4e   : > { %1017 = vmatmul.mubr.bf16.gmra.mxu1 %v1635_v51  ;;  %863 = vmatprep.mubr.bf16.mxu0 %v1636_v52 }
  0x4f   : > { %1024 = vmatprep.mubr.bf16.mxu1 %v1638_v53 }
  0x55   : > { %864 = vmatmul.mubr.bf16.gmra.mxu0 %v1640_v54 }
  0x56   : > { %1025 = vmatmul.mubr.bf16.gmra.mxu1 %v1641_v55  ;;  %871 = vmatprep.mubr.bf16.mxu0 %v1642_v56 }
  0x57   : > { %1032 = vmatprep.mubr.bf16.mxu1 %v1644_v57 }
  0x5d   : > { %872 = vmatmul.mubr.bf16.gmra.mxu0 %v1646_v58 }
  0x5e   : > { %1033 = vmatmul.mubr.bf16.gmra.mxu1 %v1647_v59  ;;  %879 = vmatprep.mubr.bf16.mxu0 %v1648_v60 }
  0x5f   : > { %1040 = vmatprep.mubr.bf16.mxu1 %v1650_v61 }
  0x65   : > { %880 = vmatmul.mubr.bf16.gmra.mxu0 %v1652_v62 }
  0x66   : > { %1041 = vmatmul.mubr.bf16.gmra.mxu1 %v1653_v63  ;;  %887 = vmatprep.mubr.bf16.mxu0 %v1654_v0 }
  0x67   : > { %1048 = vmatprep.mubr.bf16.mxu1 %v1656_v1 }
  0x6d   : > { %888 = vmatmul.mubr.bf16.gmra.mxu0 %v1658_v2 }
  0x6e   : > { %1049 = vmatmul.mubr.bf16.gmra.mxu1 %v1659_v3  ;;  %895 = vmatprep.mubr.bf16.mxu0 %v1660_v4 }
  0x6f   : > { %1056 = vmatprep.mubr.bf16.mxu1 %v1662_v5 }
  0x75   : > { %896 = vmatmul.mubr.bf16.gmra.mxu0 %v1664_v6 }
  0x76   : > { %1057 = vmatmul.mubr.bf16.gmra.mxu1 %v1665_v7  ;;  %903 = vmatprep.mubr.bf16.mxu0 %v1666_v8 }
  0x77   : > { %1064 = vmatprep.mubr.bf16.mxu1 %v1668_v9 }
  0x7d   : > { %904 = vmatmul.mubr.bf16.gmra.mxu0 %v1670_v10 }
  0x7e   : > { %1065 = vmatmul.mubr.bf16.gmra.mxu1 %v1671_v11  ;;  %911 = vmatprep.mubr.bf16.mxu0 %v1672_v12 }
  0x7f   : > { %1072 = vmatprep.mubr.bf16.mxu1 %v1674_v13 }
  0x85   : > { %912 = vmatmul.mubr.bf16.gmra.mxu0 %v1676_v14 }
  0x86   : > { %1073 = vmatmul.mubr.bf16.gmra.mxu1 %v1677_v15  ;;  %919 = vmatprep.mubr.bf16.mxu0 %v1678_v16 }
  0x87   : > { %1080 = vmatprep.mubr.bf16.mxu1 %v1680_v17 }
  0x8d   : > { %920 = vmatmul.mubr.bf16.gmra.mxu0 %v1682_v18 }
  0x8e   : > { %1081 = vmatmul.mubr.bf16.gmra.mxu1 %v1683_v19  ;;  %927 = vmatprep.mubr.bf16.mxu0 %v1684_v20 }
  0x8f   : > { %1088 = vmatprep.mubr.bf16.mxu1 %v1686_v21 }
  0x95   : > { %928 = vmatmul.mubr.bf16.gmra.mxu0 %v1688_v22 }
  0x96   : > { %1089 = vmatmul.mubr.bf16.gmra.mxu1 %v1689_v23  ;;  %935 = vmatprep.mubr.bf16.mxu0 %v1690_v24 }
  0x97   : > { %1096 = vmatprep.mubr.bf16.mxu1 %v1692_v25 }
  0x9d   : > { %936 = vmatmul.mubr.bf16.gmra.mxu0 %v1694_v26 }
  0x9e   : > { %1097 = vmatmul.mubr.bf16.gmra.mxu1 %v1695_v27  ;;  %943 = vmatprep.mubr.bf16.mxu0 %v1696_v28 }
  0x9f   : > { %1104 = vmatprep.mubr.bf16.mxu1 %v1698_v29 }
  0xa5   : > { %944 = vmatmul.mubr.bf16.gmra.mxu0 %v1700_v30 }
  0xa6   : > { %1105 = vmatmul.mubr.bf16.gmra.mxu1 %v1701_v31 }
  0xed   : > { %v1358_v32 = vpop.f32.mrf.mxu0 }
  0xee   : > { %v1470_v33 = vpop.f32.mrf.mxu1 }
  0xef   : > { %v1359_v34 = vpop.f32.mrf.mxu0 }
  0xf0   : > { %v1360_v35 = vadd.f32 %v1359_v34, %v1358_v32  ;;  %v1471_v36 = vpop.f32.mrf.mxu1 }
  0xf1   : > { %v1472_v37 = vadd.f32 %v1471_v36, %v1470_v33  ;;  %v1361_v38 = vpop.f32.mrf.mxu0 }
  0xf2   : > { %v1473_v39 = vpop.f32.mrf.mxu1 }
  0xf3   : > { %v987_v40 = vadd.f32 %v1472_v37, %v1360_v35  ;;  %v1362_v41 = vpop.f32.mrf.mxu0 }
  0xf4   : > { %v1363_v42 = vadd.f32 %v1362_v41, %v1361_v38  ;;  %v1474_v43 = vpop.f32.mrf.mxu1 }
  0xf5   : > { %1702 = vtanh.f32 %v987_v40  ;;  %v1475_v44 = vadd.f32 %v1474_v43, %v1473_v39  ;;  %v1364_v45 = vpop.f32.mrf.mxu0 }
  0xf6   : > { %v1476_v46 = vpop.f32.mrf.mxu1 }
  0xf7   : > { %v990_v47 = vadd.f32 %v1475_v44, %v1363_v42  ;;  %v1365_v48 = vpop.f32.mrf.mxu0 }
  0xf8   : > { %v1366_v49 = vadd.f32 %v1365_v48, %v1364_v45  ;;  %v1477_v50 = vpop.f32.mrf.mxu1 }
  0xf9   : > { %1704 = vtanh.f32 %v990_v47  ;;  %v1478_v51 = vadd.f32 %v1477_v50, %v1476_v46  ;;  %v1367_v52 = vpop.f32.mrf.mxu0 }
  0xfa   : > { %v1479_v53 = vpop.f32.mrf.mxu1 }
  0xfb   : > { %v995_v54 = vadd.f32 %v1478_v51, %v1366_v49  ;;  %v1368_v55 = vpop.f32.mrf.mxu0 }
  0xfc   : > { %v1369_v56 = vadd.f32 %v1368_v55, %v1367_v52  ;;  %v1480_v57 = vpop.f32.mrf.mxu1 }
  0xfd   : > { %1706 = vtanh.f32 %v995_v54  ;;  %v1481_v58 = vadd.f32 %v1480_v57, %v1479_v53  ;;  %v1370_v59 = vpop.f32.mrf.mxu0 }
  0xfe   : > { %v1482_v60 = vpop.f32.mrf.mxu1 }
  0xff   : > { %v998_v61 = vadd.f32 %v1481_v58, %v1369_v56  ;;  %v1371_v62 = vpop.f32.mrf.mxu0 }
 0x100   : > { %v1372_v63 = vadd.f32 %v1371_v62, %v1370_v59  ;;  %v1483_v0 = vpop.f32.mrf.mxu1 }
 0x101   : > { %1708 = vtanh.f32 %v998_v61  ;;  %v1484_v1 = vadd.f32 %v1483_v0, %v1482_v60  ;;  %v1373_v2 = vpop.f32.mrf.mxu0 }
 0x102   : > { %v1703_v3 = vpop.eup %1702  ;;  %v1485_v4 = vpop.f32.mrf.mxu1 }
 0x103   : > { %1145 = vst [vmem:[%s1971_s30] sm:$0xff] %v1703_v3  ;;  %v1003_v5 = vadd.f32 %v1484_v1, %v1372_v63  ;;  %v1374_v6 = vpop.f32.mrf.mxu0 }
 0x104   : > { %v1375_v7 = vadd.f32 %v1374_v6, %v1373_v2  ;;  %v1486_v8 = vpop.f32.mrf.mxu1 }
 0x105   : > { %1710 = vtanh.f32 %v1003_v5  ;;  %v1487_v9 = vadd.f32 %v1486_v8, %v1485_v4  ;;  %v1376_v10 = vpop.f32.mrf.mxu0 }
 0x106   : > { %v1705_v11 = vpop.eup %1704  ;;  %v1488_v12 = vpop.f32.mrf.mxu1 }
 0x107   : > { %1146 = vst [vmem:[%s1971_s30 + $0x8] sm:$0xff] %v1705_v11  ;;  %v1006_v13 = vadd.f32 %v1487_v9, %v1375_v7  ;;  %v1377_v14 = vpop.f32.mrf.mxu0 }
 0x108   : > { %v1378_v15 = vadd.f32 %v1377_v14, %v1376_v10  ;;  %v1489_v16 = vpop.f32.mrf.mxu1 }
 0x109   : > { %1712 = vtanh.f32 %v1006_v13  ;;  %v1490_v17 = vadd.f32 %v1489_v16, %v1488_v12  ;;  %v1379_v18 = vpop.f32.mrf.mxu0 }
 0x10a   : > { %v1707_v19 = vpop.eup %1706  ;;  %v1491_v20 = vpop.f32.mrf.mxu1 }
 0x10b   : > { %1147 = vst [vmem:[%s1971_s30 + $0x10] sm:$0xff] %v1707_v19  ;;  %v1011_v21 = vadd.f32 %v1490_v17, %v1378_v15  ;;  %v1380_v22 = vpop.f32.mrf.mxu0 }
 0x10c   : > { %v1381_v23 = vadd.f32 %v1380_v22, %v1379_v18  ;;  %v1492_v24 = vpop.f32.mrf.mxu1 }
 0x10d   : > { %1714 = vtanh.f32 %v1011_v21  ;;  %v1493_v25 = vadd.f32 %v1492_v24, %v1491_v20  ;;  %v1382_v26 = vpop.f32.mrf.mxu0 }
 0x10e   : > { %v1709_v27 = vpop.eup %1708  ;;  %v1494_v28 = vpop.f32.mrf.mxu1 }
 0x10f   : > { %1148 = vst [vmem:[%s1971_s30 + $0x18] sm:$0xff] %v1709_v27  ;;  %v1014_v29 = vadd.f32 %v1493_v25, %v1381_v23  ;;  %v1383_v30 = vpop.f32.mrf.mxu0 }
 0x110   : > { %v1384_v31 = vadd.f32 %v1383_v30, %v1382_v26  ;;  %v1495_v32 = vpop.f32.mrf.mxu1 }
 0x111   : > { %1716 = vtanh.f32 %v1014_v29  ;;  %v1496_v33 = vadd.f32 %v1495_v32, %v1494_v28  ;;  %v1385_v34 = vpop.f32.mrf.mxu0 }
 0x112   : > { %v1711_v35 = vpop.eup %1710  ;;  %v1497_v36 = vpop.f32.mrf.mxu1 }
 0x113   : > { %1149 = vst [vmem:[%s1971_s30 + $0x20] sm:$0xff] %v1711_v35  ;;  %v1019_v37 = vadd.f32 %v1496_v33, %v1384_v31  ;;  %v1386_v38 = vpop.f32.mrf.mxu0 }
 0x114   : > { %v1387_v39 = vadd.f32 %v1386_v38, %v1385_v34  ;;  %v1498_v40 = vpop.f32.mrf.mxu1 }
 0x115   : > { %1718 = vtanh.f32 %v1019_v37  ;;  %v1499_v41 = vadd.f32 %v1498_v40, %v1497_v36  ;;  %v1388_v42 = vpop.f32.mrf.mxu0 }
 0x116   : > { %v1713_v43 = vpop.eup %1712  ;;  %v1500_v44 = vpop.f32.mrf.mxu1 }
 0x117   : > { %1150 = vst [vmem:[%s1971_s30 + $0x28] sm:$0xff] %v1713_v43  ;;  %v1022_v45 = vadd.f32 %v1499_v41, %v1387_v39  ;;  %v1389_v46 = vpop.f32.mrf.mxu0 }
 0x118   : > { %v1390_v47 = vadd.f32 %v1389_v46, %v1388_v42  ;;  %v1501_v48 = vpop.f32.mrf.mxu1 }
 0x119   : > { %1720 = vtanh.f32 %v1022_v45  ;;  %v1502_v49 = vadd.f32 %v1501_v48, %v1500_v44  ;;  %v1391_v50 = vpop.f32.mrf.mxu0 }
 0x11a   : > { %v1715_v51 = vpop.eup %1714  ;;  %v1503_v52 = vpop.f32.mrf.mxu1 }
 0x11b   : > { %1151 = vst [vmem:[%s1971_s30 + $0x30] sm:$0xff] %v1715_v51  ;;  %v1027_v53 = vadd.f32 %v1502_v49, %v1390_v47  ;;  %v1392_v54 = vpop.f32.mrf.mxu0 }
 0x11c   : > { %v1393_v55 = vadd.f32 %v1392_v54, %v1391_v50  ;;  %v1504_v56 = vpop.f32.mrf.mxu1 }
 0x11d   : > { %1722 = vtanh.f32 %v1027_v53  ;;  %v1505_v57 = vadd.f32 %v1504_v56, %v1503_v52  ;;  %v1394_v58 = vpop.f32.mrf.mxu0 }
 0x11e   : > { %v1717_v59 = vpop.eup %1716  ;;  %v1506_v60 = vpop.f32.mrf.mxu1 }
 0x11f   : > { %1152 = vst [vmem:[%s1971_s30 + $0x38] sm:$0xff] %v1717_v59  ;;  %v1030_v61 = vadd.f32 %v1505_v57, %v1393_v55  ;;  %v1395_v62 = vpop.f32.mrf.mxu0 }
 0x120   : > { %v1396_v63 = vadd.f32 %v1395_v62, %v1394_v58  ;;  %v1507_v0 = vpop.f32.mrf.mxu1 }
 0x121   : > { %1724 = vtanh.f32 %v1030_v61  ;;  %v1508_v1 = vadd.f32 %v1507_v0, %v1506_v60  ;;  %v1397_v2 = vpop.f32.mrf.mxu0 }
 0x122   : > { %v1719_v3 = vpop.eup %1718  ;;  %v1509_v4 = vpop.f32.mrf.mxu1 }
 0x123   : > { %1153 = vst [vmem:[%s1971_s30 + $0x40] sm:$0xff] %v1719_v3  ;;  %v1035_v5 = vadd.f32 %v1508_v1, %v1396_v63  ;;  %v1398_v6 = vpop.f32.mrf.mxu0 }
 0x124   : > { %v1399_v7 = vadd.f32 %v1398_v6, %v1397_v2  ;;  %v1510_v8 = vpop.f32.mrf.mxu1 }
 0x125   : > { %1726 = vtanh.f32 %v1035_v5  ;;  %v1511_v9 = vadd.f32 %v1510_v8, %v1509_v4  ;;  %v1400_v10 = vpop.f32.mrf.mxu0 }
 0x126   : > { %v1721_v11 = vpop.eup %1720  ;;  %v1512_v12 = vpop.f32.mrf.mxu1 }
 0x127   : > { %1154 = vst [vmem:[%s1971_s30 + $0x48] sm:$0xff] %v1721_v11  ;;  %v1038_v13 = vadd.f32 %v1511_v9, %v1399_v7  ;;  %v1401_v14 = vpop.f32.mrf.mxu0 }
 0x128   : > { %v1402_v15 = vadd.f32 %v1401_v14, %v1400_v10  ;;  %v1513_v16 = vpop.f32.mrf.mxu1 }
 0x129   : > { %1728 = vtanh.f32 %v1038_v13  ;;  %v1514_v17 = vadd.f32 %v1513_v16, %v1512_v12  ;;  %v1403_v18 = vpop.f32.mrf.mxu0 }
 0x12a   : > { %v1723_v19 = vpop.eup %1722  ;;  %v1515_v20 = vpop.f32.mrf.mxu1 }
 0x12b   : > { %1155 = vst [vmem:[%s1971_s30 + $0x50] sm:$0xff] %v1723_v19  ;;  %v1043_v21 = vadd.f32 %v1514_v17, %v1402_v15  ;;  %v1404_v22 = vpop.f32.mrf.mxu0 }
 0x12c   : > { %v1405_v23 = vadd.f32 %v1404_v22, %v1403_v18  ;;  %v1516_v24 = vpop.f32.mrf.mxu1 }
 0x12d   : > { %1730 = vtanh.f32 %v1043_v21  ;;  %v1517_v25 = vadd.f32 %v1516_v24, %v1515_v20  ;;  %v1406_v26 = vpop.f32.mrf.mxu0 }
 0x12e   : > { %v1725_v27 = vpop.eup %1724  ;;  %v1518_v28 = vpop.f32.mrf.mxu1 }
 0x12f   : > { %1156 = vst [vmem:[%s1971_s30 + $0x58] sm:$0xff] %v1725_v27  ;;  %v1046_v29 = vadd.f32 %v1517_v25, %v1405_v23  ;;  %v1407_v30 = vpop.f32.mrf.mxu0 }
 0x130   : > { %v1408_v31 = vadd.f32 %v1407_v30, %v1406_v26  ;;  %v1519_v32 = vpop.f32.mrf.mxu1 }
 0x131   : > { %1732 = vtanh.f32 %v1046_v29  ;;  %v1520_v33 = vadd.f32 %v1519_v32, %v1518_v28  ;;  %v1409_v34 = vpop.f32.mrf.mxu0 }
 0x132   : > { %v1727_v35 = vpop.eup %1726  ;;  %v1521_v36 = vpop.f32.mrf.mxu1 }
 0x133   : > { %1157 = vst [vmem:[%s1971_s30 + $0x60] sm:$0xff] %v1727_v35  ;;  %v1051_v37 = vadd.f32 %v1520_v33, %v1408_v31  ;;  %v1410_v38 = vpop.f32.mrf.mxu0 }
 0x134   : > { %v1411_v39 = vadd.f32 %v1410_v38, %v1409_v34  ;;  %v1522_v40 = vpop.f32.mrf.mxu1 }
 0x135   : > { %1734 = vtanh.f32 %v1051_v37  ;;  %v1523_v41 = vadd.f32 %v1522_v40, %v1521_v36  ;;  %v1412_v42 = vpop.f32.mrf.mxu0 }
 0x136   : > { %v1729_v43 = vpop.eup %1728  ;;  %v1524_v44 = vpop.f32.mrf.mxu1 }
 0x137   : > { %1158 = vst [vmem:[%s1971_s30 + $0x68] sm:$0xff] %v1729_v43  ;;  %v1054_v45 = vadd.f32 %v1523_v41, %v1411_v39  ;;  %v1413_v46 = vpop.f32.mrf.mxu0 }
 0x138   : > { %v1414_v47 = vadd.f32 %v1413_v46, %v1412_v42  ;;  %v1525_v48 = vpop.f32.mrf.mxu1 }
 0x139   : > { %1736 = vtanh.f32 %v1054_v45  ;;  %v1526_v49 = vadd.f32 %v1525_v48, %v1524_v44  ;;  %v1415_v50 = vpop.f32.mrf.mxu0 }
 0x13a   : > { %v1731_v51 = vpop.eup %1730  ;;  %v1527_v52 = vpop.f32.mrf.mxu1 }
 0x13b   : > { %1159 = vst [vmem:[%s1971_s30 + $0x70] sm:$0xff] %v1731_v51  ;;  %v1059_v53 = vadd.f32 %v1526_v49, %v1414_v47  ;;  %v1416_v54 = vpop.f32.mrf.mxu0 }
 0x13c   : > { %v1417_v55 = vadd.f32 %v1416_v54, %v1415_v50  ;;  %v1528_v56 = vpop.f32.mrf.mxu1 }
 0x13d   : > { %1738 = vtanh.f32 %v1059_v53  ;;  %v1529_v57 = vadd.f32 %v1528_v56, %v1527_v52  ;;  %v1418_v58 = vpop.f32.mrf.mxu0 }
 0x13e   : > { %v1733_v59 = vpop.eup %1732  ;;  %v1530_v60 = vpop.f32.mrf.mxu1 }
 0x13f   : > { %1160 = vst [vmem:[%s1971_s30 + $0x78] sm:$0xff] %v1733_v59  ;;  %v1062_v61 = vadd.f32 %v1529_v57, %v1417_v55  ;;  %v1419_v62 = vpop.f32.mrf.mxu0 }
 0x140   : > { %v1420_v63 = vadd.f32 %v1419_v62, %v1418_v58  ;;  %v1531_v0 = vpop.f32.mrf.mxu1 }
 0x141   : > { %1740 = vtanh.f32 %v1062_v61  ;;  %v1532_v1 = vadd.f32 %v1531_v0, %v1530_v60  ;;  %v1421_v2 = vpop.f32.mrf.mxu0 }
 0x142   : > { %v1735_v3 = vpop.eup %1734  ;;  %v1533_v4 = vpop.f32.mrf.mxu1 }
 0x143   : > { %1161 = vst [vmem:[%s1971_s30 + $0x80] sm:$0xff] %v1735_v3  ;;  %v1067_v5 = vadd.f32 %v1532_v1, %v1420_v63  ;;  %v1422_v6 = vpop.f32.mrf.mxu0 }
 0x144   : > { %v1423_v7 = vadd.f32 %v1422_v6, %v1421_v2  ;;  %v1534_v8 = vpop.f32.mrf.mxu1 }
 0x145   : > { %1742 = vtanh.f32 %v1067_v5  ;;  %v1535_v9 = vadd.f32 %v1534_v8, %v1533_v4  ;;  %v1424_v10 = vpop.f32.mrf.mxu0 }
 0x146   : > { %v1737_v11 = vpop.eup %1736  ;;  %v1536_v12 = vpop.f32.mrf.mxu1 }
 0x147   : > { %1162 = vst [vmem:[%s1971_s30 + $0x88] sm:$0xff] %v1737_v11  ;;  %v1070_v13 = vadd.f32 %v1535_v9, %v1423_v7  ;;  %v1425_v14 = vpop.f32.mrf.mxu0 }
 0x148   : > { %v1426_v15 = vadd.f32 %v1425_v14, %v1424_v10  ;;  %v1537_v16 = vpop.f32.mrf.mxu1 }
 0x149   : > { %1744 = vtanh.f32 %v1070_v13  ;;  %v1538_v17 = vadd.f32 %v1537_v16, %v1536_v12  ;;  %v1427_v18 = vpop.f32.mrf.mxu0 }
 0x14a   : > { %v1739_v19 = vpop.eup %1738  ;;  %v1539_v20 = vpop.f32.mrf.mxu1 }
 0x14b   : > { %1163 = vst [vmem:[%s1971_s30 + $0x90] sm:$0xff] %v1739_v19  ;;  %v1075_v21 = vadd.f32 %v1538_v17, %v1426_v15  ;;  %v1428_v22 = vpop.f32.mrf.mxu0 }
 0x14c   : > { %v1429_v23 = vadd.f32 %v1428_v22, %v1427_v18  ;;  %v1540_v24 = vpop.f32.mrf.mxu1 }
 0x14d   : > { %1746 = vtanh.f32 %v1075_v21  ;;  %v1541_v25 = vadd.f32 %v1540_v24, %v1539_v20  ;;  %v1430_v26 = vpop.f32.mrf.mxu0 }
 0x14e   : > { %v1741_v27 = vpop.eup %1740  ;;  %v1542_v28 = vpop.f32.mrf.mxu1 }
 0x14f   : > { %1164 = vst [vmem:[%s1971_s30 + $0x98] sm:$0xff] %v1741_v27  ;;  %v1078_v29 = vadd.f32 %v1541_v25, %v1429_v23  ;;  %v1431_v30 = vpop.f32.mrf.mxu0 }
 0x150   : > { %v1432_v31 = vadd.f32 %v1431_v30, %v1430_v26  ;;  %v1543_v32 = vpop.f32.mrf.mxu1 }
 0x151   : > { %1748 = vtanh.f32 %v1078_v29  ;;  %v1544_v33 = vadd.f32 %v1543_v32, %v1542_v28  ;;  %v1433_v34 = vpop.f32.mrf.mxu0 }
 0x152   : > { %v1743_v35 = vpop.eup %1742  ;;  %v1545_v36 = vpop.f32.mrf.mxu1 }
 0x153   : > { %1165 = vst [vmem:[%s1971_s30 + $0xa0] sm:$0xff] %v1743_v35  ;;  %v1083_v37 = vadd.f32 %v1544_v33, %v1432_v31  ;;  %v1434_v38 = vpop.f32.mrf.mxu0 }
 0x154   : > { %v1435_v39 = vadd.f32 %v1434_v38, %v1433_v34  ;;  %v1546_v40 = vpop.f32.mrf.mxu1 }
 0x155   : > { %1750 = vtanh.f32 %v1083_v37  ;;  %v1547_v41 = vadd.f32 %v1546_v40, %v1545_v36  ;;  %v1436_v42 = vpop.f32.mrf.mxu0 }
 0x156   : > { %v1745_v43 = vpop.eup %1744  ;;  %v1548_v44 = vpop.f32.mrf.mxu1 }
 0x157   : > { %1166 = vst [vmem:[%s1971_s30 + $0xa8] sm:$0xff] %v1745_v43  ;;  %v1086_v45 = vadd.f32 %v1547_v41, %v1435_v39  ;;  %v1437_v46 = vpop.f32.mrf.mxu0 }
 0x158   : > { %v1438_v47 = vadd.f32 %v1437_v46, %v1436_v42  ;;  %v1549_v48 = vpop.f32.mrf.mxu1 }
 0x159   : > { %1752 = vtanh.f32 %v1086_v45  ;;  %v1550_v49 = vadd.f32 %v1549_v48, %v1548_v44  ;;  %v1439_v50 = vpop.f32.mrf.mxu0 }
 0x15a   : > { %v1747_v51 = vpop.eup %1746  ;;  %v1551_v52 = vpop.f32.mrf.mxu1 }
 0x15b   : > { %1167 = vst [vmem:[%s1971_s30 + $0xb0] sm:$0xff] %v1747_v51  ;;  %v1091_v53 = vadd.f32 %v1550_v49, %v1438_v47  ;;  %v1440_v54 = vpop.f32.mrf.mxu0 }
 0x15c   : > { %v1441_v55 = vadd.f32 %v1440_v54, %v1439_v50  ;;  %v1552_v56 = vpop.f32.mrf.mxu1 }
 0x15d   : > { %1754 = vtanh.f32 %v1091_v53  ;;  %v1553_v57 = vadd.f32 %v1552_v56, %v1551_v52  ;;  %v1442_v58 = vpop.f32.mrf.mxu0 }
 0x15e   : > { %v1749_v59 = vpop.eup %1748  ;;  %v1554_v60 = vpop.f32.mrf.mxu1 }
 0x15f   : > { %1168 = vst [vmem:[%s1971_s30 + $0xb8] sm:$0xff] %v1749_v59  ;;  %v1094_v61 = vadd.f32 %v1553_v57, %v1441_v55  ;;  %v1443_v62 = vpop.f32.mrf.mxu0 }
 0x160   : > { %v1444_v63 = vadd.f32 %v1443_v62, %v1442_v58  ;;  %v1555_v0 = vpop.f32.mrf.mxu1 }
 0x161   : > { %1756 = vtanh.f32 %v1094_v61  ;;  %v1556_v1 = vadd.f32 %v1555_v0, %v1554_v60  ;;  %v1445_v2 = vpop.f32.mrf.mxu0 }
 0x162   : > { %v1751_v3 = vpop.eup %1750  ;;  %v1557_v4 = vpop.f32.mrf.mxu1 }
 0x163   : > { %1169 = vst [vmem:[%s1971_s30 + $0xc0] sm:$0xff] %v1751_v3  ;;  %v1099_v5 = vadd.f32 %v1556_v1, %v1444_v63  ;;  %v1446_v6 = vpop.f32.mrf.mxu0 }
 0x164   : > { %v1447_v7 = vadd.f32 %v1446_v6, %v1445_v2  ;;  %v1558_v8 = vpop.f32.mrf.mxu1 }
 0x165   : > { %1758 = vtanh.f32 %v1099_v5  ;;  %v1559_v9 = vadd.f32 %v1558_v8, %v1557_v4  ;;  %v1448_v10 = vpop.f32.mrf.mxu0 }
 0x166   : > { %v1753_v11 = vpop.eup %1752  ;;  %v1560_v12 = vpop.f32.mrf.mxu1 }
 0x167   : > { %1170 = vst [vmem:[%s1971_s30 + $0xc8] sm:$0xff] %v1753_v11  ;;  %v1102_v13 = vadd.f32 %v1559_v9, %v1447_v7  ;;  %v1449_v14 = vpop.f32.mrf.mxu0 }
 0x168   : > { %v1450_v15 = vadd.f32 %v1449_v14, %v1448_v10  ;;  %v1561_v16 = vpop.f32.mrf.mxu1 }
 0x169   : > { %1760 = vtanh.f32 %v1102_v13  ;;  %v1562_v17 = vadd.f32 %v1561_v16, %v1560_v12  ;;  %v1451_v18 = vpop.f32.mrf.mxu0 }
 0x16a   : > { %v1755_v19 = vpop.eup %1754  ;;  %v1563_v20 = vpop.f32.mrf.mxu1 }
 0x16b   : > { %1171 = vst [vmem:[%s1971_s30 + $0xd0] sm:$0xff] %v1755_v19  ;;  %v1107_v21 = vadd.f32 %v1562_v17, %v1450_v15  ;;  %v1452_v22 = vpop.f32.mrf.mxu0 }
 0x16c   : > { %v1453_v23 = vadd.f32 %v1452_v22, %v1451_v18  ;;  %v1564_v24 = vpop.f32.mrf.mxu1 }
 0x16d   : > { %1762 = vtanh.f32 %v1107_v21  ;;  %v1565_v25 = vadd.f32 %v1564_v24, %v1563_v20 }
 0x16e   : > { %v1757_v26 = vpop.eup %1756 }
 0x16f   : > { %1172 = vst [vmem:[%s1971_s30 + $0xd8] sm:$0xff] %v1757_v26  ;;  %v1110_v27 = vadd.f32 %v1565_v25, %v1453_v23 }
 0x171   : > { %1764 = vtanh.f32 %v1110_v27 }
 0x172   : > { %v1759_v28 = vpop.eup %1758 }
 0x173   : > { %1173 = vst [vmem:[%s1971_s30 + $0xe0] sm:$0xff] %v1759_v28 }
 0x176   : > { %v1761_v29 = vpop.eup %1760 }
 0x177   : > { %1174 = vst [vmem:[%s1971_s30 + $0xe8] sm:$0xff] %v1761_v29 }
 0x17a   : > { %v1763_v30 = vpop.eup %1762 }
 0x17b   : > { %1175 = vst [vmem:[%s1971_s30 + $0xf0] sm:$0xff] %v1763_v30 }
 0x17e   : > { %v1765_v31 = vpop.eup %1764 }
 0x17f   : > { %1176 = vst [vmem:[%s1971_s30 + $0xf8] sm:$0xff] %v1765_v31 }
 0x180 PF: > { %s12_s9 = sadd.s32 1, %s1772_s9  }
 0x181   : > { %p9_p4 = scmp.ge.s32.totalorder %s12_s9, 10  }
 0x183   :  { %11 = sbr.rel (!%p9_p4) target bundleno = 1 (0x1), region = 58 }

</bundles_post_ra>
